<compile_context>
chip_gen: v6e
topology: v6e:2x2x1
jax: 0.10.0
libtpu: 0.0.40
codegen_flags: <defaults>
</compile_context>

<pallas_src>
import jax
import jax.numpy as jnp
from jax.experimental import pallas as pl
from jax.experimental.pallas import tpu as pltpu

_VMEM_LIMIT = 48 * 1024 * 1024   # v7x-safe; raise to 64-96 MiB on v5e/v6e.


# ----------------------------------------------------------------------------
# In-kernel helpers
# ----------------------------------------------------------------------------
def _zero_halo(pad_ref, H, W, C):
    """Zero only the 1-pixel border of a (H+2, W+2, C) bf16 scratch."""
    z_row = jnp.zeros((1, W + 2, C), jnp.bfloat16)
    z_col = jnp.zeros((H, 1, C), jnp.bfloat16)
    pad_ref[0:1, :, :] = z_row
    pad_ref[H + 1:H + 2, :, :] = z_row
    pad_ref[1:H + 1, 0:1, :] = z_col
    pad_ref[1:H + 1, W + 1:W + 2, :] = z_col


def _conv3x3(pad_ref, w_ref, H, W, Cin, Cout):
    """3x3 'same' conv from a zero-padded VMEM ref.  Returns (H*W, Cout) f32.

    w_ref rows are ordered (dy*3+dx)*Cin + cin (im2col-flattened taps).
    """
    if Cin % 128 == 0:
        # Lane-aligned channels: a single deep MXU dot (K = 9*Cin).
        patch = jnp.concatenate(
            [pad_ref[dy:dy + H, dx:dx + W, :].reshape(H * W, Cin)
             for dy in range(3) for dx in range(3)], axis=-1)
        return jnp.dot(patch, w_ref[...], preferred_element_type=jnp.float32)
    # Narrow channels (2 / 64): 9 accumulating dots of K=Cin avoid the
    # lane-misaligned concat and the 9x patch materialization.
    acc = jnp.zeros((H * W, Cout), jnp.float32)
    t = 0
    for dy in range(3):
        for dx in range(3):
            lhs = pad_ref[dy:dy + H, dx:dx + W, :].reshape(H * W, Cin)
            acc = acc + jnp.dot(lhs, w_ref[t * Cin:(t + 1) * Cin, :],
                                preferred_element_type=jnp.float32)
            t += 1
    return acc


# ----------------------------------------------------------------------------
# Fused conv-pair kernel:
#   mid = bn_a( relu( conv_a(x) ) )
#   out = bn_b( [maxpool2x2]( relu( conv_b(mid) ) ) )
# (bn_b may be identity via scale=1, shift=0 -- used for conv8.)
# ----------------------------------------------------------------------------
def _make_pair_kernel(H, W, Cin, Cmid, Cout, pool):
    Ho, Wo = (H // 2, W // 2) if pool else (H, W)

    def kernel(x_ref, wa_ref, ba_ref, sa_ref, sha_ref,
               wb_ref, bb_ref, sb_ref, shb_ref, o_ref,
               xpad_ref, mpad_ref):
        # Stage the zero-padded input; only halo strips are zeroed, the
        # interior is overwritten every grid step.
        _zero_halo(xpad_ref, H, W, Cin)
        xpad_ref[1:H + 1, 1:W + 1, :] = x_ref[0]

        # conv_a -> bias -> ReLU -> bn_a
        mid = _conv3x3(xpad_ref, wa_ref, H, W, Cin, Cmid)
        mid = jnp.maximum(mid + ba_ref[...], 0.0)
        mid = mid * sa_ref[...] + sha_ref[...]

        # Stage the padded intermediate for conv_b (stays entirely in VMEM).
        _zero_halo(mpad_ref, H, W, Cmid)
        mpad_ref[1:H + 1, 1:W + 1, :] = (
            mid.reshape(H, W, Cmid).astype(jnp.bfloat16))

        # conv_b -> bias -> ReLU -> [2x2 maxpool] -> bn_b
        acc = _conv3x3(mpad_ref, wb_ref, H, W, Cmid, Cout)
        acc = jnp.maximum(acc + bb_ref[...], 0.0)
        if pool:
            acc = jnp.max(acc.reshape(H * W // 2, 2, Cout), axis=1)       # pool W
            acc = jnp.max(acc.reshape(H // 2, 2, W // 2, Cout), axis=1)   # pool H
            acc = acc.reshape(Ho * Wo, Cout)
        acc = acc * sb_ref[...] + shb_ref[...]
        o_ref[...] = acc.reshape(1, Ho, Wo, Cout).astype(o_ref.dtype)

    return kernel


def conv_pair(x_nhwc, la, lb, *, pool):
    N, H, W, Cin = x_nhwc.shape
    Cmid = la["w"].shape[-1]
    Cout = lb["w"].shape[-1]
    Ho, Wo = (H // 2, W // 2) if pool else (H, W)

    kernel = _make_pair_kernel(H, W, Cin, Cmid, Cout, pool)
    full = lambda n: (0, 0)
    return pl.pallas_call(
        kernel,
        out_shape=jax.ShapeDtypeStruct((N, Ho, Wo, Cout), jnp.bfloat16),
        grid=(N,),
        in_specs=[
            pl.BlockSpec((1, H, W, Cin), lambda n: (n, 0, 0, 0)),
            pl.BlockSpec((9 * Cin, Cmid), full),
            pl.BlockSpec((1, Cmid), full),
            pl.BlockSpec((1, Cmid), full),
            pl.BlockSpec((1, Cmid), full),
            pl.BlockSpec((9 * Cmid, Cout), full),
            pl.BlockSpec((1, Cout), full),
            pl.BlockSpec((1, Cout), full),
            pl.BlockSpec((1, Cout), full),
        ],
        out_specs=pl.BlockSpec((1, Ho, Wo, Cout), lambda n: (n, 0, 0, 0)),
        scratch_shapes=[pltpu.VMEM((H + 2, W + 2, Cin), jnp.bfloat16),
                        pltpu.VMEM((H + 2, W + 2, Cmid), jnp.bfloat16)],
        compiler_params=pltpu.CompilerParams(
            dimension_semantics=("parallel",),
            vmem_limit_bytes=_VMEM_LIMIT),
    )(x_nhwc, la["w"], la["b"], la["scale"], la["shift"],
      lb["w"], lb["b"], lb["scale"], lb["shift"])


# ----------------------------------------------------------------------------
# FC head: bn8 -> fc1 (K-tiled over feat) -> relu -> bn9 -> fc2 -> tanh
# (w1 / bn8 are pre-permuted to NHWC-flatten order at init, so the conv output
#  feeds the head directly without a runtime transpose.)
# ----------------------------------------------------------------------------
def _head_kernel(x_ref, s8_ref, sh8_ref, w1_ref, b1_ref,
                 s9_ref, sh9_ref, w2_ref, b2_ref, o_ref, acc_ref):
    k = pl.program_id(0)

    @pl.when(k == 0)
    def _():
        acc_ref[...] = jnp.zeros_like(acc_ref)

    # bn8 affine on this K-slice (drop1 = identity in eval mode), then a bf16
    # MXU dot with the matching K-block of w1; accumulate in f32.
    xb = x_ref[...].astype(jnp.float32) * s8_ref[...] + sh8_ref[...]
    acc_ref[...] += jnp.dot(xb.astype(jnp.bfloat16), w1_ref[...],
                            preferred_element_type=jnp.float32)

    @pl.when(k == pl.num_programs(0) - 1)
    def _():
        h = jnp.maximum(acc_ref[...] + b1_ref[...], 0.0)          # relu(fc1)
        h = h * s9_ref[...] + sh9_ref[...]                        # bn9 (drop2=id)
        y = jnp.dot(h.astype(jnp.bfloat16), w2_ref[...],
                    preferred_element_type=jnp.float32) + b2_ref[...]
        o_ref[...] = jnp.tanh(y)                                  # fc2 -> tanh


def _pick_k_tile(feat, cap=4096):
    """Largest multiple of 128 <= cap that divides feat."""
    if feat % 128 != 0:
        return feat            # full-K single step (padded MXU pass; rare)
    tk = min(feat, cap)
    tk -= tk % 128
    while feat % tk:
        tk -= 128
    return tk


def head(x_flat, p):
    N, feat = x_flat.shape
    TK = _pick_k_tile(feat)
    full = lambda k: (0, 0)
    return pl.pallas_call(
        _head_kernel,
        out_shape=jax.ShapeDtypeStruct((N, 8), jnp.float32),
        grid=(feat // TK,),
        in_specs=[
            pl.BlockSpec((N, TK), lambda k: (0, k)),
            pl.BlockSpec((1, TK), lambda k: (0, k)),
            pl.BlockSpec((1, TK), lambda k: (0, k)),
            pl.BlockSpec((TK, 1024), lambda k: (k, 0)),
            pl.BlockSpec((1, 1024), full),
            pl.BlockSpec((1, 1024), full),
            pl.BlockSpec((1, 1024), full),
            pl.BlockSpec((1024, 8), full),
            pl.BlockSpec((1, 8), full),
        ],
        out_specs=pl.BlockSpec((N, 8), lambda k: (0, 0)),
        scratch_shapes=[pltpu.VMEM((N, 1024), jnp.float32)],
        compiler_params=pltpu.CompilerParams(
            dimension_semantics=("arbitrary",),
            vmem_limit_bytes=_VMEM_LIMIT),
    )(x_flat, p["s8"], p["sh8"], p["w1"], p["b1"],
      p["s9"], p["sh9"], p["w2"], p["b2"])


# ----------------------------------------------------------------------------
# Parameter initialization (deterministic, synthetic)
# ----------------------------------------------------------------------------
_CONV_CFG = [  # (Cin, Cout, has_bn)
    (2, 64, True),      # conv1 / bn1
    (64, 64, True),     # conv2 / pool1 / bn2
    (64, 64, True),     # conv3 / bn3
    (64, 64, True),     # conv4 / pool2 / bn4
    (64, 128, True),    # conv5 / bn5
    (128, 128, True),   # conv6 / pool3 / bn6
    (128, 128, True),   # conv7 / bn7
    (128, 128, False),  # conv8: relu only, no BN
]
_PAIR_POOL = [True, True, True, False]   # pool applies to the 2nd conv of each pair


def _bn_affine(keys, c):
    gamma = 1.0 + 0.1 * jax.random.normal(keys[0], (c,), jnp.float32)
    beta = 0.1 * jax.random.normal(keys[1], (c,), jnp.float32)
    mean = 0.05 * jax.random.normal(keys[2], (c,), jnp.float32)
    var = 1.0 + 0.1 * jnp.abs(jax.random.normal(keys[3], (c,), jnp.float32))
    scale = gamma / jnp.sqrt(var + 1e-5)
    shift = beta - mean * scale
    return scale.reshape(1, c), shift.reshape(1, c)


def init_params(key, input_width, input_height):
    width_factor = int(input_width / 128.0 * 16)
    height_factor = int(input_height / 128.0 * 16)
    feat = width_factor * height_factor * 128

    keys = iter(jax.random.split(key, 128))
    conv_layers = []
    for (cin, cout, has_bn) in _CONV_CFG:
        # PyTorch conv weight (Cout, Cin, 3, 3) -> im2col (9*Cin, Cout) with
        # row index = (dy*3+dx)*Cin + cin, matching the kernel's tap order.
        w = jax.random.normal(next(keys), (cout, cin, 3, 3), jnp.float32)
        w = w * (2.0 / (cin * 9)) ** 0.5 * 0.5
        b = 0.01 * jax.random.normal(next(keys), (cout,), jnp.float32)
        w_mat = jnp.transpose(w, (2, 3, 1, 0)).reshape(9 * cin, cout)
        if has_bn:
            scale, shift = _bn_affine([next(keys) for _ in range(4)], cout)
        else:
            scale = jnp.ones((1, cout), jnp.float32)
            shift = jnp.zeros((1, cout), jnp.float32)
        conv_layers.append(dict(w=w_mat.astype(jnp.bfloat16),
                                b=b.reshape(1, cout),
                                scale=scale, shift=shift))

    pairs = [(conv_layers[2 * i], conv_layers[2 * i + 1], _PAIR_POOL[i])
             for i in range(4)]

    # ---- Head.  Permute w1 rows + bn8 vectors from the PyTorch NCHW-flatten
    # order to the conv kernels' NHWC-flatten order (static, exact). ----
    s8, sh8 = _bn_affine([next(keys) for _ in range(4)], feat)
    w1 = jax.random.normal(next(keys), (1024, feat), jnp.float32) / jnp.sqrt(feat)
    b1 = 0.01 * jax.random.normal(next(keys), (1024,), jnp.float32)
    s9, sh9 = _bn_affine([next(keys) for _ in range(4)], 1024)
    w2 = jax.random.normal(next(keys), (8, 1024), jnp.float32) / jnp.sqrt(1024.0)
    b2 = 0.01 * jax.random.normal(next(keys), (8,), jnp.float32)

    wf, hf = width_factor, height_factor
    j = jnp.arange(feat)
    c = j % 128
    w_ = (j // 128) % wf
    h = j // (128 * wf)
    nchw_idx = c * (hf * wf) + h * wf + w_        # NHWC pos j <- NCHW pos nchw_idx[j]

    head_p = dict(s8=s8[:, nchw_idx], sh8=sh8[:, nchw_idx],
                  w1=jnp.transpose(w1)[nchw_idx, :].astype(jnp.bfloat16),
                  b1=b1.reshape(1, 1024),
                  s9=s9, sh9=sh9,
                  w2=jnp.transpose(w2).astype(jnp.bfloat16),
                  b2=b2.reshape(1, 8))
    return dict(pairs=pairs, head=head_p, feat=feat)


# ----------------------------------------------------------------------------
# Full forward pass
# ----------------------------------------------------------------------------
def homography_net(params, x_nchw):
    # NCHW (PyTorch) -> NHWC bf16 once at the boundary.
    x = jnp.transpose(x_nchw, (0, 2, 3, 1)).astype(jnp.bfloat16)
    for (la, lb, pool) in params["pairs"]:
        x = conv_pair(x, la, lb, pool=pool)
    # NHWC flatten; w1 / bn8 were permuted at init so no runtime transpose.
    x = x.reshape(x.shape[0], params["feat"])
    return head(x, params["head"])


# ----------------------------------------------------------------------------
if __name__ == "__main__":
    key = jax.random.PRNGKey(0)
    k_x, k_p = jax.random.split(key)

    N, C, H, W = 2, 2, 16, 16          # conv1 expects 2 input channels
    x = jax.random.normal(k_x, (N, C, H, W), jnp.float32)
    params = init_params(k_p, input_width=W, input_height=H)

    out = homography_net(params, x)
    out = jax.block_until_ready(out)

    assert out.shape == (N, 8), out.shape
    assert bool(jnp.all(jnp.isfinite(out)))
    assert bool(jnp.all(jnp.abs(out) <= 1.0))   # tanh range
    print("KERNEL_OK")
</pallas_src>

<mosaic_0001>
module attributes {stable_mosaic.version = 11 : i64} {
  func.func @kernel(%arg0: i32, %arg1: memref<1x16x16x2xbf16, #tpu.memory_space<vmem>>, %arg2: memref<18x64xbf16, #tpu.memory_space<vmem>>, %arg3: memref<1x64xf32, #tpu.memory_space<vmem>>, %arg4: memref<1x64xf32, #tpu.memory_space<vmem>>, %arg5: memref<1x64xf32, #tpu.memory_space<vmem>>, %arg6: memref<576x64xbf16, #tpu.memory_space<vmem>>, %arg7: memref<1x64xf32, #tpu.memory_space<vmem>>, %arg8: memref<1x64xf32, #tpu.memory_space<vmem>>, %arg9: memref<1x64xf32, #tpu.memory_space<vmem>>, %arg10: memref<1x8x8x64xbf16, #tpu.memory_space<vmem>>, %arg11: memref<18x18x2xbf16, #tpu.memory_space<vmem>>, %arg12: memref<18x18x64xbf16, #tpu.memory_space<vmem>>) attributes {dimension_semantics = [#tpu.dimension_semantics<parallel>], iteration_bounds = array<i64: 2>, scalar_prefetch = 0 : i64, scratch_operands = 2 : i64, tpu.core_type = #tpu.core_type<tc>, window_params = [{transform_indices = @transform_0, window_bounds = array<i64: 1, 16, 16, 2>}, {pipeline_mode = #tpu.pipeline_mode<synchronous>, transform_indices = @transform_1, window_bounds = array<i64: 18, 64>}, {pipeline_mode = #tpu.pipeline_mode<synchronous>, transform_indices = @transform_2, window_bounds = array<i64: 1, 64>}, {pipeline_mode = #tpu.pipeline_mode<synchronous>, transform_indices = @transform_3, window_bounds = array<i64: 1, 64>}, {pipeline_mode = #tpu.pipeline_mode<synchronous>, transform_indices = @transform_4, window_bounds = array<i64: 1, 64>}, {pipeline_mode = #tpu.pipeline_mode<synchronous>, transform_indices = @transform_5, window_bounds = array<i64: 576, 64>}, {pipeline_mode = #tpu.pipeline_mode<synchronous>, transform_indices = @transform_6, window_bounds = array<i64: 1, 64>}, {pipeline_mode = #tpu.pipeline_mode<synchronous>, transform_indices = @transform_7, window_bounds = array<i64: 1, 64>}, {pipeline_mode = #tpu.pipeline_mode<synchronous>, transform_indices = @transform_8, window_bounds = array<i64: 1, 64>}, {transform_indices = @transform_9, window_bounds = array<i64: 1, 8, 8, 64>}]} {
    %cst = arith.constant 0.000000e+00 : bf16
    %0 = vector.broadcast %cst : bf16 to vector<1x18x2xbf16>
    %cst_0 = arith.constant 0.000000e+00 : bf16
    %1 = vector.broadcast %cst_0 : bf16 to vector<16x1x2xbf16>
    %c0 = arith.constant 0 : index
    %c0_1 = arith.constant 0 : index
    %c0_2 = arith.constant 0 : index
    %2 = vector.load %arg11[%c0, %c0_1, %c0_2] : memref<18x18x2xbf16, #tpu.memory_space<vmem>>, vector<1x18x2xbf16>
    tpu.vector_store %arg11[%c0, %c0_1, %c0_2], %0 {strides = array<i32>} : memref<18x18x2xbf16, #tpu.memory_space<vmem>>, vector<1x18x2xbf16>,
    %c17 = arith.constant 17 : index
    %c0_3 = arith.constant 0 : index
    %c0_4 = arith.constant 0 : index
    %3 = vector.load %arg11[%c17, %c0_3, %c0_4] : memref<18x18x2xbf16, #tpu.memory_space<vmem>>, vector<1x18x2xbf16>
    tpu.vector_store %arg11[%c17, %c0_3, %c0_4], %0 {strides = array<i32>} : memref<18x18x2xbf16, #tpu.memory_space<vmem>>, vector<1x18x2xbf16>,
    %c1 = arith.constant 1 : index
    %c0_5 = arith.constant 0 : index
    %c0_6 = arith.constant 0 : index
    %4 = vector.load %arg11[%c1, %c0_5, %c0_6] : memref<18x18x2xbf16, #tpu.memory_space<vmem>>, vector<16x1x2xbf16>
    tpu.vector_store %arg11[%c1, %c0_5, %c0_6], %1 {strides = array<i32>} : memref<18x18x2xbf16, #tpu.memory_space<vmem>>, vector<16x1x2xbf16>,
    %c1_7 = arith.constant 1 : index
    %c17_8 = arith.constant 17 : index
    %c0_9 = arith.constant 0 : index
    %5 = vector.load %arg11[%c1_7, %c17_8, %c0_9] : memref<18x18x2xbf16, #tpu.memory_space<vmem>>, vector<16x1x2xbf16>
    tpu.vector_store %arg11[%c1_7, %c17_8, %c0_9], %1 {strides = array<i32>} : memref<18x18x2xbf16, #tpu.memory_space<vmem>>, vector<16x1x2xbf16>,
    %c0_10 = arith.constant 0 : index
    %c0_11 = arith.constant 0 : index
    %c0_12 = arith.constant 0 : index
    %c0_13 = arith.constant 0 : index
    %6 = vector.load %arg1[%c0_10, %c0_11, %c0_12, %c0_13] : memref<1x16x16x2xbf16, #tpu.memory_space<vmem>>, vector<1x16x16x2xbf16>
    %7 = vector.shape_cast %6 : vector<1x16x16x2xbf16> to vector<16x16x2xbf16>
    %c1_14 = arith.constant 1 : index
    %c1_15 = arith.constant 1 : index
    %c0_16 = arith.constant 0 : index
    %8 = vector.load %arg11[%c1_14, %c1_15, %c0_16] : memref<18x18x2xbf16, #tpu.memory_space<vmem>>, vector<16x16x2xbf16>
    tpu.vector_store %arg11[%c1_14, %c1_15, %c0_16], %7 {strides = array<i32>} : memref<18x18x2xbf16, #tpu.memory_space<vmem>>, vector<16x16x2xbf16>,
    %cst_17 = arith.constant 0.000000e+00 : f32
    %9 = vector.broadcast %cst_17 : f32 to vector<256x64xf32>
    %c0_18 = arith.constant 0 : index
    %c0_19 = arith.constant 0 : index
    %c0_20 = arith.constant 0 : index
    %10 = vector.load %arg11[%c0_18, %c0_19, %c0_20] : memref<18x18x2xbf16, #tpu.memory_space<vmem>>, vector<16x16x2xbf16>
    %11 = vector.shape_cast %10 : vector<16x16x2xbf16> to vector<256x2xbf16>
    %c0_21 = arith.constant 0 : index
    %c0_22 = arith.constant 0 : index
    %12 = vector.load %arg2[%c0_21, %c0_22] : memref<18x64xbf16, #tpu.memory_space<vmem>>, vector<2x64xbf16>
    %cst_23 = arith.constant dense<0.000000e+00> : vector<256x64xf32>
    %13 = tpu.matmul %11, %12, %cst_23 {dimension_numbers = #tpu.dot_dimension_numbers<[1], [0], [0], [1], [0, 0, 1, 1], [], []>} : vector<256x2xbf16>, vector<2x64xbf16>, vector<256x64xf32> -> vector<256x64xf32>
    %14 = arith.addf %9, %13 : vector<256x64xf32>
    %c0_24 = arith.constant 0 : index
    %c1_25 = arith.constant 1 : index
    %c0_26 = arith.constant 0 : index
    %15 = vector.load %arg11[%c0_24, %c1_25, %c0_26] : memref<18x18x2xbf16, #tpu.memory_space<vmem>>, vector<16x16x2xbf16>
    %16 = vector.shape_cast %15 : vector<16x16x2xbf16> to vector<256x2xbf16>
    %c2 = arith.constant 2 : index
    %c0_27 = arith.constant 0 : index
    %17 = vector.load %arg2[%c2, %c0_27] : memref<18x64xbf16, #tpu.memory_space<vmem>>, vector<2x64xbf16>
    %cst_28 = arith.constant dense<0.000000e+00> : vector<256x64xf32>
    %18 = tpu.matmul %16, %17, %cst_28 {dimension_numbers = #tpu.dot_dimension_numbers<[1], [0], [0], [1], [0, 0, 1, 1], [], []>} : vector<256x2xbf16>, vector<2x64xbf16>, vector<256x64xf32> -> vector<256x64xf32>
    %19 = arith.addf %14, %18 : vector<256x64xf32>
    %c0_29 = arith.constant 0 : index
    %c2_30 = arith.constant 2 : index
    %c0_31 = arith.constant 0 : index
    %20 = vector.load %arg11[%c0_29, %c2_30, %c0_31] : memref<18x18x2xbf16, #tpu.memory_space<vmem>>, vector<16x16x2xbf16>
    %21 = vector.shape_cast %20 : vector<16x16x2xbf16> to vector<256x2xbf16>
    %c4 = arith.constant 4 : index
    %c0_32 = arith.constant 0 : index
    %22 = vector.load %arg2[%c4, %c0_32] : memref<18x64xbf16, #tpu.memory_space<vmem>>, vector<2x64xbf16>
    %cst_33 = arith.constant dense<0.000000e+00> : vector<256x64xf32>
    %23 = tpu.matmul %21, %22, %cst_33 {dimension_numbers = #tpu.dot_dimension_numbers<[1], [0], [0], [1], [0, 0, 1, 1], [], []>} : vector<256x2xbf16>, vector<2x64xbf16>, vector<256x64xf32> -> vector<256x64xf32>
    %24 = arith.addf %19, %23 : vector<256x64xf32>
    %c1_34 = arith.constant 1 : index
    %c0_35 = arith.constant 0 : index
    %c0_36 = arith.constant 0 : index
    %25 = vector.load %arg11[%c1_34, %c0_35, %c0_36] : memref<18x18x2xbf16, #tpu.memory_space<vmem>>, vector<16x16x2xbf16>
    %26 = vector.shape_cast %25 : vector<16x16x2xbf16> to vector<256x2xbf16>
    %c6 = arith.constant 6 : index
    %c0_37 = arith.constant 0 : index
    %27 = vector.load %arg2[%c6, %c0_37] : memref<18x64xbf16, #tpu.memory_space<vmem>>, vector<2x64xbf16>
    %cst_38 = arith.constant dense<0.000000e+00> : vector<256x64xf32>
    %28 = tpu.matmul %26, %27, %cst_38 {dimension_numbers = #tpu.dot_dimension_numbers<[1], [0], [0], [1], [0, 0, 1, 1], [], []>} : vector<256x2xbf16>, vector<2x64xbf16>, vector<256x64xf32> -> vector<256x64xf32>
    %29 = arith.addf %24, %28 : vector<256x64xf32>
    %c1_39 = arith.constant 1 : index
    %c1_40 = arith.constant 1 : index
    %c0_41 = arith.constant 0 : index
    %30 = vector.load %arg11[%c1_39, %c1_40, %c0_41] : memref<18x18x2xbf16, #tpu.memory_space<vmem>>, vector<16x16x2xbf16>
    %31 = vector.shape_cast %30 : vector<16x16x2xbf16> to vector<256x2xbf16>
    %c8 = arith.constant 8 : index
    %c0_42 = arith.constant 0 : index
    %32 = vector.load %arg2[%c8, %c0_42] : memref<18x64xbf16, #tpu.memory_space<vmem>>, vector<2x64xbf16>
    %cst_43 = arith.constant dense<0.000000e+00> : vector<256x64xf32>
    %33 = tpu.matmul %31, %32, %cst_43 {dimension_numbers = #tpu.dot_dimension_numbers<[1], [0], [0], [1], [0, 0, 1, 1], [], []>} : vector<256x2xbf16>, vector<2x64xbf16>, vector<256x64xf32> -> vector<256x64xf32>
    %34 = arith.addf %29, %33 : vector<256x64xf32>
    %c1_44 = arith.constant 1 : index
    %c2_45 = arith.constant 2 : index
    %c0_46 = arith.constant 0 : index
    %35 = vector.load %arg11[%c1_44, %c2_45, %c0_46] : memref<18x18x2xbf16, #tpu.memory_space<vmem>>, vector<16x16x2xbf16>
    %36 = vector.shape_cast %35 : vector<16x16x2xbf16> to vector<256x2xbf16>
    %c10 = arith.constant 10 : index
    %c0_47 = arith.constant 0 : index
    %37 = vector.load %arg2[%c10, %c0_47] : memref<18x64xbf16, #tpu.memory_space<vmem>>, vector<2x64xbf16>
    %cst_48 = arith.constant dense<0.000000e+00> : vector<256x64xf32>
    %38 = tpu.matmul %36, %37, %cst_48 {dimension_numbers = #tpu.dot_dimension_numbers<[1], [0], [0], [1], [0, 0, 1, 1], [], []>} : vector<256x2xbf16>, vector<2x64xbf16>, vector<256x64xf32> -> vector<256x64xf32>
    %39 = arith.addf %34, %38 : vector<256x64xf32>
    %c2_49 = arith.constant 2 : index
    %c0_50 = arith.constant 0 : index
    %c0_51 = arith.constant 0 : index
    %40 = vector.load %arg11[%c2_49, %c0_50, %c0_51] : memref<18x18x2xbf16, #tpu.memory_space<vmem>>, vector<16x16x2xbf16>
    %41 = vector.shape_cast %40 : vector<16x16x2xbf16> to vector<256x2xbf16>
    %c12 = arith.constant 12 : index
    %c0_52 = arith.constant 0 : index
    %42 = vector.load %arg2[%c12, %c0_52] : memref<18x64xbf16, #tpu.memory_space<vmem>>, vector<2x64xbf16>
    %cst_53 = arith.constant dense<0.000000e+00> : vector<256x64xf32>
    %43 = tpu.matmul %41, %42, %cst_53 {dimension_numbers = #tpu.dot_dimension_numbers<[1], [0], [0], [1], [0, 0, 1, 1], [], []>} : vector<256x2xbf16>, vector<2x64xbf16>, vector<256x64xf32> -> vector<256x64xf32>
    %44 = arith.addf %39, %43 : vector<256x64xf32>
    %c2_54 = arith.constant 2 : index
    %c1_55 = arith.constant 1 : index
    %c0_56 = arith.constant 0 : index
    %45 = vector.load %arg11[%c2_54, %c1_55, %c0_56] : memref<18x18x2xbf16, #tpu.memory_space<vmem>>, vector<16x16x2xbf16>
    %46 = vector.shape_cast %45 : vector<16x16x2xbf16> to vector<256x2xbf16>
    %c14 = arith.constant 14 : index
    %c0_57 = arith.constant 0 : index
    %47 = vector.load %arg2[%c14, %c0_57] : memref<18x64xbf16, #tpu.memory_space<vmem>>, vector<2x64xbf16>
    %cst_58 = arith.constant dense<0.000000e+00> : vector<256x64xf32>
    %48 = tpu.matmul %46, %47, %cst_58 {dimension_numbers = #tpu.dot_dimension_numbers<[1], [0], [0], [1], [0, 0, 1, 1], [], []>} : vector<256x2xbf16>, vector<2x64xbf16>, vector<256x64xf32> -> vector<256x64xf32>
    %49 = arith.addf %44, %48 : vector<256x64xf32>
    %c2_59 = arith.constant 2 : index
    %c2_60 = arith.constant 2 : index
    %c0_61 = arith.constant 0 : index
    %50 = vector.load %arg11[%c2_59, %c2_60, %c0_61] : memref<18x18x2xbf16, #tpu.memory_space<vmem>>, vector<16x16x2xbf16>
    %51 = vector.shape_cast %50 : vector<16x16x2xbf16> to vector<256x2xbf16>
    %c16 = arith.constant 16 : index
    %c0_62 = arith.constant 0 : index
    %52 = vector.load %arg2[%c16, %c0_62] : memref<18x64xbf16, #tpu.memory_space<vmem>>, vector<2x64xbf16>
    %cst_63 = arith.constant dense<0.000000e+00> : vector<256x64xf32>
    %53 = tpu.matmul %51, %52, %cst_63 {dimension_numbers = #tpu.dot_dimension_numbers<[1], [0], [0], [1], [0, 0, 1, 1], [], []>} : vector<256x2xbf16>, vector<2x64xbf16>, vector<256x64xf32> -> vector<256x64xf32>
    %54 = arith.addf %49, %53 : vector<256x64xf32>
    %c0_64 = arith.constant 0 : index
    %c0_65 = arith.constant 0 : index
    %55 = vector.load %arg3[%c0_64, %c0_65] : memref<1x64xf32, #tpu.memory_space<vmem>>, vector<1x64xf32>
    %56 = vector.broadcast %55 : vector<1x64xf32> to vector<256x64xf32>
    %57 = arith.addf %54, %56 : vector<256x64xf32>
    %cst_66 = arith.constant 0.000000e+00 : f32
    %58 = vector.broadcast %cst_66 : f32 to vector<256x64xf32>
    %59 = arith.maximumf %57, %58 : vector<256x64xf32>
    %c0_67 = arith.constant 0 : index
    %c0_68 = arith.constant 0 : index
    %60 = vector.load %arg4[%c0_67, %c0_68] : memref<1x64xf32, #tpu.memory_space<vmem>>, vector<1x64xf32>
    %61 = vector.broadcast %60 : vector<1x64xf32> to vector<256x64xf32>
    %62 = arith.mulf %59, %61 : vector<256x64xf32>
    %c0_69 = arith.constant 0 : index
    %c0_70 = arith.constant 0 : index
    %63 = vector.load %arg5[%c0_69, %c0_70] : memref<1x64xf32, #tpu.memory_space<vmem>>, vector<1x64xf32>
    %64 = vector.broadcast %63 : vector<1x64xf32> to vector<256x64xf32>
    %65 = arith.addf %62, %64 : vector<256x64xf32>
    %cst_71 = arith.constant 0.000000e+00 : bf16
    %66 = vector.broadcast %cst_71 : bf16 to vector<1x18x64xbf16>
    %cst_72 = arith.constant 0.000000e+00 : bf16
    %67 = vector.broadcast %cst_72 : bf16 to vector<16x1x64xbf16>
    %c0_73 = arith.constant 0 : index
    %c0_74 = arith.constant 0 : index
    %c0_75 = arith.constant 0 : index
    %68 = vector.load %arg12[%c0_73, %c0_74, %c0_75] : memref<18x18x64xbf16, #tpu.memory_space<vmem>>, vector<1x18x64xbf16>
    tpu.vector_store %arg12[%c0_73, %c0_74, %c0_75], %66 {strides = array<i32>} : memref<18x18x64xbf16, #tpu.memory_space<vmem>>, vector<1x18x64xbf16>,
    %c17_76 = arith.constant 17 : index
    %c0_77 = arith.constant 0 : index
    %c0_78 = arith.constant 0 : index
    %69 = vector.load %arg12[%c17_76, %c0_77, %c0_78] : memref<18x18x64xbf16, #tpu.memory_space<vmem>>, vector<1x18x64xbf16>
    tpu.vector_store %arg12[%c17_76, %c0_77, %c0_78], %66 {strides = array<i32>} : memref<18x18x64xbf16, #tpu.memory_space<vmem>>, vector<1x18x64xbf16>,
    %c1_79 = arith.constant 1 : index
    %c0_80 = arith.constant 0 : index
    %c0_81 = arith.constant 0 : index
    %70 = vector.load %arg12[%c1_79, %c0_80, %c0_81] : memref<18x18x64xbf16, #tpu.memory_space<vmem>>, vector<16x1x64xbf16>
    tpu.vector_store %arg12[%c1_79, %c0_80, %c0_81], %67 {strides = array<i32>} : memref<18x18x64xbf16, #tpu.memory_space<vmem>>, vector<16x1x64xbf16>,
    %c1_82 = arith.constant 1 : index
    %c17_83 = arith.constant 17 : index
    %c0_84 = arith.constant 0 : index
    %71 = vector.load %arg12[%c1_82, %c17_83, %c0_84] : memref<18x18x64xbf16, #tpu.memory_space<vmem>>, vector<16x1x64xbf16>
    tpu.vector_store %arg12[%c1_82, %c17_83, %c0_84], %67 {strides = array<i32>} : memref<18x18x64xbf16, #tpu.memory_space<vmem>>, vector<16x1x64xbf16>,
    %72 = vector.shape_cast %65 : vector<256x64xf32> to vector<16x16x64xf32>
    %73 = arith.truncf %72 : vector<16x16x64xf32> to vector<16x16x64xbf16>
    %c1_85 = arith.constant 1 : index
    %c1_86 = arith.constant 1 : index
    %c0_87 = arith.constant 0 : index
    %74 = vector.load %arg12[%c1_85, %c1_86, %c0_87] : memref<18x18x64xbf16, #tpu.memory_space<vmem>>, vector<16x16x64xbf16>
    tpu.vector_store %arg12[%c1_85, %c1_86, %c0_87], %73 {strides = array<i32>} : memref<18x18x64xbf16, #tpu.memory_space<vmem>>, vector<16x16x64xbf16>,
    %cst_88 = arith.constant 0.000000e+00 : f32
    %75 = vector.broadcast %cst_88 : f32 to vector<256x64xf32>
    %c0_89 = arith.constant 0 : index
    %c0_90 = arith.constant 0 : index
    %c0_91 = arith.constant 0 : index
    %76 = vector.load %arg12[%c0_89, %c0_90, %c0_91] : memref<18x18x64xbf16, #tpu.memory_space<vmem>>, vector<16x16x64xbf16>
    %77 = vector.shape_cast %76 : vector<16x16x64xbf16> to vector<256x64xbf16>
    %c0_92 = arith.constant 0 : index
    %c0_93 = arith.constant 0 : index
    %78 = vector.load %arg6[%c0_92, %c0_93] : memref<576x64xbf16, #tpu.memory_space<vmem>>, vector<64x64xbf16>
    %cst_94 = arith.constant dense<0.000000e+00> : vector<256x64xf32>
    %79 = tpu.matmul %77, %78, %cst_94 {dimension_numbers = #tpu.dot_dimension_numbers<[1], [0], [0], [1], [0, 0, 1, 1], [], []>} : vector<256x64xbf16>, vector<64x64xbf16>, vector<256x64xf32> -> vector<256x64xf32>
    %80 = arith.addf %75, %79 : vector<256x64xf32>
    %c0_95 = arith.constant 0 : index
    %c1_96 = arith.constant 1 : index
    %c0_97 = arith.constant 0 : index
    %81 = vector.load %arg12[%c0_95, %c1_96, %c0_97] : memref<18x18x64xbf16, #tpu.memory_space<vmem>>, vector<16x16x64xbf16>
    %82 = vector.shape_cast %81 : vector<16x16x64xbf16> to vector<256x64xbf16>
    %c64 = arith.constant 64 : index
    %c0_98 = arith.constant 0 : index
    %83 = vector.load %arg6[%c64, %c0_98] : memref<576x64xbf16, #tpu.memory_space<vmem>>, vector<64x64xbf16>
    %cst_99 = arith.constant dense<0.000000e+00> : vector<256x64xf32>
    %84 = tpu.matmul %82, %83, %cst_99 {dimension_numbers = #tpu.dot_dimension_numbers<[1], [0], [0], [1], [0, 0, 1, 1], [], []>} : vector<256x64xbf16>, vector<64x64xbf16>, vector<256x64xf32> -> vector<256x64xf32>
    %85 = arith.addf %80, %84 : vector<256x64xf32>
    %c0_100 = arith.constant 0 : index
    %c2_101 = arith.constant 2 : index
    %c0_102 = arith.constant 0 : index
    %86 = vector.load %arg12[%c0_100, %c2_101, %c0_102] : memref<18x18x64xbf16, #tpu.memory_space<vmem>>, vector<16x16x64xbf16>
    %87 = vector.shape_cast %86 : vector<16x16x64xbf16> to vector<256x64xbf16>
    %c128 = arith.constant 128 : index
    %c0_103 = arith.constant 0 : index
    %88 = vector.load %arg6[%c128, %c0_103] : memref<576x64xbf16, #tpu.memory_space<vmem>>, vector<64x64xbf16>
    %cst_104 = arith.constant dense<0.000000e+00> : vector<256x64xf32>
    %89 = tpu.matmul %87, %88, %cst_104 {dimension_numbers = #tpu.dot_dimension_numbers<[1], [0], [0], [1], [0, 0, 1, 1], [], []>} : vector<256x64xbf16>, vector<64x64xbf16>, vector<256x64xf32> -> vector<256x64xf32>
    %90 = arith.addf %85, %89 : vector<256x64xf32>
    %c1_105 = arith.constant 1 : index
    %c0_106 = arith.constant 0 : index
    %c0_107 = arith.constant 0 : index
    %91 = vector.load %arg12[%c1_105, %c0_106, %c0_107] : memref<18x18x64xbf16, #tpu.memory_space<vmem>>, vector<16x16x64xbf16>
    %92 = vector.shape_cast %91 : vector<16x16x64xbf16> to vector<256x64xbf16>
    %c192 = arith.constant 192 : index
    %c0_108 = arith.constant 0 : index
    %93 = vector.load %arg6[%c192, %c0_108] : memref<576x64xbf16, #tpu.memory_space<vmem>>, vector<64x64xbf16>
    %cst_109 = arith.constant dense<0.000000e+00> : vector<256x64xf32>
    %94 = tpu.matmul %92, %93, %cst_109 {dimension_numbers = #tpu.dot_dimension_numbers<[1], [0], [0], [1], [0, 0, 1, 1], [], []>} : vector<256x64xbf16>, vector<64x64xbf16>, vector<256x64xf32> -> vector<256x64xf32>
    %95 = arith.addf %90, %94 : vector<256x64xf32>
    %c1_110 = arith.constant 1 : index
    %c1_111 = arith.constant 1 : index
    %c0_112 = arith.constant 0 : index
    %96 = vector.load %arg12[%c1_110, %c1_111, %c0_112] : memref<18x18x64xbf16, #tpu.memory_space<vmem>>, vector<16x16x64xbf16>
    %97 = vector.shape_cast %96 : vector<16x16x64xbf16> to vector<256x64xbf16>
    %c256 = arith.constant 256 : index
    %c0_113 = arith.constant 0 : index
    %98 = vector.load %arg6[%c256, %c0_113] : memref<576x64xbf16, #tpu.memory_space<vmem>>, vector<64x64xbf16>
    %cst_114 = arith.constant dense<0.000000e+00> : vector<256x64xf32>
    %99 = tpu.matmul %97, %98, %cst_114 {dimension_numbers = #tpu.dot_dimension_numbers<[1], [0], [0], [1], [0, 0, 1, 1], [], []>} : vector<256x64xbf16>, vector<64x64xbf16>, vector<256x64xf32> -> vector<256x64xf32>
    %100 = arith.addf %95, %99 : vector<256x64xf32>
    %c1_115 = arith.constant 1 : index
    %c2_116 = arith.constant 2 : index
    %c0_117 = arith.constant 0 : index
    %101 = vector.load %arg12[%c1_115, %c2_116, %c0_117] : memref<18x18x64xbf16, #tpu.memory_space<vmem>>, vector<16x16x64xbf16>
    %102 = vector.shape_cast %101 : vector<16x16x64xbf16> to vector<256x64xbf16>
    %c320 = arith.constant 320 : index
    %c0_118 = arith.constant 0 : index
    %103 = vector.load %arg6[%c320, %c0_118] : memref<576x64xbf16, #tpu.memory_space<vmem>>, vector<64x64xbf16>
    %cst_119 = arith.constant dense<0.000000e+00> : vector<256x64xf32>
    %104 = tpu.matmul %102, %103, %cst_119 {dimension_numbers = #tpu.dot_dimension_numbers<[1], [0], [0], [1], [0, 0, 1, 1], [], []>} : vector<256x64xbf16>, vector<64x64xbf16>, vector<256x64xf32> -> vector<256x64xf32>
    %105 = arith.addf %100, %104 : vector<256x64xf32>
    %c2_120 = arith.constant 2 : index
    %c0_121 = arith.constant 0 : index
    %c0_122 = arith.constant 0 : index
    %106 = vector.load %arg12[%c2_120, %c0_121, %c0_122] : memref<18x18x64xbf16, #tpu.memory_space<vmem>>, vector<16x16x64xbf16>
    %107 = vector.shape_cast %106 : vector<16x16x64xbf16> to vector<256x64xbf16>
    %c384 = arith.constant 384 : index
    %c0_123 = arith.constant 0 : index
    %108 = vector.load %arg6[%c384, %c0_123] : memref<576x64xbf16, #tpu.memory_space<vmem>>, vector<64x64xbf16>
    %cst_124 = arith.constant dense<0.000000e+00> : vector<256x64xf32>
    %109 = tpu.matmul %107, %108, %cst_124 {dimension_numbers = #tpu.dot_dimension_numbers<[1], [0], [0], [1], [0, 0, 1, 1], [], []>} : vector<256x64xbf16>, vector<64x64xbf16>, vector<256x64xf32> -> vector<256x64xf32>
    %110 = arith.addf %105, %109 : vector<256x64xf32>
    %c2_125 = arith.constant 2 : index
    %c1_126 = arith.constant 1 : index
    %c0_127 = arith.constant 0 : index
    %111 = vector.load %arg12[%c2_125, %c1_126, %c0_127] : memref<18x18x64xbf16, #tpu.memory_space<vmem>>, vector<16x16x64xbf16>
    %112 = vector.shape_cast %111 : vector<16x16x64xbf16> to vector<256x64xbf16>
    %c448 = arith.constant 448 : index
    %c0_128 = arith.constant 0 : index
    %113 = vector.load %arg6[%c448, %c0_128] : memref<576x64xbf16, #tpu.memory_space<vmem>>, vector<64x64xbf16>
    %cst_129 = arith.constant dense<0.000000e+00> : vector<256x64xf32>
    %114 = tpu.matmul %112, %113, %cst_129 {dimension_numbers = #tpu.dot_dimension_numbers<[1], [0], [0], [1], [0, 0, 1, 1], [], []>} : vector<256x64xbf16>, vector<64x64xbf16>, vector<256x64xf32> -> vector<256x64xf32>
    %115 = arith.addf %110, %114 : vector<256x64xf32>
    %c2_130 = arith.constant 2 : index
    %c2_131 = arith.constant 2 : index
    %c0_132 = arith.constant 0 : index
    %116 = vector.load %arg12[%c2_130, %c2_131, %c0_132] : memref<18x18x64xbf16, #tpu.memory_space<vmem>>, vector<16x16x64xbf16>
    %117 = vector.shape_cast %116 : vector<16x16x64xbf16> to vector<256x64xbf16>
    %c512 = arith.constant 512 : index
    %c0_133 = arith.constant 0 : index
    %118 = vector.load %arg6[%c512, %c0_133] : memref<576x64xbf16, #tpu.memory_space<vmem>>, vector<64x64xbf16>
    %cst_134 = arith.constant dense<0.000000e+00> : vector<256x64xf32>
    %119 = tpu.matmul %117, %118, %cst_134 {dimension_numbers = #tpu.dot_dimension_numbers<[1], [0], [0], [1], [0, 0, 1, 1], [], []>} : vector<256x64xbf16>, vector<64x64xbf16>, vector<256x64xf32> -> vector<256x64xf32>
    %120 = arith.addf %115, %119 : vector<256x64xf32>
    %c0_135 = arith.constant 0 : index
    %c0_136 = arith.constant 0 : index
    %121 = vector.load %arg7[%c0_135, %c0_136] : memref<1x64xf32, #tpu.memory_space<vmem>>, vector<1x64xf32>
    %122 = vector.broadcast %121 : vector<1x64xf32> to vector<256x64xf32>
    %123 = arith.addf %120, %122 : vector<256x64xf32>
    %cst_137 = arith.constant 0.000000e+00 : f32
    %124 = vector.broadcast %cst_137 : f32 to vector<256x64xf32>
    %125 = arith.maximumf %123, %124 : vector<256x64xf32>
    %126 = vector.shape_cast %125 : vector<256x64xf32> to vector<128x2x64xf32>
    %cst_138 = arith.constant dense<0xFF800000> : vector<128x64xf32>
    %127 = vector.multi_reduction <maximumf>, %126, %cst_138 [1] : vector<128x2x64xf32> to vector<128x64xf32>
    %128 = vector.shape_cast %127 : vector<128x64xf32> to vector<8x2x8x64xf32>
    %cst_139 = arith.constant dense<0xFF800000> : vector<8x8x64xf32>
    %129 = vector.multi_reduction <maximumf>, %128, %cst_139 [1] : vector<8x2x8x64xf32> to vector<8x8x64xf32>
    %130 = vector.shape_cast %129 : vector<8x8x64xf32> to vector<64x64xf32>
    %c0_140 = arith.constant 0 : index
    %c0_141 = arith.constant 0 : index
    %131 = vector.load %arg8[%c0_140, %c0_141] : memref<1x64xf32, #tpu.memory_space<vmem>>, vector<1x64xf32>
    %132 = vector.broadcast %131 : vector<1x64xf32> to vector<64x64xf32>
    %133 = arith.mulf %130, %132 : vector<64x64xf32>
    %c0_142 = arith.constant 0 : index
    %c0_143 = arith.constant 0 : index
    %134 = vector.load %arg9[%c0_142, %c0_143] : memref<1x64xf32, #tpu.memory_space<vmem>>, vector<1x64xf32>
    %135 = vector.broadcast %134 : vector<1x64xf32> to vector<64x64xf32>
    %136 = arith.addf %133, %135 : vector<64x64xf32>
    %137 = vector.shape_cast %136 : vector<64x64xf32> to vector<1x8x8x64xf32>
    %138 = arith.truncf %137 : vector<1x8x8x64xf32> to vector<1x8x8x64xbf16>
    %c0_144 = arith.constant 0 : index
    %c0_145 = arith.constant 0 : index
    %c0_146 = arith.constant 0 : index
    %c0_147 = arith.constant 0 : index
    %139 = vector.load %arg10[%c0_144, %c0_145, %c0_146, %c0_147] : memref<1x8x8x64xbf16, #tpu.memory_space<vmem>>, vector<1x8x8x64xbf16>
    tpu.vector_store %arg10[%c0_144, %c0_145, %c0_146, %c0_147], %138 {strides = array<i32>} : memref<1x8x8x64xbf16, #tpu.memory_space<vmem>>, vector<1x8x8x64xbf16>,
    return
  }
  func.func @transform_0(%arg0: i32) -> (i32, i32, i32, i32) {
    %c0_i32 = arith.constant 0 : i32
    %c0_i32_0 = arith.constant 0 : i32
    %c0_i32_1 = arith.constant 0 : i32
    %c0_i32_2 = arith.constant 0 : i32
    return %arg0, %c0_i32, %c0_i32_0, %c0_i32_1 : i32, i32, i32, i32
  }
  func.func @transform_1(%arg0: i32) -> (i32, i32) {
    %c0_i32 = arith.constant 0 : i32
    %c0_i32_0 = arith.constant 0 : i32
    %c0_i32_1 = arith.constant 0 : i32
    return %c0_i32, %c0_i32_0 : i32, i32
  }
  func.func @transform_2(%arg0: i32) -> (i32, i32) {
    %c0_i32 = arith.constant 0 : i32
    %c0_i32_0 = arith.constant 0 : i32
    %c0_i32_1 = arith.constant 0 : i32
    return %c0_i32, %c0_i32_0 : i32, i32
  }
  func.func @transform_3(%arg0: i32) -> (i32, i32) {
    %c0_i32 = arith.constant 0 : i32
    %c0_i32_0 = arith.constant 0 : i32
    %c0_i32_1 = arith.constant 0 : i32
    return %c0_i32, %c0_i32_0 : i32, i32
  }
  func.func @transform_4(%arg0: i32) -> (i32, i32) {
    %c0_i32 = arith.constant 0 : i32
    %c0_i32_0 = arith.constant 0 : i32
    %c0_i32_1 = arith.constant 0 : i32
    return %c0_i32, %c0_i32_0 : i32, i32
  }
  func.func @transform_5(%arg0: i32) -> (i32, i32) {
    %c0_i32 = arith.constant 0 : i32
    %c0_i32_0 = arith.constant 0 : i32
    %c0_i32_1 = arith.constant 0 : i32
    return %c0_i32, %c0_i32_0 : i32, i32
  }
  func.func @transform_6(%arg0: i32) -> (i32, i32) {
    %c0_i32 = arith.constant 0 : i32
    %c0_i32_0 = arith.constant 0 : i32
    %c0_i32_1 = arith.constant 0 : i32
    return %c0_i32, %c0_i32_0 : i32, i32
  }
  func.func @transform_7(%arg0: i32) -> (i32, i32) {
    %c0_i32 = arith.constant 0 : i32
    %c0_i32_0 = arith.constant 0 : i32
    %c0_i32_1 = arith.constant 0 : i32
    return %c0_i32, %c0_i32_0 : i32, i32
  }
  func.func @transform_8(%arg0: i32) -> (i32, i32) {
    %c0_i32 = arith.constant 0 : i32
    %c0_i32_0 = arith.constant 0 : i32
    %c0_i32_1 = arith.constant 0 : i32
    return %c0_i32, %c0_i32_0 : i32, i32
  }
  func.func @transform_9(%arg0: i32) -> (i32, i32, i32, i32) {
    %c0_i32 = arith.constant 0 : i32
    %c0_i32_0 = arith.constant 0 : i32
    %c0_i32_1 = arith.constant 0 : i32
    %c0_i32_2 = arith.constant 0 : i32
    return %arg0, %c0_i32, %c0_i32_0, %c0_i32_1 : i32, i32, i32, i32
  }
}

</mosaic_0001>

<bundles_post_ra>
// kernel: tpu_custom_call.1
= control target key start
LH: loop header
LB: loop body
LE: loop exit
PB: predicated region body
PF: predicated region fallthrough
CT: control target
= control target key end

     0   :  { %14 = vsyncpa [#allocation5], 0  ;;  %s21812_s0 = inlined_call_operand.vmem [shape: bf16[2,16,16,2], index: 0, kind: input, shape index: {}]   ;;  %s21813_s1 = inlined_call_operand.vmem [shape: bf16[18,64], index: 1, kind: input, shape index: {}]   ;;  %s21814_s2 = inlined_call_operand.vmem [shape: f32[1,64], index: 2, kind: input, shape index: {}]   ;;  %s21815_s3 = inlined_call_operand.vmem [shape: f32[1,64], index: 3, kind: input, shape index: {}]   ;;  %s21816_s4 = inlined_call_operand.vmem [shape: f32[1,64], index: 4, kind: input, shape index: {}]   ;;  %s21817_s5 = inlined_call_operand.vmem [shape: bf16[576,64], index: 5, kind: input, shape index: {}]   ;;  %s21818_s6 = inlined_call_operand.vmem [shape: f32[1,64], index: 6, kind: input, shape index: {}]   ;;  %s21819_s7 = inlined_call_operand.vmem [shape: f32[1,64], index: 7, kind: input, shape index: {}]   ;;  %s21820_s8 = inlined_call_operand.vmem [shape: f32[1,64], index: 8, kind: input, shape index: {}]   ;;  %s21821_s9 = inlined_call_operand.hbm [shape: bf16[2,8,8,64], index: 9, kind: output, shape index: {}]  }
   0x1   :  { %16 = vsyncpa [#allocation5 + $0x1], 0  ;;  %s15877_s30 = smov 0   ;;  %s15879_s10 = smov 0  }
   0x2   :  { %s15881_s11 = smov 0   ;;  %s15883_s12 = smov 0  }
   0x3 LB: > { %s15898_s13 = sadd.s32 4294967295, %s15820_s12   ;;  %s13613_s14 = sadd.s32 4294967294, %s15820_s12   ;;  %s15820_s12 = sphi %s15883_s12, %s22137_s12   ;;  %s15816_s11 = sphi %s15881_s11, %s22136_s11   ;;  %s15812_s10 = sphi %s15879_s10, %s22135_s10   ;;  %s15808_s30 = sphi %s15877_s30, %s22134_s30  }
   0x4   : > { %s15902_s15 = sadd.s32 1, %s15820_s12   ;;  %s223_s16 = sadd.s32 1, %s15816_s11 }
   0x5   : > { %s220_s17 = ssub.s32 %s15820_s12, %s15902_s15  ;;  %p233_p0 = scmp.ne.s32.totalorder %s15816_s11, %s15812_s10 }
   0x6   : > { %p221_p1 = scmp.eq.s32.totalorder %s220_s17, 0  ;;  %p234_p2 = scmp.eq.s32.totalorder %s15898_s13, 1 }
   0x7   : > { %p239_p3 = scmp.ne.s32.totalorder %s15812_s10, %s15808_s30  ;;  %p240_p4 = scmp.eq.s32.totalorder %s13613_s14, 1 }
   0x8   : > { %s15913_s18 = scalar_select %p221_p1, %s15816_s11, %s223_s16  }
   0x9   : > { %p15915_p5 = por %p234_p2, %p233_p0  ;;  %p15919_p6 = por %p240_p4, %p239_p3 }
   0xa   : > { %p13616_p7 = scmp.ge.s32.totalorder %s15820_s12, 1  ;;  %p290_p8 = scmp.lt.s32.totalorder %s15820_s12, 3 }
   0xc   : > { %p291_p9 = pnand %p13616_p7, %p290_p8 }
   0xe   : > { %294 = sbr.rel (%p291_p9) target bundleno = 1624 (0x658), region = 56 }
  0x13   : > { %v15590_v0 = vld [vmem:[%s21813_s1] ss:$0 sps:$4 sm:$0x22]   ;;  %vm1449_vm0 = vcmask 1040384   ;;  %vm332_vm1 = vcmask 11264   ;;  %vm335_vm2 = vcmask 8192  }
  0x14   : > { %v943_v1 = vld [vmem:[%s21813_s1] sm:$0x1]  ;;  %v1399_v2 = vrot.slane %v15590_v0, 1  ;;  %v15822_v4 = vmov 0   ;;  %vm343_vm3 = vsmask.f32 256 }
  0x15   : > { %15539 = vmatprep.subr.msk.bf16.mxu1 %vm1449_vm0, %v943_v1  ;;  %v1743_v3 = vsel %vm1449_vm0, %v943_v1, 0  ;;  %333 = vst.msk [vmem:[#allocation2] sm:$0xf] %vm332_vm1, %v15822_v4  ;;  %334 = vst.msk [vmem:[#allocation2 + $0x4] sm:$0xf] %vm332_vm1, %v15822_v4  ;;  %vm5634_vm6 = vcmask 519168  }
  0x16   : > { %336 = vst.msk [vmem:[#allocation2 + $0x8] sm:$0x1] %vm335_vm2, %v15822_v4  ;;  %340 = vst.msk [vmem:[#allocation2 + $0xd4] sm:$0x1] %vm335_vm2, %v15822_v4  ;;  %vm393_vm4 = vsmask.f32 7938  ;;  %14907 = vmatpush3.bf16.msra.mxu1 %v1743_v3  ;;  %15538 = vmatprep.subr.msk.bf16.mxu0 %vm1449_vm0, %v1399_v2 }
  0x17   : > { %338 = vst.msk [vmem:[#allocation2 + $0xcc] sm:$0xf] %vm332_vm1, %v15822_v4  ;;  %339 = vst.msk [vmem:[#allocation2 + $0xd0] sm:$0xf] %vm332_vm1, %v15822_v4  ;;  %vm5637_vm7 = vcmask 516096   ;;  %v1451_v6 = vsel %vm1449_vm0, %v1399_v2, 0 }
  0x18   : > { %vm15941_vm5 = vmand %vm335_vm2, %vm343_vm3  ;;  %5635 = vst.msk [vmem:[#allocation3] sm:$0xf] %vm5634_vm6, %v15822_v4  ;;  %v15962_v8 = vld [vmem:[%s21813_s1] ss:$0 sps:$4 sm:$0x44]   ;;  %14873 = vmatpush3.bf16.msra.mxu0 %v1451_v6  ;;  %p326_p10 = scmp.lt.s32.totalorder %s15898_s13, 1 }
  0x19   : > { %vm15949_vm8 = vmand %vm335_vm2, %vm393_vm4  ;;  %5636 = vst.msk [vmem:[#allocation3 + $0x4] sm:$0xf] %vm5634_vm6, %v15822_v4  ;;  %v345_v9 = vld [vmem:[#allocation2 + $0xc] sm:$0x1]  ;;  %v395_v10 = vld [vmem:[#allocation2 + $0x14] sm:$0x1] }
  0x1a   : > { %5638 = vst.msk [vmem:[#allocation3 + $0x8] sm:$0x1] %vm5637_vm7, %v15822_v4  ;;  %5642 = vst.msk [vmem:[#allocation3 + $0xd4] sm:$0x1] %vm5637_vm7, %v15822_v4  ;;  %vm960_vm9 = vsmask.f32 3328 }
  0x1b   : > { %5640 = vst.msk [vmem:[#allocation3 + $0xcc] sm:$0xf] %vm5634_vm6, %v15822_v4  ;;  %5641 = vst.msk [vmem:[#allocation3 + $0xd0] sm:$0xf] %vm5634_vm6, %v15822_v4  ;;  %v2121_v11 = vrot.slane %v15962_v8, 2  ;;  %v346_v12 = vsel %vm15941_vm5, 0, %v345_v9 }
  0x1c   : > { %v396_v13 = vsel %vm15949_vm8, 0, %v395_v10  ;;  %vm1400_vm10 = vcmask 15360   ;;  %s327_s27 = scalar_select %p326_p10, %s15898_s13, 1  ;;  %347 = vst [vmem:[#allocation2 + $0xc] sm:$0x1] %v346_v12  ;;  %v21853_v44 = vmov 0  ;;  %vm16003_vm14 = vmand %vm332_vm1, %vm393_vm4 }
  0x1d   : > { %397 = vst [vmem:[#allocation2 + $0x14] sm:$0x1] %v396_v13  ;;  %v348_v14 = vld [vmem:[#allocation2 + $0x18] sm:$0x1]  ;;  %v398_v15 = vld [vmem:[#allocation2 + $0x20] sm:$0x1]  ;;  %15540 = vmatprep.subr.msk.bf16.mxu0 %vm1449_vm0, %v2121_v11 }
  0x1e   : > { %vm961_vm11 = vsmask.f32 7440  ;;  %v349_v16 = vsel %vm15941_vm5, 0, %v348_v14  ;;  %v399_v17 = vsel %vm15949_vm8, 0, %v398_v15  ;;  %v351_v18 = vld [vmem:[#allocation2 + $0x24] sm:$0x1] }
  0x1f   : > { %v911_v19 = vld [vmem:[#allocation2] sm:$0xf]  ;;  %v912_v20 = vld [vmem:[#allocation2 + $0x4] sm:$0xf]  ;;  %v15978_v21 = vld [vmem:[#allocation2 + $0x8] sm:$0x1] }
  0x20   : > { %350 = vst [vmem:[#allocation2 + $0x18] sm:$0x1] %v349_v16  ;;  %400 = vst [vmem:[#allocation2 + $0x20] sm:$0x1] %v399_v17  ;;  %v964_v22 = vshrl.u32 %v911_v19, 16  ;;  %v967_v23 = vshll.u32 %v911_v19, 16  ;;  %v13653_v27 = vcombine.low %v911_v19, %v912_v20 }
  0x21   : > { %v973_v24 = vshll.u32 %v912_v20, 16  ;;  %v977_v25 = vshrl.u32 %v912_v20, 16  ;;  %s14441_s28 = sshll.u32 %s327_s27, 7  ;;  %v983_v26 = vshll.u32 %v15978_v21, 16  ;;  %vm475_vm12 = vsmask.f32 4368  ;;  %vm15995_vm13 = vmor %vm960_vm9, %vm961_vm11 }
  0x22   : > { %s15984_s16 = scalar_lea.vmem %s21812_s0, %s14441_s28  ;;  %v352_v28 = vsel %vm15941_vm5, 0, %v351_v18  ;;  %v401_v29 = vld [vmem:[#allocation2 + $0x2c] sm:$0x1]  ;;  %v966_v30 = vrot.slane %v964_v22, 4  ;;  %v969_v31 = vrot.slane %v967_v23, 5  ;;  %14908 = vmatprep.mubr.msk.bf16.mxu1 %vm1400_vm10, %v13653_v27  ;;  %v21854_v44 = vsel %vm15995_vm13, 4294967295, %v21853_v44  ;;  %vm16009_vm15 = vmor %vm343_vm3, %vm475_vm12 }
  0x23   : > { %v975_v32 = vrot.slane %v973_v24, 5  ;;  %v979_v33 = vrot.slane %v977_v25, 4  ;;  %v443_v34 = vld [vmem:[%s15984_s16] sm:$0xf]  ;;  %353 = vst [vmem:[#allocation2 + $0x24] sm:$0x1] %v352_v28 }
  0x24   : > { %v985_v35 = vrot.slane %v983_v26, 5  ;;  %v444_v36 = vld [vmem:[%s15984_s16 + $0x4] sm:$0xf]  ;;  %v478_v37 = vshrl.u32 %v443_v34, 16  ;;  %v481_v38 = vshll.u32 %v443_v34, 16  ;;  %v402_v39 = vsel %vm15949_vm8, 0, %v401_v29 }
  0x25   : > { %v970_v40 = vor.u32 %v969_v31, %v966_v30  ;;  %v980_v41 = vor.u32 %v979_v33, %v975_v32  ;;  %v486_v42 = vshrl.u32 %v444_v36, 16  ;;  %v489_v43 = vshll.u32 %v444_v36, 16  ;;  %403 = vst [vmem:[#allocation2 + $0x2c] sm:$0x1] %v402_v39  ;;  %21855 = vst [vmem:[#allocation7_spill] sm:$0xff] %v21854_v44  ;;  %s323_s14 = sand.u32 1, %s15812_s10  }
  0x26   : > { %v480_v45 = vrot.slane %v478_v37, 7  ;;  %v445_v46 = vld [vmem:[%s15984_s16 + $0x8] sm:$0xf]  ;;  %v446_v47 = vld [vmem:[%s15984_s16 + $0xc] sm:$0xf]  ;;  %v21858_v54 = vmov 0 }
  0x27   : > { %v971_v49 = vrot.slane %v970_v40, 4  ;;  %v981_v50 = vrot.slane %v980_v41, 4  ;;  %v488_v51 = vrot.slane %v486_v42, 7  ;;  %v799_v52 = vld [vmem:[#allocation2 + $0xc] sm:$0xf]  ;;  %v495_v53 = vshrl.u32 %v445_v46, 16 }
  0x28   : > { %v21859_v54 = vsel %vm16009_vm15, 4294967295, %v21858_v54  ;;  %v483_v55 = vor.u32 %v481_v38, %v480_v45  ;;  %v484_v56 = vrot.slane %v480_v45, 4  ;;  %v803_v57 = vld [vmem:[#allocation2 + $0x14] sm:$0x1]  ;;  %v498_v58 = vshll.u32 %v445_v46, 16  ;;  %s14538_s29 = sshll.u32 %s15898_s13, 9 }
  0x29   : > { %21860 = vst [vmem:[#allocation8_spill] sm:$0xff] %v21859_v54  ;;  %v503_v59 = vshrl.u32 %v446_v47, 16  ;;  %v976_v60 = vsel %vm15995_vm13, %v971_v49, %v975_v32  ;;  %v986_v61 = vsel %vm15995_vm13, %v981_v50, %v985_v35  ;;  %v491_v62 = vor.u32 %v489_v43, %v488_v51  ;;  %v806_v0 = vld [vmem:[#allocation2 + $0x18] sm:$0xf]  ;;  %v447_v1 = vld [vmem:[%s15984_s16 + $0x10] sm:$0xf]  ;;  %s21764_s23 = scalar_lea.hbm %s21821_s9, %s14538_s29 }
  0x2a   : > { %v493_v63 = vrot.slane %v488_v51, 4  ;;  %v13620_v2 = vcombine.low %v976_v60, %v986_v61  ;;  %v800_v3 = vsel %vm16003_vm14, %v483_v55, %v799_v52  ;;  %v497_v4 = vrot.slane %v495_v53, 7  ;;  %v810_v9 = vld [vmem:[#allocation2 + $0x20] sm:$0x1]  ;;  %v448_v10 = vld [vmem:[%s15984_s16 + $0x14] sm:$0xf] }
  0x2b   : > { %v505_v6 = vrot.slane %v503_v59, 7  ;;  %v492_v12 = vsel %vm16009_vm15, %v484_v56, %v491_v62  ;;  %801 = vst [vmem:[#allocation2 + $0xc] sm:$0xf] %v800_v3  ;;  %v506_v14 = vshll.u32 %v446_v47, 16  ;;  %v512_v15 = vshrl.u32 %v447_v1, 16  ;;  %s21772_s13 = scalar_lea.sflag [#allocation5], %s323_s14 }
  0x2c   : > { %v804_v13 = vsel %vm15941_vm5, %v493_v63, %v803_v57  ;;  %v354_v16 = vld [vmem:[#allocation2 + $0x30] sm:$0x1]  ;;  %v404_v17 = vld [vmem:[#allocation2 + $0x38] sm:$0x1]  ;;  %14874 = vmatprep.mubr.msk.bf16.mxu0 %vm1400_vm10, %v13620_v2  ;;  %802 = vst.msk [vmem:[#allocation2 + $0x10] sm:$0xf] %vm332_vm1, %v492_v12  ;;  %v500_v18 = vor.u32 %v498_v58, %v497_v4 }
  0x2d   : > { %805 = vst [vmem:[#allocation2 + $0x14] sm:$0x1] %v804_v13  ;;  %v501_v19 = vrot.slane %v497_v4, 4  ;;  %v510_v20 = vrot.slane %v505_v6, 4  ;;  %v515_v22 = vshll.u32 %v447_v1, 16  ;;  %v508_v24 = vor.u32 %v506_v14, %v505_v6  ;;  %s15824_s25 = smov [#allocation4]  }
  0x2e   : > { %v449_v23 = vld [vmem:[%s15984_s16 + $0x18] sm:$0xf]  ;;  %v514_v25 = vrot.slane %v512_v15, 7  ;;  %v520_v26 = vshrl.u32 %v448_v10, 16  ;;  %v523_v27 = vshll.u32 %v448_v10, 16  ;;  %v807_v29 = vsel %vm16003_vm14, %v500_v18, %v806_v0  ;;  %s15764_s26 = sshll.u32 %s15824_s25, 4  ;;  %s15765_s26 = int_to_ptr.vmem [resolvable:$false] %s15764_s26 }
  0x2f   : > { %v450_v28 = vld [vmem:[%s15984_s16 + $0x1c] sm:$0xf]  ;;  %v811_v30 = vsel %vm15941_vm5, %v510_v20, %v810_v9  ;;  %v813_v31 = vld [vmem:[#allocation2 + $0x24] sm:$0xf]  ;;  %v355_v32 = vsel %vm15941_vm5, 0, %v354_v16  ;;  %v405_v33 = vsel %vm15949_vm8, 0, %v404_v17  ;;  %v509_v35 = vsel %vm16009_vm15, %v501_v19, %v508_v24 }
  0x30   : > { %v357_v34 = vld [vmem:[#allocation2 + $0x3c] sm:$0x1]  ;;  %808 = vst [vmem:[#allocation2 + $0x18] sm:$0xf] %v807_v29  ;;  %812 = vst [vmem:[#allocation2 + $0x20] sm:$0x1] %v811_v30  ;;  %v517_v36 = vor.u32 %v515_v22, %v514_v25 }
  0x31   : > { %v518_v37 = vrot.slane %v514_v25, 4  ;;  %v522_v38 = vrot.slane %v520_v26, 7  ;;  %356 = vst [vmem:[#allocation2 + $0x30] sm:$0x1] %v355_v32  ;;  %406 = vst [vmem:[#allocation2 + $0x38] sm:$0x1] %v405_v33 }
  0x32   : > { %v407_v39 = vld [vmem:[#allocation2 + $0x44] sm:$0x1]  ;;  %809 = vst.msk [vmem:[#allocation2 + $0x1c] sm:$0xf] %vm332_vm1, %v509_v35  ;;  %v817_v40 = vld [vmem:[#allocation2 + $0x2c] sm:$0x1]  ;;  %v814_v47 = vsel %vm16003_vm14, %v517_v36, %v813_v31 }
  0x33   : > { %v529_v41 = vshrl.u32 %v449_v23, 16  ;;  %v532_v42 = vshll.u32 %v449_v23, 16  ;;  %v537_v43 = vshrl.u32 %v450_v28, 16  ;;  %v525_v45 = vor.u32 %v523_v27, %v522_v38  ;;  %v16045_v50 = vld [vmem:[%s15984_s16 + $0x20] sm:$0xf]  ;;  %s15766_s27 = scalar_lea.vmem %s15765_s26, 1024 }
  0x34   : > { %v527_v46 = vrot.slane %v522_v38, 4  ;;  %v358_v49 = vsel %vm15941_vm5, 0, %v357_v34  ;;  %v913_v51 = vld [vmem:[#allocation2 + $0xc] sm:$0xf]  ;;  %815 = vst [vmem:[#allocation2 + $0x24] sm:$0xf] %v814_v47 }
  0x35   : > { %v16047_v52 = vrot.slane %v529_v41, 7  ;;  %v16049_v53 = vrot.slane %v537_v43, 7  ;;  %v540_v55 = vshll.u32 %v450_v28, 16  ;;  %359 = vst [vmem:[#allocation2 + $0x3c] sm:$0x1] %v358_v49  ;;  %v408_v56 = vsel %vm15949_vm8, 0, %v407_v39 }
  0x36   : > { %v16053_v57 = vld [vmem:[#allocation2 + $0x10] sm:$0xf]  ;;  %v16055_v58 = vld [vmem:[#allocation2 + $0x14] sm:$0x1]  ;;  %v988_v59 = vshrl.u32 %v913_v51, 16  ;;  %v991_v60 = vshll.u32 %v913_v51, 16  ;;  %v526_v61 = vsel %vm16009_vm15, %v518_v37, %v525_v45  ;;  %v818_v62 = vsel %vm15941_vm5, %v527_v46, %v817_v40 }
  0x37   : > { %409 = vst [vmem:[#allocation2 + $0x44] sm:$0x1] %v408_v56  ;;  %v997_v63 = vshll.u32 %v16053_v57, 16  ;;  %v1001_v0 = vshrl.u32 %v16053_v57, 16  ;;  %v1007_v1 = vshll.u32 %v16055_v58, 16  ;;  %v2171_v2 = vsel %vm1449_vm0, %v2121_v11, 0 }
  0x38   : > { %816 = vst.msk [vmem:[#allocation2 + $0x28] sm:$0xf] %vm332_vm1, %v526_v61  ;;  %819 = vst [vmem:[#allocation2 + $0x2c] sm:$0x1] %v818_v62  ;;  %v990_v3 = vrot.slane %v988_v59, 4  ;;  %v993_v4 = vrot.slane %v991_v60, 5  ;;  %v13654_v6 = vcombine.low %v913_v51, %v16053_v57  ;;  %v16071_v15 = vor.u32 %v532_v42, %v16047_v52 }
  0x39   : > { %v546_v9 = vshrl.u32 %v16045_v50, 16  ;;  %v999_v10 = vrot.slane %v997_v63, 5  ;;  %v1003_v12 = vrot.slane %v1001_v0, 4  ;;  %v1009_v13 = vrot.slane %v1007_v1, 5  ;;  %v915_v14 = vld [vmem:[#allocation2 + $0x18] sm:$0xf] }
  0x3a   : > { %v994_v16 = vor.u32 %v993_v4, %v990_v3  ;;  %14909 = vmatmul.mubr.msk.bf16.vlgmr.msra.gmra.mxu1 %vm1400_vm10, %v13654_v6  ;;  %v916_v8 = vld [vmem:[#allocation2 + $0x1c] sm:$0xf]  ;;  %v946_v11 = vld [vmem:[#allocation2 + $0x20] sm:$0x1]  ;;  %v1012_v17 = vshrl.u32 %v915_v14, 16  ;;  %v1015_v18 = vshll.u32 %v915_v14, 16  ;;  %v542_v19 = vor.u32 %v540_v55, %v16049_v53 }
  0x3b   : > { %v1004_v20 = vor.u32 %v1003_v12, %v999_v10  ;;  %v1021_v22 = vshll.u32 %v916_v8, 16  ;;  %v1025_v23 = vshrl.u32 %v916_v8, 16  ;;  %v1031_v24 = vshll.u32 %v946_v11, 16  ;;  %v917_v29 = vld [vmem:[#allocation2 + $0x24] sm:$0xf] }
  0x3c   : > { %v995_v25 = vrot.slane %v994_v16, 4  ;;  %v1014_v26 = vrot.slane %v1012_v17, 4  ;;  %v1017_v27 = vrot.slane %v1015_v18, 5  ;;  %v13655_v28 = vcombine.low %v915_v14, %v916_v8  ;;  %v820_v60 = vld [vmem:[#allocation2 + $0x30] sm:$0xf] }
  0x3d   : > { %v1005_v30 = vrot.slane %v1004_v20, 4  ;;  %v1023_v31 = vrot.slane %v1021_v22, 5  ;;  %v1027_v32 = vrot.slane %v1025_v23, 4  ;;  %v1033_v33 = vrot.slane %v1031_v24, 5  ;;  %v824_v1 = vld [vmem:[#allocation2 + $0x38] sm:$0x1] }
  0x3e   : > { %v1000_v34 = vsel %vm15995_vm13, %v995_v25, %v999_v10  ;;  %v1018_v35 = vor.u32 %v1017_v27, %v1014_v26  ;;  %14912 = vmatprep.mubr.msk.bf16.mxu1 %vm1400_vm10, %v13655_v28  ;;  %v1036_v38 = vshrl.u32 %v917_v29, 16  ;;  %v1039_v39 = vshll.u32 %v917_v29, 16  ;;  %v452_v3 = vld [vmem:[%s15984_s16 + $0x24] sm:$0xf]  ;;  %v410_v14 = vld [vmem:[#allocation2 + $0x50] sm:$0x1] }
  0x3f   : > { %v918_v36 = vld [vmem:[#allocation2 + $0x28] sm:$0xf]  ;;  %v947_v37 = vld [vmem:[#allocation2 + $0x2c] sm:$0x1]  ;;  %v1010_v40 = vsel %vm15995_vm13, %v1005_v30, %v1009_v13  ;;  %v1028_v41 = vor.u32 %v1027_v32, %v1023_v31  ;;  %v535_v0 = vrot.slane %v16047_v52, 4  ;;  %v544_v12 = vrot.slane %v16049_v53, 4 }
  0x40   : > { %v1045_v42 = vshll.u32 %v918_v36, 16  ;;  %v1049_v43 = vshrl.u32 %v918_v36, 16  ;;  %v13621_v45 = vcombine.low %v1000_v34, %v1010_v40  ;;  %v1019_v46 = vrot.slane %v1018_v35, 4  ;;  %v360_v13 = vld [vmem:[#allocation2 + $0x48] sm:$0x1] }
  0x41   : > { %v1038_v47 = vrot.slane %v1036_v38, 4  ;;  %v1041_v49 = vrot.slane %v1039_v39, 5  ;;  %v1029_v51 = vrot.slane %v1028_v41, 4  ;;  %v1055_v59 = vshll.u32 %v947_v37, 16  ;;  %v453_v11 = vld [vmem:[%s15984_s16 + $0x28] sm:$0xf] }
  0x42   : > { %v1047_v55 = vrot.slane %v1045_v42, 5  ;;  %v1051_v56 = vrot.slane %v1049_v43, 4  ;;  %14875 = vmatmul.mubr.msk.bf16.vlgmr.msra.gmra.mxu0 %vm1400_vm10, %v13621_v45  ;;  %v1024_v61 = vsel %vm15995_vm13, %v1019_v46, %v1023_v31  ;;  %v13656_v63 = vcombine.low %v917_v29, %v918_v36  ;;  %v454_v17 = vld [vmem:[%s15984_s16 + $0x2c] sm:$0xf]  ;;  %v827_v25 = vld [vmem:[#allocation2 + $0x3c] sm:$0xf] }
  0x43   : > { %v1042_v62 = vor.u32 %v1041_v49, %v1038_v47  ;;  %14941 = vmatpush3.bf16.msra.mxu0 %v2171_v2  ;;  %v1034_v4 = vsel %vm15995_vm13, %v1029_v51, %v1033_v33  ;;  %v1057_v10 = vrot.slane %v1055_v59, 5  ;;  %v543_v52 = vsel %vm16009_vm15, %v535_v0, %v542_v19  ;;  %v363_v19 = vld [vmem:[#allocation2 + $0x54] sm:$0x1]  ;;  %v413_v29 = vld [vmem:[#allocation2 + $0x5c] sm:$0x1] }
  0x44   : > { %v1052_v6 = vor.u32 %v1051_v56, %v1047_v55  ;;  %v13622_v16 = vcombine.low %v1024_v61, %v1034_v4  ;;  %14913 = vmatmul.mubr.msk.bf16.gmra.mxu1 %vm1400_vm10, %v13656_v63  ;;  %v821_v2 = vsel %vm16003_vm14, %v16071_v15, %v820_v60  ;;  %823 = vst.msk [vmem:[#allocation2 + $0x34] sm:$0xf] %vm332_vm1, %v543_v52  ;;  %v548_v20 = vrot.slane %v546_v9, 7  ;;  %v16112_v30 = vld [vmem:[%s15984_s16 + $0x30] sm:$0xf] }
  0x45   : > { %v1043_v8 = vrot.slane %v1042_v62, 4  ;;  %822 = vst [vmem:[#allocation2 + $0x30] sm:$0xf] %v821_v2  ;;  %v825_v53 = vsel %vm15941_vm5, %v544_v12, %v824_v1  ;;  %v549_v22 = vshll.u32 %v16045_v50, 16  ;;  %v554_v23 = vshrl.u32 %v452_v3, 16 }
  0x46   : > { %v1053_v18 = vrot.slane %v1052_v6, 4  ;;  %14878 = vmatprep.mubr.msk.bf16.mxu0 %vm1400_vm10, %v13622_v16  ;;  %826 = vst [vmem:[#allocation2 + $0x38] sm:$0x1] %v825_v53  ;;  %v557_v24 = vshll.u32 %v452_v3, 16  ;;  %v361_v26 = vsel %vm15941_vm5, 0, %v360_v13  ;;  %v552_v28 = vrot.slane %v548_v20, 4 }
  0x47   : > { %v1048_v15 = vsel %vm15995_vm13, %v1043_v8, %v1047_v55  ;;  %v551_v27 = vor.u32 %v549_v22, %v548_v20  ;;  %362 = vst [vmem:[#allocation2 + $0x48] sm:$0x1] %v361_v26  ;;  %v411_v50 = vsel %vm15949_vm8, 0, %v410_v14  ;;  %v556_v32 = vrot.slane %v554_v23, 7  ;;  %v16115_v35 = vld [vmem:[%s15984_s16 + $0x34] sm:$0xf] }
  0x48   : > { %v1058_v9 = vsel %vm15995_vm13, %v1053_v18, %v1057_v10  ;;  %412 = vst [vmem:[#allocation2 + $0x50] sm:$0x1] %v411_v50  ;;  %v563_v33 = vshrl.u32 %v453_v11, 16  ;;  %v566_v34 = vshll.u32 %v453_v11, 16  ;;  %v831_v37 = vld [vmem:[#allocation2 + $0x44] sm:$0x1] }
  0x49   : > { %v13623_v31 = vcombine.low %v1048_v15, %v1058_v9  ;;  %v828_v36 = vsel %vm16003_vm14, %v551_v27, %v827_v25  ;;  %v571_v38 = vshrl.u32 %v454_v17, 16  ;;  %v574_v39 = vshll.u32 %v454_v17, 16  ;;  %v366_v16 = vld [vmem:[#allocation2 + $0x60] sm:$0x1] }
  0x4a   : > { %v364_v40 = vsel %vm15941_vm5, 0, %v363_v19  ;;  %v559_v41 = vor.u32 %v557_v24, %v556_v32  ;;  %v561_v42 = vrot.slane %v556_v32, 4  ;;  %829 = vst [vmem:[#allocation2 + $0x3c] sm:$0xf] %v828_v36  ;;  %v565_v43 = vrot.slane %v563_v33, 7 }
  0x4b   : > { %14879 = vmatmul.mubr.msk.bf16.gmra.mxu0 %vm1400_vm10, %v13623_v31  ;;  %365 = vst [vmem:[#allocation2 + $0x54] sm:$0x1] %v364_v40  ;;  %v414_v45 = vsel %vm15949_vm8, 0, %v413_v29  ;;  %v573_v46 = vrot.slane %v571_v38, 7  ;;  %v580_v47 = vshrl.u32 %v16112_v30, 16  ;;  %v583_v49 = vshll.u32 %v16112_v30, 16 }
  0x4c   : > { %415 = vst [vmem:[#allocation2 + $0x5c] sm:$0x1] %v414_v45  ;;  %v588_v51 = vshrl.u32 %v16115_v35, 16  ;;  %v919_v55 = vld [vmem:[#allocation2 + $0x30] sm:$0xf]  ;;  %v560_v59 = vsel %vm16009_vm15, %v552_v28, %v559_v41  ;;  %v832_v60 = vsel %vm15941_vm5, %v561_v42, %v831_v37  ;;  %v568_v61 = vor.u32 %v566_v34, %v565_v43 }
  0x4d   : > { %v920_v56 = vld [vmem:[#allocation2 + $0x34] sm:$0xf]  ;;  %v569_v62 = vrot.slane %v565_v43, 4  ;;  %v948_v63 = vld [vmem:[#allocation2 + $0x38] sm:$0x1]  ;;  %v1060_v0 = vshrl.u32 %v919_v55, 16  ;;  %v576_v12 = vor.u32 %v574_v39, %v573_v46 }
  0x4e   : > { %v1063_v1 = vshll.u32 %v919_v55, 16  ;;  %v1069_v3 = vshll.u32 %v920_v56, 16  ;;  %v1073_v4 = vshrl.u32 %v920_v56, 16  ;;  %830 = vst.msk [vmem:[#allocation2 + $0x40] sm:$0xf] %vm332_vm1, %v560_v59  ;;  %v1079_v6 = vshll.u32 %v948_v63, 16 }
  0x4f   : > { %833 = vst [vmem:[#allocation2 + $0x44] sm:$0x1] %v832_v60  ;;  %v13657_v10 = vcombine.low %v919_v55, %v920_v56  ;;  %v578_v13 = vrot.slane %v573_v46, 4  ;;  %v834_v14 = vld [vmem:[#allocation2 + $0x48] sm:$0xf]  ;;  %v1062_v8 = vrot.slane %v1060_v0, 4  ;;  %v577_v53 = vsel %vm16009_vm15, %v569_v62, %v576_v12 }
  0x50   : > { %v1065_v52 = vrot.slane %v1063_v1, 5  ;;  %v1071_v2 = vrot.slane %v1069_v3, 5  ;;  %v1075_v11 = vrot.slane %v1073_v4, 4  ;;  %v838_v17 = vld [vmem:[#allocation2 + $0x50] sm:$0x1]  ;;  %v1081_v18 = vrot.slane %v1079_v6, 5 }
  0x51   : > { %14916 = vmatprep.mubr.msk.bf16.mxu1 %vm1400_vm10, %v13657_v10  ;;  %v835_v20 = vsel %vm16003_vm14, %v568_v61, %v834_v14  ;;  %v839_v22 = vsel %vm15941_vm5, %v578_v13, %v838_v17  ;;  %v921_v23 = vld [vmem:[#allocation2 + $0x3c] sm:$0xf]  ;;  %837 = vst.msk [vmem:[#allocation2 + $0x4c] sm:$0xf] %vm332_vm1, %v577_v53  ;;  %v582_v24 = vrot.slane %v580_v47, 7  ;;  %v590_v25 = vrot.slane %v588_v51, 7 }
  0x52   : > { %v1066_v19 = vor.u32 %v1065_v52, %v1062_v8  ;;  %v1076_v15 = vor.u32 %v1075_v11, %v1071_v2  ;;  %836 = vst [vmem:[#allocation2 + $0x48] sm:$0xf] %v835_v20  ;;  %840 = vst [vmem:[#allocation2 + $0x50] sm:$0x1] %v839_v22  ;;  %v1084_v26 = vshrl.u32 %v921_v23, 16  ;;  %v1087_v9 = vshll.u32 %v921_v23, 16 }
  0x53   : > { %v591_v27 = vshll.u32 %v16115_v35, 16  ;;  %v367_v28 = vsel %vm15941_vm5, 0, %v366_v16  ;;  %v1962_v50 = vrot.slane %v15978_v21, 5  ;;  %v586_v31 = vrot.slane %v582_v24, 4  ;;  %v841_v42 = vld [vmem:[#allocation2 + $0x54] sm:$0xf] }
  0x54   : > { %v1067_v29 = vrot.slane %v1066_v19, 4  ;;  %v1077_v30 = vrot.slane %v1076_v15, 4  ;;  %368 = vst [vmem:[#allocation2 + $0x60] sm:$0x1] %v367_v28  ;;  %v1086_v34 = vrot.slane %v1084_v26, 4  ;;  %v1089_v36 = vrot.slane %v1087_v9, 5 }
  0x55   : > { %v922_v32 = vld [vmem:[#allocation2 + $0x40] sm:$0xf]  ;;  %v585_v37 = vor.u32 %v583_v49, %v582_v24  ;;  %v593_v38 = vor.u32 %v591_v27, %v590_v25  ;;  %v595_v49 = vrot.slane %v590_v25, 4  ;;  %v845_v59 = vld [vmem:[#allocation2 + $0x5c] sm:$0x1]  ;;  %vm1954_vm2 = vcmask 1042432  }
  0x56   : > { %v949_v33 = vld [vmem:[#allocation2 + $0x44] sm:$0x1]  ;;  %v1072_v39 = vsel %vm15995_vm13, %v1067_v29, %v1071_v2  ;;  %v1082_v35 = vsel %vm15995_vm13, %v1077_v30, %v1081_v18  ;;  %v1093_v40 = vshll.u32 %v922_v32, 16  ;;  %v1097_v41 = vshrl.u32 %v922_v32, 16  ;;  %v416_v60 = vld [vmem:[#allocation2 + $0x68] sm:$0x1] }
  0x57   : > { %v13624_v43 = vcombine.low %v1072_v39, %v1082_v35  ;;  %v1090_v45 = vor.u32 %v1089_v36, %v1086_v34  ;;  %v1103_v46 = vshll.u32 %v949_v33, 16  ;;  %v13658_v47 = vcombine.low %v921_v23, %v922_v32  ;;  %v457_v52 = vld [vmem:[%s15984_s16 + $0x38] sm:$0xf]  ;;  %v458_v2 = vld [vmem:[%s15984_s16 + $0x3c] sm:$0xf] }
  0x58   : > { %v1095_v51 = vrot.slane %v1093_v40, 5  ;;  %v1099_v55 = vrot.slane %v1097_v41, 4  ;;  %v594_v56 = vsel %vm16009_vm15, %v586_v31, %v593_v38  ;;  %v924_v0 = vld [vmem:[#allocation2 + $0x4c] sm:$0xf]  ;;  %v842_v1 = vsel %vm16003_vm14, %v585_v37, %v841_v42  ;;  %v419_v24 = vld [vmem:[#allocation2 + $0x74] sm:$0x1] }
  0x59   : > { %14882 = vmatprep.mubr.msk.bf16.mxu0 %vm1400_vm10, %v13624_v43  ;;  %v1091_v61 = vrot.slane %v1090_v45, 4  ;;  %v1105_v62 = vrot.slane %v1103_v46, 5  ;;  %14917 = vmatmul.mubr.msk.bf16.gmra.mxu1 %vm1400_vm10, %v13658_v47  ;;  %v923_v63 = vld [vmem:[#allocation2 + $0x48] sm:$0xf]  ;;  %844 = vst.msk [vmem:[#allocation2 + $0x58] sm:$0xf] %vm332_vm1, %v594_v56  ;;  %v846_v15 = vsel %vm15941_vm5, %v595_v49, %v845_v59 }
  0x5a   : > { %v1100_v3 = vor.u32 %v1099_v55, %v1095_v51  ;;  %v950_v4 = vld [vmem:[#allocation2 + $0x50] sm:$0x1]  ;;  %v1108_v6 = vshrl.u32 %v923_v63, 16  ;;  %v1111_v10 = vshll.u32 %v923_v63, 16  ;;  %v1117_v12 = vshll.u32 %v924_v0, 16 }
  0x5b   : > { %843 = vst [vmem:[#allocation2 + $0x54] sm:$0xf] %v842_v1  ;;  %v1096_v13 = vsel %vm15995_vm13, %v1091_v61, %v1095_v51  ;;  %v1121_v14 = vshrl.u32 %v924_v0, 16  ;;  %v1127_v16 = vshll.u32 %v950_v4, 16  ;;  %v13659_v8 = vcombine.low %v923_v63, %v924_v0  ;;  %v369_v20 = vld [vmem:[#allocation2 + $0x6c] sm:$0x1] }
  0x5c   : > { %v1101_v11 = vrot.slane %v1100_v3, 4  ;;  %v1110_v17 = vrot.slane %v1108_v6, 4  ;;  %v1113_v18 = vrot.slane %v1111_v10, 5  ;;  %v1119_v53 = vrot.slane %v1117_v12, 5  ;;  %847 = vst [vmem:[#allocation2 + $0x5c] sm:$0x1] %v846_v15 }
  0x5d   : > { %v1123_v22 = vrot.slane %v1121_v14, 4  ;;  %v1129_v19 = vrot.slane %v1127_v16, 5  ;;  %14920 = vmatprep.mubr.msk.bf16.mxu1 %vm1400_vm10, %v13659_v8  ;;  %v417_v23 = vsel %vm15949_vm8, 0, %v416_v60  ;;  %v597_v9 = vshrl.u32 %v457_v52, 16  ;;  %v848_v47 = vld [vmem:[#allocation2 + $0x60] sm:$0xf] }
  0x5e   : > { %v1106_v25 = vsel %vm15995_vm13, %v1101_v11, %v1105_v62  ;;  %v1114_v26 = vor.u32 %v1113_v18, %v1110_v17  ;;  %418 = vst [vmem:[#allocation2 + $0x68] sm:$0x1] %v417_v23  ;;  %v600_v27 = vshll.u32 %v457_v52, 16  ;;  %v605_v30 = vshrl.u32 %v458_v2, 16  ;;  %v459_v51 = vld [vmem:[%s15984_s16 + $0x40] sm:$0xf] }
  0x5f   : > { %v13625_v28 = vcombine.low %v1096_v13, %v1106_v25  ;;  %v1124_v29 = vor.u32 %v1123_v22, %v1119_v53  ;;  %v608_v31 = vshll.u32 %v458_v2, 16  ;;  %v599_v34 = vrot.slane %v597_v9, 7  ;;  %v460_v60 = vld [vmem:[%s15984_s16 + $0x44] sm:$0xf]  ;;  %v372_v1 = vld [vmem:[#allocation2 + $0x78] sm:$0x1] }
  0x60   : > { %v1115_v32 = vrot.slane %v1114_v26, 4  ;;  %v16166_v33 = vld [vmem:[#allocation2 + $0x58] sm:$0xf]  ;;  %v370_v36 = vsel %vm15941_vm5, 0, %v369_v20  ;;  %v420_v37 = vsel %vm15949_vm8, 0, %v419_v24  ;;  %v607_v41 = vrot.slane %v605_v30, 7 }
  0x61   : > { %14883 = vmatmul.mubr.msk.bf16.gmra.mxu0 %vm1400_vm10, %v13625_v28  ;;  %v1125_v38 = vrot.slane %v1124_v29, 4  ;;  %v1141_v35 = vshll.u32 %v16166_v33, 16  ;;  %v1145_v40 = vshrl.u32 %v16166_v33, 16  ;;  %371 = vst [vmem:[#allocation2 + $0x6c] sm:$0x1] %v370_v36  ;;  %v602_v59 = vor.u32 %v600_v27, %v599_v34 }
  0x62   : > { %v925_v39 = vld [vmem:[#allocation2 + $0x54] sm:$0xf]  ;;  %421 = vst [vmem:[#allocation2 + $0x74] sm:$0x1] %v420_v37  ;;  %v1120_v42 = vsel %vm15995_vm13, %v1115_v32, %v1119_v53  ;;  %v603_v0 = vrot.slane %v599_v34, 4  ;;  %v610_v10 = vor.u32 %v608_v31, %v607_v41  ;;  %v612_v12 = vrot.slane %v607_v41, 4 }
  0x63   : > { %v1132_v43 = vshrl.u32 %v925_v39, 16  ;;  %v1135_v45 = vshll.u32 %v925_v39, 16  ;;  %v13660_v46 = vcombine.low %v925_v39, %v16166_v33  ;;  %v1130_v55 = vsel %vm15995_vm13, %v1125_v38, %v1129_v19  ;;  %v422_v3 = vld [vmem:[#allocation2 + $0x80] sm:$0x1]  ;;  %v16183_v4 = vld [vmem:[#allocation2 + $0x5c] sm:$0x1] }
  0x64   : > { %v1143_v56 = vrot.slane %v1141_v35, 5  ;;  %v1147_v49 = vrot.slane %v1145_v40, 4  ;;  %v13626_v61 = vcombine.low %v1120_v42, %v1130_v55  ;;  %v849_v13 = vsel %vm16003_vm14, %v602_v59, %v848_v47  ;;  %v461_v11 = vld [vmem:[%s15984_s16 + $0x48] sm:$0xf]  ;;  %v462_v22 = vld [vmem:[%s15984_s16 + $0x4c] sm:$0xf] }
  0x65   : > { %v1134_v62 = vrot.slane %v1132_v43, 4  ;;  %v1137_v63 = vrot.slane %v1135_v45, 5  ;;  %14921 = vmatmul.mubr.msk.bf16.gmra.mxu1 %vm1400_vm10, %v13660_v46  ;;  %v852_v14 = vld [vmem:[#allocation2 + $0x68] sm:$0x1]  ;;  %v1151_v8 = vshll.u32 %v16183_v4, 16  ;;  %v614_v52 = vshrl.u32 %v459_v51, 16 }
  0x66   : > { %v1148_v6 = vor.u32 %v1147_v49, %v1143_v56  ;;  %14886 = vmatprep.mubr.msk.bf16.mxu0 %vm1400_vm10, %v13626_v61  ;;  %850 = vst [vmem:[#allocation2 + $0x60] sm:$0xf] %v849_v13  ;;  %v617_v2 = vshll.u32 %v459_v51, 16  ;;  %v611_v18 = vsel %vm16009_vm15, %v603_v0, %v610_v10  ;;  %v853_v53 = vsel %vm15941_vm5, %v612_v12, %v852_v14  ;;  %v16198_v19 = vld [vmem:[%s21813_s1 + $0x4] sm:$0x1] }
  0x67   : > { %v1138_v16 = vor.u32 %v1137_v63, %v1134_v62  ;;  %v622_v20 = vshrl.u32 %v460_v60, 16  ;;  %v1153_v23 = vrot.slane %v1151_v8, 5  ;;  %851 = vst.msk [vmem:[#allocation2 + $0x64] sm:$0xf] %vm332_vm1, %v611_v18  ;;  %854 = vst [vmem:[#allocation2 + $0x68] sm:$0x1] %v853_v53  ;;  %15542 = vmatprep.subr.msk.bf16.mxu0 %vm1449_vm0, %v16198_v19 }
  0x68   : > { %v1149_v17 = vrot.slane %v1148_v6, 4  ;;  %v616_v24 = vrot.slane %v614_v52, 7  ;;  %v625_v25 = vshll.u32 %v460_v60, 16  ;;  %v855_v26 = vld [vmem:[#allocation2 + $0x6c] sm:$0xf]  ;;  %v373_v29 = vsel %vm15941_vm5, 0, %v372_v1 }
  0x69   : > { %v1139_v15 = vrot.slane %v1138_v16, 4  ;;  %v375_v9 = vld [vmem:[#allocation2 + $0x84] sm:$0x1]  ;;  %v624_v27 = vrot.slane %v622_v20, 7  ;;  %v859_v28 = vld [vmem:[#allocation2 + $0x74] sm:$0x1] }
  0x6a   : > { %v423_v30 = vsel %vm15949_vm8, 0, %v422_v3  ;;  %v631_v31 = vshrl.u32 %v461_v11, 16  ;;  %v1154_v34 = vsel %vm15995_vm13, %v1149_v17, %v1153_v23  ;;  %v619_v36 = vor.u32 %v617_v2, %v616_v24  ;;  %374 = vst [vmem:[#allocation2 + $0x78] sm:$0x1] %v373_v29  ;;  %v425_v38 = vld [vmem:[#allocation2 + $0x8c] sm:$0x1] }
  0x6b   : > { %v1144_v32 = vsel %vm15995_vm13, %v1139_v15, %v1143_v56  ;;  %v620_v37 = vrot.slane %v616_v24, 4  ;;  %424 = vst [vmem:[#allocation2 + $0x80] sm:$0x1] %v423_v30  ;;  %v627_v35 = vor.u32 %v625_v25, %v624_v27  ;;  %v629_v40 = vrot.slane %v624_v27, 4  ;;  %v16214_v47 = vld [vmem:[%s15984_s16 + $0x50] sm:$0xf] }
  0x6c   : > { %v13627_v39 = vcombine.low %v1144_v32, %v1154_v34  ;;  %v633_v41 = vrot.slane %v631_v31, 7  ;;  %v856_v42 = vsel %vm16003_vm14, %v619_v36, %v855_v26  ;;  %v634_v43 = vshll.u32 %v461_v11, 16  ;;  %v16231_v6 = vld [vmem:[%s15984_s16 + $0x54] sm:$0xf]  ;;  %v1909_v21 = vld [vmem:[#allocation2 + $0x24] sm:$0xe] }
  0x6d   : > { %v639_v45 = vshrl.u32 %v462_v22, 16  ;;  %v642_v46 = vshll.u32 %v462_v22, 16  ;;  %v927_v51 = vld [vmem:[#allocation2 + $0x60] sm:$0xf]  ;;  %v628_v55 = vsel %vm16009_vm15, %v620_v37, %v627_v35  ;;  %857 = vst [vmem:[#allocation2 + $0x6c] sm:$0xf] %v856_v42  ;;  %v860_v56 = vsel %vm15941_vm5, %v629_v40, %v859_v28 }
  0x6e   : > { %14887 = vmatmul.mubr.msk.bf16.gmra.mxu0 %vm1400_vm10, %v13627_v39  ;;  %v637_v49 = vrot.slane %v633_v41, 4  ;;  %v376_v59 = vsel %vm15941_vm5, 0, %v375_v9  ;;  %v1156_v60 = vshrl.u32 %v927_v51, 16  ;;  %v1159_v61 = vshll.u32 %v927_v51, 16  ;;  %858 = vst.msk [vmem:[#allocation2 + $0x70] sm:$0xf] %vm332_vm1, %v628_v55 }
  0x6f   : > { %861 = vst [vmem:[#allocation2 + $0x74] sm:$0x1] %v860_v56  ;;  %v636_v62 = vor.u32 %v634_v43, %v633_v41  ;;  %v641_v63 = vrot.slane %v639_v45, 7  ;;  %377 = vst [vmem:[#allocation2 + $0x84] sm:$0x1] %v376_v59  ;;  %v426_v3 = vsel %vm15949_vm8, 0, %v425_v38 }
  0x70   : > { %v16224_v0 = vld [vmem:[#allocation2 + $0x64] sm:$0xf]  ;;  %v16226_v1 = vld [vmem:[#allocation2 + $0x68] sm:$0x1]  ;;  %v648_v10 = vshrl.u32 %v16214_v47, 16  ;;  %v1158_v12 = vrot.slane %v1156_v60, 4 }
  0x71   : > { %v1161_v13 = vrot.slane %v1159_v61, 5  ;;  %v1165_v14 = vshll.u32 %v16224_v0, 16  ;;  %v1169_v16 = vshrl.u32 %v16224_v0, 16  ;;  %427 = vst [vmem:[#allocation2 + $0x8c] sm:$0x1] %v426_v3  ;;  %v1175_v8 = vshll.u32 %v16226_v1, 16 }
  0x72   : > { %v13661_v52 = vcombine.low %v927_v51, %v16224_v0  ;;  %v644_v2 = vor.u32 %v642_v46, %v641_v63  ;;  %v646_v11 = vrot.slane %v641_v63, 4  ;;  %v862_v17 = vld [vmem:[#allocation2 + $0x78] sm:$0xf]  ;;  %v866_v18 = vld [vmem:[#allocation2 + $0x80] sm:$0x1]  ;;  %v16245_v26 = vrot.slane %v648_v10, 7 }
  0x73   : > { %v1162_v53 = vor.u32 %v1161_v13, %v1158_v12  ;;  %v1167_v20 = vrot.slane %v1165_v14, 5  ;;  %v1171_v22 = vrot.slane %v1169_v16, 4  ;;  %v863_v15 = vsel %vm16003_vm14, %v636_v62, %v862_v17 }
  0x74   : > { %v1177_v23 = vrot.slane %v1175_v8, 5  ;;  %14924 = vmatprep.mubr.msk.bf16.mxu1 %vm1400_vm10, %v13661_v52  ;;  %v645_v24 = vsel %vm16009_vm15, %v637_v49, %v644_v2  ;;  %864 = vst [vmem:[#allocation2 + $0x78] sm:$0xf] %v863_v15  ;;  %v867_v25 = vsel %vm15941_vm5, %v646_v11, %v866_v18  ;;  %v929_v28 = vld [vmem:[#allocation2 + $0x6c] sm:$0xf]  ;;  %v651_v29 = vshll.u32 %v16214_v47, 16 }
  0x75   : > { %v1163_v9 = vrot.slane %v1162_v53, 4  ;;  %v1172_v27 = vor.u32 %v1171_v22, %v1167_v20  ;;  %865 = vst.msk [vmem:[#allocation2 + $0x7c] sm:$0xf] %vm332_vm1, %v645_v24  ;;  %868 = vst [vmem:[#allocation2 + $0x80] sm:$0x1] %v867_v25  ;;  %v656_v30 = vshrl.u32 %v16231_v6, 16 }
  0x76   : > { %v16250_v31 = vld [vmem:[#allocation2 + $0x70] sm:$0xf]  ;;  %v16252_v32 = vld [vmem:[#allocation2 + $0x74] sm:$0x1]  ;;  %v1180_v34 = vshrl.u32 %v929_v28, 16  ;;  %v1183_v36 = vshll.u32 %v929_v28, 16  ;;  %v653_v55 = vor.u32 %v651_v29, %v16245_v26 }
  0x77   : > { %v1168_v37 = vsel %vm15995_vm13, %v1163_v9, %v1167_v20  ;;  %v1173_v38 = vrot.slane %v1172_v27, 4  ;;  %v1189_v39 = vshll.u32 %v16250_v31, 16  ;;  %v1193_v35 = vshrl.u32 %v16250_v31, 16  ;;  %v869_v45 = vld [vmem:[#allocation2 + $0x84] sm:$0xf] }
  0x78   : > { %v1182_v40 = vrot.slane %v1180_v34, 4  ;;  %v1185_v41 = vrot.slane %v1183_v36, 5  ;;  %v1199_v42 = vshll.u32 %v16252_v32, 16  ;;  %v13662_v43 = vcombine.low %v929_v28, %v16250_v31  ;;  %v378_v8 = vld [vmem:[#allocation2 + $0x90] sm:$0x1] }
  0x79   : > { %v1178_v46 = vsel %vm15995_vm13, %v1173_v38, %v1177_v23  ;;  %v1191_v47 = vrot.slane %v1189_v39, 5  ;;  %v1195_v51 = vrot.slane %v1193_v35, 4  ;;  %v654_v60 = vrot.slane %v16245_v26, 4  ;;  %v428_v52 = vld [vmem:[#allocation2 + $0x98] sm:$0x1] }
  0x7a   : > { %v13628_v56 = vcombine.low %v1168_v37, %v1178_v46  ;;  %v1186_v49 = vor.u32 %v1185_v41, %v1182_v40  ;;  %v1201_v59 = vrot.slane %v1199_v42, 5  ;;  %14925 = vmatmul.mubr.msk.bf16.gmra.mxu1 %vm1400_vm10, %v13662_v43  ;;  %v658_v63 = vrot.slane %v656_v30, 7  ;;  %v873_v18 = vld [vmem:[#allocation2 + $0x8c] sm:$0x1]  ;;  %v465_v53 = vld [vmem:[%s15984_s16 + $0x58] sm:$0xf] }
  0x7b   : > { %v1196_v61 = vor.u32 %v1195_v51, %v1191_v47  ;;  %v931_v62 = vld [vmem:[#allocation2 + $0x78] sm:$0xf]  ;;  %v659_v3 = vshll.u32 %v16231_v6, 16  ;;  %v870_v10 = vsel %vm16003_vm14, %v653_v55, %v869_v45  ;;  %v466_v24 = vld [vmem:[%s15984_s16 + $0x5c] sm:$0xf]  ;;  %v379_v39 = vsel %vm15941_vm5, 0, %v378_v8 }
  0x7c   : > { %14890 = vmatprep.mubr.msk.bf16.mxu0 %vm1400_vm10, %v13628_v56  ;;  %v1187_v12 = vrot.slane %v1186_v49, 4  ;;  %v16269_v13 = vld [vmem:[#allocation2 + $0x7c] sm:$0xf]  ;;  %v16271_v14 = vld [vmem:[#allocation2 + $0x80] sm:$0x1]  ;;  %v1204_v16 = vshrl.u32 %v931_v62, 16 }
  0x7d   : > { %871 = vst [vmem:[#allocation2 + $0x84] sm:$0xf] %v870_v10  ;;  %v1197_v2 = vrot.slane %v1196_v61, 4  ;;  %v1207_v11 = vshll.u32 %v931_v62, 16  ;;  %v1213_v17 = vshll.u32 %v16269_v13, 16  ;;  %v1217_v6 = vshrl.u32 %v16269_v13, 16 }
  0x7e   : > { %v1192_v20 = vsel %vm15995_vm13, %v1187_v12, %v1191_v47  ;;  %v1206_v22 = vrot.slane %v1204_v16, 4  ;;  %v1223_v15 = vshll.u32 %v16271_v14, 16  ;;  %v13663_v23 = vcombine.low %v931_v62, %v16269_v13  ;;  %v381_v36 = vld [vmem:[#allocation2 + $0x9c] sm:$0x1]  ;;  %v431_v40 = vld [vmem:[#allocation2 + $0xa4] sm:$0x1] }
  0x7f   : > { %v1202_v25 = vsel %vm15995_vm13, %v1197_v2, %v1201_v59  ;;  %v1209_v26 = vrot.slane %v1207_v11, 5  ;;  %v1215_v9 = vrot.slane %v1213_v17, 5  ;;  %v1219_v27 = vrot.slane %v1217_v6, 4  ;;  %380 = vst [vmem:[#allocation2 + $0x90] sm:$0x1] %v379_v39 }
  0x80   : > { %v13629_v28 = vcombine.low %v1192_v20, %v1202_v25  ;;  %v1225_v29 = vrot.slane %v1223_v15, 5  ;;  %14928 = vmatprep.mubr.msk.bf16.mxu1 %vm1400_vm10, %v13663_v23  ;;  %v661_v30 = vor.u32 %v659_v3, %v658_v63  ;;  %v663_v34 = vrot.slane %v658_v63, 4  ;;  %v467_v46 = vld [vmem:[%s15984_s16 + $0x60] sm:$0xf]  ;;  %v468_v16 = vld [vmem:[%s15984_s16 + $0x64] sm:$0xf] }
  0x81   : > { %v1210_v37 = vor.u32 %v1209_v26, %v1206_v22  ;;  %v1220_v38 = vor.u32 %v1219_v27, %v1215_v9  ;;  %v429_v35 = vsel %vm15949_vm8, 0, %v428_v52  ;;  %v665_v43 = vshrl.u32 %v465_v53, 16  ;;  %v384_v17 = vld [vmem:[#allocation2 + $0xa8] sm:$0x1]  ;;  %v434_v25 = vld [vmem:[#allocation2 + $0xb0] sm:$0x1] }
  0x82   : > { %14891 = vmatmul.mubr.msk.bf16.gmra.mxu0 %vm1400_vm10, %v13629_v28  ;;  %v662_v41 = vsel %vm16009_vm15, %v654_v60, %v661_v30  ;;  %v874_v42 = vsel %vm15941_vm5, %v663_v34, %v873_v18  ;;  %430 = vst [vmem:[#allocation2 + $0x98] sm:$0x1] %v429_v35  ;;  %v668_v45 = vshll.u32 %v465_v53, 16  ;;  %v673_v56 = vshrl.u32 %v466_v24, 16  ;;  %v469_v34 = vld [vmem:[%s15984_s16 + $0x68] sm:$0xf] }
  0x83   : > { %v1211_v47 = vrot.slane %v1210_v37, 4  ;;  %v1221_v51 = vrot.slane %v1220_v38, 4  ;;  %872 = vst.msk [vmem:[#allocation2 + $0x88] sm:$0xf] %vm332_vm1, %v662_v41  ;;  %875 = vst [vmem:[#allocation2 + $0x8c] sm:$0x1] %v874_v42 }
  0x84   : > { %v933_v55 = vld [vmem:[#allocation2 + $0x84] sm:$0xf]  ;;  %v676_v49 = vshll.u32 %v466_v24, 16  ;;  %v667_v60 = vrot.slane %v665_v43, 7  ;;  %v382_v62 = vsel %vm15941_vm5, 0, %v381_v36  ;;  %v675_v10 = vrot.slane %v673_v56, 7 }
  0x85   : > { %v1228_v59 = vshrl.u32 %v933_v55, 16  ;;  %v1231_v61 = vshll.u32 %v933_v55, 16  ;;  %v1216_v63 = vsel %vm15995_vm13, %v1211_v47, %v1215_v9  ;;  %v1226_v3 = vsel %vm15995_vm13, %v1221_v51, %v1225_v29  ;;  %383 = vst [vmem:[#allocation2 + $0x9c] sm:$0x1] %v382_v62  ;;  %v16322_v41 = vld [vmem:[%s15984_s16 + $0x6c] sm:$0xf] }
  0x86   : > { %v432_v12 = vsel %vm15949_vm8, 0, %v431_v40  ;;  %v13630_v8 = vcombine.low %v1216_v63, %v1226_v3  ;;  %v670_v11 = vor.u32 %v668_v45, %v667_v60  ;;  %v671_v6 = vrot.slane %v667_v60, 4  ;;  %v876_v27 = vld [vmem:[#allocation2 + $0x90] sm:$0xf]  ;;  %v387_v47 = vld [vmem:[#allocation2 + $0xb4] sm:$0x1] }
  0x87   : > { %v1230_v52 = vrot.slane %v1228_v59, 4  ;;  %v1233_v2 = vrot.slane %v1231_v61, 5  ;;  %433 = vst [vmem:[#allocation2 + $0xa4] sm:$0x1] %v432_v12  ;;  %v678_v18 = vor.u32 %v676_v49, %v675_v10  ;;  %v680_v53 = vrot.slane %v675_v10, 4 }
  0x88   : > { %v682_v20 = vshrl.u32 %v467_v46, 16  ;;  %v1966_v22 = vrot.slane %v16053_v57, 5  ;;  %14894 = vmatprep.mubr.msk.bf16.mxu0 %vm1400_vm10, %v13630_v8  ;;  %v685_v15 = vshll.u32 %v467_v46, 16  ;;  %v690_v23 = vshrl.u32 %v468_v16, 16  ;;  %v437_v51 = vld [vmem:[#allocation2 + $0xbc] sm:$0x1] }
  0x89   : > { %v693_v24 = vshll.u32 %v468_v16, 16  ;;  %v1234_v26 = vor.u32 %v1233_v2, %v1230_v52  ;;  %v679_v9 = vsel %vm16009_vm15, %v671_v6, %v678_v18  ;;  %v880_v28 = vld [vmem:[#allocation2 + $0x98] sm:$0x1]  ;;  %v385_v30 = vsel %vm15941_vm5, 0, %v384_v17 }
  0x8a   : > { %v684_v29 = vrot.slane %v682_v20, 7  ;;  %v1969_v36 = vrot.slane %v16055_v58, 5  ;;  %v16312_v37 = vld [vmem:[#allocation2 + $0x88] sm:$0xf]  ;;  %v16314_v38 = vld [vmem:[#allocation2 + $0x8c] sm:$0x1]  ;;  %v877_v39 = vsel %vm16003_vm14, %v670_v11, %v876_v27  ;;  %v881_v35 = vsel %vm15941_vm5, %v680_v53, %v880_v28 }
  0x8b   : > { %879 = vst.msk [vmem:[#allocation2 + $0x94] sm:$0xf] %vm332_vm1, %v679_v9  ;;  %v692_v40 = vrot.slane %v690_v23, 7  ;;  %386 = vst [vmem:[#allocation2 + $0xa8] sm:$0x1] %v385_v30  ;;  %v1237_v42 = vshll.u32 %v16312_v37, 16  ;;  %v13664_v46 = vcombine.low %v933_v55, %v16312_v37 }
  0x8c   : > { %v1241_v43 = vshrl.u32 %v16312_v37, 16  ;;  %v1247_v45 = vshll.u32 %v16314_v38, 16  ;;  %878 = vst [vmem:[#allocation2 + $0x90] sm:$0xf] %v877_v39  ;;  %882 = vst [vmem:[#allocation2 + $0x98] sm:$0x1] %v881_v35  ;;  %v687_v56 = vor.u32 %v685_v15, %v684_v29 }
  0x8d   : > { %v688_v49 = vrot.slane %v684_v29, 4  ;;  %v695_v59 = vor.u32 %v693_v24, %v692_v40  ;;  %v697_v61 = vrot.slane %v692_v40, 4  ;;  %v883_v60 = vld [vmem:[#allocation2 + $0x9c] sm:$0xf]  ;;  %v1235_v62 = vrot.slane %v1234_v26, 4  ;;  %14929 = vmatmul.mubr.msk.bf16.gmra.mxu1 %vm1400_vm10, %v13664_v46 }
  0x8e   : > { %v1239_v63 = vrot.slane %v1237_v42, 5  ;;  %v1243_v3 = vrot.slane %v1241_v43, 4  ;;  %v887_v10 = vld [vmem:[#allocation2 + $0xa4] sm:$0x1]  ;;  %v435_v12 = vsel %vm15949_vm8, 0, %v434_v25  ;;  %v884_v16 = vsel %vm16003_vm14, %v687_v56, %v883_v60 }
  0x8f   : > { %v696_v55 = vsel %vm16009_vm15, %v688_v49, %v695_v59  ;;  %v888_v8 = vsel %vm15941_vm5, %v697_v61, %v887_v10  ;;  %436 = vst [vmem:[#allocation2 + $0xb0] sm:$0x1] %v435_v12  ;;  %v699_v52 = vshrl.u32 %v469_v34, 16  ;;  %v1249_v11 = vrot.slane %v1247_v45, 5  ;;  %885 = vst [vmem:[#allocation2 + $0x9c] sm:$0xf] %v884_v16 }
  0x90   : > { %v1244_v2 = vor.u32 %v1243_v3, %v1239_v63  ;;  %886 = vst.msk [vmem:[#allocation2 + $0xa0] sm:$0xf] %vm332_vm1, %v696_v55  ;;  %889 = vst [vmem:[#allocation2 + $0xa4] sm:$0x1] %v888_v8  ;;  %v702_v17 = vshll.u32 %v469_v34, 16  ;;  %v707_v6 = vshrl.u32 %v16322_v41, 16  ;;  %v1240_v23 = vsel %vm15995_vm13, %v1235_v62, %v1239_v63 }
  0x91   : > { %v701_v18 = vrot.slane %v699_v52, 7  ;;  %v710_v53 = vshll.u32 %v16322_v41, 16  ;;  %v388_v20 = vsel %vm15941_vm5, 0, %v387_v47  ;;  %v438_v15 = vsel %vm15949_vm8, 0, %v437_v51  ;;  %v471_v10 = vld [vmem:[%s15984_s16 + $0x70] sm:$0xf] }
  0x92   : > { %v1245_v24 = vrot.slane %v1244_v2, 4  ;;  %v16346_v25 = vld [vmem:[#allocation2 + $0x94] sm:$0xf]  ;;  %v16348_v26 = vrot.slane %v707_v6, 7  ;;  %v890_v9 = vld [vmem:[#allocation2 + $0xa8] sm:$0xf] }
  0x93   : > { %389 = vst [vmem:[#allocation2 + $0xb4] sm:$0x1] %v388_v20  ;;  %439 = vst [vmem:[#allocation2 + $0xbc] sm:$0x1] %v438_v15  ;;  %v935_v27 = vld [vmem:[#allocation2 + $0x90] sm:$0xf]  ;;  %v704_v34 = vor.u32 %v702_v17, %v701_v18 }
  0x94   : > { %v16350_v28 = vld [vmem:[#allocation2 + $0x98] sm:$0x1]  ;;  %v1261_v29 = vshll.u32 %v16346_v25, 16  ;;  %v1265_v30 = vshrl.u32 %v16346_v25, 16  ;;  %v1250_v39 = vsel %vm15995_vm13, %v1245_v24, %v1249_v11  ;;  %v1252_v35 = vshrl.u32 %v935_v27, 16 }
  0x95   : > { %v1255_v40 = vshll.u32 %v935_v27, 16  ;;  %v1271_v41 = vshll.u32 %v16350_v28, 16  ;;  %v13631_v42 = vcombine.low %v1240_v23, %v1250_v39  ;;  %v13665_v46 = vcombine.low %v935_v27, %v16346_v25  ;;  %v472_v52 = vld [vmem:[%s15984_s16 + $0x74] sm:$0xf] }
  0x96   : > { %v1263_v43 = vrot.slane %v1261_v29, 5  ;;  %v1267_v45 = vrot.slane %v1265_v30, 4  ;;  %v1254_v47 = vrot.slane %v1252_v35, 4  ;;  %v705_v49 = vrot.slane %v701_v18, 4  ;;  %v937_v61 = vld [vmem:[#allocation2 + $0x9c] sm:$0xf] }
  0x97   : > { %v1257_v51 = vrot.slane %v1255_v40, 5  ;;  %v1273_v56 = vrot.slane %v1271_v41, 5  ;;  %14895 = vmatmul.mubr.msk.bf16.gmra.mxu0 %vm1400_vm10, %v13631_v42  ;;  %14932 = vmatprep.mubr.msk.bf16.mxu1 %vm1400_vm10, %v13665_v46  ;;  %v16360_v60 = vld [vmem:[#allocation2 + $0xa0] sm:$0xf]  ;;  %v16362_v62 = vld [vmem:[#allocation2 + $0xa4] sm:$0x1]  ;;  %v712_v63 = vor.u32 %v710_v53, %v16348_v26  ;;  %v891_v3 = vsel %vm16003_vm14, %v704_v34, %v890_v9 }
  0x98   : > { %v1268_v59 = vor.u32 %v1267_v45, %v1263_v43  ;;  %v1276_v55 = vshrl.u32 %v937_v61, 16  ;;  %v1279_v16 = vshll.u32 %v937_v61, 16  ;;  %v1285_v8 = vshll.u32 %v16360_v60, 16  ;;  %892 = vst [vmem:[#allocation2 + $0xa8] sm:$0xf] %v891_v3 }
  0x99   : > { %v1258_v12 = vor.u32 %v1257_v51, %v1254_v47  ;;  %v1289_v11 = vshrl.u32 %v16360_v60, 16  ;;  %v1295_v17 = vshll.u32 %v16362_v62, 16  ;;  %v13666_v6 = vcombine.low %v937_v61, %v16360_v60  ;;  %v15607_v18 = vld [vmem:[%s21813_s1] ss:$0 sps:$4 sm:$0x88]  }
  0x9a   : > { %v1269_v2 = vrot.slane %v1268_v59, 4  ;;  %v1278_v20 = vrot.slane %v1276_v55, 4  ;;  %v1281_v15 = vrot.slane %v1279_v16, 5  ;;  %v1287_v23 = vrot.slane %v1285_v8, 5  ;;  %v894_v24 = vld [vmem:[#allocation2 + $0xb0] sm:$0x1] }
  0x9b   : > { %v1259_v53 = vrot.slane %v1258_v12, 4  ;;  %v1291_v27 = vrot.slane %v1289_v11, 4  ;;  %v1297_v29 = vrot.slane %v1295_v17, 5  ;;  %14933 = vmatmul.mubr.msk.bf16.gmra.mxu1 %vm1400_vm10, %v13666_v6  ;;  %v713_v30 = vsel %vm16009_vm15, %v705_v49, %v712_v63  ;;  %v897_v49 = vld [vmem:[#allocation2 + $0xb4] sm:$0xf] }
  0x9c   : > { %v1274_v9 = vsel %vm15995_vm13, %v1269_v2, %v1273_v56  ;;  %v1282_v39 = vor.u32 %v1281_v15, %v1278_v20  ;;  %v714_v35 = vrot.slane %v16348_v26, 4  ;;  %893 = vst.msk [vmem:[#allocation2 + $0xac] sm:$0xf] %vm332_vm1, %v713_v30  ;;  %v716_v40 = vshrl.u32 %v471_v10, 16  ;;  %v901_v16 = vld [vmem:[#allocation2 + $0xbc] sm:$0x1] }
  0x9d   : > { %v1264_v34 = vsel %vm15995_vm13, %v1259_v53, %v1263_v43  ;;  %v1292_v42 = vor.u32 %v1291_v27, %v1287_v23  ;;  %v719_v45 = vshll.u32 %v471_v10, 16  ;;  %v724_v46 = vshrl.u32 %v472_v52, 16  ;;  %v1906_v20 = vld [vmem:[#allocation2] sm:$0xe]  ;;  %v1907_v15 = vld [vmem:[#allocation2 + $0xc] sm:$0xe] }
  0x9e   : > { %v13632_v41 = vcombine.low %v1264_v34, %v1274_v9  ;;  %v1283_v47 = vrot.slane %v1282_v39, 4  ;;  %v895_v51 = vsel %vm15941_vm5, %v714_v35, %v894_v24  ;;  %v718_v56 = vrot.slane %v716_v40, 7 }
  0x9f   : > { %v727_v59 = vshll.u32 %v472_v52, 16  ;;  %v1293_v43 = vrot.slane %v1292_v42, 4  ;;  %896 = vst [vmem:[#allocation2 + $0xb0] sm:$0x1] %v895_v51  ;;  %v939_v61 = vld [vmem:[#allocation2 + $0xa8] sm:$0xf] }
  0xa0   : > { %14898 = vmatprep.mubr.msk.bf16.mxu0 %vm1400_vm10, %v13632_v41  ;;  %v726_v26 = vrot.slane %v724_v46, 7  ;;  %v2482_v63 = vrot.slane %v15607_v18, 3  ;;  %v1288_v3 = vsel %vm15995_vm13, %v1283_v47, %v1287_v23  ;;  %v1300_v10 = vshrl.u32 %v939_v61, 16  ;;  %v15727_v41 = vld [vmem:[#allocation2 + $0x4] sm:$0xf] }
  0xa1   : > { %v1303_v12 = vshll.u32 %v939_v61, 16  ;;  %v721_v55 = vor.u32 %v719_v45, %v718_v56  ;;  %v1298_v8 = vsel %vm15995_vm13, %v1293_v43, %v1297_v29  ;;  %v722_v52 = vrot.slane %v718_v56, 4 }
  0xa2   : > { %v729_v2 = vor.u32 %v727_v59, %v726_v26  ;;  %v731_v11 = vrot.slane %v726_v26, 4  ;;  %15541 = vmatprep.subr.msk.bf16.mxu1 %vm1449_vm0, %v2482_v63  ;;  %v13633_v17 = vcombine.low %v1288_v3, %v1298_v8  ;;  %v1302_v6 = vrot.slane %v1300_v10, 4  ;;  %v1908_v26 = vld [vmem:[#allocation2 + $0x18] sm:$0xe] }
  0xa3   : > { %v1305_v53 = vrot.slane %v1303_v12, 5  ;;  %v898_v18 = vsel %vm16003_vm14, %v721_v55, %v897_v49  ;;  %v16395_v23 = vld [vmem:[#allocation2 + $0xac] sm:$0xf]  ;;  %v2532_v27 = vsel %vm1449_vm0, %v2482_v63, 0  ;;  %vm1955_vm9 = vcmask 1046532  }
  0xa4   : > { %v730_v24 = vsel %vm16009_vm15, %v722_v52, %v729_v2  ;;  %899 = vst [vmem:[#allocation2 + $0xb4] sm:$0xf] %v898_v18  ;;  %v902_v9 = vsel %vm15941_vm5, %v731_v11, %v901_v16  ;;  %14899 = vmatmul.mubr.msk.bf16.gmra.mxu0 %vm1400_vm10, %v13633_v17  ;;  %v1309_v30 = vshll.u32 %v16395_v23, 16  ;;  %v1313_v34 = vshrl.u32 %v16395_v23, 16  ;;  %14975 = vmatpush3.bf16.msra.mxu1 %v2532_v27  ;;  %vm16408_vm11 = vmor %vm1954_vm2, %vm1955_vm9  ;;  %v15728_v52 = vld [vmem:[#allocation2 + $0x1c] sm:$0xf] }
  0xa5   : > { %v1306_v29 = vor.u32 %v1305_v53, %v1302_v6  ;;  %v13667_v39 = vcombine.low %v939_v61, %v16395_v23  ;;  %900 = vst.msk [vmem:[#allocation2 + $0xb8] sm:$0xf] %vm332_vm1, %v730_v24  ;;  %903 = vst [vmem:[#allocation2 + $0xbc] sm:$0x1] %v902_v9  ;;  %v21861_v35 = vmov 0  ;;  %v13685_v40 = vrot.slane %v1906_v20, 9 }
  0xa6   : > { %v21862_v35 = vsel %vm16408_vm11, 4294967295, %v21861_v35  ;;  %v1959_v42 = vrot.slane %v15727_v41, 5  ;;  %v13686_v45 = vrot.slane %v1907_v15, 9  ;;  %v1968_v46 = vrot.slane %v1966_v22, 4  ;;  %v16414_v47 = vld [vmem:[#allocation2 + $0xb0] sm:$0x1] }
  0xa7   : > { %21863 = vst [vmem:[#allocation9_spill] sm:$0xff] %v21862_v35  ;;  %v1307_v51 = vrot.slane %v1306_v29, 4  ;;  %v1311_v56 = vrot.slane %v1309_v30, 5  ;;  %v1315_v59 = vrot.slane %v1313_v34, 4  ;;  %14936 = vmatprep.mubr.msk.bf16.mxu1 %vm1400_vm10, %v13667_v39  ;;  %v1319_v49 = vshll.u32 %v16414_v47, 16  ;;  %v15608_v24 = vld [vmem:[#allocation2 + $0xc] sm:$0xff]  }
  0xa8   : > { %v1961_v43 = vrot.slane %v1959_v42, 4  ;;  %v16422_v61 = vsel %vm16408_vm11, %v13686_v45, %v1966_v22  ;;  %v16426_v3 = vsel %vm16408_vm11, %v13685_v40, %v1959_v42  ;;  %v16432_v10 = vsel %vm16408_vm11, %v1968_v46, %v1969_v36  ;;  %v1910_v9 = vld [vmem:[#allocation2 + $0x30] sm:$0xe]  ;;  %v15729_v42 = vld [vmem:[#allocation2 + $0x20] sm:$0x1] }
  0xa9   : > { %v1316_v63 = vor.u32 %v1315_v59, %v1311_v56  ;;  %v1321_v12 = vrot.slane %v1319_v49, 5  ;;  %v13702_v22 = vcombine.low %v16422_v61, %v16432_v10  ;;  %v16444_v55 = vsel %vm1449_vm0, %v16198_v19, 0  ;;  %v15730_v59 = vld [vmem:[#allocation2 + $0x28] sm:$0xf] }
  0xaa   : > { %v16438_v57 = vsel %vm16408_vm11, %v1961_v43, %v1962_v50  ;;  %v1312_v58 = vsel %vm15995_vm13, %v1307_v51, %v1311_v56  ;;  %v13687_v8 = vrot.slane %v1908_v26, 9  ;;  %v1973_v2 = vrot.slane %v15728_v52, 5  ;;  %v1911_v43 = vld [vmem:[#allocation2 + $0x3c] sm:$0xe] }
  0xab   : > { %v1317_v16 = vrot.slane %v1316_v63, 4  ;;  %v941_v36 = vld [vmem:[#allocation2 + $0xb4] sm:$0xf]  ;;  %v13701_v53 = vcombine.low %v16426_v3, %v16438_v57  ;;  %v1976_v45 = vrot.slane %v15729_v42, 5  ;;  %v13688_v56 = vrot.slane %v1909_v21, 9 }
  0xac   : > { %v16448_v11 = vld [vmem:[#allocation2 + $0xb8] sm:$0xf]  ;;  %v16450_v50 = vld [vmem:[#allocation2 + $0xbc] sm:$0x1]  ;;  %v1324_v17 = vshrl.u32 %v941_v36, 16  ;;  %v1327_v6 = vshll.u32 %v941_v36, 16 }
  0xad   : > { %v1322_v19 = vsel %vm15995_vm13, %v1317_v16, %v1321_v12  ;;  %v1333_v18 = vshll.u32 %v16448_v11, 16  ;;  %v1337_v20 = vshrl.u32 %v16448_v11, 16  ;;  %v1343_v15 = vshll.u32 %v16450_v50, 16  ;;  %v15731_v63 = vld [vmem:[#allocation2 + $0x2c] sm:$0x1] }
  0xae   : > { %v13634_v27 = vcombine.low %v1312_v58, %v1322_v19  ;;  %v1326_v29 = vrot.slane %v1324_v17, 4  ;;  %v1329_v30 = vrot.slane %v1327_v6, 5  ;;  %v13668_v34 = vcombine.low %v941_v36, %v16448_v11  ;;  %v15732_v16 = vld [vmem:[#allocation2 + $0x34] sm:$0xf]  ;;  %v15733_v19 = vld [vmem:[#allocation2 + $0x38] sm:$0x1] }
  0xaf   : > { %v1335_v39 = vrot.slane %v1333_v18, 5  ;;  %v1339_v40 = vrot.slane %v1337_v20, 4  ;;  %v1975_v41 = vrot.slane %v1973_v2, 4  ;;  %v1345_v51 = vrot.slane %v1343_v15, 5  ;;  %v1912_v21 = vld [vmem:[#allocation2 + $0x48] sm:$0xe] }
  0xb0   : > { %14902 = vmatprep.mubr.msk.bf16.mxu0 %vm1400_vm10, %v13634_v27  ;;  %v1330_v46 = vor.u32 %v1329_v30, %v1326_v29  ;;  %14937 = vmatmul.mubr.msk.bf16.gmra.mxu1 %vm1400_vm10, %v13668_v34  ;;  %v1980_v49 = vrot.slane %v15730_v59, 5  ;;  %v1983_v12 = vrot.slane %v15731_v63, 5  ;;  %v13689_v58 = vrot.slane %v1910_v9, 9  ;;  %v15609_v29 = vld [vmem:[#allocation2 + $0x18] sm:$0xff]   ;;  %v15735_v34 = vld [vmem:[#allocation2 + $0x44] sm:$0x1] }
  0xb1   : > { %v1340_v26 = vor.u32 %v1339_v40, %v1335_v39  ;;  %14976 = vmatprep.mubr.msk.bf16.mxu1 %vm1400_vm10, %v15608_v24  ;;  %v1987_v36 = vrot.slane %v15732_v16, 5  ;;  %v16465_v17 = vsel %vm16408_vm11, %v13687_v8, %v1973_v2  ;;  %v1990_v18 = vrot.slane %v15733_v19, 5  ;;  %v15734_v8 = vld [vmem:[#allocation2 + $0x40] sm:$0xf]  ;;  %v1913_v42 = vld [vmem:[#allocation2 + $0x54] sm:$0xe] }
  0xb2   : > { %v1331_v52 = vrot.slane %v1330_v46, 4  ;;  %v1982_v6 = vrot.slane %v1980_v49, 4  ;;  %v16469_v15 = vsel %vm16408_vm11, %v1975_v41, %v1976_v45  ;;  %v13690_v27 = vrot.slane %v1911_v43, 9  ;;  %v15610_v45 = vld [vmem:[#allocation2 + $0x24] sm:$0xff]   ;;  %v15736_v63 = vld [vmem:[#allocation2 + $0x4c] sm:$0xf] }
  0xb3   : > { %v1341_v20 = vrot.slane %v1340_v26, 4  ;;  %v1989_v24 = vrot.slane %v1987_v36, 4  ;;  %v16475_v30 = vsel %vm16408_vm11, %v13688_v56, %v1980_v49  ;;  %v1994_v2 = vrot.slane %v15734_v8, 5  ;;  %v1914_v56 = vld [vmem:[#allocation2 + $0x60] sm:$0xe] }
  0xb4   : > { %v1336_v9 = vsel %vm15995_vm13, %v1331_v52, %v1335_v39  ;;  %v1997_v40 = vrot.slane %v15735_v34, 5  ;;  %v16481_v41 = vsel %vm16408_vm11, %v1982_v6, %v1983_v12  ;;  %v16485_v39 = vsel %vm16408_vm11, %v13689_v58, %v1987_v36  ;;  %v15737_v16 = vld [vmem:[#allocation2 + $0x50] sm:$0x1] }
  0xb5   : > { %v1346_v46 = vsel %vm15995_vm13, %v1341_v20, %v1345_v51  ;;  %v13691_v59 = vrot.slane %v1912_v21, 9  ;;  %v16489_v43 = vsel %vm16408_vm11, %v1989_v24, %v1990_v18  ;;  %v16493_v26 = vsel %vm16408_vm11, %v13690_v27, %v1994_v2  ;;  %v1915_v20 = vld [vmem:[#allocation2 + $0x6c] sm:$0xe]  ;;  %v15611_v34 = vld [vmem:[#allocation2 + $0x30] sm:$0xff]  }
  0xb6   : > { %v13635_v49 = vcombine.low %v1336_v9, %v1346_v46  ;;  %v1996_v51 = vrot.slane %v1994_v2, 4  ;;  %v2001_v12 = vrot.slane %v15736_v63, 5  ;;  %v2004_v52 = vrot.slane %v15737_v16, 5  ;;  %v1917_v2 = vld [vmem:[#allocation2 + $0x84] sm:$0xe]  ;;  %v15612_v63 = vld [vmem:[#allocation2 + $0x3c] sm:$0xff]  }
  0xb7   : > { %v13692_v6 = vrot.slane %v1913_v42, 9  ;;  %v2008_v58 = vrot.slane %v16166_v33, 5  ;;  %v2011_v19 = vrot.slane %v16183_v4, 5  ;;  %v13693_v18 = vrot.slane %v1914_v56, 9 }
  0xb8   : > { %14903 = vmatmul.mubr.msk.bf16.gmra.mxu0 %vm1400_vm10, %v13635_v49  ;;  %14977 = vmatmul.mubr.msk.bf16.vlgmr.msra.gmra.mxu1 %vm1400_vm10, %v15609_v29  ;;  %v16500_v36 = vsel %vm16408_vm11, %v1996_v51, %v1997_v40  ;;  %v2015_v21 = vrot.slane %v16224_v0, 5  ;;  %v13703_v33 = vcombine.low %v16465_v17, %v16469_v15  ;;  %v13704_v24 = vcombine.low %v16475_v30, %v16481_v41  ;;  %v1916_v0 = vld [vmem:[#allocation2 + $0x78] sm:$0xe] }
  0xb9   : > { %14942 = vmatprep.mubr.msk.bf16.mxu0 %vm1400_vm10, %v13701_v53  ;;  %14980 = vmatprep.mubr.msk.bf16.mxu1 %vm1400_vm10, %v15610_v45  ;;  %v16515_v4 = vsel %vm16408_vm11, %v13691_v59, %v2001_v12  ;;  %v2003_v27 = vrot.slane %v2001_v12, 4  ;;  %v16519_v9 = vsel %vm16408_vm11, %v13692_v6, %v2008_v58  ;;  %v2010_v3 = vrot.slane %v2008_v58, 4  ;;  %v1918_v45 = vld [vmem:[#allocation2 + $0x90] sm:$0xe] }
  0xba   : > { %v2017_v57 = vrot.slane %v2015_v21, 4  ;;  %v2018_v53 = vrot.slane %v16226_v1, 5  ;;  %v13705_v17 = vcombine.low %v16485_v39, %v16489_v43  ;;  %v13706_v15 = vcombine.low %v16493_v26, %v16500_v36 }
  0xbb   : > { %v16528_v29 = vsel %vm16408_vm11, %v2003_v27, %v2004_v52  ;;  %v13694_v8 = vrot.slane %v1915_v20, 9  ;;  %v16532_v40 = vsel %vm16408_vm11, %v2010_v3, %v2011_v19  ;;  %v16536_v1 = vsel %vm16408_vm11, %v13693_v18, %v2015_v21  ;;  %v1919_v21 = vld [vmem:[#allocation2 + $0x9c] sm:$0xe]  ;;  %v1921_v3 = vld [vmem:[#allocation2 + $0xb4] sm:$0xe] }
  0xbc   : > { %v2022_v42 = vrot.slane %v16250_v31, 5  ;;  %v13695_v46 = vrot.slane %v1916_v0, 9  ;;  %v13707_v59 = vcombine.low %v16515_v4, %v16528_v29  ;;  %v13708_v56 = vcombine.low %v16519_v9, %v16532_v40 }
  0xbd   : > { %v16545_v49 = vsel %vm16408_vm11, %v2017_v57, %v2018_v53  ;;  %v2025_v51 = vrot.slane %v16252_v32, 5  ;;  %v2029_v12 = vrot.slane %v16269_v13, 5  ;;  %v2032_v16 = vrot.slane %v16271_v14, 5 }
  0xbe   : > { %v13696_v31 = vrot.slane %v1917_v2, 9  ;;  %v2036_v52 = vrot.slane %v16312_v37, 5  ;;  %v16553_v6 = vsel %vm16408_vm11, %v13694_v8, %v2022_v42  ;;  %v2039_v58 = vrot.slane %v16314_v38, 5  ;;  %v390_v2 = vld [vmem:[#allocation2 + $0xc0] sm:$0x1] }
  0xbf   : > { %v13697_v19 = vrot.slane %v1918_v45, 9  ;;  %v2043_v18 = vrot.slane %v16346_v25, 5  ;;  %v16562_v13 = vrot.slane %v2022_v42, 4  ;;  %v16566_v14 = vsel %vm16408_vm11, %v13695_v46, %v2029_v12  ;;  %v1920_v25 = vld [vmem:[#allocation2 + $0xa8] sm:$0xe] }
  0xc0   : > { %14943 = vmatmul.mubr.msk.bf16.vlgmr.msra.gmra.mxu0 %vm1400_vm10, %v13702_v22  ;;  %14981 = vmatmul.mubr.msk.bf16.gmra.mxu1 %vm1400_vm10, %v15611_v34  ;;  %v2031_v37 = vrot.slane %v2029_v12, 4  ;;  %v16570_v38 = vsel %vm16408_vm11, %v13696_v31, %v2036_v52  ;;  %v2038_v61 = vrot.slane %v2036_v52, 4  ;;  %v2046_v20 = vrot.slane %v16350_v28, 5  ;;  %v473_v34 = vld [vmem:[%s15984_s16 + $0x78] sm:$0xf]  ;;  %v15613_v42 = vld [vmem:[#allocation2 + $0x48] sm:$0xff]  }
  0xc1   : > { %15009 = vmatpush3.bf16.msra.mxu0 %v16444_v55  ;;  %14946 = vmatprep.mubr.msk.bf16.mxu0 %vm1400_vm10, %v13703_v33  ;;  %v16576_v10 = vsel %vm16408_vm11, %v13697_v19, %v2043_v18  ;;  %v2045_v22 = vrot.slane %v2043_v18, 4  ;;  %v13698_v0 = vrot.slane %v1919_v21, 9  ;;  %v2050_v55 = vrot.slane %v16360_v60, 5  ;;  %v15614_v60 = vld [vmem:[#allocation2 + $0x54] sm:$0xff]   ;;  %v474_v19 = vld [vmem:[%s15984_s16 + $0x7c] sm:$0xf] }
  0xc2   : > { %14984 = vmatprep.mubr.msk.bf16.mxu1 %vm1400_vm10, %v15612_v63  ;;  %v16582_v27 = vsel %vm16408_vm11, %v2031_v37, %v2032_v16  ;;  %v2053_v33 = vrot.slane %v16362_v62, 5  ;;  %v16590_v53 = vsel %vm16408_vm11, %v2038_v61, %v2039_v58  ;;  %v13699_v8 = vrot.slane %v1920_v25, 9  ;;  %v15624_v12 = vld [vmem:[%s21813_s1 + $0x4] ss:$0 sps:$4 sm:$0x22]   ;;  %s13617_s16 = sshll.u32 %s323_s14, 5 }
  0xc3   : > { %v13711_v57 = vcombine.low %v16566_v14, %v16582_v27  ;;  %v16594_v28 = vsel %vm16408_vm11, %v2045_v22, %v2046_v20  ;;  %v13712_v62 = vcombine.low %v16570_v38, %v16590_v53  ;;  %v16603_v45 = vsel %vm16408_vm11, %v13698_v0, %v2050_v55  ;;  %v2727_v61 = vld [vmem:[#allocation2 + $0xc] sm:$0xf]  ;;  %v16629_v20 = vld [vmem:[#allocation2 + $0x10] sm:$0xf]  ;;  %s21001_s17 = scalar_lea.vmem [#allocation4], %s13617_s16 }
  0xc4   : > { %v13713_v46 = vcombine.low %v16576_v10, %v16594_v28  ;;  %v2052_v63 = vrot.slane %v2050_v55, 4  ;;  %v2057_v16 = vrot.slane %v16395_v23, 5  ;;  %v2060_v31 = vrot.slane %v16414_v47, 5  ;;  %s13551_s16 = sshll.u32 %s21001_s17, 4  ;;  %s21766_s16 = int_to_ptr.vmem [resolvable:$true] %s13551_s16 }
  0xc5   : > { %v13700_v52 = vrot.slane %v1921_v3, 9  ;;  %v2064_v58 = vrot.slane %v16448_v11, 5  ;;  %v2067_v21 = vrot.slane %v16450_v50, 5  ;;  %v391_v37 = vsel %vm15941_vm5, 0, %v390_v2  ;;  %v16636_v3 = vld [vmem:[#allocation2 + $0x14] sm:$0x1]  ;;  %p15767_p0 = scmp.lt.s32.totalorder %s21766_s16, %s15765_s26 }
  0xc6   : > { %v16614_v18 = vsel %vm16408_vm11, %v2052_v63, %v2053_v33  ;;  %v733_v25 = vshrl.u32 %v473_v34, 16  ;;  %v16623_v47 = vsel %vm16408_vm11, %v13699_v8, %v2057_v16  ;;  %v2059_v11 = vrot.slane %v2057_v16, 4  ;;  %392 = vst [vmem:[#allocation2 + $0xc0] sm:$0x1] %v391_v37  ;;  %v15616_v63 = vld [vmem:[#allocation2 + $0x6c] sm:$0xff]   ;;  %s15760_s24 = scalar_lea.vmem %s21766_s16, 512 }
  0xc7   : > { %v16627_v22 = vsel %vm16408_vm11, %v13700_v52, %v2064_v58  ;;  %v2066_v50 = vrot.slane %v2064_v58, 4  ;;  %v736_v55 = vshll.u32 %v473_v34, 16  ;;  %v741_v33 = vshrl.u32 %v474_v19, 16  ;;  %v16650_v2 = vld [vmem:[%s21813_s1 + $0x4] ss:$0 sps:$4 sm:$0x44]   ;;  %p15761_p11 = scmp.ne.s32.totalorder %s21766_s16, %s15760_s24  ;;  %p15768_p1 = scmp.lt.s32.totalorder %s15766_s27, %s15760_s24 }
  0xc8   : > { %14947 = vmatmul.mubr.msk.bf16.gmra.mxu0 %vm1400_vm10, %v13704_v24  ;;  %14985 = vmatmul.mubr.msk.bf16.gmra.mxu1 %vm1400_vm10, %v15613_v42  ;;  %v735_v0 = vrot.slane %v733_v25, 7  ;;  %v16645_v30 = vsel %vm16408_vm11, %v2059_v11, %v2060_v31  ;;  %v744_v41 = vshll.u32 %v474_v19, 16  ;;  %v3680_v24 = vrot.slane %v15624_v12, 1  ;;  %v15615_v34 = vld [vmem:[#allocation2 + $0x60] sm:$0xff]   ;;  %v16664_v58 = vld [vmem:[#allocation2 + $0x1c] sm:$0xf] }
  0xc9   : > { %14950 = vmatprep.mubr.msk.bf16.mxu0 %vm1400_vm10, %v13705_v17  ;;  %14988 = vmatprep.mubr.msk.bf16.mxu1 %vm1400_vm10, %v15614_v60  ;;  %v2776_v8 = vshrl.u32 %v2727_v61, 16  ;;  %v16656_v43 = vsel %vm16408_vm11, %v2066_v50, %v2067_v21  ;;  %v2730_v60 = vld [vmem:[#allocation2 + $0x18] sm:$0xf]  ;;  %v16660_v16 = vrot.slane %v741_v33, 7  ;;  %v2779_v19 = vshll.u32 %v2727_v61, 16  ;;  %p15762_p12 = pnand %p15761_p11, %p15915_p5  ;;  %p15769_p2 = por %p15768_p1, %p15767_p0 }
  0xca   : > { %v738_v17 = vor.u32 %v736_v55, %v735_v0  ;;  %v739_v42 = vrot.slane %v735_v0, 4  ;;  %15543 = vmatprep.subr.msk.bf16.mxu1 %vm1449_vm0, %v3680_v24  ;;  %v3730_v31 = vsel %vm1449_vm0, %v3680_v24, 0  ;;  %v2785_v21 = vshll.u32 %v16629_v20, 16  ;;  %v16669_v11 = vld [vmem:[#allocation2 + $0x20] sm:$0x1] }
  0xcb   : > { %v2778_v52 = vrot.slane %v2776_v8, 4  ;;  %15043 = vmatpush3.bf16.msra.mxu1 %v3730_v31  ;;  %v2789_v37 = vshrl.u32 %v16629_v20, 16  ;;  %v2795_v25 = vshll.u32 %v16636_v3, 16  ;;  %v16676_v50 = vsel %vm16408_vm11, %v16562_v13, %v2025_v51  ;;  %v3452_v33 = vld [vmem:[#allocation2 + $0xc] sm:$0xe]  ;;  %p15763_p13 = pneg %p15762_p12 }
  0xcc   : > { %v746_v0 = vor.u32 %v744_v41, %v16660_v16  ;;  %v4042_v55 = vrot.slane %v16650_v2, 2  ;;  %v2800_v61 = vshrl.u32 %v2730_v60, 16  ;;  %v2781_v8 = vrot.slane %v2779_v19, 5 }
  0xcd   : > { %v904_v24 = vld [vmem:[#allocation2 + $0xc0] sm:$0xf]  ;;  %v2787_v31 = vrot.slane %v2785_v21, 5  ;;  %v2791_v12 = vrot.slane %v2789_v37, 4  ;;  %v2797_v39 = vrot.slane %v2795_v25, 5  ;;  %v2803_v13 = vshll.u32 %v2730_v60, 16  ;;  %p15770_p3 = pnand %p15769_p2, %p15763_p13 }
  0xce   : > { %v747_v23 = vsel %vm16009_vm15, %v739_v42, %v746_v0  ;;  %v905_v32 = vsel %vm16003_vm14, %v738_v17, %v904_v24  ;;  %15544 = vmatprep.subr.msk.bf16.mxu0 %vm1449_vm0, %v4042_v55  ;;  %v2802_v51 = vrot.slane %v2800_v61, 4  ;;  %v2782_v41 = vor.u32 %v2781_v8, %v2778_v52  ;;  %v16709_v0 = vld [vmem:[#allocation2 + $0x28] sm:$0xf]  ;;  %v16715_v8 = vld [vmem:[#allocation2 + $0x2c] sm:$0x1] }
  0xcf   : > { %906 = vst [vmem:[#allocation2 + $0xc0] sm:$0xf] %v905_v32  ;;  %907 = vst.msk [vmem:[#allocation2 + $0xc4] sm:$0xf] %vm332_vm1, %v747_v23  ;;  %v2792_v2 = vor.u32 %v2791_v12, %v2787_v31  ;;  %v2809_v42 = vshll.u32 %v16664_v58, 16  ;;  %v2813_v48 = vshrl.u32 %v16664_v58, 16  ;;  %v13709_v26 = vcombine.low %v16536_v1, %v16545_v49 }
  0xd0   : > { %14951 = vmatmul.mubr.msk.bf16.gmra.mxu0 %vm1400_vm10, %v13706_v15  ;;  %14989 = vmatmul.mubr.msk.bf16.gmra.mxu1 %vm1400_vm10, %v15615_v34  ;;  %v2805_v36 = vrot.slane %v2803_v13, 5  ;;  %v2819_v15 = vshll.u32 %v16669_v11, 16  ;;  %v13799_v23 = vrot.slane %v3452_v33, 9  ;;  %v3453_v34 = vld [vmem:[#allocation2 + $0x18] sm:$0xe]  ;;  %v2783_v17 = vrot.slane %v2782_v41, 4  ;;  %vm17903_vm1 = vmand %vm5637_vm7, %vm393_vm4 }
  0xd1   : > { %14954 = vmatprep.mubr.msk.bf16.mxu0 %vm1400_vm10, %v13707_v59  ;;  %14992 = vmatprep.mubr.msk.bf16.mxu1 %vm1400_vm10, %v15616_v63  ;;  %v2793_v60 = vrot.slane %v2792_v2, 4  ;;  %v2811_v12 = vrot.slane %v2809_v42, 5  ;;  %v2815_v52 = vrot.slane %v2813_v48, 4  ;;  %v13710_v19 = vcombine.low %v16553_v6, %v16676_v50  ;;  %v2733_v1 = vld [vmem:[#allocation2 + $0x24] sm:$0xf]  ;;  %v15617_v49 = vld [vmem:[#allocation2 + $0x78] sm:$0xff]  }
  0xd2   : > { %v2806_v4 = vor.u32 %v2805_v36, %v2802_v51  ;;  %v3518_v29 = vrot.slane %v16629_v20, 5  ;;  %v3521_v59 = vrot.slane %v16636_v3, 5  ;;  %v2788_v63 = vsel %vm15995_vm13, %v2783_v17, %v2787_v31  ;;  %v15618_v61 = vld [vmem:[#allocation2 + $0x84] sm:$0xff]   ;;  %v2736_v13 = vld [vmem:[#allocation2 + $0x30] sm:$0xf] }
  0xd3   : > { %v2798_v21 = vsel %vm15995_vm13, %v2793_v60, %v2797_v39  ;;  %v2816_v37 = vor.u32 %v2815_v52, %v2811_v12  ;;  %v2821_v25 = vrot.slane %v2819_v15, 5  ;;  %v13800_v3 = vrot.slane %v3453_v34, 9  ;;  %v16749_v17 = vld [vmem:[#allocation2 + $0x38] sm:$0x1]  ;;  %v15619_v60 = vld [vmem:[#allocation2 + $0x90] sm:$0xff]  }
  0xd4   : > { %v2807_v33 = vrot.slane %v2806_v4, 4  ;;  %v16713_v24 = vsel %vm16408_vm11, %v13799_v23, %v3518_v29  ;;  %v3520_v20 = vrot.slane %v3518_v29, 4  ;;  %v748_v32 = vrot.slane %v16660_v16, 4  ;;  %v16740_v23 = vld [vmem:[#allocation2 + $0x34] sm:$0xf]  ;;  %v15620_v29 = vld [vmem:[#allocation2 + $0x9c] sm:$0xff]  }
  0xd5   : > { %v2817_v31 = vrot.slane %v2816_v37, 4  ;;  %v3525_v51 = vrot.slane %v16664_v58, 5  ;;  %v2824_v39 = vshrl.u32 %v2733_v1, 16  ;;  %v16719_v41 = vcombine.low %v2788_v63, %v2798_v21 }
  0xd6   : > { %v16722_v2 = vsel %vm1449_vm0, %v4042_v55, 0  ;;  %v16726_v42 = vsel %vm16408_vm11, %v3520_v20, %v3521_v59  ;;  %v2827_v48 = vshll.u32 %v2733_v1, 16  ;;  %v2812_v58 = vsel %vm15995_vm13, %v2807_v33, %v2811_v12 }
  0xd7   : > { %v2822_v36 = vsel %vm15995_vm13, %v2817_v31, %v2821_v25  ;;  %v13815_v55 = vcombine.low %v16713_v24, %v16726_v42  ;;  %v3528_v15 = vrot.slane %v16669_v11, 5  ;;  %v16746_v9 = vsel %vm16408_vm11, %v13800_v3, %v3525_v51 }
  0xd8   : > { %14955 = vmatmul.mubr.msk.bf16.gmra.mxu0 %vm1400_vm10, %v13708_v56  ;;  %14993 = vmatmul.mubr.msk.bf16.gmra.mxu1 %vm1400_vm10, %v15617_v49  ;;  %v2826_v40 = vrot.slane %v2824_v39, 4  ;;  %v2829_v56 = vrot.slane %v2827_v48, 5  ;;  %v2833_v34 = vshll.u32 %v16709_v0, 16  ;;  %v3527_v12 = vrot.slane %v3525_v51, 4 }
  0xd9   : > { %14958 = vmatprep.mubr.msk.bf16.mxu0 %vm1400_vm10, %v13709_v26  ;;  %14996 = vmatprep.mubr.msk.bf16.mxu1 %vm1400_vm10, %v15618_v61  ;;  %v2837_v11 = vshrl.u32 %v16709_v0, 16  ;;  %v2843_v52 = vshll.u32 %v16715_v8, 16  ;;  %v2848_v4 = vshrl.u32 %v2736_v13, 16  ;;  %v3454_v26 = vld [vmem:[#allocation2 + $0x24] sm:$0xe]  ;;  %v16753_v59 = vcombine.low %v2812_v58, %v2822_v36 }
  0xda   : > { %v2830_v1 = vor.u32 %v2829_v56, %v2826_v40  ;;  %v2835_v49 = vrot.slane %v2833_v34, 5  ;;  %v2851_v63 = vshll.u32 %v2736_v13, 16  ;;  %v2857_v61 = vshll.u32 %v16740_v23, 16  ;;  %v3455_v36 = vld [vmem:[#allocation2 + $0x30] sm:$0xe] }
  0xdb   : > { %v2839_v21 = vrot.slane %v2837_v11, 4  ;;  %v2845_v37 = vrot.slane %v2843_v52, 5  ;;  %v2850_v25 = vrot.slane %v2848_v4, 4  ;;  %v2861_v3 = vshrl.u32 %v16740_v23, 16  ;;  %v2739_v11 = vld [vmem:[#allocation2 + $0x3c] sm:$0xf] }
  0xdc   : > { %v2831_v33 = vrot.slane %v2830_v1, 4  ;;  %v2853_v20 = vrot.slane %v2851_v63, 5  ;;  %v2867_v31 = vshll.u32 %v16749_v17, 16  ;;  %v2859_v39 = vrot.slane %v2857_v61, 5  ;;  %v15621_v1 = vld [vmem:[#allocation2 + $0xa8] sm:$0xff]  }
  0xdd   : > { %v2840_v51 = vor.u32 %v2839_v21, %v2835_v49  ;;  %v13801_v48 = vrot.slane %v3454_v26, 9  ;;  %v3532_v58 = vrot.slane %v16709_v0, 5  ;;  %v16761_v13 = vsel %vm16408_vm11, %v3527_v12, %v3528_v15 }
  0xde   : > { %v2836_v40 = vsel %vm15995_vm13, %v2831_v33, %v2835_v49  ;;  %v2854_v56 = vor.u32 %v2853_v20, %v2850_v25  ;;  %v2863_v34 = vrot.slane %v2861_v3, 4  ;;  %v2869_v0 = vrot.slane %v2867_v31, 5  ;;  %v16798_v3 = vld [vmem:[#allocation2 + $0x4c] sm:$0xf] }
  0xdf   : > { %v2841_v52 = vrot.slane %v2840_v51, 4  ;;  %v3534_v4 = vrot.slane %v3532_v58, 4  ;;  %v3535_v26 = vrot.slane %v16715_v8, 5  ;;  %v16778_v6 = vsel %vm16408_vm11, %v13801_v48, %v3532_v58 }
  0xe0   : > { %14959 = vmatmul.mubr.msk.bf16.gmra.mxu0 %vm1400_vm10, %v13710_v19  ;;  %14997 = vmatmul.mubr.msk.bf16.gmra.mxu1 %vm1400_vm10, %v15619_v60  ;;  %v2855_v15 = vrot.slane %v2854_v56, 4  ;;  %v2864_v12 = vor.u32 %v2863_v34, %v2859_v39  ;;  %v13802_v50 = vrot.slane %v3455_v36, 9  ;;  %v2740_v19 = vld [vmem:[#allocation2 + $0x40] sm:$0xf]  ;;  %v16780_v60 = vld [vmem:[#allocation2 + $0x44] sm:$0x1]  ;;  %v13816_v49 = vcombine.low %v16746_v9, %v16761_v13 }
  0xe1   : > { %14962 = vmatprep.mubr.msk.bf16.mxu0 %vm1400_vm10, %v13711_v57  ;;  %15000 = vmatprep.mubr.msk.bf16.mxu1 %vm1400_vm10, %v15620_v29  ;;  %v2846_v8 = vsel %vm15995_vm13, %v2841_v52, %v2845_v37  ;;  %v16786_v14 = vsel %vm16408_vm11, %v3534_v4, %v3535_v26  ;;  %v3539_v27 = vrot.slane %v16740_v23, 5  ;;  %v2872_v57 = vshrl.u32 %v2739_v11, 16  ;;  %v2742_v29 = vld [vmem:[#allocation2 + $0x48] sm:$0xf]  ;;  %v15622_v23 = vld [vmem:[#allocation2 + $0xb4] sm:$0xff]  }
  0xe2   : > { %v16791_v63 = vcombine.low %v2836_v40, %v2846_v8  ;;  %v2865_v21 = vrot.slane %v2864_v12, 4  ;;  %v3542_v25 = vrot.slane %v16749_v17, 5  ;;  %v2860_v61 = vsel %vm15995_vm13, %v2855_v15, %v2859_v39  ;;  %v16803_v36 = vld [vmem:[#allocation2 + $0x50] sm:$0x1]  ;;  %v3456_v34 = vld [vmem:[#allocation2 + $0x3c] sm:$0xe] }
  0xe3   : > { %v13817_v37 = vcombine.low %v16778_v6, %v16786_v14  ;;  %v2874_v33 = vrot.slane %v2872_v57, 4  ;;  %v2875_v20 = vshll.u32 %v2739_v11, 16  ;;  %v2881_v51 = vshll.u32 %v2740_v19, 16  ;;  %v16927_v14 = vld [vmem:[#allocation2 + $0x70] sm:$0xf] }
  0xe4   : > { %v2870_v31 = vsel %vm15995_vm13, %v2865_v21, %v2869_v0  ;;  %v2885_v48 = vshrl.u32 %v2740_v19, 16  ;;  %v2891_v58 = vshll.u32 %v16780_v60, 16  ;;  %v16807_v17 = vsel %vm16408_vm11, %v13802_v50, %v3539_v27 }
  0xe5   : > { %v3541_v39 = vrot.slane %v3539_v27, 4  ;;  %v2877_v40 = vrot.slane %v2875_v20, 5  ;;  %v2896_v56 = vshrl.u32 %v2742_v29, 16  ;;  %v16809_v11 = vcombine.low %v2860_v61, %v2870_v31 }
  0xe6   : > { %v2883_v52 = vrot.slane %v2881_v51, 5  ;;  %v2887_v4 = vrot.slane %v2885_v48, 4  ;;  %v2893_v26 = vrot.slane %v2891_v58, 5  ;;  %v2899_v12 = vshll.u32 %v2742_v29, 16 }
  0xe7   : > { %v2878_v0 = vor.u32 %v2877_v40, %v2874_v33  ;;  %v2898_v15 = vrot.slane %v2896_v56, 4  ;;  %v2905_v50 = vshll.u32 %v16798_v3, 16  ;;  %v2909_v27 = vshrl.u32 %v16798_v3, 16  ;;  %v15623_v33 = vld [vmem:[#allocation2 + $0xc0] sm:$0xff]  }
  0xe8   : > { %14963 = vmatmul.mubr.msk.bf16.gmra.mxu0 %vm1400_vm10, %v13712_v62  ;;  %15001 = vmatmul.mubr.msk.bf16.gmra.mxu1 %vm1400_vm10, %v15621_v1  ;;  %v2888_v8 = vor.u32 %v2887_v4, %v2883_v52  ;;  %v2915_v38 = vshll.u32 %v16803_v36, 16  ;;  %v13803_v53 = vrot.slane %v3456_v34, 9  ;;  %v3457_v62 = vld [vmem:[#allocation2 + $0x48] sm:$0xe]  ;;  %v2901_v57 = vrot.slane %v2899_v12, 5 }
  0xe9   : > { %14966 = vmatprep.mubr.msk.bf16.mxu0 %vm1400_vm10, %v13713_v46  ;;  %15004 = vmatprep.mubr.msk.bf16.mxu1 %vm1400_vm10, %v15622_v23  ;;  %v2879_v1 = vrot.slane %v2878_v0, 4  ;;  %v16824_v21 = vrot.slane %v2905_v50, 5  ;;  %v3546_v29 = vrot.slane %v2740_v19, 5  ;;  %v16828_v61 = vsel %vm16408_vm11, %v3541_v39, %v3542_v25  ;;  %v2745_v39 = vld [vmem:[#allocation2 + $0x54] sm:$0xf] }
  0xea   : > { %v2889_v10 = vrot.slane %v2888_v8, 4  ;;  %v2911_v28 = vrot.slane %v2909_v27, 4  ;;  %v3549_v46 = vrot.slane %v16780_v60, 5  ;;  %v2902_v23 = vor.u32 %v2901_v57, %v2898_v15  ;;  %v16841_v60 = vld [vmem:[#allocation2 + $0x58] sm:$0xf] }
  0xeb   : > { %v2884_v20 = vsel %vm15995_vm13, %v2879_v1, %v2883_v52  ;;  %v16835_v31 = vsel %vm16408_vm11, %v13803_v53, %v3546_v29  ;;  %v3548_v51 = vrot.slane %v3546_v29, 4  ;;  %v13804_v48 = vrot.slane %v3457_v62, 9  ;;  %v16848_v4 = vld [vmem:[#allocation2 + $0x5c] sm:$0x1]  ;;  %v2748_v12 = vld [vmem:[#allocation2 + $0x60] sm:$0xf] }
  0xec   : > { %v2894_v19 = vsel %vm15995_vm13, %v2889_v10, %v2893_v26  ;;  %v2912_v25 = vor.u32 %v2911_v28, %v16824_v21  ;;  %v3553_v58 = vrot.slane %v16798_v3, 5  ;;  %v2903_v40 = vrot.slane %v2902_v23, 4  ;;  %v16854_v50 = vld [vmem:[#allocation2 + $0x64] sm:$0xf]  ;;  %v16864_v62 = vld [vmem:[#allocation2 + $0x68] sm:$0x1] }
  0xed   : > { %v2917_v56 = vrot.slane %v2915_v38, 5  ;;  %v16845_v34 = vsel %vm16408_vm11, %v3548_v51, %v3549_v46  ;;  %v3556_v52 = vrot.slane %v16803_v36, 5  ;;  %v13818_v26 = vcombine.low %v16807_v17, %v16828_v61  ;;  %v3461_v61 = vld [vmem:[#allocation2 + $0x78] sm:$0xe] }
  0xee   : > { %v16852_v0 = vcombine.low %v2884_v20, %v2894_v19  ;;  %v2913_v15 = vrot.slane %v2912_v25, 4  ;;  %v3555_v3 = vrot.slane %v3553_v58, 4  ;;  %v21864_v8 = vcombine.low %v16603_v45, %v16614_v18 }
  0xef   : > { %v13819_v36 = vcombine.low %v16835_v31, %v16845_v34  ;;  %v2920_v27 = vshrl.u32 %v2745_v39, 16  ;;  %v2923_v38 = vshll.u32 %v2745_v39, 16  ;;  %v2929_v53 = vshll.u32 %v16841_v60, 16  ;;  %v3459_v39 = vld [vmem:[#allocation2 + $0x60] sm:$0xe] }
  0xf0   : > { %14967 = vmatmul.mubr.msk.bf16.gmra.mxu0 %vm1400_vm10, %v21864_v8  ;;  %15005 = vmatmul.mubr.msk.bf16.gmra.mxu1 %vm1400_vm10, %v15623_v33  ;;  %v21865_v1 = vcombine.low %v16623_v47, %v16645_v30  ;;  %v2908_v45 = vsel %vm15995_vm13, %v2903_v40, %v16824_v21  ;;  %v16879_v18 = vsel %vm16408_vm11, %v13804_v48, %v3553_v58  ;;  %v2933_v57 = vshrl.u32 %v16841_v60, 16 }
  0xf1   : > { %15044 = vmatprep.mubr.msk.bf16.mxu1 %vm1400_vm10, %v13815_v55  ;;  %v2939_v29 = vshll.u32 %v16848_v4, 16  ;;  %v2918_v47 = vsel %vm15995_vm13, %v2913_v15, %v2917_v56  ;;  %v16887_v30 = vsel %vm16408_vm11, %v3555_v3, %v3556_v52  ;;  %v2922_v24 = vrot.slane %v2920_v27, 4  ;;  %v3458_v55 = vld [vmem:[#allocation2 + $0x54] sm:$0xe] }
  0xf2   : > { %14970 = vmatprep.mubr.msk.bf16.mxu0 %vm1400_vm10, %v21865_v1  ;;  %v2925_v42 = vrot.slane %v2923_v38, 5  ;;  %v2931_v10 = vrot.slane %v2929_v53, 5  ;;  %v2935_v21 = vrot.slane %v2933_v57, 4  ;;  %v2944_v46 = vshrl.u32 %v2748_v12, 16  ;;  %v2751_v38 = vld [vmem:[#allocation2 + $0x6c] sm:$0xf] }
  0xf3   : > { %v2941_v28 = vrot.slane %v2939_v29, 5  ;;  %v2947_v20 = vshll.u32 %v2748_v12, 16  ;;  %v2953_v23 = vshll.u32 %v16854_v50, 16  ;;  %v2957_v51 = vshrl.u32 %v16854_v50, 16 }
  0xf4   : > { %v2926_v33 = vor.u32 %v2925_v42, %v2922_v24  ;;  %v2936_v19 = vor.u32 %v2935_v21, %v2931_v10  ;;  %v2946_v25 = vrot.slane %v2944_v46, 4  ;;  %v2963_v48 = vshll.u32 %v16864_v62, 16  ;;  %v2754_v42 = vld [vmem:[#allocation2 + $0x78] sm:$0xf]  ;;  %v16949_v46 = vld [vmem:[#allocation2 + $0x80] sm:$0x1] }
  0xf5   : > { %v13805_v58 = vrot.slane %v3458_v55, 9  ;;  %v2949_v56 = vrot.slane %v2947_v20, 5  ;;  %v16892_v52 = vrot.slane %v2953_v23, 5  ;;  %v2959_v15 = vrot.slane %v2957_v51, 4 }
  0xf6   : > { %v2927_v40 = vrot.slane %v2926_v33, 4  ;;  %v16894_v3 = vcombine.low %v2908_v45, %v2918_v47  ;;  %v2937_v8 = vrot.slane %v2936_v19, 4  ;;  %v3560_v12 = vrot.slane %v16841_v60, 5  ;;  %v3460_v19 = vld [vmem:[#allocation2 + $0x6c] sm:$0xe] }
  0xf7   : > { %v3563_v27 = vrot.slane %v16848_v4, 5  ;;  %v21866_v53 = vcombine.low %v16627_v22, %v16656_v43  ;;  %v2950_v1 = vor.u32 %v2949_v56, %v2946_v25  ;;  %v2960_v45 = vor.u32 %v2959_v15, %v16892_v52  ;;  %v16960_v25 = vld [vmem:[%s21813_s1 + $0x8] sm:$0x1] }
  0xf8   : > { %15045 = vmatmul.mubr.msk.bf16.vlgmr.msra.gmra.mxu1 %vm1400_vm10, %v13816_v49  ;;  %v16907_v57 = vrot.slane %v2963_v48, 5  ;;  %v13806_v29 = vrot.slane %v3459_v39, 9  ;;  %v2932_v22 = vsel %vm15995_vm13, %v2927_v40, %v2931_v10  ;;  %v2942_v43 = vsel %vm15995_vm13, %v2937_v8, %v2941_v28  ;;  %v16947_v28 = vld [vmem:[#allocation2 + $0x7c] sm:$0xf] }
  0xf9   : > { %14971 = vmatmul.mubr.msk.bf16.gmra.mxu0 %vm1400_vm10, %v21866_v53  ;;  %15048 = vmatprep.mubr.msk.bf16.mxu1 %vm1400_vm10, %v13817_v37  ;;  %v3562_v9 = vrot.slane %v3560_v12, 4  ;;  %v3567_v13 = vrot.slane %v16854_v50, 5  ;;  %v16920_v49 = vrot.slane %v2950_v1, 4  ;;  %v2961_v60 = vrot.slane %v2960_v45, 4  ;;  %v16935_v50 = vld [vmem:[#allocation2 + $0x74] sm:$0x1] }
  0xfa   : > { %15010 = vmatprep.mubr.msk.bf16.mxu0 %vm1400_vm10, %v16719_v41  ;;  %v16924_v41 = vsel %vm16408_vm11, %v13805_v58, %v3560_v12  ;;  %v3570_v6 = vrot.slane %v16864_v62, 5  ;;  %v13820_v37 = vcombine.low %v16879_v18, %v16887_v30  ;;  %v2968_v24 = vshrl.u32 %v2751_v38, 16  ;;  %v16976_v1 = vpop.f32.mrf.mxu1 }
  0xfb   : > { %v16933_v4 = vsel %vm16408_vm11, %v3562_v9, %v3563_v27  ;;  %v3569_v47 = vrot.slane %v3567_v13, 4  ;;  %v16937_v55 = vcombine.low %v2932_v22, %v2942_v43  ;;  %v2956_v62 = vsel %vm15995_vm13, %v16920_v49, %v16892_v52  ;;  %v2757_v49 = vld [vmem:[#allocation2 + $0x84] sm:$0xf] }
  0xfc   : > { %v16945_v10 = vsel %vm16408_vm11, %v13806_v29, %v3567_v13  ;;  %v2971_v21 = vshll.u32 %v2751_v38, 16  ;;  %v2966_v33 = vsel %vm15995_vm13, %v2961_v60, %v16907_v57  ;;  %v13821_v20 = vcombine.low %v16924_v41, %v16933_v4 }
  0xfd   : > { %v2970_v23 = vrot.slane %v2968_v24, 4  ;;  %v2977_v51 = vshll.u32 %v16927_v14, 16  ;;  %v16964_v48 = vsel %vm16408_vm11, %v3569_v47, %v3570_v6  ;;  %v2981_v39 = vshrl.u32 %v16927_v14, 16  ;;  %v16997_v6 = vld [vmem:[#allocation2 + $0x88] sm:$0xf]  ;;  %v16999_v47 = vpop.f32.mrf.mxu1 }
  0xfe   : > { %v2973_v58 = vrot.slane %v2971_v21, 5  ;;  %v2987_v40 = vshll.u32 %v16935_v50, 16  ;;  %v2992_v52 = vshrl.u32 %v2754_v42, 16  ;;  %v2995_v15 = vshll.u32 %v2754_v42, 16 }
  0xff   : > { %v2979_v56 = vrot.slane %v2977_v51, 5  ;;  %v3001_v8 = vshll.u32 %v16947_v28, 16  ;;  %v2983_v27 = vrot.slane %v2981_v39, 4  ;;  %v3005_v53 = vshrl.u32 %v16947_v28, 16 }
 0x100   : > { %15049 = vmatmul.mubr.msk.bf16.gmra.mxu1 %vm1400_vm10, %v13818_v26  ;;  %v2974_v12 = vor.u32 %v2973_v58, %v2970_v23  ;;  %v2989_v38 = vrot.slane %v2987_v40, 5  ;;  %v2994_v45 = vrot.slane %v2992_v52, 4  ;;  %v2997_v57 = vrot.slane %v2995_v15, 5  ;;  %v17004_v23 = vld [vmem:[#allocation2 + $0x8c] sm:$0x1] }
 0x101   : > { %15011 = vmatmul.mubr.msk.bf16.vlgmr.msra.gmra.mxu0 %vm1400_vm10, %v16753_v59  ;;  %v16981_v59 = vrot.slane %v3001_v8, 5  ;;  %v3011_v17 = vshll.u32 %v16949_v46, 16  ;;  %15052 = vmatprep.mubr.msk.bf16.mxu1 %vm1400_vm10, %v13819_v36  ;;  %v2984_v29 = vor.u32 %v2983_v27, %v2979_v56  ;;  %v3007_v22 = vrot.slane %v3005_v53, 4  ;;  %v17045_v8 = vld [vmem:[#allocation2 + $0x94] sm:$0xf] }
 0x102   : > { %15077 = vmatpush3.bf16.msra.mxu0 %v16722_v2  ;;  %15014 = vmatprep.mubr.msk.bf16.mxu0 %vm1400_vm10, %v16791_v63  ;;  %v2975_v26 = vrot.slane %v2974_v12, 4  ;;  %v13807_v43 = vrot.slane %v3460_v19, 9  ;;  %v2998_v2 = vor.u32 %v2997_v57, %v2994_v45  ;;  %v3574_v9 = vrot.slane %v16927_v14, 5  ;;  %v17033_v52 = vpop.f32.mrf.mxu0  ;;  %v3462_v57 = vld [vmem:[#allocation2 + $0x84] sm:$0xe] }
 0x103   : > { %15546 = vmatprep.subr.msk.bf16.mxu0 %vm1449_vm0, %v16960_v25  ;;  %v16990_v63 = vrot.slane %v3011_v17, 5  ;;  %v3577_v13 = vrot.slane %v16935_v50, 5  ;;  %v2985_v34 = vrot.slane %v2984_v29, 4  ;;  %v3008_v36 = vor.u32 %v3007_v22, %v16981_v59  ;;  %v2760_v50 = vld [vmem:[#allocation2 + $0x90] sm:$0xf] }
 0x104   : > { %v2980_v31 = vsel %vm15995_vm13, %v2975_v26, %v2979_v56  ;;  %v13808_v60 = vrot.slane %v3461_v61, 9  ;;  %v17001_v24 = vcombine.low %v2956_v62, %v2966_v33  ;;  %v2999_v42 = vrot.slane %v2998_v2, 4  ;;  %v17055_v29 = vpop.f32.mrf.mxu0 }
 0x105   : > { %v3576_v21 = vrot.slane %v3574_v9, 4  ;;  %v3581_v14 = vrot.slane %v16947_v28, 5  ;;  %v2990_v51 = vsel %vm15995_vm13, %v2985_v34, %v2989_v38  ;;  %v3009_v19 = vrot.slane %v3008_v36, 4  ;;  %v17048_v38 = vld [vmem:[#allocation2 + $0x98] sm:$0x1] }
 0x106   : > { %v3584_v58 = vrot.slane %v16949_v46, 5  ;;  %v3016_v39 = vshrl.u32 %v2757_v49, 16  ;;  %v13822_v40 = vcombine.low %v16945_v10, %v16964_v48  ;;  %v17011_v56 = vcombine.low %v2980_v31, %v2990_v51  ;;  %v17066_v51 = vld [vmem:[#allocation2 + $0xa0] sm:$0xf] }
 0x107   : > { %v3575_v62 = vsel %vm16408_vm11, %v13807_v43, %v3574_v9  ;;  %v3578_v28 = vsel %vm16408_vm11, %v3576_v21, %v3577_v13  ;;  %v3004_v10 = vsel %vm15995_vm13, %v2999_v42, %v16981_v59  ;;  %v3014_v46 = vsel %vm15995_vm13, %v3009_v19, %v16990_v63  ;;  %v3463_v13 = vld [vmem:[#allocation2 + $0x90] sm:$0xe] }
 0x108   : > { %15053 = vmatmul.mubr.msk.bf16.gmra.mxu1 %vm1400_vm10, %v13820_v37  ;;  %v17031_v33 = vsel %vm16408_vm11, %v13808_v60, %v3581_v14  ;;  %v3583_v48 = vrot.slane %v3581_v14, 4  ;;  %v3018_v18 = vrot.slane %v3016_v39, 4  ;;  %v3019_v30 = vshll.u32 %v2757_v49, 16  ;;  %v2763_v60 = vld [vmem:[#allocation2 + $0x9c] sm:$0xf] }
 0x109   : > { %15015 = vmatmul.mubr.msk.bf16.gmra.mxu0 %vm1400_vm10, %v16809_v11  ;;  %v17035_v11 = vpop.f32.mrf.mxu1  ;;  %15056 = vmatprep.mubr.msk.bf16.mxu1 %vm1400_vm10, %v13821_v20  ;;  %v3025_v37 = vshll.u32 %v16997_v6, 16  ;;  %v3029_v15 = vshrl.u32 %v16997_v6, 16  ;;  %v13823_v12 = vcombine.low %v3575_v62, %v3578_v28  ;;  %v3035_v27 = vshll.u32 %v17004_v23, 16  ;;  %v17076_v62 = vpop.f32.mrf.mxu0 }
 0x10a   : > { %15018 = vmatprep.mubr.msk.bf16.mxu0 %vm1400_vm10, %v16852_v0  ;;  %v3040_v53 = vshrl.u32 %v2760_v50, 16  ;;  %v3043_v0 = vshll.u32 %v2760_v50, 16  ;;  %v17052_v41 = vsel %vm16408_vm11, %v3583_v48, %v3584_v58  ;;  %v3021_v4 = vrot.slane %v3019_v30, 5  ;;  %v2766_v30 = vld [vmem:[#allocation2 + $0xa8] sm:$0xf] }
 0x10b   : > { %v3027_v20 = vrot.slane %v3025_v37, 5  ;;  %v3031_v45 = vrot.slane %v3029_v15, 4  ;;  %v3037_v59 = vrot.slane %v3035_v27, 5  ;;  %v3049_v26 = vshll.u32 %v17045_v8, 16  ;;  %v17057_v22 = vpop.f32.mrf.mxu1 }
 0x10c   : > { %v3042_v17 = vrot.slane %v3040_v53, 4  ;;  %v3045_v61 = vrot.slane %v3043_v0, 5  ;;  %21867 = vst [vmem:[#allocation10_spill] sm:$0xff] %v17057_v22  ;;  %v3022_v43 = vor.u32 %v3021_v4, %v3018_v18  ;;  %v3053_v63 = vshrl.u32 %v17045_v8, 16  ;;  %v17102_v53 = vld [vmem:[#allocation2 + $0xac] sm:$0xf] }
 0x10d   : > { %v3032_v2 = vor.u32 %v3031_v45, %v3027_v20  ;;  %v3059_v9 = vshll.u32 %v17048_v38, 16  ;;  %v17061_v31 = vrot.slane %v3049_v26, 5  ;;  %v13809_v34 = vrot.slane %v3462_v57, 9  ;;  %v17078_v28 = vpop.f32.mrf.mxu1  ;;  %v3464_v45 = vld [vmem:[#allocation2 + $0x9c] sm:$0xe]  ;;  %v17111_v57 = vpop.f32.mrf.mxu0 }
 0x10e   : > { %v3046_v49 = vor.u32 %v3045_v61, %v3042_v17  ;;  %v3588_v36 = vrot.slane %v16997_v6, 5  ;;  %v17064_v42 = vcombine.low %v3004_v10, %v3014_v46  ;;  %v3023_v21 = vrot.slane %v3022_v43, 4  ;;  %21868 = vst [vmem:[#allocation11_spill] sm:$0xff] %v17111_v57 }
 0x10f   : > { %v3033_v14 = vrot.slane %v3032_v2, 4  ;;  %v3055_v50 = vrot.slane %v3053_v63, 4  ;;  %v13824_v19 = vcombine.low %v17031_v33, %v17052_v41  ;;  %v3591_v6 = vrot.slane %v17004_v23, 5  ;;  %v17090_v23 = vld [vmem:[#allocation2 + $0xa4] sm:$0x1] }
 0x110   : > { %15057 = vmatmul.mubr.msk.bf16.gmra.mxu1 %vm1400_vm10, %v13822_v40  ;;  %v17073_v58 = vrot.slane %v3046_v49, 4  ;;  %v3590_v39 = vrot.slane %v3588_v36, 4  ;;  %v17088_v46 = vrot.slane %v3059_v9, 5  ;;  %v3589_v33 = vsel %vm16408_vm11, %v13809_v34, %v3588_v36 }
 0x111   : > { %15019 = vmatmul.mubr.msk.bf16.gmra.mxu0 %vm1400_vm10, %v16894_v3  ;;  %15060 = vmatprep.mubr.msk.bf16.mxu1 %vm1400_vm10, %v13823_v12  ;;  %v3028_v3 = vsel %vm15995_vm13, %v3023_v21, %v3027_v20  ;;  %v3038_v40 = vsel %vm15995_vm13, %v3033_v14, %v3037_v59  ;;  %v3056_v10 = vor.u32 %v3055_v50, %v17061_v31  ;;  %v13810_v48 = vrot.slane %v3463_v13, 9  ;;  %v17113_v59 = vpop.f32.mrf.mxu1  ;;  %v17130_v50 = vpop.f32.mrf.mxu0 }
 0x112   : > { %15022 = vmatprep.mubr.msk.bf16.mxu0 %vm1400_vm10, %v16937_v55  ;;  %v3592_v55 = vsel %vm16408_vm11, %v3590_v39, %v3591_v6  ;;  %v3595_v18 = vrot.slane %v17045_v8, 5  ;;  %v17097_v37 = vcombine.low %v3028_v3, %v3038_v40  ;;  %v3598_v12 = vrot.slane %v17048_v38, 5  ;;  %v17109_v8 = vld [vmem:[#allocation2 + $0xb0] sm:$0x1]  ;;  %v3465_v3 = vld [vmem:[#allocation2 + $0xa8] sm:$0xe] }
 0x113   : > { %v17099_v15 = vrot.slane %v3056_v10, 4  ;;  %v3064_v27 = vshrl.u32 %v2763_v60, 16  ;;  %v3052_v0 = vsel %vm15995_vm13, %v17073_v58, %v17061_v31  ;;  %v3067_v4 = vshll.u32 %v2763_v60, 16  ;;  %v17132_v58 = vpop.f32.mrf.mxu1 }
 0x114   : > { %v3597_v41 = vrot.slane %v3595_v18, 4  ;;  %v3073_v20 = vshll.u32 %v17066_v51, 16  ;;  %v13825_v38 = vcombine.low %v3589_v33, %v3592_v55  ;;  %v3077_v61 = vshrl.u32 %v17066_v51, 16  ;;  %v2769_v55 = vld [vmem:[#allocation2 + $0xb4] sm:$0xf] }
 0x115   : > { %v3066_v17 = vrot.slane %v3064_v27, 4  ;;  %v3083_v26 = vshll.u32 %v17090_v23, 16  ;;  %v3062_v43 = vsel %vm15995_vm13, %v17099_v15, %v17088_v46  ;;  %v3596_v2 = vsel %vm16408_vm11, %v13810_v48, %v3595_v18 }
 0x116   : > { %v3069_v63 = vrot.slane %v3067_v4, 5  ;;  %v3075_v9 = vrot.slane %v3073_v20, 5  ;;  %v3599_v13 = vsel %vm16408_vm11, %v3597_v41, %v3598_v12  ;;  %v3079_v49 = vrot.slane %v3077_v61, 4  ;;  %v17145_v4 = vld [vmem:[#allocation2 + $0xb8] sm:$0xf]  ;;  %v17147_v20 = vpop.f32.mrf.mxu0 }
 0x117   : > { %v3085_v31 = vrot.slane %v3083_v26, 5  ;;  %v3088_v34 = vshrl.u32 %v2766_v30, 16  ;;  %v3091_v60 = vshll.u32 %v2766_v30, 16  ;;  %v3097_v21 = vshll.u32 %v17102_v53, 16  ;;  %v17156_v61 = vld [vmem:[#allocation2 + $0xbc] sm:$0x1] }
 0x118   : > { %15061 = vmatmul.mubr.msk.bf16.gmra.mxu1 %vm1400_vm10, %v13824_v19  ;;  %v3070_v36 = vor.u32 %v3069_v63, %v3066_v17  ;;  %v3101_v14 = vshrl.u32 %v17102_v53, 16  ;;  %v3080_v39 = vor.u32 %v3079_v49, %v3075_v9  ;;  %v13811_v19 = vrot.slane %v3464_v45, 9  ;;  %v17149_v45 = vpop.f32.mrf.mxu1 }
 0x119   : > { %15023 = vmatmul.mubr.msk.bf16.gmra.mxu0 %vm1400_vm10, %v17001_v24  ;;  %15064 = vmatprep.mubr.msk.bf16.mxu1 %vm1400_vm10, %v13825_v38  ;;  %v3090_v6 = vrot.slane %v3088_v34, 4  ;;  %v3107_v24 = vshll.u32 %v17109_v8, 16  ;;  %v3093_v10 = vrot.slane %v3091_v60, 5  ;;  %v17138_v46 = vrot.slane %v3097_v21, 5  ;;  %21869 = vst [vmem:[#allocation12_spill] sm:$0xff] %v17149_v45 }
 0x11a   : > { %15026 = vmatprep.mubr.msk.bf16.mxu0 %vm1400_vm10, %v17011_v56  ;;  %v3071_v40 = vrot.slane %v3070_v36, 4  ;;  %v3103_v33 = vrot.slane %v3101_v14, 4  ;;  %v13826_v48 = vcombine.low %v3596_v2, %v3599_v13  ;;  %v3081_v18 = vrot.slane %v3080_v39, 4  ;;  %v440_v13 = vld [vmem:[#allocation2 + $0xc8] sm:$0x1] }
 0x11b   : > { %v3602_v30 = vrot.slane %v17066_v51, 5  ;;  %v3605_v56 = vrot.slane %v17090_v23, 5  ;;  %v3094_v12 = vor.u32 %v3093_v10, %v3090_v6  ;;  %v13812_v41 = vrot.slane %v3465_v3, 9  ;;  %v2772_v60 = vld [vmem:[#allocation2 + $0xc0] sm:$0xf]  ;;  %v17172_v6 = vpop.f32.mrf.mxu0 }
 0x11c   : > { %v3076_v15 = vsel %vm15995_vm13, %v3071_v40, %v3075_v9  ;;  %v3104_v27 = vor.u32 %v3103_v33, %v17138_v46  ;;  %v3086_v38 = vsel %vm15995_vm13, %v3081_v18, %v3085_v31  ;;  %v3609_v17 = vrot.slane %v17102_v53, 5  ;;  %v17185_v3 = vld [vmem:[#allocation2 + $0xc4] sm:$0xf] }
 0x11d   : > { %v3603_v51 = vsel %vm16408_vm11, %v13811_v19, %v3602_v30  ;;  %v3604_v23 = vrot.slane %v3602_v30, 4  ;;  %v17158_v26 = vrot.slane %v3094_v12, 4  ;;  %v17162_v63 = vrot.slane %v3107_v24, 5  ;;  %v15626_v30 = vld [vmem:[%s21813_s1 + $0x4] ss:$0 sps:$4 sm:$0x88]  }
 0x11e   : > { %v17160_v2 = vrot.slane %v3104_v27, 4  ;;  %v3612_v9 = vrot.slane %v17109_v8, 5  ;;  %v13778_v49 = vcombine.low %v3052_v0, %v3062_v43  ;;  %v3611_v34 = vrot.slane %v3609_v17, 4  ;;  %v3466_v8 = vld [vmem:[#allocation2 + $0xb4] sm:$0xe]  ;;  %v17174_v0 = vpop.f32.mrf.mxu1 }
 0x11f   : > { %v3606_v31 = vsel %vm16408_vm11, %v3604_v23, %v3605_v56  ;;  %v3112_v36 = vshrl.u32 %v2769_v55, 16  ;;  %v13779_v53 = vcombine.low %v3076_v15, %v3086_v38  ;;  %v3610_v14 = vsel %vm16408_vm11, %v13812_v41, %v3609_v17  ;;  %v17200_v41 = vpop.f32.mrf.mxu0 }
 0x120   : > { %15065 = vmatmul.mubr.msk.bf16.gmra.mxu1 %vm1400_vm10, %v13826_v48  ;;  %v13827_v21 = vcombine.low %v3603_v51, %v3606_v31  ;;  %v3115_v39 = vshll.u32 %v2769_v55, 16  ;;  %v3613_v43 = vsel %vm16408_vm11, %v3611_v34, %v3612_v9  ;;  %v3121_v19 = vshll.u32 %v17145_v4, 16  ;;  %21870 = vst [vmem:[#allocation13_spill] sm:$0xff] %v17200_v41  ;;  %v17202_v38 = vpop.f32.mrf.mxu1 }
 0x121   : > { %15027 = vmatmul.mubr.msk.bf16.gmra.mxu0 %vm1400_vm10, %v17064_v42  ;;  %v3100_v42 = vsel %vm15995_vm13, %v17158_v26, %v17138_v46  ;;  %v3114_v24 = vrot.slane %v3112_v36, 4  ;;  %v3110_v40 = vsel %vm15995_vm13, %v17160_v2, %v17162_v63  ;;  %v3125_v10 = vshrl.u32 %v17145_v4, 16 }
 0x122   : > { %15030 = vmatprep.mubr.msk.bf16.mxu0 %vm1400_vm10, %v17097_v37  ;;  %15068 = vmatprep.mubr.msk.bf16.mxu1 %vm1400_vm10, %v13827_v21  ;;  %v3117_v37 = vrot.slane %v3115_v39, 5  ;;  %v3131_v46 = vshll.u32 %v17156_v61, 16  ;;  %v3123_v33 = vrot.slane %v3121_v19, 5  ;;  %v441_v55 = vsel %vm15949_vm8, 0, %v440_v13  ;;  %v17226_v19 = vld [vmem:[#allocation2 + $0x1c] sm:$0xf] }
 0x123   : > { %v3136_v48 = vshrl.u32 %v2772_v60, 16  ;;  %v3139_v18 = vshll.u32 %v2772_v60, 16  ;;  %v13828_v56 = vcombine.low %v3610_v14, %v3613_v43  ;;  %v3127_v12 = vrot.slane %v3125_v10, 4  ;;  %442 = vst [vmem:[#allocation2 + $0xc8] sm:$0x1] %v441_v55  ;;  %v17219_v43 = vpop.f32.mrf.mxu1 }
 0x124   : > { %v3118_v15 = vor.u32 %v3117_v37, %v3114_v24  ;;  %v3145_v27 = vshll.u32 %v17185_v3, 16  ;;  %v3149_v7 = vshrl.u32 %v17185_v3, 16  ;;  %v13813_v17 = vrot.slane %v3466_v8, 9  ;;  %v17211_v60 = vld [vmem:[#allocation2 + $0xc0] sm:$0xe] }
 0x125   : > { %v3138_v51 = vrot.slane %v3136_v48, 4  ;;  %v3141_v23 = vrot.slane %v3139_v18, 5  ;;  %v3128_v2 = vor.u32 %v3127_v12, %v3123_v33  ;;  %v3133_v63 = vrot.slane %v3131_v46, 5  ;;  %v4287_v8 = vld [vmem:[#allocation2 + $0x18] sm:$0xf] }
 0x126   : > { %v3119_v26 = vrot.slane %v3118_v15, 4  ;;  %v3616_v9 = vrot.slane %v17145_v4, 5  ;;  %v17206_v31 = vrot.slane %v3145_v27, 5  ;;  %v17208_v34 = vrot.slane %v3149_v7, 4  ;;  %v17217_v4 = vpop.f32.mrf.mxu0  ;;  %v17228_v37 = vld [vmem:[#allocation2 + $0x20] sm:$0x1] }
 0x127   : > { %v3142_v13 = vor.u32 %v3141_v23, %v3138_v51  ;;  %v3619_v36 = vrot.slane %v17156_v61, 5  ;;  %v3129_v21 = vrot.slane %v3128_v2, 4  ;;  %v13780_v10 = vcombine.low %v3100_v42, %v3110_v40  ;;  %v4290_v48 = vld [vmem:[#allocation2 + $0x24] sm:$0xf]  ;;  %v17243_v40 = vld [vmem:[#allocation2 + $0x28] sm:$0xf]  ;;  %v17258_v51 = vpop.f32.mrf.mxu1 }
 0x128   : > { %15069 = vmatmul.mubr.msk.bf16.gmra.mxu1 %vm1400_vm10, %v13828_v56  ;;  %v3617_v14 = vsel %vm16408_vm11, %v13813_v17, %v3616_v9  ;;  %v3618_v39 = vrot.slane %v3616_v9, 4  ;;  %v3124_v61 = vsel %vm15995_vm13, %v3119_v26, %v3123_v33  ;;  %v3152_v18 = vor.u32 %v17208_v34, %v17206_v31  ;;  %v17254_v27 = vld [vmem:[#allocation2 + $0x2c] sm:$0x1]  ;;  %21871 = vst [vmem:[#allocation14_spill] sm:$0xff] %v17258_v51 }
 0x129   : > { %15031 = vmatmul.mubr.msk.bf16.gmra.mxu0 %vm1400_vm10, %v13778_v49  ;;  %v17224_v24 = vrot.slane %v3142_v13, 4  ;;  %v4771_v49 = vrot.slane %v15626_v30, 3  ;;  %v3134_v46 = vsel %vm15995_vm13, %v3129_v21, %v3133_v63  ;;  %v13814_v56 = vrot.slane %v17211_v60, 9 }
 0x12a   : > { %15034 = vmatprep.mubr.msk.bf16.mxu0 %vm1400_vm10, %v13779_v53  ;;  %v3620_v55 = vsel %vm16408_vm11, %v3618_v39, %v3619_v36  ;;  %v17236_v53 = vadd.f32 %v16976_v1, %v17033_v52  ;;  %v908_v33 = vld [vmem:[#allocation2 + $0xc8] sm:$0x1]  ;;  %v3623_v42 = vrot.slane %v17185_v3, 5  ;;  %v13781_v15 = vcombine.low %v3124_v61, %v3134_v46  ;;  %v17256_v3 = vpop.f32.mrf.mxu0  ;;  %v4293_v46 = vld [vmem:[#allocation2 + $0x30] sm:$0xf] }
 0x12b   : > { %v13829_v30 = vcombine.low %v3617_v14, %v3620_v55  ;;  %15545 = vmatprep.subr.msk.bf16.mxu1 %vm1449_vm0, %v4771_v49  ;;  %v909_v1 = vsel %vm15941_vm5, %v748_v32, %v908_v33  ;;  %v3148_v52 = vsel %vm15995_vm13, %v17224_v24, %v17206_v31  ;;  %v4821_v12 = vsel %vm1449_vm0, %v4771_v49, 0  ;;  %vm18416_vm5 = vmand %vm5634_vm6, %vm393_vm4 }
 0x12c   : > { %910 = vst [vmem:[#allocation2 + $0xc8] sm:$0x1] %v909_v1  ;;  %15111 = vmatpush3.bf16.msra.mxu1 %v4821_v12  ;;  %v4336_v16 = vshrl.u32 %v4287_v8, 16  ;;  %v4339_v5 = vshll.u32 %v4287_v8, 16  ;;  %v4345_v32 = vshll.u32 %v17226_v19, 16  ;;  %v4349_v23 = vshrl.u32 %v17226_v19, 16  ;;  %v17270_v39 = vpop.f32.mrf.mxu0  ;;  %v17272_v8 = vpop.f32.mrf.mxu1 }
 0x12d   : > { %15072 = vmatprep.mubr.msk.bf16.mxu1 %vm1400_vm10, %v13829_v30  ;;  %v4355_v7 = vshll.u32 %v17228_v37, 16  ;;  %v17266_v17 = vadd.f32 %v16999_v47, %v17055_v29  ;;  %v4360_v26 = vshrl.u32 %v4290_v48, 16  ;;  %v4363_v2 = vshll.u32 %v4290_v48, 16  ;;  %v17279_v30 = vld [vmem:[#allocation2 + $0x34] sm:$0xf] }
 0x12e   : > { %v4338_v63 = vrot.slane %v4336_v16, 4  ;;  %v4341_v9 = vrot.slane %v4339_v5, 5  ;;  %v4347_v13 = vrot.slane %v4345_v32, 5  ;;  %v4351_v34 = vrot.slane %v4349_v23, 4 }
 0x12f   : > { %v4357_v36 = vrot.slane %v4355_v7, 5  ;;  %v4362_v60 = vrot.slane %v4360_v26, 4  ;;  %v4365_v21 = vrot.slane %v4363_v2, 5  ;;  %v4369_v14 = vshll.u32 %v17243_v40, 16  ;;  %v17291_v26 = vpop.f32.mrf.mxu0  ;;  %v17293_v2 = vpop.f32.mrf.mxu1 }
 0x130   : > { %v4342_v47 = vor.u32 %v4341_v9, %v4338_v63  ;;  %v4352_v29 = vor.u32 %v4351_v34, %v4347_v13  ;;  %v4373_v61 = vshrl.u32 %v17243_v40, 16  ;;  %v4379_v49 = vshll.u32 %v17254_v27, 16  ;;  %21872 = vst [vmem:[#allocation15_spill] sm:$0xff] %v17291_v26 }
 0x131   : > { %15035 = vmatmul.mubr.msk.bf16.gmra.mxu0 %vm1400_vm10, %v13780_v10  ;;  %v3153_v55 = vrot.slane %v3152_v18, 4  ;;  %v3624_v10 = vsel %vm16408_vm11, %v13814_v56, %v3623_v42  ;;  %v4366_v48 = vor.u32 %v4365_v21, %v4362_v60  ;;  %v4371_v33 = vrot.slane %v4369_v14, 5  ;;  %v17289_v56 = vld [vmem:[#allocation2 + $0x38] sm:$0x1]  ;;  %v4296_v60 = vld [vmem:[#allocation2 + $0x3c] sm:$0xf] }
 0x132   : > { %15038 = vmatprep.mubr.msk.bf16.mxu0 %vm1400_vm10, %v13781_v15  ;;  %v3625_v1 = vrot.slane %v3623_v42, 4  ;;  %v4343_v12 = vrot.slane %v4342_v47, 4  ;;  %v4353_v16 = vrot.slane %v4352_v29, 4  ;;  %v4375_v5 = vrot.slane %v4373_v61, 4  ;;  %v17304_v61 = vld [vmem:[#allocation2 + $0x40] sm:$0xf] }
 0x133   : > { %v2774_v15 = vld [vmem:[#allocation2 + $0xc8] sm:$0x1]  ;;  %v4367_v32 = vrot.slane %v4366_v48, 4  ;;  %v4381_v23 = vrot.slane %v4379_v49, 5  ;;  %v17283_v7 = vadd.f32 %v17035_v11, %v17076_v62  ;;  %v17287_v18 = vadd.f32 %v17078_v28, %v17130_v50 }
 0x134   : > { %v3155_v42 = vshll.u32 %v2774_v15, 16  ;;  %v3626_v63 = vrot.slane %v2774_v15, 5  ;;  %v4348_v9 = vsel %vm15995_vm13, %v4343_v12, %v4347_v13  ;;  %v4358_v34 = vsel %vm15995_vm13, %v4353_v16, %v4357_v36  ;;  %v17307_v12 = vpop.f32.mrf.mxu0  ;;  %v17309_v16 = vpop.f32.mrf.mxu1 }
 0x135   : > { %v13881_v11 = vcombine.low %v4348_v9, %v4358_v34  ;;  %v4372_v62 = vsel %vm15995_vm13, %v4367_v32, %v4371_v33  ;;  %v4376_v28 = vor.u32 %v4375_v5, %v4371_v33  ;;  %v4384_v50 = vshrl.u32 %v4293_v46, 16  ;;  %v15627_v5 = vld [vmem:[#allocation2 + $0x18] sm:$0xff]   ;;  %v17314_v32 = vld [vmem:[#allocation2 + $0x44] sm:$0x1] }
 0x136   : > { %v3157_v21 = vrot.slane %v3155_v42, 5  ;;  %v3627_v14 = vsel %vm16408_vm11, %v3625_v1, %v3626_v63  ;;  %v4387_v47 = vshll.u32 %v4293_v46, 16  ;;  %v4393_v29 = vshll.u32 %v17279_v30, 16 }
 0x137   : > { %v13830_v13 = vcombine.low %v3624_v10, %v3627_v14  ;;  %v4377_v49 = vrot.slane %v4376_v28, 4  ;;  %v4386_v48 = vrot.slane %v4384_v50, 4  ;;  %v4397_v36 = vshrl.u32 %v17279_v30, 16  ;;  %v17334_v14 = vpop.f32.mrf.mxu0 }
 0x138   : > { %v3158_v33 = vsel %vm15995_vm13, %v3153_v55, %v3157_v21  ;;  %v4389_v15 = vrot.slane %v4387_v47, 5  ;;  %v4395_v1 = vrot.slane %v4393_v29, 5  ;;  %v4403_v46 = vshll.u32 %v17289_v56, 16  ;;  %v4299_v21 = vld [vmem:[#allocation2 + $0x48] sm:$0xf] }
 0x139   : > { %v13782_v10 = vcombine.low %v3148_v52, %v3158_v33  ;;  %15073 = vmatmul.mubr.msk.bf16.gmra.mxu1 %vm1400_vm10, %v13830_v13  ;;  %v4382_v42 = vsel %vm15995_vm13, %v4377_v49, %v4381_v23  ;;  %v4399_v63 = vrot.slane %v4397_v36, 4  ;;  %v17326_v55 = vadd.f32 %v17113_v59, %v17147_v20  ;;  %v17332_v23 = vld [vmem:[#allocation2 + $0x4c] sm:$0xf]  ;;  %v17336_v59 = vpop.f32.mrf.mxu1  ;;  %v17340_v13 = vld [vmem:[#allocation2 + $0x50] sm:$0x1] }
 0x13a   : > { %15112 = vmatprep.mubr.msk.bf16.mxu1 %vm1400_vm10, %v13881_v11  ;;  %v4390_v9 = vor.u32 %v4389_v15, %v4386_v48  ;;  %v4405_v34 = vrot.slane %v4403_v46, 5  ;;  %v4408_v28 = vshrl.u32 %v4296_v60, 16  ;;  %v4411_v31 = vshll.u32 %v4296_v60, 16  ;;  %21873 = vst [vmem:[#allocation16_spill] sm:$0xff] %v17336_v59  ;;  %v15628_v60 = vld [vmem:[#allocation2 + $0x24] sm:$0xff]  }
 0x13b   : > { %15039 = vmatmul.mubr.msk.bf16.gmra.mxu0 %vm1400_vm10, %v13782_v10  ;;  %v4400_v50 = vor.u32 %v4399_v63, %v4395_v1  ;;  %v4417_v24 = vshll.u32 %v17304_v61, 16  ;;  %v4421_v52 = vshrl.u32 %v17304_v61, 16  ;;  %v13882_v20 = vcombine.low %v4372_v62, %v4382_v42  ;;  %v4317_v59 = vld [vmem:[#allocation2 + $0x90] sm:$0xf] }
 0x13c   : > { %15078 = vmatprep.mubr.msk.bf16.mxu0 %vm1400_vm10, %v15627_v5  ;;  %v4391_v11 = vrot.slane %v4390_v9, 4  ;;  %v4410_v47 = vrot.slane %v4408_v28, 4  ;;  %v4427_v29 = vshll.u32 %v17314_v32, 16  ;;  %v4413_v48 = vrot.slane %v4411_v31, 5  ;;  %v4302_v28 = vld [vmem:[#allocation2 + $0x54] sm:$0xf] }
 0x13d   : > { %v4401_v49 = vrot.slane %v4400_v50, 4  ;;  %v4419_v36 = vrot.slane %v4417_v24, 5  ;;  %v4423_v33 = vrot.slane %v4421_v52, 4  ;;  %v5290_v15 = vsel %vm1449_vm0, %v16960_v25, 0  ;;  %v17356_v50 = vpop.f32.mrf.mxu0  ;;  %v17358_v25 = vpop.f32.mrf.mxu1  ;;  %vm17888_vm0 = vmand %vm5637_vm7, %vm343_vm3 }
 0x13e   : > { %v4396_v46 = vsel %vm15995_vm13, %v4391_v11, %v4395_v1  ;;  %v4429_v10 = vrot.slane %v4427_v29, 5  ;;  %v17348_v62 = vadd.f32 %v17132_v58, %v17172_v6  ;;  %v4414_v42 = vor.u32 %v4413_v48, %v4410_v47  ;;  %v15629_v1 = vld [vmem:[#allocation2 + $0x30] sm:$0xff]   ;;  %v17361_v6 = vld [vmem:[#allocation2 + $0x58] sm:$0xf] }
 0x13f   : > { %v4406_v5 = vsel %vm15995_vm13, %v4401_v49, %v4405_v34  ;;  %v4424_v63 = vor.u32 %v4423_v33, %v4419_v36  ;;  %v17354_v9 = vadd.f32 %v17174_v0, %v17217_v4  ;;  %v4432_v24 = vshrl.u32 %v4299_v21, 16  ;;  %v17363_v34 = vld [vmem:[#allocation2 + $0x5c] sm:$0x1] }
 0x140   : > { %v13883_v31 = vcombine.low %v4396_v46, %v4406_v5  ;;  %v4435_v52 = vshll.u32 %v4299_v21, 16  ;;  %v4441_v58 = vshll.u32 %v17332_v23, 16  ;;  %v4415_v11 = vrot.slane %v4414_v42, 4  ;;  %v17378_v42 = vpop.f32.mrf.mxu0 }
 0x141   : > { %15113 = vmatmul.mubr.msk.bf16.vlgmr.msra.gmra.mxu1 %vm1400_vm10, %v13882_v20  ;;  %v4425_v0 = vrot.slane %v4424_v63, 4  ;;  %v4445_v4 = vshrl.u32 %v17332_v23, 16  ;;  %v4451_v47 = vshll.u32 %v17340_v13, 16  ;;  %v4434_v29 = vrot.slane %v4432_v24, 4  ;;  %21874 = vst [vmem:[#allocation17_spill] sm:$0xff] %v17378_v42  ;;  %v17380_v63 = vpop.f32.mrf.mxu1 }
 0x142   : > { %15116 = vmatprep.mubr.msk.bf16.mxu1 %vm1400_vm10, %v13883_v31  ;;  %v4437_v49 = vrot.slane %v4435_v52, 5  ;;  %v4443_v48 = vrot.slane %v4441_v58, 5  ;;  %v17371_v21 = vadd.f32 %v17202_v38, %v17256_v3  ;;  %v4420_v20 = vsel %vm15995_vm13, %v4415_v11, %v4419_v36  ;;  %v15630_v52 = vld [vmem:[#allocation2 + $0x3c] sm:$0xff]  }
 0x143   : > { %15079 = vmatmul.mubr.msk.bf16.vlgmr.msra.gmra.mxu0 %vm1400_vm10, %v15628_v60  ;;  %v4430_v33 = vsel %vm15995_vm13, %v4425_v0, %v4429_v10  ;;  %v4447_v46 = vrot.slane %v4445_v4, 4  ;;  %v4453_v5 = vrot.slane %v4451_v47, 5  ;;  %v4456_v3 = vshrl.u32 %v4302_v28, 16  ;;  %v4305_v60 = vld [vmem:[#allocation2 + $0x60] sm:$0xf]  ;;  %v15631_v4 = vld [vmem:[#allocation2 + $0x48] sm:$0xff]  }
 0x144   : > { %15145 = vmatpush3.bf16.msra.mxu0 %v5290_v15  ;;  %15082 = vmatprep.mubr.msk.bf16.mxu0 %vm1400_vm10, %v15629_v1  ;;  %v13884_v31 = vcombine.low %v4420_v20, %v4430_v33  ;;  %v4438_v38 = vor.u32 %v4437_v49, %v4434_v29  ;;  %v4459_v24 = vshll.u32 %v4302_v28, 16  ;;  %v4465_v36 = vshll.u32 %v17361_v6, 16  ;;  %v17386_v0 = vld [vmem:[#allocation2 + $0x64] sm:$0xf]  ;;  %v17388_v1 = vld [vmem:[#allocation2 + $0x68] sm:$0x1]  ;;  %v14892_v33 = vpop.f32.mrf.mxu0 }
 0x145   : > { %v4448_v58 = vor.u32 %v4447_v46, %v4443_v48  ;;  %v4469_v10 = vshrl.u32 %v17361_v6, 16  ;;  %v4475_v11 = vshll.u32 %v17363_v34, 16  ;;  %v4458_v15 = vrot.slane %v4456_v3, 4  ;;  %v17390_v46 = vpop.f32.mrf.mxu1  ;;  %v17497_v42 = vld [vmem:[#allocation2 + $0xa0] sm:$0xf] }
 0x146   : > { %v4439_v47 = vrot.slane %v4438_v38, 4  ;;  %v4461_v54 = vrot.slane %v4459_v24, 5  ;;  %v4467_v49 = vrot.slane %v4465_v36, 5  ;;  %v17396_v45 = vadd.f32 %v17219_v43, %v17270_v39  ;;  %v4308_v38 = vld [vmem:[#allocation2 + $0x6c] sm:$0xf] }
 0x147   : > { %v4449_v29 = vrot.slane %v4448_v58, 4  ;;  %v4471_v28 = vrot.slane %v4469_v10, 4  ;;  %v4477_v20 = vrot.slane %v4475_v11, 5  ;;  %v17403_v58 = vadd.f32 %v17272_v8, %v17307_v12  ;;  %v17405_v10 = vld [vmem:[#allocation2 + $0x70] sm:$0xf] }
 0x148   : > { %v4444_v51 = vsel %vm15995_vm13, %v4439_v47, %v4443_v48  ;;  %v4462_v26 = vor.u32 %v4461_v54, %v4458_v15  ;;  %v4480_v36 = vshrl.u32 %v4305_v60, 16  ;;  %v4483_v11 = vshll.u32 %v4305_v60, 16  ;;  %v1551_v15 = vpop.f32.mrf.mxu0  ;;  %v17421_v60 = vld [vmem:[#allocation2 + $0x74] sm:$0x1] }
 0x149   : > { %15117 = vmatmul.mubr.msk.bf16.gmra.mxu1 %vm1400_vm10, %v13884_v31  ;;  %v4454_v3 = vsel %vm15995_vm13, %v4449_v29, %v4453_v5  ;;  %v4472_v24 = vor.u32 %v4471_v28, %v4467_v49  ;;  %21875 = vst [vmem:[#allocation18_spill] sm:$0xff] %v17403_v58  ;;  %v4489_v43 = vshll.u32 %v17386_v0, 16  ;;  %v4493_v47 = vshrl.u32 %v17386_v0, 16  ;;  %v17411_v29 = vpop.f32.mrf.mxu1 }
 0x14a   : > { %v13885_v48 = vcombine.low %v4444_v51, %v4454_v3  ;;  %v4463_v54 = vrot.slane %v4462_v26, 4  ;;  %v4482_v31 = vrot.slane %v4480_v36, 4  ;;  %v4499_v5 = vshll.u32 %v17388_v1, 16  ;;  %21876 = vst [vmem:[#allocation19_spill] sm:$0xff] %v17411_v29 }
 0x14b   : > { %15083 = vmatmul.mubr.msk.bf16.gmra.mxu0 %vm1400_vm10, %v15630_v52  ;;  %v4473_v39 = vrot.slane %v4472_v24, 4  ;;  %v4485_v8 = vrot.slane %v4483_v11, 5  ;;  %v4491_v26 = vrot.slane %v4489_v43, 5  ;;  %v17419_v12 = vadd.f32 %v17293_v2, %v17334_v14  ;;  %v17428_v14 = vpop.f32.mrf.mxu0 }
 0x14c   : > { %15086 = vmatprep.mubr.msk.bf16.mxu0 %vm1400_vm10, %v15631_v4  ;;  %15120 = vmatprep.mubr.msk.bf16.mxu1 %vm1400_vm10, %v13885_v48  ;;  %v4468_v51 = vsel %vm15995_vm13, %v4463_v54, %v4467_v49  ;;  %v4495_v28 = vrot.slane %v4493_v47, 4  ;;  %v4501_v3 = vrot.slane %v4499_v5, 5  ;;  %v4504_v24 = vshrl.u32 %v4308_v38, 16  ;;  %v15632_v49 = vld [vmem:[#allocation2 + $0x54] sm:$0xff]  }
 0x14d   : > { %21877 = vst [vmem:[#allocation20_spill] sm:$0xff] %v17419_v12  ;;  %v4478_v52 = vsel %vm15995_vm13, %v4473_v39, %v4477_v20  ;;  %v4486_v36 = vor.u32 %v4485_v8, %v4482_v31  ;;  %v4507_v48 = vshll.u32 %v4308_v38, 16  ;;  %v4513_v29 = vshll.u32 %v17405_v10, 16  ;;  %v17430_v41 = vpop.f32.mrf.mxu1  ;;  %v15633_v20 = vld [vmem:[#allocation2 + $0x60] sm:$0xff]  }
 0x14e   : > { %v13886_v4 = vcombine.low %v4468_v51, %v4478_v52  ;;  %v4496_v54 = vor.u32 %v4495_v28, %v4491_v26  ;;  %v4506_v11 = vrot.slane %v4504_v24, 4  ;;  %v4517_v43 = vshrl.u32 %v17405_v10, 16  ;;  %v4311_v51 = vld [vmem:[#allocation2 + $0x78] sm:$0xf]  ;;  %v17437_v52 = vld [vmem:[#allocation2 + $0x7c] sm:$0xf] }
 0x14f   : > { %v4523_v2 = vshll.u32 %v17421_v60, 16  ;;  %v4487_v39 = vrot.slane %v4486_v36, 4  ;;  %v4509_v47 = vrot.slane %v4507_v48, 5  ;;  %v4515_v5 = vrot.slane %v4513_v29, 5  ;;  %v17444_v29 = vld [vmem:[#allocation2 + $0x80] sm:$0x1] }
 0x150   : > { %v4497_v38 = vrot.slane %v4496_v54, 4  ;;  %v4519_v31 = vrot.slane %v4517_v43, 4  ;;  %v17435_v8 = vadd.f32 %v17309_v16, %v17356_v50  ;;  %v17442_v36 = vadd.f32 %v17358_v25, %v14892_v33  ;;  %v17449_v54 = vpop.f32.mrf.mxu0  ;;  %v17451_v43 = vpop.f32.mrf.mxu1 }
 0x151   : > { %15121 = vmatmul.mubr.msk.bf16.gmra.mxu1 %vm1400_vm10, %v13886_v4  ;;  %v4492_v28 = vsel %vm15995_vm13, %v4487_v39, %v4491_v26  ;;  %v4510_v24 = vor.u32 %v4509_v47, %v4506_v11  ;;  %v4525_v22 = vrot.slane %v4523_v2, 5  ;;  %v4528_v16 = vshrl.u32 %v4311_v51, 16  ;;  %21880 = vst [vmem:[#allocation23_spill] sm:$0xff] %v17449_v54  ;;  %v4314_v2 = vld [vmem:[#allocation2 + $0x84] sm:$0xf] }
 0x152   : > { %21878 = vst [vmem:[#allocation21_spill] sm:$0xff] %v17435_v8  ;;  %21879 = vst [vmem:[#allocation22_spill] sm:$0xff] %v17442_v36  ;;  %v4502_v4 = vsel %vm15995_vm13, %v4497_v38, %v4501_v3  ;;  %v4520_v48 = vor.u32 %v4519_v31, %v4515_v5  ;;  %v4531_v50 = vshll.u32 %v4311_v51, 16  ;;  %v4537_v25 = vshll.u32 %v17437_v52, 16  ;;  %v17457_v38 = vld [vmem:[#allocation2 + $0x88] sm:$0xf]  ;;  %v17469_v36 = vpop.f32.mrf.mxu1 }
 0x153   : > { %15087 = vmatmul.mubr.msk.bf16.gmra.mxu0 %vm1400_vm10, %v15632_v49  ;;  %v13887_v26 = vcombine.low %v4492_v28, %v4502_v4  ;;  %v4511_v11 = vrot.slane %v4510_v24, 4  ;;  %v4541_v33 = vshrl.u32 %v17437_v52, 16  ;;  %v4530_v39 = vrot.slane %v4528_v16, 4  ;;  %v17465_v24 = vld [vmem:[#allocation2 + $0x8c] sm:$0x1]  ;;  %v15635_v8 = vld [vmem:[#allocation2 + $0x78] sm:$0xff]  }
 0x154   : > { %15090 = vmatprep.mubr.msk.bf16.mxu0 %vm1400_vm10, %v15633_v20  ;;  %v4521_v49 = vrot.slane %v4520_v48, 4  ;;  %v4533_v47 = vrot.slane %v4531_v50, 5  ;;  %v4547_v3 = vshll.u32 %v17444_v29, 16  ;;  %v4539_v20 = vrot.slane %v4537_v25, 5  ;;  %v15634_v4 = vld [vmem:[#allocation2 + $0x6c] sm:$0xff]  }
 0x155   : > { %15124 = vmatprep.mubr.msk.bf16.mxu1 %vm1400_vm10, %v13887_v26  ;;  %v4516_v51 = vsel %vm15995_vm13, %v4511_v11, %v4515_v5  ;;  %v4543_v31 = vrot.slane %v4541_v33, 4  ;;  %v17463_v28 = vadd.f32 %v17380_v63, %v1551_v15  ;;  %v4552_v54 = vshrl.u32 %v4314_v2, 16 }
 0x156   : > { %v4526_v48 = vsel %vm15995_vm13, %v4521_v49, %v4525_v22  ;;  %v4534_v16 = vor.u32 %v4533_v47, %v4530_v39  ;;  %v4549_v50 = vrot.slane %v4547_v3, 5  ;;  %v4555_v11 = vshll.u32 %v4314_v2, 16  ;;  %v17479_v2 = vld [vmem:[#allocation2 + $0x94] sm:$0xf] }
 0x157   : > { %21881 = vst [vmem:[#allocation24_spill] sm:$0xff] %v17463_v28  ;;  %v14896_v57 = vpop.f32.mrf.mxu0  ;;  %v13888_v26 = vcombine.low %v4516_v51, %v4526_v48  ;;  %v4544_v5 = vor.u32 %v4543_v31, %v4539_v20  ;;  %v4561_v25 = vshll.u32 %v17457_v38, 16  ;;  %v4554_v15 = vrot.slane %v4552_v54, 4  ;;  %v17484_v48 = vld [vmem:[#allocation2 + $0x98] sm:$0x1] }
 0x158   : > { %v4535_v63 = vrot.slane %v4534_v16, 4  ;;  %v4565_v33 = vshrl.u32 %v17457_v38, 16  ;;  %v4571_v28 = vshll.u32 %v17465_v24, 16  ;;  %v4557_v39 = vrot.slane %v4555_v11, 5  ;;  %21883 = vst [vmem:[#allocation26_spill] sm:$0xff] %v17484_v48  ;;  %v17486_v16 = vpop.f32.mrf.mxu1 }
 0x159   : > { %v1567_v22 = vpop.f32.mrf.mxu0  ;;  %15125 = vmatmul.mubr.msk.bf16.gmra.mxu1 %vm1400_vm10, %v13888_v26  ;;  %v4545_v49 = vrot.slane %v4544_v5, 4  ;;  %v4563_v47 = vrot.slane %v4561_v25, 5  ;;  %v17477_v3 = vadd.f32 %v17390_v46, %v17428_v14  ;;  %21884 = vst [vmem:[#allocation27_spill] sm:$0xff] %v17486_v16  ;;  %v17492_v14 = vadd.f32 %v17430_v41, %v14896_v57 }
 0x15a   : > { %v4540_v54 = vsel %vm15995_vm13, %v4535_v63, %v4539_v20  ;;  %v4567_v51 = vrot.slane %v4565_v33, 4  ;;  %v4573_v31 = vrot.slane %v4571_v28, 5  ;;  %v4558_v46 = vor.u32 %v4557_v39, %v4554_v15  ;;  %v4320_v63 = vld [vmem:[#allocation2 + $0x9c] sm:$0xf] }
 0x15b   : > { %21882 = vst [vmem:[#allocation25_spill] sm:$0xff] %v17477_v3  ;;  %15091 = vmatmul.mubr.msk.bf16.gmra.mxu0 %vm1400_vm10, %v15634_v4  ;;  %v4550_v26 = vsel %vm15995_vm13, %v4545_v49, %v4549_v50  ;;  %21885 = vst [vmem:[#allocation28_spill] sm:$0xff] %v17492_v14  ;;  %v4576_v5 = vshrl.u32 %v4317_v59, 16  ;;  %v14897_v4 = vpop.f32.mrf.mxu0  ;;  %v4579_v20 = vshll.u32 %v4317_v59, 16  ;;  %v4585_v28 = vshll.u32 %v17479_v2, 16  ;;  %v15636_v50 = vld [vmem:[#allocation2 + $0x84] sm:$0xff]   ;;  %v14934_v59 = vpop.f32.mrf.mxu1 }
 0x15c   : > { %15094 = vmatprep.mubr.msk.bf16.mxu0 %vm1400_vm10, %v15635_v8  ;;  %v13889_v11 = vcombine.low %v4540_v54, %v4550_v26  ;;  %v4568_v25 = vor.u32 %v4567_v51, %v4563_v47  ;;  %v4559_v33 = vrot.slane %v4558_v46, 4  ;;  %v4589_v16 = vshrl.u32 %v17479_v2, 16  ;;  %v15637_v54 = vld [vmem:[#allocation2 + $0x90] sm:$0xff]   ;;  %v17505_v46 = vld [vmem:[#allocation2 + $0xa4] sm:$0x1] }
 0x15d   : > { %v4578_v3 = vrot.slane %v4576_v5, 4  ;;  %v4595_v8 = vshll.u32 %v17484_v48, 16  ;;  %v4581_v41 = vrot.slane %v4579_v20, 5  ;;  %v4587_v15 = vrot.slane %v4585_v28, 5  ;;  %v17507_v14 = vpop.f32.mrf.mxu0  ;;  %v1875_v48 = vpop.f32.mrf.mxu1 }
 0x15e   : > { %15128 = vmatprep.mubr.msk.bf16.mxu1 %vm1400_vm10, %v13889_v11  ;;  %v4569_v57 = vrot.slane %v4568_v25, 4  ;;  %v17501_v49 = vadd.f32 %v17451_v43, %v1567_v22  ;;  %v4564_v39 = vsel %vm15995_vm13, %v4559_v33, %v4563_v47  ;;  %v4591_v51 = vrot.slane %v4589_v16, 4  ;;  %21887 = vst [vmem:[#allocation30_spill] sm:$0xff] %v17507_v14  ;;  %v4323_v14 = vld [vmem:[#allocation2 + $0xa8] sm:$0xf] }
 0x15f   : > { %v4597_v26 = vrot.slane %v4595_v8, 5  ;;  %v4600_v5 = vshrl.u32 %v4320_v63, 16  ;;  %v4582_v25 = vor.u32 %v4581_v41, %v4578_v3  ;;  %v4603_v20 = vshll.u32 %v4320_v63, 16 }
 0x160   : > { %21886 = vst [vmem:[#allocation29_spill] sm:$0xff] %v17501_v49  ;;  %v4574_v11 = vsel %vm15995_vm13, %v4569_v57, %v4573_v31  ;;  %v4609_v43 = vshll.u32 %v17497_v42, 16  ;;  %v4592_v28 = vor.u32 %v4591_v51, %v4587_v15  ;;  %v4613_v47 = vshrl.u32 %v17497_v42, 16  ;;  %v15639_v31 = vld [vmem:[#allocation2 + $0xa8] sm:$0xff]  }
 0x161   : > { %v13890_v22 = vcombine.low %v4564_v39, %v4574_v11  ;;  %v4602_v49 = vrot.slane %v4600_v5, 4  ;;  %v4583_v16 = vrot.slane %v4582_v25, 4  ;;  %v4605_v33 = vrot.slane %v4603_v20, 5  ;;  %v17527_v25 = vld [vmem:[#allocation2 + $0xb0] sm:$0x1]  ;;  %v15638_v20 = vld [vmem:[#allocation2 + $0x9c] sm:$0xff]  }
 0x162   : > { %v4611_v8 = vrot.slane %v4609_v43, 5  ;;  %v4619_v12 = vshll.u32 %v17505_v46, 16  ;;  %v4593_v3 = vrot.slane %v4592_v28, 4  ;;  %v4615_v63 = vrot.slane %v4613_v47, 4  ;;  %21891 = vst [vmem:[#allocation34_spill] sm:$0xff] %v17527_v25 }
 0x163   : > { %15095 = vmatmul.mubr.msk.bf16.gmra.mxu0 %vm1400_vm10, %v15636_v50  ;;  %15129 = vmatmul.mubr.msk.bf16.gmra.mxu1 %vm1400_vm10, %v13890_v22  ;;  %v17519_v57 = vadd.f32 %v17469_v36, %v14897_v4  ;;  %v17521_v50 = vld [vmem:[#allocation2 + $0xac] sm:$0xf]  ;;  %v4588_v39 = vsel %vm15995_vm13, %v4583_v16, %v4587_v15  ;;  %v4606_v51 = vor.u32 %v4605_v33, %v4602_v49  ;;  %v4624_v22 = vshrl.u32 %v4323_v14, 16  ;;  %v14935_v49 = vpop.f32.mrf.mxu1 }
 0x164   : > { %15098 = vmatprep.mubr.msk.bf16.mxu0 %vm1400_vm10, %v15637_v54  ;;  %v14900_v41 = vpop.f32.mrf.mxu0  ;;  %21889 = vst [vmem:[#allocation32_spill] sm:$0xff] %v17521_v50  ;;  %v4621_v5 = vrot.slane %v4619_v12, 5  ;;  %v4598_v54 = vsel %vm15995_vm13, %v4593_v3, %v4597_v26  ;;  %v4616_v43 = vor.u32 %v4615_v63, %v4611_v8  ;;  %v4627_v36 = vshll.u32 %v4323_v14, 16  ;;  %v4326_v12 = vld [vmem:[#allocation2 + $0xb4] sm:$0xf] }
 0x165   : > { %21888 = vst [vmem:[#allocation31_spill] sm:$0xff] %v17519_v57  ;;  %v17525_v11 = vadd.f32 %v14934_v59, %v14900_v41  ;;  %v13891_v28 = vcombine.low %v4588_v39, %v4598_v54  ;;  %v4607_v47 = vrot.slane %v4606_v51, 4  ;;  %v4633_v57 = vshll.u32 %v17521_v50, 16  ;;  %v17541_v39 = vld [vmem:[#allocation2 + $0xbc] sm:$0x1] }
 0x166   : > { %v1583_v4 = vpop.f32.mrf.mxu0  ;;  %v4637_v15 = vshrl.u32 %v17521_v50, 16  ;;  %v4617_v59 = vrot.slane %v4616_v43, 4  ;;  %v4626_v16 = vrot.slane %v4624_v22, 4  ;;  %v4629_v33 = vrot.slane %v4627_v36, 5  ;;  %21894 = vst [vmem:[#allocation37_spill] sm:$0xff] %v17541_v39 }
 0x167   : > { %21890 = vst [vmem:[#allocation33_spill] sm:$0xff] %v17525_v11  ;;  %v4643_v41 = vshll.u32 %v17527_v25, 16  ;;  %v17534_v11 = vld [vmem:[#allocation2 + $0xb8] sm:$0xf]  ;;  %15132 = vmatprep.mubr.msk.bf16.mxu1 %vm1400_vm10, %v13891_v28  ;;  %v4612_v14 = vsel %vm15995_vm13, %v4607_v47, %v4611_v8  ;;  %v4635_v26 = vrot.slane %v4633_v57, 5  ;;  %v17539_v63 = vadd.f32 %v1875_v48, %v1583_v4  ;;  %v17547_v57 = vpop.f32.mrf.mxu1 }
 0x168   : > { %21892 = vst [vmem:[#allocation35_spill] sm:$0xff] %v17534_v11  ;;  %v4639_v3 = vrot.slane %v4637_v15, 4  ;;  %v4622_v51 = vsel %vm15995_vm13, %v4617_v59, %v4621_v5  ;;  %v4630_v54 = vor.u32 %v4629_v33, %v4626_v16  ;;  %v4648_v22 = vshrl.u32 %v4326_v12, 16  ;;  %v14901_v36 = vpop.f32.mrf.mxu0  ;;  %21895 = vst [vmem:[#allocation38_spill] sm:$0xff] %v17547_v57  ;;  %v4329_v15 = vld [vmem:[#allocation2 + $0xc0] sm:$0xf] }
 0x169   : > { %21893 = vst [vmem:[#allocation36_spill] sm:$0xff] %v17539_v63  ;;  %v4645_v43 = vrot.slane %v4643_v41, 5  ;;  %v13892_v25 = vcombine.low %v4612_v14, %v4622_v51  ;;  %v4651_v50 = vshll.u32 %v4326_v12, 16  ;;  %v4657_v8 = vshll.u32 %v17534_v11, 16  ;;  %v17555_v12 = vld [vmem:[#allocation2 + $0xc4] sm:$0xf] }
 0x16a   : > { %v4640_v28 = vor.u32 %v4639_v3, %v4635_v26  ;;  %v4631_v48 = vrot.slane %v4630_v54, 4  ;;  %v4650_v4 = vrot.slane %v4648_v22, 4  ;;  %v4661_v47 = vshrl.u32 %v17534_v11, 16  ;;  %21897 = vst [vmem:[#allocation40_spill] sm:$0xff] %v17555_v12  ;;  %v17560_v51 = vld [vmem:[#allocation2 + $0xc8] sm:$0x1] }
 0x16b   : > { %15099 = vmatmul.mubr.msk.bf16.gmra.mxu0 %vm1400_vm10, %v15638_v20  ;;  %v4667_v5 = vshll.u32 %v17541_v39, 16  ;;  %15133 = vmatmul.mubr.msk.bf16.gmra.mxu1 %vm1400_vm10, %v13892_v25  ;;  %v4653_v20 = vrot.slane %v4651_v50, 5  ;;  %v4659_v16 = vrot.slane %v4657_v8, 5  ;;  %v17553_v33 = vadd.f32 %v14935_v49, %v14901_v36  ;;  %21898 = vst [vmem:[#allocation41_spill] sm:$0xff] %v17560_v51  ;;  %v15640_v54 = vld [vmem:[#allocation2 + $0xb4] sm:$0xff]  }
 0x16c   : > { %15102 = vmatprep.mubr.msk.bf16.mxu0 %vm1400_vm10, %v15639_v31  ;;  %v4641_v59 = vrot.slane %v4640_v28, 4  ;;  %v4636_v31 = vsel %vm15995_vm13, %v4631_v48, %v4635_v26  ;;  %v4663_v14 = vrot.slane %v4661_v47, 4  ;;  %v4672_v28 = vshrl.u32 %v4329_v15, 16  ;;  %v4332_v36 = vld [vmem:[#allocation2 + $0xcc] sm:$0xf] }
 0x16d   : > { %21896 = vst [vmem:[#allocation39_spill] sm:$0xff] %v17553_v33  ;;  %v4669_v3 = vrot.slane %v4667_v5, 5  ;;  %v4654_v22 = vor.u32 %v4653_v20, %v4650_v4  ;;  %v4675_v49 = vshll.u32 %v4329_v15, 16  ;;  %v15641_v33 = vld [vmem:[#allocation2 + $0xc0] sm:$0xff]   ;;  %v4681_v41 = vshll.u32 %v17555_v12, 16 }
 0x16e   : > { %v4646_v25 = vsel %vm15995_vm13, %v4641_v59, %v4645_v43  ;;  %v4664_v57 = vor.u32 %v4663_v14, %v4659_v16  ;;  %v4685_v26 = vshrl.u32 %v17555_v12, 16  ;;  %v4674_v47 = vrot.slane %v4672_v28, 4  ;;  %v17567_v11 = vld [vmem:[#allocation2 + $0xd0] sm:$0xf] }
 0x16f   : > { %v13893_v8 = vcombine.low %v4636_v31, %v4646_v25  ;;  %v4655_v48 = vrot.slane %v4654_v22, 4  ;;  %v4677_v5 = vrot.slane %v4675_v49, 5  ;;  %v4691_v63 = vshll.u32 %v17560_v51, 16  ;;  %21899 = vst [vmem:[#allocation42_spill] sm:$0xff] %v17567_v11  ;;  %v17573_v31 = vpop.f32.mrf.mxu0  ;;  %v17575_v22 = vld [vmem:[#allocation2 + $0xd4] sm:$0x1] }
 0x170   : > { %v14938_v50 = vpop.f32.mrf.mxu1  ;;  %v4665_v43 = vrot.slane %v4664_v57, 4  ;;  %v4683_v4 = vrot.slane %v4681_v41, 5  ;;  %v4687_v15 = vrot.slane %v4685_v26, 4  ;;  %v4696_v59 = vshrl.u32 %v4332_v36, 16  ;;  %21900 = vst [vmem:[#allocation43_spill] sm:$0xff] %v17573_v31  ;;  %21901 = vst [vmem:[#allocation44_spill] sm:$0xff] %v17575_v22 }
 0x171   : > { %15136 = vmatprep.mubr.msk.bf16.mxu1 %vm1400_vm10, %v13893_v8  ;;  %v4660_v20 = vsel %vm15995_vm13, %v4655_v48, %v4659_v16  ;;  %v4678_v14 = vor.u32 %v4677_v5, %v4674_v47  ;;  %v4693_v25 = vrot.slane %v4691_v63, 5  ;;  %v4699_v28 = vshll.u32 %v4332_v36, 16  ;;  %v5016_v51 = vld [vmem:[#allocation2 + $0x18] sm:$0xe] }
 0x172   : > { %v1891_v39 = vpop.f32.mrf.mxu1  ;;  %v4670_v57 = vsel %vm15995_vm13, %v4665_v43, %v4669_v3  ;;  %v4688_v41 = vor.u32 %v4687_v15, %v4683_v4  ;;  %v4698_v8 = vrot.slane %v4696_v59, 4  ;;  %v4709_v47 = vshrl.u32 %v17567_v11, 16 }
 0x173   : > { %15103 = vmatmul.mubr.msk.bf16.gmra.mxu0 %vm1400_vm10, %v15640_v54  ;;  %v4705_v54 = vshll.u32 %v17567_v11, 16  ;;  %v13894_v26 = vcombine.low %v4660_v20, %v4670_v57  ;;  %v4679_v16 = vrot.slane %v4678_v14, 4  ;;  %v4701_v48 = vrot.slane %v4699_v28, 5  ;;  %v5017_v14 = vld [vmem:[#allocation2 + $0x24] sm:$0xe] }
 0x174   : > { %v14939_v49 = vpop.f32.mrf.mxu1  ;;  %15106 = vmatprep.mubr.msk.bf16.mxu0 %vm1400_vm10, %v15641_v33  ;;  %v4689_v5 = vrot.slane %v4688_v41, 4  ;;  %v4715_v31 = vshll.u32 %v17575_v22, 16  ;;  %v13914_v12 = vrot.slane %v5016_v51, 9  ;;  %v15642_v33 = vld [vmem:[#allocation2 + $0xcc] sm:$0xff]   ;;  %v4711_v59 = vrot.slane %v4709_v47, 4 }
 0x175   : > { %v4707_v36 = vrot.slane %v4705_v54, 5  ;;  %15137 = vmatmul.mubr.msk.bf16.gmra.mxu1 %vm1400_vm10, %v13894_v26  ;;  %v4684_v43 = vsel %vm15995_vm13, %v4679_v16, %v4683_v4  ;;  %v4702_v15 = vor.u32 %v4701_v48, %v4698_v8  ;;  %v5082_v20 = vrot.slane %v17226_v19, 5  ;;  %v5018_v26 = vld [vmem:[#allocation2 + $0x30] sm:$0xe] }
 0x176   : > { %v17582_v63 = vpop.f32.mrf.mxu1  ;;  %v4694_v41 = vsel %vm15995_vm13, %v4689_v5, %v4693_v25  ;;  %v4717_v54 = vrot.slane %v4715_v31, 5  ;;  %v5085_v51 = vrot.slane %v17228_v37, 5  ;;  %v21903_v48 = vrot.slane %v17243_v40, 5 }
 0x177   : > { %21902 = vst [vmem:[#allocation45_spill] sm:$0xff] %v17582_v63  ;;  %v13895_v63 = vcombine.low %v4684_v43, %v4694_v41  ;;  %v4703_v11 = vrot.slane %v4702_v15, 4  ;;  %v4712_v58 = vor.u32 %v4711_v59, %v4707_v36  ;;  %v5083_v4 = vsel %vm16408_vm11, %v13914_v12, %v5082_v20 }
 0x178   : > { %v14904_v3 = vpop.f32.mrf.mxu0  ;;  %v14978_v28 = vpop.f32.mrf.mxu1  ;;  %v5084_v16 = vrot.slane %v5082_v20, 4  ;;  %v5091_v47 = vrot.slane %v21903_v48, 4  ;;  %v5096_v12 = vrot.slane %v17279_v30, 5  ;;  %v21904_v43 = vmov %v21903_v48 }
 0x179   : > { %v17589_v57 = vadd.f32 %v14938_v50, %v14904_v3  ;;  %v13915_v50 = vrot.slane %v5017_v14, 9  ;;  %15140 = vmatprep.mubr.msk.bf16.mxu1 %vm1400_vm10, %v13895_v63  ;;  %v4708_v37 = vsel %vm15995_vm13, %v4703_v11, %v4707_v36  ;;  %v4713_v31 = vrot.slane %v4712_v58, 4  ;;  %v5019_v11 = vld [vmem:[#allocation2 + $0x3c] sm:$0xe]  ;;  %v5020_v36 = vld [vmem:[#allocation2 + $0x48] sm:$0xe] }
 0x17a   : > { %v1599_v22 = vpop.f32.mrf.mxu0  ;;  %v2568_v8 = vpop.f32.mrf.mxu1  ;;  %v13916_v3 = vrot.slane %v5018_v26, 9  ;;  %v21905_v63 = vrot.slane %v17254_v27, 5  ;;  %v5106_v15 = vrot.slane %v17314_v32, 5  ;;  %v5098_v41 = vrot.slane %v5096_v12, 4  ;;  %v5021_v26 = vld [vmem:[#allocation2 + $0x54] sm:$0xe] }
 0x17b   : > { %v17596_v19 = vadd.f32 %v1891_v39, %v1599_v22  ;;  %15107 = vmatmul.mubr.msk.bf16.gmra.mxu0 %vm1400_vm10, %v15642_v33  ;;  %v5086_v22 = vsel %vm16408_vm11, %v5084_v16, %v5085_v51  ;;  %v5090_v33 = vsel %vm16408_vm11, %v13915_v50, %v21904_v43  ;;  %v4718_v30 = vsel %vm15995_vm13, %v4713_v31, %v4717_v54 }
 0x17c   : > { %v14905_v25 = vpop.f32.mrf.mxu0  ;;  %v14979_v5 = vpop.f32.mrf.mxu1  ;;  %v5093_v58 = vsel %vm16408_vm11, %v5091_v47, %v21905_v63  ;;  %v13930_v59 = vcombine.low %v5083_v4, %v5086_v22  ;;  %v13896_v14 = vcombine.low %v4708_v37, %v4718_v30  ;;  %v5097_v27 = vsel %vm16408_vm11, %v13916_v3, %v5096_v12 }
 0x17d   : > { %v17605_v39 = vadd.f32 %v14939_v49, %v14905_v25  ;;  %v13931_v20 = vcombine.low %v5090_v33, %v5093_v58  ;;  %v5099_v51 = vrot.slane %v17289_v56, 5  ;;  %v13917_v16 = vrot.slane %v5019_v11, 9  ;;  %v5022_v25 = vld [vmem:[#allocation2 + $0x60] sm:$0xe] }
 0x17e   : > { %v17620_v49 = vpop.f32.mrf.mxu0  ;;  %v17622_v40 = vpop.f32.mrf.mxu1  ;;  %15146 = vmatprep.mubr.msk.bf16.mxu0 %vm1400_vm10, %v13930_v59  ;;  %v5103_v54 = vrot.slane %v17304_v61, 5  ;;  %v13918_v48 = vrot.slane %v5020_v36, 9  ;;  %v5110_v4 = vrot.slane %v17332_v23, 5  ;;  %v5120_v47 = vrot.slane %v17363_v34, 5  ;;  %15141 = vmatmul.mubr.msk.bf16.gmra.mxu1 %vm1400_vm10, %v13896_v14  ;;  %v5023_v14 = vld [vmem:[#allocation2 + $0x6c] sm:$0xe] }
 0x17f   : > { %v5100_v56 = vsel %vm16408_vm11, %v5098_v41, %v5099_v51  ;;  %v5113_v31 = vrot.slane %v17340_v13, 5  ;;  %v13919_v23 = vrot.slane %v5021_v26, 9  ;;  %v13920_v30 = vrot.slane %v5022_v25, 9  ;;  %v5025_v25 = vld [vmem:[#allocation2 + $0x84] sm:$0xe] }
 0x180   : > { %v14944_v32 = vpop.f32.mrf.mxu0  ;;  %v14982_v50 = vpop.f32.mrf.mxu1  ;;  %v13932_v12 = vcombine.low %v5097_v27, %v5100_v56  ;;  %v5105_v22 = vrot.slane %v5103_v54, 4  ;;  %v5111_v43 = vsel %vm16408_vm11, %v13918_v48, %v5110_v4  ;;  %v5112_v63 = vrot.slane %v5110_v4, 4 }
 0x181   : > { %v2336_v37 = vadd.f32 %v14944_v32, %v17236_v53  ;;  %v5117_v53 = vrot.slane %v17361_v6, 5  ;;  %v5104_v13 = vsel %vm16408_vm11, %v13917_v16, %v5103_v54  ;;  %v5124_v59 = vrot.slane %v17386_v0, 5 }
 0x182   : > { %v2207_v3 = vpop.f32.mrf.mxu0  ;;  %v2584_v61 = vpop.f32.mrf.mxu1  ;;  %v5107_v11 = vsel %vm16408_vm11, %v5105_v22, %v5106_v15  ;;  %v5114_v6 = vsel %vm16408_vm11, %v5112_v63, %v5113_v31  ;;  %v13921_v32 = vrot.slane %v5023_v14, 9  ;;  %v5134_v16 = vrot.slane %v17421_v60, 5  ;;  %v5024_v14 = vld [vmem:[#allocation2 + $0x78] sm:$0xe] }
 0x183   : > { %v2334_v34 = vadd.f32 %v2207_v3, %v17266_v17  ;;  %v17639_v33 = vadd.f32 %v14978_v28, %v2336_v37  ;;  %15147 = vmatmul.mubr.msk.bf16.vlgmr.msra.gmra.mxu0 %vm1400_vm10, %v13931_v20  ;;  %v5127_v20 = vrot.slane %v17388_v1, 5  ;;  %v13934_v41 = vcombine.low %v5111_v43, %v5114_v6 }
 0x184   : > { %v14945_v58 = vpop.f32.mrf.mxu0  ;;  %v14983_v36 = vpop.f32.mrf.mxu1  ;;  %15150 = vmatprep.mubr.msk.bf16.mxu0 %vm1400_vm10, %v13932_v12  ;;  %v5118_v0 = vsel %vm16408_vm11, %v13919_v23, %v5117_v53  ;;  %v5119_v51 = vrot.slane %v5117_v53, 4  ;;  %v13933_v54 = vcombine.low %v5104_v13, %v5107_v11  ;;  %v5131_v37 = vrot.slane %v17405_v10, 5 }
 0x185   : > { %v2337_v17 = vadd.f32 %v14945_v58, %v17283_v7  ;;  %v17649_v28 = vadd.f32 %v2568_v8, %v2334_v34  ;;  %v17665_v7 = vsel %vm16408_vm11, %v13920_v30, %v5124_v59  ;;  %v5126_v8 = vrot.slane %v5124_v59, 4 }
 0x186   : > { %v17655_v27 = vpop.f32.mrf.mxu0  ;;  %v17657_v15 = vpop.f32.mrf.mxu1  ;;  %v5121_v48 = vsel %vm16408_vm11, %v5119_v51, %v5120_v47  ;;  %v17677_v60 = vsel %vm16408_vm11, %v13921_v32, %v5131_v37  ;;  %v5133_v43 = vrot.slane %v5131_v37, 4  ;;  %v13923_v63 = vrot.slane %v5025_v25, 9 }
 0x187   : > { %v17661_v26 = vadd.f32 %v14979_v5, %v2337_v17  ;;  %v13935_v5 = vcombine.low %v5118_v0, %v5121_v48  ;;  %v5128_v31 = vsel %vm16408_vm11, %v5126_v8, %v5127_v20  ;;  %v5145_v53 = vrot.slane %v17457_v38, 5 }
 0x188   : > { %v14948_v1 = vpop.f32.mrf.mxu0  ;;  %v14986_v4 = vpop.f32.mrf.mxu1  ;;  %v13936_v22 = vcombine.low %v17665_v7, %v5128_v31  ;;  %v5135_v34 = vsel %vm16408_vm11, %v5133_v43, %v5134_v16  ;;  %v5148_v58 = vrot.slane %v17465_v24, 5  ;;  %v5138_v17 = vrot.slane %v17437_v52, 5 }
 0x189   : > { %v2340_v56 = vadd.f32 %v14948_v1, %v17287_v18  ;;  %v17699_v38 = vsel %vm16408_vm11, %v13923_v63, %v5145_v53  ;;  %v5147_v24 = vrot.slane %v5145_v53, 4  ;;  %v5159_v0 = vrot.slane %v17497_v42, 5 }
 0x18a   : > { %v2223_v3 = vpop.f32.mrf.mxu0  ;;  %v2600_v12 = vpop.f32.mrf.mxu1  ;;  %v5162_v51 = vrot.slane %v17505_v46, 5  ;;  %v13922_v7 = vrot.slane %v5024_v14, 9  ;;  %v5140_v16 = vrot.slane %v5138_v17, 4  ;;  %v5141_v1 = vrot.slane %v17444_v29, 5 }
 0x18b   : > { %v2338_v47 = vadd.f32 %v2223_v3, %v17326_v55  ;;  %v17680_v23 = vadd.f32 %v14982_v50, %v2340_v56  ;;  %15151 = vmatmul.mubr.msk.bf16.gmra.mxu0 %vm1400_vm10, %v13933_v54  ;;  %v13937_v55 = vcombine.low %v17677_v60, %v5135_v34  ;;  %v5027_v50 = vld [vmem:[#allocation2 + $0x9c] sm:$0xe]  ;;  %v17705_v20 = vsel %vm16408_vm11, %v5147_v24, %v5148_v58 }
 0x18c   : > { %v14949_v18 = vpop.f32.mrf.mxu0  ;;  %v14987_v10 = vpop.f32.mrf.mxu1  ;;  %15154 = vmatprep.mubr.msk.bf16.mxu0 %vm1400_vm10, %v13934_v41  ;;  %v13925_v41 = vrot.slane %v5027_v50, 9  ;;  %v13939_v8 = vcombine.low %v17699_v38, %v17705_v20  ;;  %v5161_v48 = vrot.slane %v5159_v0, 4  ;;  %v5152_v60 = vrot.slane %v17479_v2, 5  ;;  %v21907_v50 = vld [vmem:[#allocation26_spill] sm:$0xff]  ;;  %v21910_v20 = vld [vmem:[#allocation16_spill] sm:$0xff] }
 0x18d   : > { %v2341_v13 = vadd.f32 %v14949_v18, %v17348_v62  ;;  %v17688_v11 = vadd.f32 %v2584_v61, %v2338_v47  ;;  %v21906_v47 = vld [vmem:[#allocation18_spill] sm:$0xff]  ;;  %v5155_v14 = vrot.slane %v21907_v50, 5  ;;  %vm6793_vm3 = vcmask 523264  }
 0x18e   : > { %v17692_v30 = vpop.f32.mrf.mxu0  ;;  %v17694_v59 = vpop.f32.mrf.mxu1  ;;  %v17715_v54 = vsel %vm16408_vm11, %v13925_v41, %v5159_v0  ;;  %v17723_v56 = vsel %vm16408_vm11, %v5161_v48, %v5162_v51  ;;  %v21911_v0 = vld [vmem:[#allocation21_spill] sm:$0xff]  ;;  %vm11843_vm4 = vcmask 517120   ;;  %vm13395_vm7 = vcmask 1041409  }
 0x18f   : > { %v17701_v62 = vadd.f32 %v14983_v36, %v2341_v13  ;;  %v13941_v25 = vcombine.low %v17715_v54, %v17723_v56  ;;  %v5154_v13 = vrot.slane %v5152_v60, 4  ;;  %vm13398_vm8 = vcmask 1042434  }
 0x190   : > { %v14952_v61 = vpop.f32.mrf.mxu0  ;;  %v14990_v6 = vpop.f32.mrf.mxu1  ;;  %vm13404_vm12 = vcmask 1044484   ;;  %vm13410_vm14 = vcmask 1046534  }
 0x191   : > { %v2344_v52 = vadd.f32 %v14952_v61, %v17354_v9  ;;  %v21909_v61 = vld [vmem:[#allocation17_spill] sm:$0xff] }
 0x192   : > { %v2239_v32 = vpop.f32.mrf.mxu0  ;;  %v2616_v36 = vpop.f32.mrf.mxu1  ;;  %v1831_v41 = vadd.f32 %v21910_v20, %v21909_v61  ;;  %v5029_v61 = vld [vmem:[#allocation2 + $0xb4] sm:$0xe] }
 0x193   : > { %v2342_v42 = vadd.f32 %v2239_v32, %v17371_v21  ;;  %v17718_v37 = vadd.f32 %v14986_v4, %v2344_v52  ;;  %15155 = vmatmul.mubr.msk.bf16.gmra.mxu0 %vm1400_vm10, %v13935_v5  ;;  %v5139_v4 = vsel %vm16408_vm11, %v13922_v7, %v5138_v17  ;;  %v5142_v5 = vsel %vm16408_vm11, %v5140_v16, %v5141_v1  ;;  %v21908_v17 = vld [vmem:[#allocation20_spill] sm:$0xff]  ;;  %v21917_v20 = vld [vmem:[#allocation35_spill] sm:$0xff] }
 0x194   : > { %v14953_v9 = vpop.f32.mrf.mxu0  ;;  %v14991_v46 = vpop.f32.mrf.mxu1  ;;  %15158 = vmatprep.mubr.msk.bf16.mxu0 %vm1400_vm10, %v13936_v22  ;;  %v13938_v34 = vcombine.low %v5139_v4, %v5142_v5  ;;  %v21913_v4 = vld [vmem:[#allocation22_spill] sm:$0xff] }
 0x195   : > { %v2345_v31 = vadd.f32 %v14953_v9, %v17396_v45  ;;  %v17726_v29 = vadd.f32 %v2600_v12, %v2342_v42  ;;  %v5026_v12 = vld [vmem:[#allocation2 + $0x90] sm:$0xe]  ;;  %v5028_v9 = vld [vmem:[#allocation2 + $0xa8] sm:$0xe] }
 0x196   : > { %v17731_v21 = vpop.f32.mrf.mxu0  ;;  %v17737_v3 = vpop.f32.mrf.mxu1  ;;  %v13924_v58 = vrot.slane %v5026_v12, 9 }
 0x197   : > { %v17740_v45 = vadd.f32 %v14987_v10, %v2345_v31 }
 0x198   : > { %v14956_v43 = vpop.f32.mrf.mxu0  ;;  %v14994_v22 = vpop.f32.mrf.mxu1  ;;  %v5153_v32 = vsel %vm16408_vm11, %v13924_v58, %v5152_v60  ;;  %v13926_v60 = vrot.slane %v5028_v9, 9  ;;  %v21915_v58 = vld [vmem:[#allocation24_spill] sm:$0xff]  ;;  %v13927_v9 = vrot.slane %v5029_v61, 9 }
 0x199   : > { %v2348_v18 = vadd.f32 %v14956_v43, %v21906_v47 }
 0x19a   : > { %v2255_v63 = vpop.f32.mrf.mxu0  ;;  %v2632_v53 = vpop.f32.mrf.mxu1 }
 0x19b   : > { %v2346_v38 = vadd.f32 %v2255_v63, %v21908_v17  ;;  %v17745_v24 = vadd.f32 %v14990_v6, %v2348_v18  ;;  %15159 = vmatmul.mubr.msk.bf16.gmra.mxu0 %vm1400_vm10, %v13937_v55  ;;  %v5156_v6 = vsel %vm16408_vm11, %v5154_v13, %v5155_v14  ;;  %v21912_v55 = vld [vmem:[#allocation32_spill] sm:$0xff]  ;;  %v21916_v17 = vld [vmem:[#allocation25_spill] sm:$0xff] }
 0x19c   : > { %v14957_v2 = vpop.f32.mrf.mxu0  ;;  %v14995_v10 = vpop.f32.mrf.mxu1  ;;  %15162 = vmatprep.mubr.msk.bf16.mxu0 %vm1400_vm10, %v13938_v34  ;;  %v5166_v1 = vrot.slane %v21912_v55, 5  ;;  %v13940_v12 = vcombine.low %v5153_v32, %v5156_v6  ;;  %v21914_v34 = vld [vmem:[#allocation34_spill] sm:$0xff] }
 0x19d   : > { %v2349_v51 = vadd.f32 %v14957_v2, %v21911_v0  ;;  %v17751_v52 = vadd.f32 %v2616_v36, %v2346_v38  ;;  %v5169_v63 = vrot.slane %v21914_v34, 5  ;;  %v21920_v34 = vld [vmem:[#allocation37_spill] sm:$0xff] }
 0x19e   : > { %v2258_v7 = vpop.f32.mrf.mxu0  ;;  %v17758_v16 = vpop.f32.mrf.mxu1  ;;  %v5168_v18 = vrot.slane %v5166_v1, 4 }
 0x19f   : > { %v17761_v48 = vadd.f32 %v2258_v7, %v1831_v41  ;;  %v17763_v42 = vadd.f32 %v14991_v46, %v2349_v51  ;;  %v5173_v41 = vrot.slane %v21917_v20, 5  ;;  %v5167_v51 = vsel %vm16408_vm11, %v13926_v60, %v5166_v1  ;;  %v21918_v7 = vld [vmem:[#allocation40_spill] sm:$0xff] }
 0x1a0   : > { %v14960_v36 = vpop.f32.mrf.mxu0  ;;  %v14998_v31 = vpop.f32.mrf.mxu1  ;;  %v5180_v32 = vrot.slane %v21918_v7, 5 }
 0x1a1   : > { %v2352_v5 = vadd.f32 %v14960_v36, %v21913_v4  ;;  %v21919_v4 = vld [vmem:[#allocation28_spill] sm:$0xff]  ;;  %v5174_v61 = vsel %vm16408_vm11, %v13927_v9, %v5173_v41 }
 0x1a2   : > { %v2271_v43 = vpop.f32.mrf.mxu0  ;;  %v2648_v47 = vpop.f32.mrf.mxu1 }
 0x1a3   : > { %v2350_v13 = vadd.f32 %v2271_v43, %v21915_v58  ;;  %v17768_v50 = vadd.f32 %v14994_v22, %v2352_v5  ;;  %15163 = vmatmul.mubr.msk.bf16.gmra.mxu0 %vm1400_vm10, %v13939_v8  ;;  %v5170_v22 = vsel %vm16408_vm11, %v5168_v18, %v5169_v63  ;;  %v5175_v43 = vrot.slane %v5173_v41, 4  ;;  %v21921_v63 = vld [vmem:[#allocation41_spill] sm:$0xff] }
 0x1a4   : > { %v14961_v46 = vpop.f32.mrf.mxu0  ;;  %v14999_v14 = vpop.f32.mrf.mxu1  ;;  %15166 = vmatprep.mubr.msk.bf16.mxu0 %vm1400_vm10, %v13940_v12  ;;  %v13942_v12 = vcombine.low %v5167_v51, %v5170_v22  ;;  %v5176_v58 = vrot.slane %v21920_v34, 5  ;;  %v5182_v18 = vrot.slane %v5180_v32, 4  ;;  %v21923_v22 = vld [vmem:[#allocation31_spill] sm:$0xff] }
 0x1a5   : > { %v2353_v38 = vadd.f32 %v14961_v46, %v21916_v17  ;;  %v17772_v2 = vadd.f32 %v2632_v53, %v2350_v13  ;;  %v5030_v53 = vld [vmem:[#allocation2 + $0xc0] sm:$0xe]  ;;  %v5183_v46 = vrot.slane %v21921_v63, 5 }
 0x1a6   : > { %v17776_v0 = vpop.f32.mrf.mxu0  ;;  %v17782_v8 = vpop.f32.mrf.mxu1  ;;  %v13928_v13 = vrot.slane %v5030_v53, 9  ;;  %v21922_v17 = vld [vmem:[#allocation29_spill] sm:$0xff] }
 0x1a7   : > { %v17785_v6 = vadd.f32 %v14995_v10, %v2353_v38 }
 0x1a8   : > { %v14964_v55 = vpop.f32.mrf.mxu0  ;;  %v15002_v36 = vpop.f32.mrf.mxu1  ;;  %v5181_v56 = vsel %vm16408_vm11, %v13928_v13, %v5180_v32  ;;  %v15643_v32 = vld [vmem:[%s21817_s5 + $0x38] sm:$0xff]  }
 0x1a9   : > { %v2356_v5 = vadd.f32 %v14964_v55, %v21919_v4  ;;  %v5031_v55 = vld [vmem:[#allocation2 + $0xcc] sm:$0xe]  ;;  %15178 = vmatprep.subr.bf16.mxu1 %v15643_v32 }
 0x1aa   : > { %v2287_v1 = vpop.f32.mrf.mxu0  ;;  %v2664_v60 = vpop.f32.mrf.mxu1  ;;  %v21924_v4 = vld [vmem:[#allocation42_spill] sm:$0xff]  ;;  %v13929_v34 = vrot.slane %v5031_v55, 9  ;;  %15179 = vmatpush3.bf16.msra.mxu1 %v15643_v32 }
 0x1ab   : > { %v2354_v20 = vadd.f32 %v2287_v1, %v21922_v17  ;;  %v17791_v10 = vadd.f32 %v14998_v31, %v2356_v5  ;;  %15167 = vmatmul.mubr.msk.bf16.gmra.mxu0 %vm1400_vm10, %v13941_v25  ;;  %v5177_v31 = vsel %vm16408_vm11, %v5175_v43, %v5176_v58  ;;  %v5187_v5 = vrot.slane %v21924_v4, 5  ;;  %v21925_v43 = vld [vmem:[#allocation33_spill] sm:$0xff] }
 0x1ac   : > { %v14965_v38 = vpop.f32.mrf.mxu0  ;;  %v15003_v51 = vpop.f32.mrf.mxu1  ;;  %15170 = vmatprep.mubr.msk.bf16.mxu0 %vm1400_vm10, %v13942_v12  ;;  %v5184_v25 = vsel %vm16408_vm11, %v5182_v18, %v5183_v46  ;;  %v13943_v12 = vcombine.low %v5174_v61, %v5177_v31  ;;  %v21927_v46 = vld [vmem:[#allocation36_spill] sm:$0xff]  ;;  %v21928_v31 = vld [vmem:[#allocation39_spill] sm:$0xff] }
 0x1ad   : > { %v2357_v7 = vadd.f32 %v14965_v38, %v21923_v22  ;;  %v17800_v53 = vadd.f32 %v2648_v47, %v2354_v20  ;;  %v13944_v63 = vcombine.low %v5181_v56, %v5184_v25  ;;  %v5189_v17 = vrot.slane %v5187_v5, 4  ;;  %v21926_v20 = vld [vmem:[#allocation44_spill] sm:$0xff] }
 0x1ae   : > { %v17806_v54 = vpop.f32.mrf.mxu0  ;;  %v17812_v41 = vpop.f32.mrf.mxu1  ;;  %v5190_v38 = vrot.slane %v21926_v20, 5  ;;  %v5188_v56 = vsel %vm16408_vm11, %v13929_v34, %v5187_v5 }
 0x1af   : > { %v17814_v47 = vadd.f32 %v14999_v14, %v2357_v7 }
 0x1b0   : > { %v14968_v9 = vpop.f32.mrf.mxu0  ;;  %v15006_v1 = vpop.f32.mrf.mxu1  ;;  %v5191_v25 = vsel %vm16408_vm11, %v5189_v17, %v5190_v38 }
 0x1b1   : > { %v2360_v58 = vadd.f32 %v14968_v9, %v21925_v43 }
 0x1b2   : > { %v2303_v13 = vpop.f32.mrf.mxu0  ;;  %v2680_v18 = vpop.f32.mrf.mxu1 }
 0x1b3   : > { %v2358_v22 = vadd.f32 %v2303_v13, %v21927_v46  ;;  %v17822_v14 = vadd.f32 %v15002_v36, %v2360_v58  ;;  %15171 = vmatmul.mubr.msk.bf16.gmra.mxu0 %vm1400_vm10, %v13943_v12  ;;  %v13945_v58 = vcombine.low %v5188_v56, %v5191_v25  ;;  %v15644_v25 = vld [vmem:[%s21817_s5 + $0x30] sm:$0xff]  }
 0x1b4   : > { %v14969_v61 = vpop.f32.mrf.mxu0  ;;  %v15007_v7 = vpop.f32.mrf.mxu1  ;;  %15174 = vmatprep.mubr.msk.bf16.mxu0 %vm1400_vm10, %v13944_v63  ;;  %15180 = vmatprep.subr.bf16.mxu1 %v15644_v25 }
 0x1b5   : > { %v2361_v55 = vadd.f32 %v14969_v61, %v21928_v31  ;;  %v17826_v4 = vadd.f32 %v2664_v60, %v2358_v22  ;;  %15181 = vmatpush3.bf16.msra.mxu1 %v15644_v25 }
 0x1b6   : > { %v17833_v36 = vpop.f32.mrf.mxu0  ;;  %v17835_v9 = vpop.f32.mrf.mxu1 }
 0x1b7   : > { %v17837_v12 = vadd.f32 %v15003_v51, %v2361_v55 }
 0x1b8   : > { %v17839_v20 = vpop.f32.mrf.mxu1 }
 0x1b9   : > { %v14972_v43 = vpop.f32.mrf.mxu0 }
 0x1ba   : > { %v2364_v60 = vadd.f32 %v14972_v43, %v17589_v57  ;;  %v17842_v63 = vpop.f32.mrf.mxu1 }
 0x1bb   : > { %v2319_v32 = vpop.f32.mrf.mxu0  ;;  %15175 = vmatmul.mubr.msk.bf16.gmra.mxu0 %vm1400_vm10, %v13945_v58  ;;  %vm13401_vm10 = vcmask 1043459  }
 0x1bc   : > { %v2362_v5 = vadd.f32 %v2319_v32, %v17596_v19  ;;  %v17845_v34 = vadd.f32 %v15006_v1, %v2364_v60  ;;  %v17848_v38 = vpop.f32.mrf.mxu1 }
 0x1bd   : > { %v14973_v17 = vpop.f32.mrf.mxu0  ;;  %21929 = vst [vmem:[#allocation18_spill] sm:$0xff] %v17848_v38 }
 0x1be   : > { %v2365_v51 = vadd.f32 %v14973_v17, %v17605_v39  ;;  %v17851_v13 = vadd.f32 %v2680_v18, %v2362_v5  ;;  %v17855_v22 = vpop.f32.mrf.mxu1 }
 0x1bf   : > { %v17853_v46 = vpop.f32.mrf.mxu0  ;;  %21930 = vst [vmem:[#allocation26_spill] sm:$0xff] %v17855_v22 }
 0x1c0   : > { %v17857_v57 = vadd.f32 %v15007_v7, %v2365_v51  ;;  %v17859_v31 = vpop.f32.mrf.mxu1 }
 0x1c1   : > { %v15012_v61 = vpop.f32.mrf.mxu0  ;;  %21931 = vst [vmem:[#allocation20_spill] sm:$0xff] %v17859_v31 }
 0x1c2   : > { %v17862_v19 = vadd.f32 %v15012_v61, %v17639_v33  ;;  %v17864_v55 = vpop.f32.mrf.mxu1 }
 0x1c3   : > { %v3293_v1 = vpop.f32.mrf.mxu0  ;;  %21932 = vst [vmem:[#allocation17_spill] sm:$0xff] %v17864_v55 }
 0x1c4   : > { %v17867_v56 = vadd.f32 %v3293_v1, %v17649_v28  ;;  %v15051_v18 = vpop.f32.mrf.mxu1 }
 0x1c5   : > { %v15013_v39 = vpop.f32.mrf.mxu0 }
 0x1c6   : > { %v17873_v7 = vadd.f32 %v15013_v39, %v17661_v26  ;;  %v17877_v58 = vpop.f32.mrf.mxu1  ;;  %v5649_v39 = vld [vmem:[#allocation3 + $0x18] sm:$0x1] }
 0x1c7   : > { %v17875_v43 = vpop.f32.mrf.mxu0  ;;  %21933 = vst [vmem:[#allocation16_spill] sm:$0xff] %v17877_v58 }
 0x1c8   : > { %v15054_v60 = vpop.f32.mrf.mxu1 }
 0x1c9   : > { %v15016_v33 = vpop.f32.mrf.mxu0 }
 0x1ca   : > { %v17880_v28 = vadd.f32 %v15016_v33, %v17680_v23  ;;  %v3798_v5 = vpop.f32.mrf.mxu1  ;;  %v5650_v33 = vsel %vm17888_vm0, 0, %v5649_v39 }
 0x1cb   : > { %v3309_v32 = vpop.f32.mrf.mxu0  ;;  %5651 = vst [vmem:[#allocation3 + $0x18] sm:$0x1] %v5650_v33 }
 0x1cc   : > { %21934 = vst [vmem:[#allocation21_spill] sm:$0xff] %v17880_v28  ;;  %v17883_v17 = vadd.f32 %v3309_v32, %v17688_v11  ;;  %v15055_v61 = vpop.f32.mrf.mxu1 }
 0x1cd   : > { %v15017_v51 = vpop.f32.mrf.mxu0 }
 0x1ce   : > { %21935 = vst [vmem:[#allocation32_spill] sm:$0xff] %v17883_v17  ;;  %v3427_v26 = vadd.f32 %v15017_v51, %v17701_v62  ;;  %v17894_v23 = vpop.f32.mrf.mxu1  ;;  %v5646_v17 = vld [vmem:[#allocation3 + $0xc] sm:$0x1] }
 0x1cf   : > { %v17892_v25 = vpop.f32.mrf.mxu0  ;;  %21938 = vst [vmem:[#allocation22_spill] sm:$0xff] %v17894_v23 }
 0x1d0   : > { %v17898_v11 = vadd.f32 %v15051_v18, %v3427_v26  ;;  %v15058_v35 = vpop.f32.mrf.mxu1  ;;  %v5647_v18 = vsel %vm17888_vm0, 0, %v5646_v17 }
 0x1d1   : > { %v15020_v32 = vpop.f32.mrf.mxu0  ;;  %5648 = vst [vmem:[#allocation3 + $0xc] sm:$0x1] %v5647_v18 }
 0x1d2   : > { %v3430_v62 = vadd.f32 %v15020_v32, %v17718_v37  ;;  %v3814_v55 = vpop.f32.mrf.mxu1  ;;  %v5698_v37 = vld [vmem:[#allocation3 + $0x20] sm:$0x1] }
 0x1d3   : > { %v3325_v58 = vpop.f32.mrf.mxu0  ;;  %v5699_v28 = vsel %vm17903_vm1, 0, %v5698_v37  ;;  %v5652_v37 = vld [vmem:[#allocation3 + $0x24] sm:$0x1] }
 0x1d4   : > { %v3428_v23 = vadd.f32 %v3325_v58, %v17726_v29  ;;  %v17908_v31 = vadd.f32 %v15054_v60, %v3430_v62  ;;  %v15059_v39 = vpop.f32.mrf.mxu1  ;;  %5700 = vst [vmem:[#allocation3 + $0x20] sm:$0x1] %v5699_v28  ;;  %v5695_v29 = vld [vmem:[#allocation3 + $0x14] sm:$0x1] }
 0x1d5   : > { %v15021_v26 = vpop.f32.mrf.mxu0  ;;  %v5696_v60 = vsel %vm17903_vm1, 0, %v5695_v29 }
 0x1d6   : > { %v3431_v33 = vadd.f32 %v15021_v26, %v17740_v45  ;;  %v17913_v32 = vadd.f32 %v3798_v5, %v3428_v23  ;;  %v17919_v38 = vpop.f32.mrf.mxu1  ;;  %5697 = vst [vmem:[#allocation3 + $0x14] sm:$0x1] %v5696_v60  ;;  %v5655_v45 = vld [vmem:[#allocation3 + $0x30] sm:$0x1] }
 0x1d7   : > { %v17917_v22 = vpop.f32.mrf.mxu0  ;;  %21942 = vst [vmem:[#allocation24_spill] sm:$0xff] %v17919_v38  ;;  %v5656_v23 = vsel %vm17888_vm0, 0, %v5655_v45 }
 0x1d8   : > { %21941 = vst [vmem:[#allocation34_spill] sm:$0xff] %v17917_v22  ;;  %v17921_v58 = vadd.f32 %v15055_v61, %v3431_v33  ;;  %v15062_v62 = vpop.f32.mrf.mxu1  ;;  %5657 = vst [vmem:[#allocation3 + $0x30] sm:$0x1] %v5656_v23  ;;  %v5653_v33 = vsel %vm17888_vm0, 0, %v5652_v37 }
 0x1d9   : > { %v15024_v17 = vpop.f32.mrf.mxu0  ;;  %5654 = vst [vmem:[#allocation3 + $0x24] sm:$0x1] %v5653_v33 }
 0x1da   : > { %v3434_v5 = vadd.f32 %v15024_v17, %v17745_v24  ;;  %v3830_v26 = vpop.f32.mrf.mxu1  ;;  %v5704_v17 = vld [vmem:[#allocation3 + $0x38] sm:$0x1] }
 0x1db   : > { %v3341_v18 = vpop.f32.mrf.mxu0 }
 0x1dc   : > { %v3432_v28 = vadd.f32 %v3341_v18, %v17751_v52  ;;  %v17929_v61 = vadd.f32 %v15058_v35, %v3434_v5  ;;  %v15063_v38 = vpop.f32.mrf.mxu1  ;;  %v5705_v52 = vsel %vm17903_vm1, 0, %v5704_v17  ;;  %v15646_v18 = vld [vmem:[%s21817_s5 + $0x18] sm:$0xff]   ;;  %v15647_v17 = vld [vmem:[%s21817_s5 + $0x10] sm:$0xff]  }
 0x1dd   : > { %v15025_v29 = vpop.f32.mrf.mxu0  ;;  %5706 = vst [vmem:[#allocation3 + $0x38] sm:$0x1] %v5705_v52  ;;  %15218 = vmatprep.subr.bf16.mxu0 %v15646_v18 }
 0x1de   : > { %v3435_v60 = vadd.f32 %v15025_v29, %v17763_v42  ;;  %v17934_v24 = vadd.f32 %v3814_v55, %v3432_v28  ;;  %v17938_v22 = vpop.f32.mrf.mxu1  ;;  %15219 = vmatpush3.bf16.msra.mxu0 %v15646_v18 }
 0x1df   : > { %v17936_v45 = vpop.f32.mrf.mxu0  ;;  %21944 = vst [vmem:[#allocation35_spill] sm:$0xff] %v17938_v22  ;;  %15220 = vmatprep.subr.bf16.mxu0 %v15647_v17 }
 0x1e0   : > { %21943 = vst [vmem:[#allocation25_spill] sm:$0xff] %v17936_v45  ;;  %v17942_v35 = vadd.f32 %v15059_v39, %v3435_v60  ;;  %v15066_v23 = vpop.f32.mrf.mxu1  ;;  %v5701_v60 = vld [vmem:[#allocation3 + $0x2c] sm:$0x1] }
 0x1e1   : > { %v15028_v5 = vpop.f32.mrf.mxu0  ;;  %v5670_v45 = vld [vmem:[#allocation3 + $0x6c] sm:$0x1] }
 0x1e2   : > { %v3438_v42 = vadd.f32 %v15028_v5, %v17768_v50  ;;  %v3846_v37 = vpop.f32.mrf.mxu1  ;;  %v5702_v50 = vsel %vm17903_vm1, 0, %v5701_v60  ;;  %15221 = vmatpush3.bf16.msra.mxu0 %v15647_v17  ;;  %v5710_v17 = vld [vmem:[#allocation3 + $0x50] sm:$0x1] }
 0x1e3   : > { %v3357_v55 = vpop.f32.mrf.mxu0  ;;  %5703 = vst [vmem:[#allocation3 + $0x2c] sm:$0x1] %v5702_v50 }
 0x1e4   : > { %v3436_v28 = vadd.f32 %v3357_v55, %v17772_v2  ;;  %v17949_v33 = vadd.f32 %v15062_v62, %v3438_v42  ;;  %v15067_v39 = vpop.f32.mrf.mxu1  ;;  %v5661_v62 = vld [vmem:[#allocation3 + $0x48] sm:$0x1] }
 0x1e5   : > { %v15029_v29 = vpop.f32.mrf.mxu0  ;;  %v5662_v42 = vsel %vm17888_vm0, 0, %v5661_v62 }
 0x1e6   : > { %v3439_v52 = vadd.f32 %v15029_v29, %v17785_v6  ;;  %v17955_v22 = vadd.f32 %v3830_v26, %v3436_v28  ;;  %v17961_v2 = vpop.f32.mrf.mxu1  ;;  %v15645_v6 = vld [vmem:[%s21817_s5 + $0x28] sm:$0xff]   ;;  %5663 = vst [vmem:[#allocation3 + $0x48] sm:$0x1] %v5662_v42  ;;  %v5658_v26 = vld [vmem:[#allocation3 + $0x3c] sm:$0x1]  ;;  %v5711_v42 = vsel %vm17903_vm1, 0, %v5710_v17 }
 0x1e7   : > { %v17959_v5 = vpop.f32.mrf.mxu0  ;;  %21946 = vst [vmem:[#allocation28_spill] sm:$0xff] %v17961_v2  ;;  %v5659_v29 = vsel %vm17888_vm0, 0, %v5658_v26  ;;  %15182 = vmatprep.subr.bf16.mxu1 %v15645_v6  ;;  %5712 = vst [vmem:[#allocation3 + $0x50] sm:$0x1] %v5711_v42 }
 0x1e8   : > { %21945 = vst [vmem:[#allocation40_spill] sm:$0xff] %v17959_v5  ;;  %v17963_v18 = vadd.f32 %v15063_v38, %v3439_v52  ;;  %v15070_v50 = vpop.f32.mrf.mxu1  ;;  %5660 = vst [vmem:[#allocation3 + $0x3c] sm:$0x1] %v5659_v29  ;;  %15183 = vmatpush3.bf16.msra.mxu1 %v15645_v6  ;;  %v5667_v6 = vld [vmem:[#allocation3 + $0x60] sm:$0x1] }
 0x1e9   : > { %v15032_v55 = vpop.f32.mrf.mxu0 }
 0x1ea   : > { %v3442_v28 = vadd.f32 %v15032_v55, %v17791_v10  ;;  %v5707_v55 = vld [vmem:[#allocation3 + $0x44] sm:$0x1]  ;;  %v3862_v5 = vpop.f32.mrf.mxu1 }
 0x1eb   : > { %v3373_v60 = vpop.f32.mrf.mxu0 }
 0x1ec   : > { %v3440_v38 = vadd.f32 %v3373_v60, %v17800_v53  ;;  %v17974_v52 = vadd.f32 %v15066_v23, %v3442_v28  ;;  %v5708_v53 = vsel %vm17903_vm1, 0, %v5707_v55  ;;  %v15649_v28 = vld [vmem:[%s21817_s5 + $0x8] sm:$0xff]  }
 0x1ed   : > { %v15033_v62 = vpop.f32.mrf.mxu0  ;;  %5709 = vst [vmem:[#allocation3 + $0x44] sm:$0x1] %v5708_v53  ;;  %15222 = vmatprep.subr.bf16.mxu0 %v15649_v28  ;;  %v5664_v53 = vld [vmem:[#allocation3 + $0x54] sm:$0x1] }
 0x1ee   : > { %v3443_v2 = vadd.f32 %v15033_v62, %v17814_v47  ;;  %v17979_v10 = vadd.f32 %v3846_v37, %v3440_v38  ;;  %v5668_v47 = vsel %vm17888_vm0, 0, %v5667_v6  ;;  %v15071_v38 = vpop.f32.mrf.mxu1  ;;  %15223 = vmatpush3.bf16.msra.mxu0 %v15649_v28  ;;  %v15650_v62 = vld [vmem:[%s21817_s5] sm:$0xff]   ;;  %v5665_v6 = vsel %vm17888_vm0, 0, %v5664_v53  ;;  %v6273_v28 = vld [vmem:[#allocation3] sm:$0xf] }
 0x1ef   : > { %v17981_v26 = vpop.f32.mrf.mxu0  ;;  %5669 = vst [vmem:[#allocation3 + $0x60] sm:$0x1] %v5668_v47  ;;  %15224 = vmatprep.subr.bf16.mxu0 %v15650_v62  ;;  %5666 = vst [vmem:[#allocation3 + $0x54] sm:$0x1] %v5665_v6 }
 0x1f0   : > { %21947 = vst [vmem:[#allocation37_spill] sm:$0xff] %v17981_v26  ;;  %v17985_v23 = vadd.f32 %v15067_v39, %v3443_v2 }
 0x1f1   : > { %v15036_v29 = vpop.f32.mrf.mxu0 }
 0x1f2   : > { %v3446_v37 = vadd.f32 %v15036_v29, %v17822_v14  ;;  %v18002_v14 = vpop.f32.mrf.mxu1  ;;  %15225 = vmatpush3.bf16.msra.mxu0 %v15650_v62  ;;  %v5713_v62 = vld [vmem:[#allocation3 + $0x5c] sm:$0x1] }
 0x1f3   : > { %v3389_v60 = vpop.f32.mrf.mxu0  ;;  %21948 = vst [vmem:[#allocation41_spill] sm:$0xff] %v18002_v14  ;;  %v5714_v6 = vsel %vm17903_vm1, 0, %v5713_v62 }
 0x1f4   : > { %v3444_v39 = vadd.f32 %v3389_v60, %v17826_v4  ;;  %v17994_v2 = vadd.f32 %v15070_v50, %v3446_v37  ;;  %v6274_v50 = vld [vmem:[#allocation3 + $0x4] sm:$0xf]  ;;  %5715 = vst [vmem:[#allocation3 + $0x5c] sm:$0x1] %v5714_v6 }
 0x1f5   : > { %v15037_v17 = vpop.f32.mrf.mxu0  ;;  %v14033_v47 = vcombine.low %v6273_v28, %v6274_v50 }
 0x1f6   : > { %v3447_v42 = vadd.f32 %v15037_v17, %v17837_v12  ;;  %v18000_v55 = vadd.f32 %v3862_v5, %v3444_v39  ;;  %v5716_v5 = vld [vmem:[#allocation3 + $0x68] sm:$0x1] }
 0x1f7   : > { %v18008_v29 = vpop.f32.mrf.mxu0  ;;  %15226 = vmatprep.mubr.msk.bf16.mxu0 %vm6793_vm3, %v14033_v47  ;;  %v5717_v37 = vsel %vm17903_vm1, 0, %v5716_v5  ;;  %v5673_v5 = vld [vmem:[#allocation3 + $0x78] sm:$0x1] }
 0x1f8   : > { %v18006_v4 = vadd.f32 %v15071_v38, %v3447_v42  ;;  %21949 = vst [vmem:[#allocation29_spill] sm:$0xff] %v18008_v29  ;;  %5718 = vst [vmem:[#allocation3 + $0x68] sm:$0x1] %v5717_v37  ;;  %v15648_v38 = vld [vmem:[%s21817_s5 + $0x20] sm:$0xff]  }
 0x1f9   : > { %v15074_v12 = vpop.f32.mrf.mxu1  ;;  %15184 = vmatprep.subr.bf16.mxu1 %v15648_v38 }
 0x1fa   : > { %15185 = vmatpush3.bf16.msra.mxu1 %v15648_v38 }
 0x1fb   : > { %v15040_v60 = vpop.f32.mrf.mxu0  ;;  %v3878_v39 = vpop.f32.mrf.mxu1 }
 0x1fc   : > { %v3450_v17 = vadd.f32 %v15040_v60, %v17845_v34  ;;  %v5674_v34 = vsel %vm17888_vm0, 0, %v5673_v5 }
 0x1fd   : > { %v3405_v42 = vpop.f32.mrf.mxu0  ;;  %v15075_v53 = vpop.f32.mrf.mxu1  ;;  %5675 = vst [vmem:[#allocation3 + $0x78] sm:$0x1] %v5674_v34 }
 0x1fe   : > { %v3448_v47 = vadd.f32 %v3405_v42, %v17851_v13  ;;  %v18020_v14 = vadd.f32 %v15074_v12, %v3450_v17  ;;  %v5671_v12 = vsel %vm17888_vm0, 0, %v5670_v45  ;;  %v5722_v17 = vld [vmem:[#allocation3 + $0x80] sm:$0x1]  ;;  %v6330_v45 = vshrl.u32 %v6273_v28, 16 }
 0x1ff   : > { %v15041_v37 = vpop.f32.mrf.mxu0  ;;  %v18022_v29 = vpop.f32.mrf.mxu1  ;;  %5672 = vst [vmem:[#allocation3 + $0x6c] sm:$0x1] %v5671_v12  ;;  %v6343_v12 = vshrl.u32 %v6274_v50, 16 }
 0x200   : > { %21950 = vst [vmem:[#allocation31_spill] sm:$0xff] %v18020_v14  ;;  %21951 = vst [vmem:[#allocation42_spill] sm:$0xff] %v18022_v29  ;;  %v3451_v60 = vadd.f32 %v15041_v37, %v17857_v57  ;;  %v18027_v26 = vadd.f32 %v3878_v39, %v3448_v47  ;;  %v5723_v57 = vsel %vm17903_vm1, 0, %v5722_v17  ;;  %v6332_v17 = vrot.slane %v6330_v45, 4 }
 0x201   : > { %v18029_v62 = vpop.f32.mrf.mxu0  ;;  %v18031_v13 = vpop.f32.mrf.mxu1  ;;  %5724 = vst [vmem:[#allocation3 + $0x80] sm:$0x1] %v5723_v57 }
 0x202   : > { %21952 = vst [vmem:[#allocation33_spill] sm:$0xff] %v18027_v26  ;;  %21953 = vst [vmem:[#allocation44_spill] sm:$0xff] %v18031_v13  ;;  %v18035_v38 = vadd.f32 %v15075_v53, %v3451_v60  ;;  %v6333_v53 = vshll.u32 %v6273_v28, 16  ;;  %v6339_v13 = vshll.u32 %v6274_v50, 16 }
 0x203   : > { %v18037_v42 = vpop.f32.mrf.mxu0  ;;  %v18039_v6 = vpop.f32.mrf.mxu1 }
 0x204   : > { %21954 = vst [vmem:[#allocation36_spill] sm:$0xff] %v18035_v38  ;;  %21955 = vst [vmem:[#allocation39_spill] sm:$0xff] %v18039_v6  ;;  %v6335_v57 = vrot.slane %v6333_v53, 5  ;;  %v6341_v26 = vrot.slane %v6339_v13, 5 }
 0x205   : > { %v18043_v39 = vpop.f32.mrf.mxu0  ;;  %v18045_v47 = vpop.f32.mrf.mxu1 }
 0x206   : > { %21956 = vst [vmem:[#allocation46_spill] sm:$0xff] %v18043_v39  ;;  %21957 = vst [vmem:[#allocation47_spill] sm:$0xff] %v18045_v47 }
 0x207   : > { %v18047_v5 = vpop.f32.mrf.mxu0  ;;  %v18049_v37 = vpop.f32.mrf.mxu1 }
 0x208   : > { %21958 = vst [vmem:[#allocation48_spill] sm:$0xff] %v18047_v5  ;;  %21959 = vst [vmem:[#allocation49_spill] sm:$0xff] %v18049_v37  ;;  %v6345_v37 = vrot.slane %v6343_v12, 4  ;;  %v6313_v5 = vld [vmem:[#allocation3 + $0x8] sm:$0x1] }
 0x209   : > { %v18051_v34 = vpop.f32.mrf.mxu0  ;;  %v18053_v60 = vpop.f32.mrf.mxu1  ;;  %v6349_v14 = vshll.u32 %v6313_v5, 16 }
 0x20a   : > { %21960 = vst [vmem:[#allocation50_spill] sm:$0xff] %v18051_v34  ;;  %21961 = vst [vmem:[#allocation51_spill] sm:$0xff] %v18053_v60  ;;  %v6336_v34 = vor.u32 %v6335_v57, %v6332_v17  ;;  %v6346_v60 = vor.u32 %v6345_v37, %v6341_v26 }
 0x20b   : > { %v18055_v6 = vpop.f32.mrf.mxu0  ;;  %v18057_v38 = vpop.f32.mrf.mxu1 }
 0x20c   : > { %21962 = vst [vmem:[#allocation52_spill] sm:$0xff] %v18055_v6  ;;  %21963 = vst [vmem:[#allocation53_spill] sm:$0xff] %v18057_v38  ;;  %v5719_v38 = vld [vmem:[#allocation3 + $0x74] sm:$0x1]  ;;  %v6337_v13 = vrot.slane %v6336_v34, 4  ;;  %v6347_v12 = vrot.slane %v6346_v60, 4 }
 0x20d   : > { %v18059_v29 = vpop.f32.mrf.mxu0  ;;  %v18061_v47 = vpop.f32.mrf.mxu1  ;;  %v5720_v53 = vsel %vm17903_vm1, 0, %v5719_v38 }
 0x20e   : > { %21964 = vst [vmem:[#allocation54_spill] sm:$0xff] %v18059_v29  ;;  %21965 = vst [vmem:[#allocation55_spill] sm:$0xff] %v18061_v47  ;;  %v6351_v47 = vrot.slane %v6349_v14, 5  ;;  %v6342_v5 = vsel %vm15995_vm13, %v6337_v13, %v6341_v26 }
 0x20f   : > { %v15085_v28 = vpop.f32.mrf.mxu0  ;;  %v18063_v39 = vpop.f32.mrf.mxu1  ;;  %5721 = vst [vmem:[#allocation3 + $0x74] sm:$0x1] %v5720_v53  ;;  %v5676_v53 = vld [vmem:[#allocation3 + $0x84] sm:$0x1] }
 0x210   : > { %21966 = vst [vmem:[#allocation56_spill] sm:$0xff] %v18063_v39  ;;  %v18066_v6 = vadd.f32 %v15085_v28, %v17898_v11  ;;  %v6352_v11 = vsel %vm15995_vm13, %v6347_v12, %v6351_v47 }
 0x211   : > { %v18068_v45 = vpop.f32.mrf.mxu0  ;;  %v18070_v50 = vpop.f32.mrf.mxu1  ;;  %v13997_v17 = vcombine.low %v6342_v5, %v6352_v11  ;;  %v5677_v5 = vsel %vm17888_vm0, 0, %v5676_v53  ;;  %v15655_v11 = vld [vmem:[%s21817_s5 + $0x58] sm:$0xff]  }
 0x212   : > { %5678 = vst [vmem:[#allocation3 + $0x84] sm:$0x1] %v5677_v5  ;;  %15258 = vmatprep.subr.bf16.mxu1 %v15655_v11 }
 0x213   : > { %v15088_v29 = vpop.f32.mrf.mxu0  ;;  %v18074_v39 = vpop.f32.mrf.mxu1  ;;  %15186 = vmatprep.mubr.msk.bf16.mxu1 %vm6793_vm3, %v13997_v17 }
 0x214   : > { %v18081_v37 = vadd.f32 %v15088_v29, %v17908_v31  ;;  %v5679_v29 = vld [vmem:[#allocation3 + $0x90] sm:$0x1] }
 0x215   : > { %v4160_v57 = vpop.f32.mrf.mxu0  ;;  %v18083_v28 = vpop.f32.mrf.mxu1  ;;  %v5680_v12 = vsel %vm17888_vm0, 0, %v5679_v29 }
 0x216   : > { %v18086_v38 = vadd.f32 %v4160_v57, %v17913_v32  ;;  %5681 = vst [vmem:[#allocation3 + $0x90] sm:$0x1] %v5680_v12  ;;  %v5725_v12 = vld [vmem:[#allocation3 + $0x8c] sm:$0x1] }
 0x217   : > { %v15089_v14 = vpop.f32.mrf.mxu0  ;;  %v18089_v34 = vpop.f32.mrf.mxu1 }
 0x218   : > { %v18092_v26 = vadd.f32 %v15089_v14, %v17921_v58  ;;  %v5728_v58 = vld [vmem:[#allocation3 + $0x98] sm:$0x1] }
 0x219   : > { %v18094_v60 = vpop.f32.mrf.mxu0  ;;  %v18096_v47 = vpop.f32.mrf.mxu1 }
 0x21a   : > { %21967 = vst [vmem:[#allocation57_spill] sm:$0xff] %v18096_v47  ;;  %v21994_v47 = vld [vmem:[#allocation27_spill] sm:$0xff] }
 0x21b   : > { %v15092_v31 = vpop.f32.mrf.mxu0  ;;  %v18101_v32 = vpop.f32.mrf.mxu1 }
 0x21c   : > { %v18099_v13 = vadd.f32 %v15092_v31, %v17929_v61  ;;  %21969 = vst [vmem:[#allocation59_spill] sm:$0xff] %v18101_v32  ;;  %v5729_v61 = vsel %vm17903_vm1, 0, %v5728_v58  ;;  %v5726_v58 = vsel %vm17903_vm1, 0, %v5725_v12 }
 0x21d   : > { %v4176_v17 = vpop.f32.mrf.mxu0  ;;  %v18115_v14 = vpop.f32.mrf.mxu1  ;;  %5730 = vst [vmem:[#allocation3 + $0x98] sm:$0x1] %v5729_v61  ;;  %5727 = vst [vmem:[#allocation3 + $0x8c] sm:$0x1] %v5726_v58 }
 0x21e   : > { %21968 = vst [vmem:[#allocation58_spill] sm:$0xff] %v18099_v13  ;;  %v18113_v57 = vadd.f32 %v4176_v17, %v17934_v24  ;;  %21971 = vst [vmem:[#allocation61_spill] sm:$0xff] %v18115_v14 }
 0x21f   : > { %v15093_v31 = vpop.f32.mrf.mxu0  ;;  %v18120_v53 = vpop.f32.mrf.mxu1 }
 0x220   : > { %21970 = vst [vmem:[#allocation60_spill] sm:$0xff] %v18113_v57  ;;  %v18118_v29 = vadd.f32 %v15093_v31, %v17942_v35  ;;  %21973 = vst [vmem:[#allocation63_spill] sm:$0xff] %v18120_v53  ;;  %v21993_v57 = vld [vmem:[#allocation30_spill] sm:$0xff] }
 0x221   : > { %v18122_v44 = vpop.f32.mrf.mxu0 }
 0x222   : > { %21972 = vst [vmem:[#allocation62_spill] sm:$0xff] %v18118_v29 }
 0x223   : > { %v15096_v5 = vpop.f32.mrf.mxu0  ;;  %v18129_v17 = vpop.f32.mrf.mxu1 }
 0x224   : > { %v18127_v24 = vadd.f32 %v15096_v5, %v17949_v33  ;;  %21975 = vst [vmem:[#allocation65_spill] sm:$0xff] %v18129_v17 }
 0x225   : > { %v4192_v11 = vpop.f32.mrf.mxu0  ;;  %v18134_v35 = vpop.f32.mrf.mxu1 }
 0x226   : > { %21974 = vst [vmem:[#allocation64_spill] sm:$0xff] %v18127_v24  ;;  %v18132_v61 = vadd.f32 %v4192_v11, %v17955_v22  ;;  %21977 = vst [vmem:[#allocation67_spill] sm:$0xff] %v18134_v35  ;;  %v5685_v22 = vld [vmem:[#allocation3 + $0xa8] sm:$0x1]  ;;  %v21983_v11 = vld [vmem:[#allocation11_spill] sm:$0xff] }
 0x227   : > { %v15097_v31 = vpop.f32.mrf.mxu0  ;;  %v18139_v14 = vpop.f32.mrf.mxu1  ;;  %v21984_v35 = vld [vmem:[#allocation10_spill] sm:$0xff] }
 0x228   : > { %21976 = vst [vmem:[#allocation66_spill] sm:$0xff] %v18132_v61  ;;  %v18137_v53 = vadd.f32 %v15097_v31, %v17963_v18  ;;  %21979 = vst [vmem:[#allocation69_spill] sm:$0xff] %v18139_v14  ;;  %v1783_v61 = vadd.f32 %v21984_v35, %v21983_v11  ;;  %v5686_v31 = vsel %vm17888_vm0, 0, %v5685_v22  ;;  %v21990_v24 = vld [vmem:[#allocation14_spill] sm:$0xff]  ;;  %v21991_v11 = vld [vmem:[#allocation23_spill] sm:$0xff] }
 0x229   : > { %v18141_v29 = vpop.f32.mrf.mxu0  ;;  %v18143_v12 = vpop.f32.mrf.mxu1  ;;  %5687 = vst [vmem:[#allocation3 + $0xa8] sm:$0x1] %v5686_v31 }
 0x22a   : > { %21978 = vst [vmem:[#allocation68_spill] sm:$0xff] %v18137_v53  ;;  %21980 = vst [vmem:[#allocation70_spill] sm:$0xff] %v18143_v12  ;;  %v21987_v12 = vld [vmem:[#allocation13_spill] sm:$0xff]  ;;  %v2335_v32 = vadd.f32 %v17655_v27, %v1783_v61 }
 0x22b   : > { %v15100_v33 = vpop.f32.mrf.mxu0  ;;  %v18148_v17 = vpop.f32.mrf.mxu1 }
 0x22c   : > { %v18146_v5 = vadd.f32 %v15100_v33, %v17974_v52  ;;  %21982 = vst [vmem:[#allocation72_spill] sm:$0xff] %v18148_v17  ;;  %v21988_v52 = vld [vmem:[#allocation12_spill] sm:$0xff] }
 0x22d   : > { %v4208_v58 = vpop.f32.mrf.mxu0  ;;  %v18157_v53 = vpop.f32.mrf.mxu1  ;;  %v1799_v33 = vadd.f32 %v21988_v52, %v21987_v12  ;;  %v21997_v12 = vld [vmem:[#allocation45_spill] sm:$0xff] }
 0x22e   : > { %21981 = vst [vmem:[#allocation71_spill] sm:$0xff] %v18146_v5  ;;  %v18153_v18 = vadd.f32 %v4208_v58, %v17979_v10  ;;  %21986 = vst [vmem:[#allocation10_spill] sm:$0xff] %v18157_v53  ;;  %v21989_v5 = vld [vmem:[#allocation15_spill] sm:$0xff]  ;;  %v5734_v58 = vld [vmem:[#allocation3 + $0xb0] sm:$0x1]  ;;  %v1863_v53 = vadd.f32 %v21994_v47, %v21993_v57 }
 0x22f   : > { %v15101_v14 = vpop.f32.mrf.mxu0  ;;  %v1815_v17 = vadd.f32 %v21990_v24, %v21989_v5  ;;  %v5682_v10 = vld [vmem:[#allocation3 + $0x9c] sm:$0x1]  ;;  %v18173_v13 = vpop.f32.mrf.mxu1  ;;  %v5735_v27 = vsel %vm17903_vm1, 0, %v5734_v58  ;;  %v1895_v5 = vadd.f32 %v21997_v12, %v17620_v49  ;;  %v2696_v58 = vadd.f32 %v17622_v40, %v2335_v32  ;;  %v22003_v12 = vld [vmem:[#allocation32_spill] sm:$0xff] }
 0x230   : > { %21985 = vst [vmem:[#allocation11_spill] sm:$0xff] %v18153_v18  ;;  %v18165_v35 = vadd.f32 %v15101_v14, %v17985_v23  ;;  %v21992_v18 = vld [vmem:[#allocation19_spill] sm:$0xff]  ;;  %v5683_v24 = vsel %vm17888_vm0, 0, %v5682_v10  ;;  %v21996_v14 = vld [vmem:[#allocation38_spill] sm:$0xff]  ;;  %5736 = vst [vmem:[#allocation3 + $0xb0] sm:$0x1] %v5735_v27  ;;  %v2355_v52 = vadd.f32 %v17806_v54, %v1863_v53  ;;  %v2708_v40 = vadd.f32 %v17737_v3, %v17761_v48 }
 0x231   : > { %v1847_v22 = vadd.f32 %v21992_v18, %v21991_v11  ;;  %v18171_v31 = vpop.f32.mrf.mxu0  ;;  %v21995_v23 = vld [vmem:[#allocation43_spill] sm:$0xff]  ;;  %v2339_v18 = vadd.f32 %v17692_v30, %v1799_v33  ;;  %5684 = vst [vmem:[#allocation3 + $0x9c] sm:$0x1] %v5683_v24  ;;  %v2343_v47 = vadd.f32 %v17731_v21, %v1815_v17  ;;  %v18187_v11 = vpop.f32.mrf.mxu1  ;;  %v3421_v21 = vadd.f32 %v17875_v43, %v2696_v58  ;;  %v22002_v27 = vld [vmem:[#allocation20_spill] sm:$0xff] }
 0x232   : > { %v1879_v61 = vadd.f32 %v21996_v14, %v21995_v23  ;;  %v2363_v14 = vadd.f32 %v17853_v46, %v1895_v5  ;;  %v2716_v46 = vadd.f32 %v17782_v8, %v2355_v52  ;;  %v3893_v3 = vadd.f32 %v17842_v63, %v17867_v56  ;;  %v21999_v8 = vld [vmem:[#allocation34_spill] sm:$0xff]  ;;  %v22005_v56 = vld [vmem:[#allocation25_spill] sm:$0xff]  ;;  %v22006_v5 = vld [vmem:[#allocation40_spill] sm:$0xff] }
 0x233   : > { %v2351_v57 = vadd.f32 %v17776_v0, %v1847_v22  ;;  %v15104_v10 = vpop.f32.mrf.mxu0  ;;  %v2700_v33 = vadd.f32 %v17657_v15, %v2339_v18  ;;  %v2704_v54 = vadd.f32 %v17694_v59, %v2343_v47  ;;  %v3895_v59 = vadd.f32 %v17839_v20, %v17862_v19  ;;  %v22004_v20 = vld [vmem:[#allocation17_spill] sm:$0xff] }
 0x234   : > { %v2359_v23 = vadd.f32 %v17833_v36, %v1879_v61  ;;  %v18193_v49 = vadd.f32 %v15104_v10, %v17994_v2  ;;  %v2724_v15 = vadd.f32 %v17835_v9, %v2363_v14  ;;  %v5731_v9 = vld [vmem:[#allocation3 + $0xa4] sm:$0x1]  ;;  %v3897_v19 = vadd.f32 %v22004_v20, %v22003_v12  ;;  %v22007_v47 = vld [vmem:[#allocation37_spill] sm:$0xff]  ;;  %v22016_v20 = vld [vmem:[#allocation54_spill] sm:$0xff] }
 0x235   : > { %v4224_v30 = vpop.f32.mrf.mxu0  ;;  %v2712_v36 = vadd.f32 %v17758_v16, %v2351_v57  ;;  %v18205_v32 = vpop.f32.mrf.mxu1  ;;  %v3425_v43 = vadd.f32 %v17892_v25, %v2700_v33  ;;  %v21998_v16 = vld [vmem:[#allocation18_spill] sm:$0xff]  ;;  %v3429_v17 = vadd.f32 %v21999_v8, %v2704_v54  ;;  %v5732_v63 = vsel %vm17903_vm1, 0, %v5731_v9  ;;  %v22008_v52 = vld [vmem:[#allocation29_spill] sm:$0xff]  ;;  %v22009_v14 = vld [vmem:[#allocation16_spill] sm:$0xff] }
 0x236   : > { %v18198_v0 = vadd.f32 %v4224_v30, %v18000_v55  ;;  %v2720_v53 = vadd.f32 %v17812_v41, %v2359_v23  ;;  %v3896_v48 = vadd.f32 %v21998_v16, %v17873_v7  ;;  %v22000_v25 = vld [vmem:[#allocation26_spill] sm:$0xff]  ;;  %v3433_v7 = vadd.f32 %v22005_v56, %v2708_v40  ;;  %5733 = vst [vmem:[#allocation3 + $0xa4] sm:$0x1] %v5732_v63  ;;  %v22010_v54 = vld [vmem:[#allocation31_spill] sm:$0xff]  ;;  %v22015_v12 = vld [vmem:[#allocation52_spill] sm:$0xff] }
 0x237   : > { %v15105_v2 = vpop.f32.mrf.mxu0  ;;  %v18220_v22 = vpop.f32.mrf.mxu1  ;;  %v3894_v24 = vadd.f32 %v22000_v25, %v3421_v21  ;;  %v3437_v18 = vadd.f32 %v22006_v5, %v2712_v36  ;;  %v3441_v57 = vadd.f32 %v22007_v47, %v2716_v46  ;;  %v3898_v30 = vadd.f32 %v22009_v14, %v3425_v43  ;;  %v22011_v40 = vld [vmem:[#allocation22_spill] sm:$0xff]  ;;  %v22013_v46 = vld [vmem:[#allocation48_spill] sm:$0xff]  ;;  %v22019_v56 = vld [vmem:[#allocation35_spill] sm:$0xff] }
 0x238   : > { %v18211_v55 = vadd.f32 %v15105_v2, %v18006_v4  ;;  %v22001_v4 = vld [vmem:[#allocation21_spill] sm:$0xff]  ;;  %v3445_v10 = vadd.f32 %v22008_v52, %v2720_v53  ;;  %v3449_v33 = vadd.f32 %v18029_v62, %v2724_v15  ;;  %v4257_v21 = vadd.f32 %v18037_v42, %v3895_v59  ;;  %v22012_v36 = vld [vmem:[#allocation46_spill] sm:$0xff]  ;;  %v22018_v63 = vld [vmem:[#allocation24_spill] sm:$0xff] }
 0x239   : > { %v18222_v41 = vpop.f32.mrf.mxu0  ;;  %v3899_v61 = vadd.f32 %v22002_v27, %v22001_v4  ;;  %v18235_v58 = vpop.f32.mrf.mxu1  ;;  %v3902_v16 = vadd.f32 %v22011_v40, %v3429_v17  ;;  %v4255_v8 = vadd.f32 %v22012_v36, %v3893_v3  ;;  %v4258_v9 = vadd.f32 %v22013_v46, %v3896_v48  ;;  %v22014_v53 = vld [vmem:[#allocation50_spill] sm:$0xff]  ;;  %v22017_v15 = vld [vmem:[#allocation33_spill] sm:$0xff]  ;;  %v22020_v5 = vld [vmem:[#allocation28_spill] sm:$0xff] }
 0x23a   : > { %v4256_v25 = vadd.f32 %v22014_v53, %v3894_v24  ;;  %v4259_v62 = vadd.f32 %v22016_v20, %v3897_v19  ;;  %v4260_v42 = vadd.f32 %v18068_v45, %v3898_v30  ;;  %v3906_v17 = vadd.f32 %v22018_v63, %v3433_v7  ;;  %v22021_v47 = vld [vmem:[#allocation41_spill] sm:$0xff]  ;;  %v22024_v30 = vld [vmem:[#allocation36_spill] sm:$0xff]  ;;  %v22025_v7 = vld [vmem:[#allocation39_spill] sm:$0xff] }
 0x23b   : > { %v15108_v23 = vpop.f32.mrf.mxu0  ;;  %v18247_v4 = vpop.f32.mrf.mxu1  ;;  %v4261_v43 = vadd.f32 %v22015_v12, %v3899_v61  ;;  %v3910_v3 = vadd.f32 %v22019_v56, %v3437_v18  ;;  %v3914_v48 = vadd.f32 %v22020_v5, %v3441_v57  ;;  %v3918_v24 = vadd.f32 %v22021_v47, %v3445_v10  ;;  %v22023_v61 = vld [vmem:[#allocation44_spill] sm:$0xff]  ;;  %v22026_v18 = vld [vmem:[#allocation47_spill] sm:$0xff]  ;;  %v22027_v57 = vld [vmem:[#allocation49_spill] sm:$0xff] }
 0x23c   : > { %v18241_v2 = vadd.f32 %v15108_v23, %v22010_v54  ;;  %v22022_v23 = vld [vmem:[#allocation42_spill] sm:$0xff]  ;;  %v4986_v54 = vadd.f32 %v22023_v61, %v4257_v21  ;;  %v4264_v19 = vadd.f32 %v18094_v60, %v3902_v16  ;;  %v4984_v36 = vadd.f32 %v22025_v7, %v4255_v8  ;;  %v22029_v21 = vld [vmem:[#allocation53_spill] sm:$0xff]  ;;  %v22030_v60 = vld [vmem:[#allocation55_spill] sm:$0xff] }
 0x23d   : > { %v4240_v27 = vpop.f32.mrf.mxu0  ;;  %v18260_v14 = vadd.f32 %v22022_v23, %v3449_v33  ;;  %v4987_v46 = vadd.f32 %v22026_v18, %v4258_v9  ;;  %v4985_v53 = vadd.f32 %v22027_v57, %v4256_v25  ;;  %v4268_v10 = vadd.f32 %v18122_v44, %v3906_v17  ;;  %v22028_v33 = vld [vmem:[#allocation51_spill] sm:$0xff]  ;;  %v22036_v56 = vld [vmem:[#allocation62_spill] sm:$0xff] }
 0x23e   : > { %v18253_v59 = vadd.f32 %v4240_v27, %v22017_v15  ;;  %v18264_v45 = vpop.f32.mrf.mxu1  ;;  %v18274_v12 = vadd.f32 %v22028_v33, %v4261_v43  ;;  %v18277_v20 = vadd.f32 %v22029_v21, %v4259_v62  ;;  %v18281_v16 = vadd.f32 %v22030_v60, %v18066_v6  ;;  %v22031_v15 = vld [vmem:[#allocation56_spill] sm:$0xff]  ;;  %v18302_v6 = vld [vmem:[%s21814_s2] ss:$0 sm:$0xff]  ;;  %v22038_v47 = vld [vmem:[#allocation63_spill] sm:$0xff] }
 0x23f   : > { %v15109_v52 = vpop.f32.mrf.mxu0  ;;  %v18284_v63 = vadd.f32 %v22031_v15, %v4260_v42  ;;  %v18288_v8 = vadd.f32 %v18070_v50, %v18081_v37  ;;  %v18292_v44 = vadd.f32 %v18074_v39, %v18086_v38  ;;  %v18296_v9 = vadd.f32 %v18083_v28, %v18092_v26  ;;  %v22032_v50 = vld [vmem:[#allocation58_spill] sm:$0xff]  ;;  %v22033_v37 = vld [vmem:[#allocation57_spill] sm:$0xff]  ;;  %v22034_v39 = vld [vmem:[#allocation60_spill] sm:$0xff] }
 0x240   : > { %v18267_v40 = vadd.f32 %v15109_v52, %v22024_v30  ;;  %v4272_v25 = vadd.f32 %v18141_v29, %v3910_v3  ;;  %v18305_v62 = vadd.f32 %v18089_v34, %v4264_v19  ;;  %v18309_v42 = vadd.f32 %v22033_v37, %v22032_v50  ;;  %v22035_v38 = vld [vmem:[#allocation59_spill] sm:$0xff]  ;;  %v4969_v28 = vpop.f32.mrf.mxu1  ;;  %v5691_v29 = vld [vmem:[#allocation3 + $0xc0] sm:$0x1]  ;;  %v22037_v3 = vld [vmem:[#allocation61_spill] sm:$0xff] }
 0x241   : > { %v4243_v27 = vpop.f32.mrf.mxu0  ;;  %v18313_v17 = vadd.f32 %v22035_v38, %v22034_v39  ;;  %v18317_v5 = vadd.f32 %v22037_v3, %v22036_v56  ;;  %v18320_v52 = vadd.f32 %v22038_v47, %v4268_v10  ;;  %v4276_v34 = vadd.f32 %v18171_v31, %v3914_v48  ;;  %v5688_v19 = vld [vmem:[#allocation3 + $0xb4] sm:$0x1]  ;;  %v5740_v30 = vld [vmem:[#allocation3 + $0xc8] sm:$0x1]  ;;  %v22039_v10 = vld [vmem:[#allocation64_spill] sm:$0xff] }
 0x242   : > { %v5692_v61 = vsel %vm17888_vm0, 0, %v5691_v29  ;;  %v5741_v57 = vsel %vm17903_vm1, 0, %v5740_v30  ;;  %v22040_v33 = vld [vmem:[#allocation65_spill] sm:$0xff]  ;;  %v22041_v31 = vld [vmem:[#allocation66_spill] sm:$0xff]  ;;  %v22042_v48 = vld [vmem:[#allocation67_spill] sm:$0xff]  ;;  %v15143_v3 = vpop.f32.mrf.mxu1 }
 0x243   : > { %v15148_v43 = vpop.f32.mrf.mxu0  ;;  %5693 = vst [vmem:[#allocation3 + $0xc0] sm:$0x1] %v5692_v61  ;;  %v18332_v21 = vadd.f32 %v22040_v33, %v22039_v10  ;;  %v18336_v60 = vadd.f32 %v22042_v48, %v22041_v31  ;;  %v22043_v15 = vld [vmem:[#allocation68_spill] sm:$0xff]  ;;  %v18348_v39 = vld [vmem:[%s21815_s3] ss:$0 sm:$0xff]  ;;  %v18361_v10 = vadd.f32 %v18173_v13, %v18165_v35  ;;  %v18376_v13 = vadd.f32 %v18205_v32, %v18193_v49 }
 0x244   : > { %v5455_v26 = vadd.f32 %v15148_v43, %v4986_v54  ;;  %v5689_v54 = vsel %vm17888_vm0, 0, %v5688_v19  ;;  %v22044_v43 = vld [vmem:[#allocation69_spill] sm:$0xff]  ;;  %5742 = vst [vmem:[#allocation3 + $0xc8] sm:$0x1] %v5741_v57  ;;  %v22047_v29 = vld [vmem:[#allocation72_spill] sm:$0xff]  ;;  %v22048_v19 = vld [vmem:[#allocation11_spill] sm:$0xff]  ;;  %v4280_v57 = vadd.f32 %v18222_v41, %v3918_v24  ;;  %v18380_v35 = vadd.f32 %v18220_v22, %v18198_v0 }
 0x245   : > { %v5326_v23 = vpop.f32.mrf.mxu0  ;;  %v18340_v50 = vadd.f32 %v22044_v43, %v22043_v15  ;;  %5690 = vst [vmem:[#allocation3 + $0xb4] sm:$0x1] %v5689_v54  ;;  %v18364_v54 = vadd.f32 %v18187_v11, %v4276_v34  ;;  %v18384_v11 = vadd.f32 %v18235_v58, %v18211_v55  ;;  %v4284_v41 = vadd.f32 %v4243_v27, %v18260_v14  ;;  %v4972_v34 = vpop.f32.mrf.mxu1 }
 0x246   : > { %v5494_v7 = vadd.f32 %v18302_v6, %v5455_v26  ;;  %v5453_v18 = vadd.f32 %v5326_v23, %v4984_v36  ;;  %v22045_v36 = vld [vmem:[#allocation70_spill] sm:$0xff]  ;;  %v22046_v26 = vld [vmem:[#allocation71_spill] sm:$0xff]  ;;  %v18391_v32 = vadd.f32 %v18247_v4, %v4280_v57  ;;  %v18395_v0 = vadd.f32 %v18264_v45, %v18241_v2 }
 0x247   : > { %v18343_v37 = vadd.f32 %v22045_v36, %v4272_v25  ;;  %v15149_v38 = vpop.f32.mrf.mxu0  ;;  %v18352_v56 = vadd.f32 %v22047_v29, %v22046_v26  ;;  %v22049_v25 = vld [vmem:[#allocation10_spill] sm:$0xff]  ;;  %v18398_v55 = vadd.f32 %v4969_v28, %v18253_v59  ;;  %v18404_v26 = vadd.f32 %v15143_v3, %v18267_v40 }
 0x248   : > { %v5526_v47 = vmax.f32 %v5494_v7, 0.0  ;;  %v5492_v23 = vadd.f32 %v18302_v6, %v5453_v18  ;;  %v5456_v61 = vadd.f32 %v15149_v38, %v4987_v46  ;;  %v18357_v30 = vadd.f32 %v22049_v25, %v22048_v19  ;;  %v18370_v7 = vld [vmem:[%s21816_s4] ss:$0 sm:$0xff] }
 0x249   : > { %v5329_v18 = vpop.f32.mrf.mxu0  ;;  %v18406_v4 = vadd.f32 %v4972_v34, %v4284_v41 }
 0x24a   : > { %v5565_v46 = vmul.f32 %v18348_v39, %v5526_v47  ;;  %v5524_v33 = vmax.f32 %v5492_v23, 0.0  ;;  %v5495_v31 = vadd.f32 %v18302_v6, %v5456_v61  ;;  %v5454_v48 = vadd.f32 %v5329_v18, %v4985_v53 }
 0x24b   : > { %v15152_v24 = vpop.f32.mrf.mxu0 }
 0x24c   : > { %v5604_v15 = vadd.f32 %v18370_v7, %v5565_v46  ;;  %v5563_v53 = vmul.f32 %v18348_v39, %v5524_v33  ;;  %v5527_v43 = vmax.f32 %v5495_v31, 0.0  ;;  %v5493_v49 = vadd.f32 %v18302_v6, %v5454_v48  ;;  %v6168_v33 = vld [vmem:[#allocation3 + $0x18] sm:$0xf] }
 0x24d   : > { %v5459_v22 = vadd.f32 %v15152_v24, %v18274_v12  ;;  %v5342_v58 = vpop.f32.mrf.mxu0 }
 0x24e   : > { %v14444_v14 = vpack.c.bf16 %v5604_v15, %v5604_v15  ;;  %v5602_v27 = vadd.f32 %v18370_v7, %v5563_v53  ;;  %v5566_v36 = vmul.f32 %v18348_v39, %v5527_v43  ;;  %v5525_v38 = vmax.f32 %v5493_v49, 0.0  ;;  %v6161_v49 = vld [vmem:[#allocation3 + $0xc] sm:$0xf] }
 0x24f   : > { %v5498_v2 = vadd.f32 %v18302_v6, %v5459_v22  ;;  %v5457_v45 = vadd.f32 %v5342_v58, %v18277_v20  ;;  %v15153_v59 = vpop.f32.mrf.mxu0 }
 0x250   : > { %v5857_v28 = vshrl.u32 %v14444_v14, 16  ;;  %v5860_v29 = vshll.u32 %v14444_v14, 16  ;;  %v14442_v12 = vpack.c.bf16 %v5602_v27, %v5602_v27  ;;  %v5605_v47 = vadd.f32 %v18370_v7, %v5566_v36 }
 0x251   : > { %v5564_v23 = vmul.f32 %v18348_v39, %v5525_v38  ;;  %v5530_v61 = vmax.f32 %v5498_v2, 0.0  ;;  %v5496_v19 = vadd.f32 %v18302_v6, %v5457_v45  ;;  %v5460_v40 = vadd.f32 %v15153_v59, %v18281_v16  ;;  %v5345_v3 = vpop.f32.mrf.mxu0 }
 0x252   : > { %v5859_v25 = vrot.slane %v5857_v28, 7  ;;  %v5840_v57 = vshrl.u32 %v14442_v12, 16  ;;  %v5843_v18 = vshll.u32 %v14442_v12, 16  ;;  %v14445_v46 = vpack.c.bf16 %v5605_v47, %v5605_v47  ;;  %v6172_v28 = vld [vmem:[#allocation3 + $0x20] sm:$0x1] }
 0x253   : > { %v5603_v31 = vadd.f32 %v18370_v7, %v5564_v23  ;;  %v5569_v48 = vmul.f32 %v18348_v39, %v5530_v61  ;;  %v5528_v41 = vmax.f32 %v5496_v19, 0.0  ;;  %v5499_v24 = vadd.f32 %v18302_v6, %v5460_v40  ;;  %v15156_v16 = vpop.f32.mrf.mxu0 }
 0x254   : > { %v5862_v34 = vor.u32 %v5860_v29, %v5859_v25  ;;  %v5863_v15 = vrot.slane %v5859_v25, 4  ;;  %v5842_v53 = vrot.slane %v5840_v57, 7  ;;  %v5865_v43 = vshrl.u32 %v14445_v46, 16 }
 0x255   : > { %v5868_v22 = vshll.u32 %v14445_v46, 16  ;;  %v14443_v58 = vpack.c.bf16 %v5603_v31, %v5603_v31  ;;  %v5608_v14 = vadd.f32 %v18370_v7, %v5569_v48  ;;  %v5567_v27 = vmul.f32 %v18348_v39, %v5528_v41  ;;  %v5358_v36 = vpop.f32.mrf.mxu0 }
 0x256   : > { %v6169_v38 = vsel %vm18416_vm5, %v5862_v34, %v6168_v33  ;;  %v5845_v2 = vor.u32 %v5843_v18, %v5842_v53  ;;  %v5846_v45 = vrot.slane %v5842_v53, 4  ;;  %v5867_v59 = vrot.slane %v5865_v43, 7  ;;  %v6165_v43 = vld [vmem:[#allocation3 + $0x14] sm:$0x1] }
 0x257   : > { %6170 = vst [vmem:[#allocation3 + $0x18] sm:$0xf] %v6169_v38  ;;  %v5848_v29 = vshrl.u32 %v14443_v58, 16  ;;  %v5851_v12 = vshll.u32 %v14443_v58, 16  ;;  %v14448_v47 = vpack.c.bf16 %v5608_v14, %v5608_v14  ;;  %v5606_v23 = vadd.f32 %v18370_v7, %v5567_v27  ;;  %v15157_v61 = vpop.f32.mrf.mxu0 }
 0x258   : > { %v6162_v19 = vsel %vm18416_vm5, %v5845_v2, %v6161_v49  ;;  %v5870_v40 = vor.u32 %v5868_v22, %v5867_v59  ;;  %v5872_v25 = vrot.slane %v5867_v59, 4  ;;  %v5531_v57 = vmax.f32 %v5499_v24, 0.0  ;;  %v6182_v2 = vld [vmem:[#allocation3 + $0x30] sm:$0xf] }
 0x259   : > { %6163 = vst [vmem:[#allocation3 + $0xc] sm:$0xf] %v6162_v19  ;;  %v5850_v46 = vrot.slane %v5848_v29, 7  ;;  %v5891_v33 = vshrl.u32 %v14448_v47, 16  ;;  %v5894_v18 = vshll.u32 %v14448_v47, 16  ;;  %v14446_v31 = vpack.c.bf16 %v5606_v23, %v5606_v23  ;;  %v5361_v48 = vpop.f32.mrf.mxu0 }
 0x25a   : > { %v5871_v34 = vsel %vm16009_vm15, %v5863_v15, %v5870_v40  ;;  %v6173_v53 = vsel %vm17888_vm0, %v5872_v25, %v6172_v28  ;;  %v5570_v58 = vmul.f32 %v18348_v39, %v5531_v57  ;;  %v5458_v49 = vadd.f32 %v5345_v3, %v18284_v63 }
 0x25b   : > { %6171 = vst.msk [vmem:[#allocation3 + $0x1c] sm:$0xf] %vm5634_vm6, %v5871_v34  ;;  %6174 = vst [vmem:[#allocation3 + $0x20] sm:$0x1] %v6173_v53  ;;  %v5853_v24 = vor.u32 %v5851_v12, %v5850_v46  ;;  %v5855_v22 = vrot.slane %v5850_v46, 4  ;;  %v5893_v14 = vrot.slane %v5891_v33, 7  ;;  %v15160_v38 = vpop.f32.mrf.mxu0  ;;  %v5463_v28 = vadd.f32 %v15156_v16, %v18288_v8 }
 0x25c   : > { %v5874_v27 = vshrl.u32 %v14446_v31, 16  ;;  %v5877_v59 = vshll.u32 %v14446_v31, 16  ;;  %v5609_v15 = vadd.f32 %v18370_v7, %v5570_v58  ;;  %v5497_v29 = vadd.f32 %v18302_v6, %v5458_v49  ;;  %v6175_v16 = vld [vmem:[#allocation3 + $0x24] sm:$0xf] }
 0x25d   : > { %v5854_v47 = vsel %vm16009_vm15, %v5846_v45, %v5853_v24  ;;  %v6166_v63 = vsel %vm17888_vm0, %v5855_v22, %v6165_v43  ;;  %v5896_v3 = vor.u32 %v5894_v18, %v5893_v14  ;;  %v5897_v12 = vrot.slane %v5893_v14, 4  ;;  %v5374_v57 = vpop.f32.mrf.mxu0 }
 0x25e   : > { %6164 = vst.msk [vmem:[#allocation3 + $0x10] sm:$0xf] %vm5634_vm6, %v5854_v47  ;;  %6167 = vst [vmem:[#allocation3 + $0x14] sm:$0x1] %v6166_v63  ;;  %v18445_v23 = vrot.slane %v5874_v27, 7  ;;  %v14449_v19 = vpack.c.bf16 %v5609_v15, %v5609_v15  ;;  %v5529_v40 = vmax.f32 %v5497_v29, 0.0  ;;  %v5502_v25 = vadd.f32 %v18302_v6, %v5463_v28 }
 0x25f   : > { %v6183_v8 = vsel %vm18416_vm5, %v5896_v3, %v6182_v2  ;;  %v5461_v45 = vadd.f32 %v5358_v36, %v18292_v44  ;;  %v5464_v46 = vadd.f32 %v15157_v61, %v18296_v9  ;;  %v5462_v33 = vadd.f32 %v5361_v48, %v18305_v62  ;;  %v6186_v36 = vld [vmem:[#allocation3 + $0x38] sm:$0x1]  ;;  %v18462_v48 = vpop.f32.mrf.mxu0 }
 0x260   : > { %6184 = vst [vmem:[#allocation3 + $0x30] sm:$0xf] %v6183_v8  ;;  %v5879_v18 = vor.u32 %v5877_v59, %v18445_v23  ;;  %v5880_v31 = vrot.slane %v18445_v23, 4  ;;  %v5899_v34 = vshrl.u32 %v14449_v19, 16  ;;  %v5902_v53 = vshll.u32 %v14449_v19, 16 }
 0x261   : > { %v5568_v43 = vmul.f32 %v18348_v39, %v5529_v40  ;;  %v5534_v58 = vmax.f32 %v5502_v25, 0.0  ;;  %v5500_v49 = vadd.f32 %v18302_v6, %v5461_v45  ;;  %v5503_v24 = vadd.f32 %v18302_v6, %v5464_v46  ;;  %v18475_v8 = vpop.f32.mrf.mxu0  ;;  %v6189_v23 = vld [vmem:[#allocation3 + $0x3c] sm:$0xf] }
 0x262   : > { %v6176_v44 = vsel %vm18416_vm5, %v5879_v18, %v6175_v16  ;;  %v5901_v9 = vrot.slane %v5899_v34, 7  ;;  %v5501_v62 = vadd.f32 %v18302_v6, %v5462_v33  ;;  %v5467_v61 = vadd.f32 %v15160_v38, %v18309_v42  ;;  %v18480_v16 = vld [vmem:[%s21817_s5 + $0x78] sm:$0xff]  }
 0x263   : > { %6177 = vst [vmem:[#allocation3 + $0x24] sm:$0xf] %v6176_v44  ;;  %v5607_v22 = vadd.f32 %v18370_v7, %v5568_v43  ;;  %v5573_v14 = vmul.f32 %v18348_v39, %v5534_v58  ;;  %v5532_v27 = vmax.f32 %v5500_v49, 0.0  ;;  %v5535_v2 = vmax.f32 %v5503_v24, 0.0  ;;  %15298 = vmatprep.subr.bf16.mxu0 %v18480_v16 }
 0x264   : > { %v5904_v59 = vor.u32 %v5902_v53, %v5901_v9  ;;  %v5906_v15 = vrot.slane %v5901_v9, 4  ;;  %v5533_v29 = vmax.f32 %v5501_v62, 0.0  ;;  %v5506_v28 = vadd.f32 %v18302_v6, %v5467_v61  ;;  %v6179_v9 = vld [vmem:[#allocation3 + $0x2c] sm:$0x1] }
 0x265   : > { %v14447_v47 = vpack.c.bf16 %v5607_v22, %v5607_v22  ;;  %v5612_v63 = vadd.f32 %v18370_v7, %v5573_v14  ;;  %v5571_v3 = vmul.f32 %v18348_v39, %v5532_v27  ;;  %v5574_v42 = vmul.f32 %v18348_v39, %v5535_v2  ;;  %v15164_v14 = vpop.f32.mrf.mxu0 }
 0x266   : > { %v5905_v38 = vsel %vm16009_vm15, %v5897_v12, %v5904_v59  ;;  %v6187_v19 = vsel %vm17888_vm0, %v5906_v15, %v6186_v36  ;;  %v5572_v40 = vmul.f32 %v18348_v39, %v5533_v29  ;;  %v5538_v25 = vmax.f32 %v5506_v28, 0.0  ;;  %v6196_v29 = vld [vmem:[#allocation3 + $0x48] sm:$0xf] }
 0x267   : > { %6185 = vst.msk [vmem:[#allocation3 + $0x34] sm:$0xf] %vm5634_vm6, %v5905_v38  ;;  %6188 = vst [vmem:[#allocation3 + $0x38] sm:$0x1] %v6187_v19  ;;  %v5882_v45 = vshrl.u32 %v14447_v47, 16  ;;  %v5885_v46 = vshll.u32 %v14447_v47, 16  ;;  %v14452_v33 = vpack.c.bf16 %v5612_v63, %v5612_v63  ;;  %v5610_v12 = vadd.f32 %v18370_v7, %v5571_v3 }
 0x268   : > { %v5613_v18 = vadd.f32 %v18370_v7, %v5574_v42  ;;  %v5611_v34 = vadd.f32 %v18370_v7, %v5572_v40  ;;  %v5577_v53 = vmul.f32 %v18348_v39, %v5538_v25  ;;  %v5465_v43 = vadd.f32 %v5374_v57, %v18313_v17 }
 0x269   : > { %v5884_v58 = vrot.slane %v5882_v45, 7  ;;  %v5925_v49 = vshrl.u32 %v14452_v33, 16  ;;  %v5928_v24 = vshll.u32 %v14452_v33, 16  ;;  %v14450_v44 = vpack.c.bf16 %v5610_v12, %v5610_v12  ;;  %v6200_v12 = vld [vmem:[#allocation3 + $0x50] sm:$0x1] }
 0x26a   : > { %v14453_v36 = vpack.c.bf16 %v5613_v18, %v5613_v18  ;;  %v14451_v62 = vpack.c.bf16 %v5611_v34, %v5611_v34  ;;  %v5616_v61 = vadd.f32 %v18370_v7, %v5577_v53  ;;  %v5504_v22 = vadd.f32 %v18302_v6, %v5465_v43 }
 0x26b   : > { %v5887_v27 = vor.u32 %v5885_v46, %v5884_v58  ;;  %v5889_v2 = vrot.slane %v5884_v58, 4  ;;  %v5927_v59 = vrot.slane %v5925_v49, 7  ;;  %v5908_v15 = vshrl.u32 %v14450_v44, 16  ;;  %v5390_v46 = vpop.f32.mrf.mxu0 }
 0x26c   : > { %v5911_v17 = vshll.u32 %v14450_v44, 16  ;;  %v5933_v57 = vshrl.u32 %v14453_v36, 16  ;;  %v5936_v28 = vshll.u32 %v14453_v36, 16  ;;  %v5916_v47 = vshrl.u32 %v14451_v62, 16 }
 0x26d   : > { %v5888_v63 = vsel %vm16009_vm15, %v5880_v31, %v5887_v27  ;;  %v6180_v3 = vsel %vm17888_vm0, %v5889_v2, %v6179_v9  ;;  %v5930_v42 = vor.u32 %v5928_v24, %v5927_v59  ;;  %v5931_v38 = vrot.slane %v5927_v59, 4  ;;  %v6193_v24 = vld [vmem:[#allocation3 + $0x44] sm:$0x1] }
 0x26e   : > { %6178 = vst.msk [vmem:[#allocation3 + $0x28] sm:$0xf] %vm5634_vm6, %v5888_v63  ;;  %6181 = vst [vmem:[#allocation3 + $0x2c] sm:$0x1] %v6180_v3  ;;  %v5910_v19 = vrot.slane %v5908_v15, 7  ;;  %v5935_v40 = vrot.slane %v5933_v57, 7  ;;  %v14456_v18 = vpack.c.bf16 %v5616_v61, %v5616_v61  ;;  %v5468_v34 = vadd.f32 %v18462_v48, %v18317_v5  ;;  %v15165_v48 = vpop.f32.mrf.mxu0 }
 0x26f   : > { %v5918_v25 = vrot.slane %v5916_v47, 7  ;;  %v5919_v45 = vshll.u32 %v14451_v62, 16  ;;  %v6197_v33 = vsel %vm18416_vm5, %v5930_v42, %v6196_v29  ;;  %v5536_v31 = vmax.f32 %v5504_v22, 0.0  ;;  %v18523_v3 = vld [vmem:[#allocation3 + $0xc] sm:$0xf] }
 0x270   : > { %6198 = vst [vmem:[#allocation3 + $0x48] sm:$0xf] %v6197_v33  ;;  %v5913_v53 = vor.u32 %v5911_v17, %v5910_v19  ;;  %v5914_v43 = vrot.slane %v5910_v19, 4  ;;  %v5938_v58 = vor.u32 %v5936_v28, %v5935_v40  ;;  %v5940_v49 = vrot.slane %v5935_v40, 4  ;;  %v6210_v17 = vld [vmem:[#allocation3 + $0x60] sm:$0xf] }
 0x271   : > { %v5921_v44 = vor.u32 %v5919_v45, %v5918_v25  ;;  %v5923_v9 = vrot.slane %v5918_v25, 4  ;;  %v5959_v36 = vshrl.u32 %v14456_v18, 16  ;;  %v5962_v62 = vshll.u32 %v14456_v18, 16  ;;  %v18536_v18 = vld [vmem:[#allocation3 + $0x10] sm:$0xf] }
 0x272   : > { %v6190_v27 = vsel %vm18416_vm5, %v5913_v53, %v6189_v23  ;;  %v5939_v61 = vsel %vm16009_vm15, %v5931_v38, %v5938_v58  ;;  %v6201_v22 = vsel %vm17888_vm0, %v5940_v49, %v6200_v12  ;;  %v5575_v5 = vmul.f32 %v18348_v39, %v5536_v31 }
 0x273   : > { %6191 = vst [vmem:[#allocation3 + $0x3c] sm:$0xf] %v6190_v27  ;;  %6199 = vst.msk [vmem:[#allocation3 + $0x4c] sm:$0xf] %vm5634_vm6, %v5939_v61  ;;  %v5922_v2 = vsel %vm16009_vm15, %v5914_v43, %v5921_v44  ;;  %v6194_v59 = vsel %vm17888_vm0, %v5923_v9, %v6193_v24  ;;  %v18514_v15 = vrot.slane %v5959_v36, 7  ;;  %v5507_v29 = vadd.f32 %v18302_v6, %v5468_v34  ;;  %v18546_v9 = vpop.f32.mrf.mxu0 }
 0x274   : > { %6202 = vst [vmem:[#allocation3 + $0x50] sm:$0x1] %v6201_v22  ;;  %6192 = vst.msk [vmem:[#allocation3 + $0x40] sm:$0xf] %vm5634_vm6, %v5922_v2  ;;  %v5614_v57 = vadd.f32 %v18370_v7, %v5575_v5  ;;  %v5466_v28 = vadd.f32 %v18475_v8, %v18320_v52  ;;  %v5471_v47 = vadd.f32 %v15164_v14, %v18332_v21  ;;  %v6354_v14 = vshrl.u32 %v18523_v3, 16 }
 0x275   : > { %6195 = vst [vmem:[#allocation3 + $0x44] sm:$0x1] %v6194_v59  ;;  %v5469_v63 = vadd.f32 %v5390_v46, %v18336_v60  ;;  %v5964_v42 = vor.u32 %v5962_v62, %v18514_v15  ;;  %v5965_v38 = vrot.slane %v18514_v15, 4  ;;  %v5539_v19 = vmax.f32 %v5507_v29, 0.0  ;;  %v6203_v36 = vld [vmem:[#allocation3 + $0x54] sm:$0xf] }
 0x276   : > { %v5472_v40 = vadd.f32 %v15165_v48, %v18340_v50  ;;  %v14454_v25 = vpack.c.bf16 %v5614_v57, %v5614_v57  ;;  %v5505_v45 = vadd.f32 %v18302_v6, %v5466_v28  ;;  %v5510_v33 = vadd.f32 %v18302_v6, %v5471_v47 }
 0x277   : > { %v5508_v52 = vadd.f32 %v18302_v6, %v5469_v63  ;;  %v6211_v21 = vsel %vm18416_vm5, %v5964_v42, %v6210_v17  ;;  %v5578_v60 = vmul.f32 %v18348_v39, %v5539_v19  ;;  %v18539_v43 = vrot.slane %v6354_v14, 4 }
 0x278   : > { %v5511_v8 = vadd.f32 %v18302_v6, %v5472_v40  ;;  %6212 = vst [vmem:[#allocation3 + $0x60] sm:$0xf] %v6211_v21  ;;  %v5942_v46 = vshrl.u32 %v14454_v25, 16  ;;  %v5945_v23 = vshll.u32 %v14454_v25, 16  ;;  %v5537_v50 = vmax.f32 %v5505_v45, 0.0  ;;  %v18561_v40 = vpop.f32.mrf.mxu0 }
 0x279   : > { %v5542_v12 = vmax.f32 %v5510_v33, 0.0  ;;  %v5617_v31 = vadd.f32 %v18370_v7, %v5578_v60  ;;  %v5540_v34 = vmax.f32 %v5508_v52, 0.0  ;;  %v6357_v44 = vshll.u32 %v18523_v3, 16  ;;  %v6214_v45 = vld [vmem:[#allocation3 + $0x68] sm:$0x1] }
 0x27a   : > { %v5543_v53 = vmax.f32 %v5511_v8, 0.0  ;;  %v18541_v58 = vrot.slane %v5942_v46, 7  ;;  %v5576_v49 = vmul.f32 %v18348_v39, %v5537_v50  ;;  %v6367_v22 = vshrl.u32 %v18536_v18, 16  ;;  %v18565_v60 = vld [vmem:[#allocation3 + $0x18] sm:$0xf] }
 0x27b   : > { %v5581_v24 = vmul.f32 %v18348_v39, %v5542_v12  ;;  %v14457_v62 = vpack.c.bf16 %v5617_v31, %v5617_v31  ;;  %v5579_v27 = vmul.f32 %v18348_v39, %v5540_v34  ;;  %v18559_v19 = vrot.slane %v6357_v44, 5  ;;  %v15670_v8 = vld [vmem:[%s21817_s5 + $0x70] sm:$0xff]   ;;  %v6217_v44 = vld [vmem:[#allocation3 + $0x6c] sm:$0xf] }
 0x27c   : > { %v5582_v61 = vmul.f32 %v18348_v39, %v5543_v53  ;;  %v5947_v5 = vor.u32 %v5945_v23, %v18541_v58  ;;  %v5948_v48 = vrot.slane %v18541_v58, 4  ;;  %v5615_v2 = vadd.f32 %v18370_v7, %v5576_v49  ;;  %v6207_v34 = vld [vmem:[#allocation3 + $0x5c] sm:$0x1]  ;;  %v6224_v53 = vld [vmem:[#allocation3 + $0x78] sm:$0xf] }
 0x27d   : > { %v5620_v59 = vadd.f32 %v18370_v7, %v5581_v24  ;;  %v5967_v29 = vshrl.u32 %v14457_v62, 16  ;;  %v5970_v17 = vshll.u32 %v14457_v62, 16  ;;  %v5618_v57 = vadd.f32 %v18370_v7, %v5579_v27  ;;  %v5406_v27 = vpop.f32.mrf.mxu0 }
 0x27e   : > { %v5621_v28 = vadd.f32 %v18370_v7, %v5582_v61  ;;  %v6204_v47 = vsel %vm18416_vm5, %v5947_v5, %v6203_v36  ;;  %v14455_v63 = vpack.c.bf16 %v5615_v2, %v5615_v2  ;;  %v14034_v21 = vcombine.low %v18523_v3, %v18536_v18 }
 0x27f   : > { %v14460_v42 = vpack.c.bf16 %v5620_v59, %v5620_v59  ;;  %6205 = vst [vmem:[#allocation3 + $0x54] sm:$0xf] %v6204_v47  ;;  %v5969_v25 = vrot.slane %v5967_v29, 7  ;;  %v14458_v33 = vpack.c.bf16 %v5618_v57, %v5618_v57  ;;  %v6378_v59 = vshrl.u32 %v18565_v60, 16  ;;  %v15673_v29 = vld [vmem:[%s21817_s5 + $0x68] sm:$0xff]  }
 0x280   : > { %v14461_v52 = vpack.c.bf16 %v5621_v28, %v5621_v28  ;;  %v5950_v14 = vshrl.u32 %v14455_v63, 16  ;;  %v5953_v46 = vshll.u32 %v14455_v63, 16  ;;  %15227 = vmatmul.mubr.msk.bf16.vlgmr.msra.gmra.mxu0 %vm6793_vm3, %v14034_v21  ;;  %v18585_v28 = vld [vmem:[#allocation3 + $0x1c] sm:$0xf] }
 0x281   : > { %v5993_v23 = vshrl.u32 %v14460_v42, 16  ;;  %v5996_v50 = vshll.u32 %v14460_v42, 16  ;;  %v5972_v12 = vor.u32 %v5970_v17, %v5969_v25  ;;  %v5974_v31 = vrot.slane %v5969_v25, 4  ;;  %15299 = vmatpush3.bf16.msra.mxu0 %v18480_v16 }
 0x282   : > { %v5976_v58 = vshrl.u32 %v14458_v33, 16  ;;  %v5979_v49 = vshll.u32 %v14458_v33, 16  ;;  %v5952_v24 = vrot.slane %v5950_v14, 7  ;;  %v6001_v36 = vshrl.u32 %v14461_v52, 16  ;;  %15300 = vmatprep.subr.bf16.mxu0 %v15670_v8 }
 0x283   : > { %v5995_v3 = vrot.slane %v5993_v23, 7  ;;  %v6004_v62 = vshll.u32 %v14461_v52, 16  ;;  %v5973_v61 = vsel %vm16009_vm15, %v5965_v38, %v5972_v12  ;;  %v6215_v5 = vsel %vm17888_vm0, %v5974_v31, %v6214_v45  ;;  %v6228_v38 = vld [vmem:[#allocation3 + $0x80] sm:$0x1]  ;;  %v6279_v45 = vld [vmem:[#allocation3 + $0x24] sm:$0xf] }
 0x284   : > { %v18578_v2 = vrot.slane %v5976_v58, 7  ;;  %6213 = vst.msk [vmem:[#allocation3 + $0x64] sm:$0xf] %vm5634_vm6, %v5973_v61  ;;  %6216 = vst [vmem:[#allocation3 + $0x68] sm:$0x1] %v6215_v5  ;;  %v5955_v16 = vor.u32 %v5953_v46, %v5952_v24  ;;  %v5957_v15 = vrot.slane %v5952_v24, 4  ;;  %v15169_v46 = vpop.f32.mrf.mxu0  ;;  %v5470_v58 = vadd.f32 %v18546_v9, %v18343_v37 }
 0x285   : > { %v5998_v17 = vor.u32 %v5996_v50, %v5995_v3  ;;  %v5999_v57 = vrot.slane %v5995_v3, 4  ;;  %v6003_v42 = vrot.slane %v6001_v36, 7  ;;  %v18589_v25 = vrot.slane %v6378_v59, 4  ;;  %v18598_v23 = vld [vmem:[#allocation3 + $0x28] sm:$0xf]  ;;  %15301 = vmatpush3.bf16.msra.mxu0 %v15670_v8 }
 0x286   : > { %v5981_v47 = vor.u32 %v5979_v49, %v18578_v2  ;;  %v5982_v63 = vrot.slane %v18578_v2, 4  ;;  %v5956_v33 = vsel %vm16009_vm15, %v5948_v48, %v5955_v16  ;;  %v6208_v52 = vsel %vm17888_vm0, %v5957_v15, %v6207_v34  ;;  %15302 = vmatprep.subr.bf16.mxu0 %v15673_v29  ;;  %v15675_v34 = vld [vmem:[%s21817_s5 + $0x60] sm:$0xff]  }
 0x287   : > { %v6225_v21 = vsel %vm18416_vm5, %v5998_v17, %v6224_v53  ;;  %v6381_v14 = vshll.u32 %v18565_v60, 16  ;;  %6206 = vst.msk [vmem:[#allocation3 + $0x58] sm:$0xf] %vm5634_vm6, %v5956_v33  ;;  %6209 = vst [vmem:[#allocation3 + $0x5c] sm:$0x1] %v6208_v52  ;;  %v6006_v48 = vor.u32 %v6004_v62, %v6003_v42  ;;  %v6008_v12 = vrot.slane %v6003_v42, 4  ;;  %v5409_v33 = vpop.f32.mrf.mxu0 }
 0x288   : > { %6226 = vst [vmem:[#allocation3 + $0x78] sm:$0xf] %v6225_v21  ;;  %v6218_v50 = vsel %vm18416_vm5, %v5981_v47, %v6217_v44  ;;  %v6391_v31 = vshrl.u32 %v18585_v28, 16  ;;  %v14035_v8 = vcombine.low %v18565_v60, %v18585_v28  ;;  %v5475_v49 = vadd.f32 %v18561_v40, %v18352_v56 }
 0x289   : > { %6219 = vst [vmem:[#allocation3 + $0x6c] sm:$0xf] %v6218_v50  ;;  %v18607_v53 = vrot.slane %v6381_v14, 5  ;;  %v6007_v24 = vsel %vm16009_vm15, %v5999_v57, %v6006_v48  ;;  %v6229_v3 = vsel %vm17888_vm0, %v6008_v12, %v6228_v38  ;;  %v5473_v44 = vadd.f32 %v5406_v27, %v18357_v30  ;;  %15303 = vmatpush3.bf16.msra.mxu0 %v15673_v29  ;;  %v6314_v27 = vld [vmem:[#allocation3 + $0x14] sm:$0x1] }
 0x28a   : > { %v5476_v36 = vadd.f32 %v15169_v46, %v18361_v10  ;;  %6227 = vst.msk [vmem:[#allocation3 + $0x7c] sm:$0xf] %vm5634_vm6, %v6007_v24  ;;  %6230 = vst [vmem:[#allocation3 + $0x80] sm:$0x1] %v6229_v3  ;;  %15230 = vmatprep.mubr.msk.bf16.mxu0 %vm6793_vm3, %v14035_v8  ;;  %v5509_v37 = vadd.f32 %v18302_v6, %v5470_v58  ;;  %v5514_v9 = vadd.f32 %v18302_v6, %v5475_v49  ;;  %v6281_v57 = vld [vmem:[#allocation3 + $0x30] sm:$0xf] }
 0x28b   : > { %v6402_v56 = vshrl.u32 %v6279_v45, 16  ;;  %v6405_v40 = vshll.u32 %v6279_v45, 16  ;;  %v5512_v60 = vadd.f32 %v18302_v6, %v5473_v44  ;;  %v6415_v30 = vshrl.u32 %v18598_v23, 16  ;;  %15304 = vmatprep.subr.bf16.mxu0 %v15675_v34  ;;  %v18645_v48 = vld [vmem:[#allocation3 + $0x34] sm:$0xf]  ;;  %v18653_v44 = vpop.f32.mrf.mxu0 }
 0x28c   : > { %v5515_v62 = vadd.f32 %v18302_v6, %v5476_v36  ;;  %v14036_v10 = vcombine.low %v6279_v45, %v18598_v23  ;;  %v5541_v61 = vmax.f32 %v5509_v37, 0.0  ;;  %v5546_v5 = vmax.f32 %v5514_v9, 0.0 }
 0x28d   : > { %v18629_v59 = vrot.slane %v6402_v56, 4  ;;  %v18631_v16 = vrot.slane %v6405_v40, 5  ;;  %v5544_v15 = vmax.f32 %v5512_v60, 0.0  ;;  %v6360_v29 = vor.u32 %v18559_v19, %v18539_v43  ;;  %15305 = vmatpush3.bf16.msra.mxu0 %v15675_v34 }
 0x28e   : > { %v5547_v17 = vmax.f32 %v5515_v62, 0.0  ;;  %15231 = vmatmul.mubr.msk.bf16.gmra.mxu0 %vm6793_vm3, %v14036_v10  ;;  %v6363_v6 = vshll.u32 %v18536_v18, 16  ;;  %v5580_v38 = vmul.f32 %v18348_v39, %v5541_v61  ;;  %v5585_v47 = vmul.f32 %v18348_v39, %v5546_v5 }
 0x28f   : > { %v6369_v42 = vrot.slane %v6367_v22, 4  ;;  %v6373_v45 = vshll.u32 %v6314_v27, 16  ;;  %v5583_v52 = vmul.f32 %v18348_v39, %v5544_v15  ;;  %v6361_v14 = vrot.slane %v6360_v29, 4  ;;  %v6221_v29 = vld [vmem:[#allocation3 + $0x74] sm:$0x1] }
 0x290   : > { %v5586_v21 = vmul.f32 %v18348_v39, %v5547_v17  ;;  %v6365_v46 = vrot.slane %v6363_v6, 5  ;;  %v5619_v43 = vadd.f32 %v18370_v7, %v5580_v38  ;;  %v5624_v19 = vadd.f32 %v18370_v7, %v5585_v47  ;;  %v6291_v20 = vld [vmem:[#allocation3 + $0x6c] sm:$0xf] }
 0x291   : > { %v6375_v50 = vrot.slane %v6373_v45, 5  ;;  %v6426_v12 = vshrl.u32 %v6281_v57, 16  ;;  %v5622_v18 = vadd.f32 %v18370_v7, %v5583_v52  ;;  %v6429_v3 = vshll.u32 %v6281_v57, 16  ;;  %v6238_v45 = vld [vmem:[#allocation3 + $0x90] sm:$0xf] }
 0x292   : > { %v5625_v22 = vadd.f32 %v18370_v7, %v5586_v21  ;;  %v6366_v34 = vsel %vm15995_vm13, %v6361_v14, %v6365_v46  ;;  %v6370_v58 = vor.u32 %v6369_v42, %v6365_v46  ;;  %v14459_v49 = vpack.c.bf16 %v5619_v43, %v5619_v43  ;;  %v5422_v42 = vpop.f32.mrf.mxu0  ;;  %v15660_v43 = vld [vmem:[%s21817_s5 + $0x50] sm:$0xff]  }
 0x293   : > { %v14464_v39 = vpack.c.bf16 %v5624_v19, %v5624_v19  ;;  %v18651_v24 = vrot.slane %v6426_v12, 4  ;;  %v14462_v36 = vpack.c.bf16 %v5622_v18, %v5622_v18  ;;  %v6439_v56 = vshrl.u32 %v18645_v48, 16 }
 0x294   : > { %v14465_v37 = vpack.c.bf16 %v5625_v22, %v5625_v22  ;;  %v6371_v9 = vrot.slane %v6370_v58, 4  ;;  %v5984_v40 = vshrl.u32 %v14459_v49, 16  ;;  %v5987_v60 = vshll.u32 %v14459_v49, 16  ;;  %v6231_v58 = vld [vmem:[#allocation3 + $0x84] sm:$0xf] }
 0x295   : > { %v6027_v62 = vshrl.u32 %v14464_v39, 16  ;;  %v6030_v10 = vshll.u32 %v14464_v39, 16  ;;  %v6010_v27 = vshrl.u32 %v14462_v36, 16  ;;  %v6013_v61 = vshll.u32 %v14462_v36, 16 }
 0x296   : > { %v6035_v5 = vshrl.u32 %v14465_v37, 16  ;;  %v6038_v15 = vshll.u32 %v14465_v37, 16  ;;  %v5986_v17 = vrot.slane %v5984_v40, 7  ;;  %v6376_v38 = vsel %vm15995_vm13, %v6371_v9, %v6375_v50  ;;  %v6242_v50 = vld [vmem:[#allocation3 + $0x98] sm:$0x1]  ;;  %v15738_v40 = vld [vmem:[%s21817_s5 + $0x58] sm:$0xff]  }
 0x297   : > { %v6029_v6 = vrot.slane %v6027_v62, 7  ;;  %v18658_v47 = vrot.slane %v6429_v3, 5  ;;  %v18660_v52 = vrot.slane %v6010_v27, 7  ;;  %v13998_v14 = vcombine.low %v6366_v34, %v6376_v38  ;;  %v15173_v62 = vpop.f32.mrf.mxu0 }
 0x298   : > { %v6037_v21 = vrot.slane %v6035_v5, 7  ;;  %v14037_v46 = vcombine.low %v6281_v57, %v18645_v48  ;;  %v5989_v19 = vor.u32 %v5987_v60, %v5986_v17  ;;  %v5991_v12 = vrot.slane %v5986_v17, 4  ;;  %v6315_v57 = vld [vmem:[#allocation3 + $0x20] sm:$0x1] }
 0x299   : > { %v6032_v18 = vor.u32 %v6030_v10, %v6029_v6  ;;  %v6033_v22 = vrot.slane %v6029_v6, 4  ;;  %v6015_v49 = vor.u32 %v6013_v61, %v18660_v52  ;;  %v6016_v39 = vrot.slane %v18660_v52, 4  ;;  %15187 = vmatmul.mubr.msk.bf16.vlgmr.msra.gmra.mxu1 %vm6793_vm3, %v13998_v14  ;;  %v6283_v61 = vld [vmem:[#allocation3 + $0x3c] sm:$0xf] }
 0x29a   : > { %v6040_v3 = vor.u32 %v6038_v15, %v6037_v21  ;;  %v6042_v36 = vrot.slane %v6037_v21, 4  ;;  %15234 = vmatprep.mubr.msk.bf16.mxu0 %vm6793_vm3, %v14037_v46  ;;  %v5990_v34 = vsel %vm16009_vm15, %v5982_v63, %v5989_v19  ;;  %v6222_v37 = vsel %vm17888_vm0, %v5991_v12, %v6221_v29  ;;  %15259 = vmatpush3.bf16.msra.mxu1 %v15738_v40 }
 0x29b   : > { %v6239_v9 = vsel %vm18416_vm5, %v6032_v18, %v6238_v45  ;;  %v5474_v60 = vadd.f32 %v5409_v33, %v18364_v54  ;;  %6220 = vst.msk [vmem:[#allocation3 + $0x70] sm:$0xf] %vm5634_vm6, %v5990_v34  ;;  %6223 = vst [vmem:[#allocation3 + $0x74] sm:$0x1] %v6222_v37  ;;  %v6232_v2 = vsel %vm18416_vm5, %v6015_v49, %v6231_v58  ;;  %15260 = vmatprep.subr.bf16.mxu1 %v15660_v43  ;;  %v15665_v54 = vld [vmem:[%s21817_s5 + $0x48] sm:$0xff]  }
 0x29c   : > { %6240 = vst [vmem:[#allocation3 + $0x90] sm:$0xf] %v6239_v9  ;;  %v6041_v63 = vsel %vm16009_vm15, %v6033_v22, %v6040_v3  ;;  %v6243_v10 = vsel %vm17888_vm0, %v6042_v36, %v6242_v50  ;;  %v6384_v27 = vor.u32 %v18607_v53, %v18589_v25  ;;  %6233 = vst [vmem:[#allocation3 + $0x84] sm:$0xf] %v6232_v2  ;;  %v18698_v33 = vld [vmem:[%s21814_s2] ss:$0 sm:$0xff] }
 0x29d   : > { %6241 = vst.msk [vmem:[#allocation3 + $0x94] sm:$0xf] %vm5634_vm6, %v6041_v63  ;;  %6244 = vst [vmem:[#allocation3 + $0x98] sm:$0x1] %v6243_v10  ;;  %v5513_v5 = vadd.f32 %v18698_v33, %v5474_v60  ;;  %v6387_v15 = vshll.u32 %v18585_v28, 16  ;;  %v6393_v25 = vrot.slane %v6391_v31, 4  ;;  %v5479_v29 = vadd.f32 %v18653_v44, %v18376_v13 }
 0x29e   : > { %v6397_v53 = vshll.u32 %v6315_v57, 16  ;;  %v6385_v17 = vrot.slane %v6384_v27, 4  ;;  %v5477_v6 = vadd.f32 %v5422_v42, %v18380_v35  ;;  %v5480_v38 = vadd.f32 %v15173_v62, %v18384_v11  ;;  %15261 = vmatpush3.bf16.msra.mxu1 %v15660_v43  ;;  %v18711_v31 = vld [vmem:[#allocation3 + $0x40] sm:$0xf]  ;;  %v15672_v13 = vld [vmem:[%s21817_s5 + $0x40] sm:$0xff]   ;;  %v18736_v62 = vpop.f32.mrf.mxu0 }
 0x29f   : > { %v5545_v45 = vmax.f32 %v5513_v5, 0.0  ;;  %v6389_v21 = vrot.slane %v6387_v15, 5  ;;  %v6450_v46 = vshrl.u32 %v6283_v61, 16  ;;  %v5518_v19 = vadd.f32 %v18698_v33, %v5479_v29  ;;  %15262 = vmatprep.subr.bf16.mxu1 %v15665_v54  ;;  %v18719_v35 = vld [vmem:[%s21815_s3] ss:$0 sm:$0xff] }
 0x2a0   : > { %v6399_v14 = vrot.slane %v6397_v53, 5  ;;  %v5516_v12 = vadd.f32 %v18698_v33, %v5477_v6  ;;  %v5519_v28 = vadd.f32 %v18698_v33, %v5480_v38  ;;  %v6453_v18 = vshll.u32 %v6283_v61, 16  ;;  %v18744_v10 = vld [vmem:[#allocation3 + $0x2c] sm:$0x1] }
 0x2a1   : > { %v5584_v11 = vmul.f32 %v18719_v35, %v5545_v45  ;;  %v6390_v44 = vsel %vm15995_vm13, %v6385_v17, %v6389_v21  ;;  %v6394_v42 = vor.u32 %v6393_v25, %v6389_v21  ;;  %v18724_v43 = vrot.slane %v6450_v46, 4  ;;  %v18757_v25 = vld [vmem:[#allocation3 + $0x48] sm:$0xf]  ;;  %v15176_v21 = vpop.f32.mrf.mxu0 }
 0x2a2   : > { %v5550_v22 = vmax.f32 %v5518_v19, 0.0  ;;  %v5548_v58 = vmax.f32 %v5516_v12, 0.0  ;;  %v5551_v50 = vmax.f32 %v5519_v28, 0.0  ;;  %v18726_v49 = vrot.slane %v6453_v18, 5  ;;  %15263 = vmatpush3.bf16.msra.mxu1 %v15665_v54  ;;  %v6235_v18 = vld [vmem:[#allocation3 + $0x8c] sm:$0x1] }
 0x2a3   : > { %v5623_v3 = vadd.f32 %v18370_v7, %v5584_v11  ;;  %v6395_v36 = vrot.slane %v6394_v42, 4  ;;  %v6463_v57 = vshrl.u32 %v18711_v31, 16  ;;  %v14038_v34 = vcombine.low %v6283_v61, %v18711_v31  ;;  %15264 = vmatprep.subr.bf16.mxu1 %v15672_v13  ;;  %v15679_v7 = vld [vmem:[%s21817_s5 + $0x98] sm:$0xff]   ;;  %v18752_v61 = vld [vmem:[%s21816_s4] ss:$0 sm:$0xff] }
 0x2a4   : > { %v5589_v37 = vmul.f32 %v18719_v35, %v5550_v22  ;;  %v5587_v9 = vmul.f32 %v18719_v35, %v5548_v58  ;;  %v5590_v40 = vmul.f32 %v18719_v35, %v5551_v50  ;;  %v6408_v60 = vor.u32 %v18631_v16, %v18629_v59 }
 0x2a5   : > { %v14463_v2 = vpack.c.bf16 %v5623_v3, %v5623_v3  ;;  %v6400_v63 = vsel %vm15995_vm13, %v6395_v36, %v6399_v14  ;;  %15235 = vmatmul.mubr.msk.bf16.gmra.mxu0 %vm6793_vm3, %v14038_v34  ;;  %v6411_v27 = vshll.u32 %v18598_v23, 16  ;;  %v6417_v59 = vrot.slane %v6415_v30, 4  ;;  %v18764_v14 = vld [vmem:[%s21817_s5 + $0xb8] sm:$0xff]   ;;  %v6252_v34 = vld [vmem:[#allocation3 + $0xa8] sm:$0xf] }
 0x2a6   : > { %v13999_v16 = vcombine.low %v6390_v44, %v6400_v63  ;;  %v5628_v54 = vadd.f32 %v18752_v61, %v5589_v37  ;;  %v5626_v5 = vadd.f32 %v18752_v61, %v5587_v9  ;;  %v5629_v15 = vadd.f32 %v18752_v61, %v5590_v40  ;;  %15265 = vmatpush3.bf16.msra.mxu1 %v15672_v13  ;;  %v6245_v63 = vld [vmem:[#allocation3 + $0x9c] sm:$0xf] }
 0x2a7   : > { %v6018_v53 = vshrl.u32 %v14463_v2, 16  ;;  %v6021_v17 = vshll.u32 %v14463_v2, 16  ;;  %v6409_v29 = vrot.slane %v6408_v60, 4  ;;  %v6413_v6 = vrot.slane %v6411_v27, 5  ;;  %15338 = vmatprep.subr.bf16.mxu1 %v15679_v7  ;;  %15378 = vmatprep.subr.bf16.mxu0 %v18764_v14  ;;  %v5438_v60 = vpop.f32.mrf.mxu0 }
 0x2a8   : > { %15190 = vmatprep.mubr.msk.bf16.mxu1 %vm6793_vm3, %v13999_v16  ;;  %v14468_v23 = vpack.c.bf16 %v5628_v54, %v5628_v54  ;;  %v14466_v30 = vpack.c.bf16 %v5626_v5, %v5626_v5  ;;  %v14469_v38 = vpack.c.bf16 %v5629_v15, %v5629_v15  ;;  %v6421_v45 = vshll.u32 %v18744_v10, 16 }
 0x2a9   : > { %v6020_v46 = vrot.slane %v6018_v53, 7  ;;  %v6414_v19 = vsel %vm15995_vm13, %v6409_v29, %v6413_v6  ;;  %v6418_v12 = vor.u32 %v6417_v59, %v6413_v6  ;;  %v6474_v28 = vshrl.u32 %v18757_v25, 16  ;;  %v18778_v59 = vld [vmem:[#allocation3 + $0x4c] sm:$0xf]  ;;  %v6256_v53 = vld [vmem:[#allocation3 + $0xb0] sm:$0x1] }
 0x2aa   : > { %v6061_v13 = vshrl.u32 %v14468_v23, 16  ;;  %v6064_v11 = vshll.u32 %v14468_v23, 16  ;;  %v6044_v44 = vshrl.u32 %v14466_v30, 16  ;;  %v6047_v42 = vshll.u32 %v14466_v30, 16 }
 0x2ab   : > { %v6023_v22 = vor.u32 %v6021_v17, %v6020_v46  ;;  %v6025_v58 = vrot.slane %v6020_v46, 4  ;;  %v6069_v50 = vshrl.u32 %v14469_v38, 16  ;;  %v6072_v3 = vshll.u32 %v14469_v38, 16  ;;  %v18793_v46 = vld [vmem:[#allocation3 + $0x38] sm:$0x1] }
 0x2ac   : > { %v6063_v36 = vrot.slane %v6061_v13, 7  ;;  %v18770_v37 = vrot.slane %v6044_v44, 7  ;;  %v6419_v9 = vrot.slane %v6418_v12, 4  ;;  %v6423_v40 = vrot.slane %v6421_v45, 5  ;;  %v15177_v12 = vpop.f32.mrf.mxu0 }
 0x2ad   : > { %v6024_v7 = vsel %vm16009_vm15, %v6016_v39, %v6023_v22  ;;  %v6236_v2 = vsel %vm17888_vm0, %v6025_v58, %v6235_v18  ;;  %v6071_v27 = vrot.slane %v6069_v50, 7  ;;  %v18780_v16 = vrot.slane %v6474_v28, 4  ;;  %v6287_v28 = vld [vmem:[#allocation3 + $0x54] sm:$0xf] }
 0x2ae   : > { %6234 = vst.msk [vmem:[#allocation3 + $0x88] sm:$0xf] %vm5634_vm6, %v6024_v7  ;;  %6237 = vst [vmem:[#allocation3 + $0x8c] sm:$0x1] %v6236_v2  ;;  %v6066_v54 = vor.u32 %v6064_v11, %v6063_v36  ;;  %v6067_v5 = vrot.slane %v6063_v36, 4  ;;  %v6049_v15 = vor.u32 %v6047_v42, %v18770_v37  ;;  %v6050_v52 = vrot.slane %v18770_v37, 4 }
 0x2af   : > { %v6074_v39 = vor.u32 %v6072_v3, %v6071_v27  ;;  %v6076_v17 = vrot.slane %v6071_v27, 4  ;;  %v6424_v29 = vsel %vm15995_vm13, %v6419_v9, %v6423_v40  ;;  %v6477_v6 = vshll.u32 %v18757_v25, 16  ;;  %v18821_v40 = vld [vmem:[#allocation3 + $0x58] sm:$0xf] }
 0x2b0   : > { %v6253_v23 = vsel %vm18416_vm5, %v6066_v54, %v6252_v34  ;;  %v6246_v30 = vsel %vm18416_vm5, %v6049_v15, %v6245_v63  ;;  %v14000_v38 = vcombine.low %v6414_v19, %v6424_v29  ;;  %v6487_v45 = vshrl.u32 %v18778_v59, 16 }
 0x2b1   : > { %6254 = vst [vmem:[#allocation3 + $0xa8] sm:$0xf] %v6253_v23  ;;  %6247 = vst [vmem:[#allocation3 + $0x9c] sm:$0xf] %v6246_v30  ;;  %v6075_v18 = vsel %vm16009_vm15, %v6067_v5, %v6074_v39  ;;  %v6257_v13 = vsel %vm17888_vm0, %v6076_v17, %v6256_v53  ;;  %v18799_v11 = vrot.slane %v6477_v6, 5  ;;  %v14039_v44 = vcombine.low %v18757_v25, %v18778_v59 }
 0x2b2   : > { %6255 = vst.msk [vmem:[#allocation3 + $0xac] sm:$0xf] %vm5634_vm6, %v6075_v18  ;;  %6258 = vst [vmem:[#allocation3 + $0xb0] sm:$0x1] %v6257_v13  ;;  %15191 = vmatmul.mubr.msk.bf16.gmra.mxu1 %vm6793_vm3, %v14000_v38  ;;  %v5478_v19 = vadd.f32 %v18736_v62, %v18391_v32  ;;  %v6432_v42 = vor.u32 %v18658_v47, %v18651_v24  ;;  %v6435_v22 = vshll.u32 %v18645_v48, 16  ;;  %v6441_v58 = vrot.slane %v6439_v56, 4 }
 0x2b3   : > { %15238 = vmatprep.mubr.msk.bf16.mxu0 %vm6793_vm3, %v14039_v44  ;;  %v6445_v25 = vshll.u32 %v18793_v46, 16  ;;  %v5483_v50 = vadd.f32 %v15176_v21, %v18395_v0  ;;  %v5481_v3 = vadd.f32 %v5438_v60, %v18398_v55  ;;  %v5484_v36 = vadd.f32 %v15177_v12, %v18404_v26  ;;  %v18835_v6 = vld [vmem:[#allocation3 + $0x44] sm:$0x1] }
 0x2b4   : > { %v5517_v32 = vadd.f32 %v18698_v33, %v5478_v19  ;;  %v6433_v62 = vrot.slane %v6432_v42, 4  ;;  %v6437_v34 = vrot.slane %v6435_v22, 5  ;;  %v6498_v24 = vshrl.u32 %v6287_v28, 16 }
 0x2b5   : > { %v6447_v47 = vrot.slane %v6445_v25, 5  ;;  %v5522_v9 = vadd.f32 %v18698_v33, %v5483_v50  ;;  %v5520_v48 = vadd.f32 %v18698_v33, %v5481_v3  ;;  %v5523_v56 = vadd.f32 %v18698_v33, %v5484_v36 }
 0x2b6   : > { %v5549_v7 = vmax.f32 %v5517_v32, 0.0  ;;  %v6438_v0 = vsel %vm15995_vm13, %v6433_v62, %v6437_v34  ;;  %v6442_v55 = vor.u32 %v6441_v58, %v6437_v34  ;;  %v18825_v26 = vrot.slane %v6498_v24, 4  ;;  %v6289_v34 = vld [vmem:[#allocation3 + $0x60] sm:$0xf] }
 0x2b7   : > { %v5554_v21 = vmax.f32 %v5522_v9, 0.0  ;;  %v5552_v60 = vmax.f32 %v5520_v48, 0.0  ;;  %v5555_v2 = vmax.f32 %v5523_v56, 0.0  ;;  %v6501_v63 = vshll.u32 %v6287_v28, 16 }
 0x2b8   : > { %v5588_v27 = vmul.f32 %v18719_v35, %v5549_v7  ;;  %v6443_v54 = vrot.slane %v6442_v55, 4  ;;  %v6511_v5 = vshrl.u32 %v18821_v40, 16  ;;  %v14040_v15 = vcombine.low %v6287_v28, %v18821_v40 }
 0x2b9   : > { %v5593_v53 = vmul.f32 %v18719_v35, %v5554_v21  ;;  %v5591_v39 = vmul.f32 %v18719_v35, %v5552_v60  ;;  %v5594_v17 = vmul.f32 %v18719_v35, %v5555_v2  ;;  %v18833_v29 = vrot.slane %v6501_v63, 5  ;;  %v6266_v60 = vld [vmem:[#allocation3 + $0xc0] sm:$0xf] }
 0x2ba   : > { %v5627_v23 = vadd.f32 %v18752_v61, %v5588_v27  ;;  %v6448_v30 = vsel %vm15995_vm13, %v6443_v54, %v6447_v47  ;;  %15239 = vmatmul.mubr.msk.bf16.gmra.mxu0 %vm6793_vm3, %v14040_v15  ;;  %v6456_v38 = vor.u32 %v18726_v49, %v18724_v43  ;;  %v6459_v12 = vshll.u32 %v18711_v31, 16 }
 0x2bb   : > { %v14001_v28 = vcombine.low %v6438_v0, %v6448_v30  ;;  %v5632_v18 = vadd.f32 %v18752_v61, %v5593_v53  ;;  %v5630_v13 = vadd.f32 %v18752_v61, %v5591_v39  ;;  %v5633_v44 = vadd.f32 %v18752_v61, %v5594_v17  ;;  %v6259_v53 = vld [vmem:[#allocation3 + $0xb4] sm:$0xf] }
 0x2bc   : > { %v14467_v19 = vpack.c.bf16 %v5627_v23, %v5627_v23  ;;  %v6457_v42 = vrot.slane %v6456_v38, 4  ;;  %v6461_v22 = vrot.slane %v6459_v12, 5  ;;  %v6465_v58 = vrot.slane %v6463_v57, 4  ;;  %v6249_v57 = vld [vmem:[#allocation3 + $0xa4] sm:$0x1] }
 0x2bd   : > { %15194 = vmatprep.mubr.msk.bf16.mxu1 %vm6793_vm3, %v14001_v28  ;;  %v14472_v25 = vpack.c.bf16 %v5632_v18, %v5632_v18  ;;  %v14470_v50 = vpack.c.bf16 %v5630_v13, %v5630_v13  ;;  %v14473_v43 = vpack.c.bf16 %v5633_v44, %v5633_v44  ;;  %v6469_v49 = vshll.u32 %v18835_v6, 16  ;;  %v6270_v28 = vld [vmem:[#allocation3 + $0xc8] sm:$0x1] }
 0x2be   : > { %v6052_v3 = vshrl.u32 %v14467_v19, 16  ;;  %v6055_v36 = vshll.u32 %v14467_v19, 16  ;;  %v6462_v32 = vsel %vm15995_vm13, %v6457_v42, %v6461_v22  ;;  %v6466_v62 = vor.u32 %v6465_v58, %v6461_v22  ;;  %v18863_v42 = vld [vmem:[#allocation3 + $0x64] sm:$0xf]  ;;  %v5441_v22 = vpop.f32.mrf.mxu0  ;;  %v5737_v58 = vld [vmem:[#allocation3 + $0xbc] sm:$0x1] }
 0x2bf   : > { %v6095_v24 = vshrl.u32 %v14472_v25, 16  ;;  %v6098_v47 = vshll.u32 %v14472_v25, 16  ;;  %v6078_v9 = vshrl.u32 %v14470_v50, 16  ;;  %v6081_v48 = vshll.u32 %v14470_v50, 16 }
 0x2c0   : > { %v6054_v56 = vrot.slane %v6052_v3, 7  ;;  %v6103_v7 = vshrl.u32 %v14473_v43, 16  ;;  %v6106_v0 = vshll.u32 %v14473_v43, 16  ;;  %v6467_v55 = vrot.slane %v6466_v62, 4  ;;  %v18874_v43 = vld [vmem:[#allocation3 + $0x50] sm:$0x1] }
 0x2c1   : > { %v6097_v21 = vrot.slane %v6095_v24, 7  ;;  %v18853_v2 = vrot.slane %v6078_v9, 7  ;;  %v6471_v63 = vrot.slane %v6469_v49, 5  ;;  %v6522_v27 = vshrl.u32 %v6289_v34, 16  ;;  %v18882_v24 = vld [vmem:[#allocation3 + $0x70] sm:$0xf] }
 0x2c2   : > { %v6057_v54 = vor.u32 %v6055_v36, %v6054_v56  ;;  %v6059_v15 = vrot.slane %v6054_v56, 4  ;;  %v6105_v39 = vrot.slane %v6103_v7, 7  ;;  %v6525_v17 = vshll.u32 %v6289_v34, 16 }
 0x2c3   : > { %v6100_v23 = vor.u32 %v6098_v47, %v6097_v21  ;;  %v6101_v30 = vrot.slane %v6097_v21, 4  ;;  %v6083_v38 = vor.u32 %v6081_v48, %v18853_v2  ;;  %v6084_v12 = vrot.slane %v18853_v2, 4  ;;  %v18900_v21 = vld [vmem:[#allocation3 + $0x5c] sm:$0x1] }
 0x2c4   : > { %v6058_v18 = vsel %vm16009_vm15, %v6050_v52, %v6057_v54  ;;  %v6250_v13 = vsel %vm17888_vm0, %v6059_v15, %v6249_v57  ;;  %v6108_v44 = vor.u32 %v6106_v0, %v6105_v39  ;;  %v6110_v19 = vrot.slane %v6105_v39, 4 }
 0x2c5   : > { %6248 = vst.msk [vmem:[#allocation3 + $0xa0] sm:$0xf] %vm5634_vm6, %v6058_v18  ;;  %6251 = vst [vmem:[#allocation3 + $0xa4] sm:$0x1] %v6250_v13  ;;  %v6267_v25 = vsel %vm18416_vm5, %v6100_v23, %v6266_v60  ;;  %v6260_v37 = vsel %vm18416_vm5, %v6083_v38, %v6259_v53  ;;  %v6472_v52 = vsel %vm15995_vm13, %v6467_v55, %v6471_v63  ;;  %v18872_v50 = vrot.slane %v6522_v27, 4 }
 0x2c6   : > { %6268 = vst [vmem:[#allocation3 + $0xc0] sm:$0xf] %v6267_v25  ;;  %6261 = vst [vmem:[#allocation3 + $0xb4] sm:$0xf] %v6260_v37  ;;  %v6109_v49 = vsel %vm16009_vm15, %v6101_v30, %v6108_v44  ;;  %v6271_v3 = vsel %vm17888_vm0, %v6110_v19, %v6270_v28  ;;  %v14002_v36 = vcombine.low %v6462_v32, %v6472_v52  ;;  %v18880_v62 = vrot.slane %v6525_v17, 5 }
 0x2c7   : > { %6269 = vst.msk [vmem:[#allocation3 + $0xc4] sm:$0xf] %vm5634_vm6, %v6109_v49  ;;  %6272 = vst [vmem:[#allocation3 + $0xc8] sm:$0x1] %v6271_v3  ;;  %v6535_v47 = vshrl.u32 %v18863_v42, 16  ;;  %v14041_v9 = vcombine.low %v6289_v34, %v18863_v42  ;;  %v5482_v48 = vadd.f32 %v5441_v22, %v18406_v4  ;;  %v5738_v56 = vsel %vm17903_vm1, 0, %v5737_v58 }
 0x2c8   : > { %15195 = vmatmul.mubr.msk.bf16.gmra.mxu1 %vm6793_vm3, %v14002_v36  ;;  %5739 = vst [vmem:[#allocation3 + $0xbc] sm:$0x1] %v5738_v56  ;;  %v6480_v32 = vor.u32 %v18799_v11, %v18780_v16  ;;  %v6483_v57 = vshll.u32 %v18778_v59, 16  ;;  %v6489_v7 = vrot.slane %v6487_v45, 4  ;;  %v6493_v0 = vshll.u32 %v18874_v43, 16 }
 0x2c9   : > { %15242 = vmatprep.mubr.msk.bf16.mxu0 %vm6793_vm3, %v14041_v9  ;;  %v5521_v4 = vadd.f32 %v18698_v33, %v5482_v48  ;;  %v6546_v34 = vshrl.u32 %v6291_v20, 16  ;;  %v6549_v51 = vshll.u32 %v6291_v20, 16  ;;  %v6559_v55 = vshrl.u32 %v18882_v24, 16  ;;  %v6293_v27 = vld [vmem:[#allocation3 + $0x78] sm:$0xf] }
 0x2ca   : > { %v6481_v60 = vrot.slane %v6480_v32, 4  ;;  %v6485_v63 = vrot.slane %v6483_v57, 5  ;;  %v6495_v16 = vrot.slane %v6493_v0, 5  ;;  %v14042_v11 = vcombine.low %v6291_v20, %v18882_v24  ;;  %v18907_v33 = vld [vmem:[#allocation3 + $0x7c] sm:$0xf] }
 0x2cb   : > { %v5553_v54 = vmax.f32 %v5521_v4, 0.0  ;;  %v18903_v45 = vrot.slane %v6546_v34, 4  ;;  %v6551_v15 = vrot.slane %v6549_v51, 5  ;;  %v6504_v53 = vor.u32 %v18833_v29, %v18825_v26  ;;  %v18917_v26 = vld [vmem:[#allocation3 + $0x68] sm:$0x1] }
 0x2cc   : > { %v6486_v39 = vsel %vm15995_vm13, %v6481_v60, %v6485_v63  ;;  %v6490_v17 = vor.u32 %v6489_v7, %v6485_v63  ;;  %15243 = vmatmul.mubr.msk.bf16.gmra.mxu0 %vm6793_vm3, %v14042_v11  ;;  %v6507_v23 = vshll.u32 %v18821_v40, 16  ;;  %v6513_v30 = vrot.slane %v6511_v5, 4  ;;  %v6295_v52 = vld [vmem:[#allocation3 + $0x84] sm:$0xf]  ;;  %v18936_v60 = vld [vmem:[#allocation3 + $0x88] sm:$0xf] }
 0x2cd   : > { %v5592_v38 = vmul.f32 %v18719_v35, %v5553_v54  ;;  %v6505_v28 = vrot.slane %v6504_v53, 4  ;;  %v6517_v18 = vshll.u32 %v18900_v21, 16  ;;  %v6570_v13 = vshrl.u32 %v6293_v27, 16  ;;  %v18944_v53 = vld [vmem:[#allocation3 + $0x74] sm:$0x1] }
 0x2ce   : > { %v6491_v29 = vrot.slane %v6490_v17, 4  ;;  %v6509_v44 = vrot.slane %v6507_v23, 5  ;;  %v6573_v19 = vshll.u32 %v6293_v27, 16  ;;  %v6583_v22 = vshrl.u32 %v18907_v33, 16 }
 0x2cf   : > { %v5631_v58 = vadd.f32 %v18752_v61, %v5592_v38  ;;  %v6519_v25 = vrot.slane %v6517_v18, 5  ;;  %v18921_v37 = vrot.slane %v6570_v13, 4  ;;  %v14043_v5 = vcombine.low %v6293_v27, %v18907_v33  ;;  %v6263_v17 = vld [vmem:[#allocation3 + $0xbc] sm:$0x1] }
 0x2d0   : > { %v6496_v35 = vsel %vm15995_vm13, %v6491_v29, %v6495_v16  ;;  %v6510_v49 = vsel %vm15995_vm13, %v6505_v28, %v6509_v44  ;;  %v6514_v3 = vor.u32 %v6513_v30, %v6509_v44  ;;  %v18928_v36 = vrot.slane %v6573_v19, 5 }
 0x2d1   : > { %v14471_v20 = vpack.c.bf16 %v5631_v58, %v5631_v58  ;;  %v14003_v9 = vcombine.low %v6486_v39, %v6496_v35  ;;  %15246 = vmatprep.mubr.msk.bf16.mxu0 %vm6793_vm3, %v14043_v5  ;;  %v6528_v61 = vor.u32 %v18880_v62, %v18872_v50  ;;  %v6531_v48 = vshll.u32 %v18863_v42, 16  ;;  %v6297_v39 = vld [vmem:[#allocation3 + $0x90] sm:$0xf]  ;;  %v18957_v5 = vld [vmem:[#allocation3 + $0x94] sm:$0xf] }
 0x2d2   : > { %v6515_v56 = vrot.slane %v6514_v3, 4  ;;  %v6537_v32 = vrot.slane %v6535_v47, 4  ;;  %v6541_v57 = vshll.u32 %v18917_v26, 16  ;;  %v6594_v7 = vshrl.u32 %v6295_v52, 16  ;;  %v18959_v35 = vld [vmem:[#allocation3 + $0x80] sm:$0x1] }
 0x2d3   : > { %v6086_v0 = vshrl.u32 %v14471_v20, 16  ;;  %v6089_v4 = vshll.u32 %v14471_v20, 16  ;;  %15198 = vmatprep.mubr.msk.bf16.mxu1 %vm6793_vm3, %v14003_v9  ;;  %v6529_v34 = vrot.slane %v6528_v61, 4  ;;  %v6533_v51 = vrot.slane %v6531_v48, 5  ;;  %v6299_v48 = vld [vmem:[#allocation3 + $0x9c] sm:$0xf] }
 0x2d4   : > { %v6520_v63 = vsel %vm15995_vm13, %v6515_v56, %v6519_v25  ;;  %v6543_v16 = vrot.slane %v6541_v57, 5  ;;  %v18940_v50 = vrot.slane %v6594_v7, 4  ;;  %v6597_v62 = vshll.u32 %v6295_v52, 16  ;;  %v18974_v56 = vld [vmem:[#allocation3 + $0xa0] sm:$0xf] }
 0x2d5   : > { %v6088_v11 = vrot.slane %v6086_v0, 7  ;;  %v14004_v47 = vcombine.low %v6510_v49, %v6520_v63  ;;  %v6534_v27 = vsel %vm15995_vm13, %v6529_v34, %v6533_v51  ;;  %v6538_v54 = vor.u32 %v6537_v32, %v6533_v51 }
 0x2d6   : > { %v18946_v23 = vrot.slane %v6597_v62, 5  ;;  %v6607_v30 = vshrl.u32 %v18936_v60, 16  ;;  %v14044_v38 = vcombine.low %v6295_v52, %v18936_v60  ;;  %v6552_v28 = vor.u32 %v6551_v15, %v18903_v45 }
 0x2d7   : > { %v6091_v18 = vor.u32 %v6089_v4, %v6088_v11  ;;  %v6093_v13 = vrot.slane %v6088_v11, 4  ;;  %15199 = vmatmul.mubr.msk.bf16.gmra.mxu1 %vm6793_vm3, %v14004_v47  ;;  %v6539_v29 = vrot.slane %v6538_v54, 4  ;;  %v6555_v44 = vshll.u32 %v18882_v24, 16 }
 0x2d8   : > { %15247 = vmatmul.mubr.msk.bf16.gmra.mxu0 %vm6793_vm3, %v14044_v38  ;;  %v6553_v19 = vrot.slane %v6552_v28, 4  ;;  %v6561_v58 = vrot.slane %v6559_v55, 4  ;;  %v6565_v25 = vshll.u32 %v18944_v53, 16  ;;  %v6618_v52 = vshrl.u32 %v6297_v39, 16 }
 0x2d9   : > { %v6092_v45 = vsel %vm16009_vm15, %v6084_v12, %v6091_v18  ;;  %v6264_v15 = vsel %vm17888_vm0, %v6093_v13, %v6263_v17  ;;  %v6544_v49 = vsel %vm15995_vm13, %v6539_v29, %v6543_v16  ;;  %v6557_v3 = vrot.slane %v6555_v44, 5  ;;  %v18984_v16 = vld [vmem:[#allocation3 + $0x8c] sm:$0x1] }
 0x2da   : > { %6262 = vst.msk [vmem:[#allocation3 + $0xb8] sm:$0xf] %vm5634_vm6, %v6092_v45  ;;  %6265 = vst [vmem:[#allocation3 + $0xbc] sm:$0x1] %v6264_v15  ;;  %v14005_v55 = vcombine.low %v6534_v27, %v6544_v49  ;;  %v6567_v20 = vrot.slane %v6565_v25, 5  ;;  %v6620_v9 = vrot.slane %v6618_v52, 4  ;;  %v14045_v1 = vcombine.low %v6297_v39, %v18957_v5 }
 0x2db   : > { %v6621_v61 = vshll.u32 %v6297_v39, 16  ;;  %v6558_v2 = vsel %vm15995_vm13, %v6553_v19, %v6557_v3  ;;  %v6562_v41 = vor.u32 %v6561_v58, %v6557_v3  ;;  %v6631_v12 = vshrl.u32 %v18957_v5, 16  ;;  %v18990_v17 = vld [vmem:[#allocation3 + $0xac] sm:$0xf]  ;;  %v18999_v25 = vld [vmem:[#allocation3 + $0x98] sm:$0x1] }
 0x2dc   : > { %15202 = vmatprep.mubr.msk.bf16.mxu1 %vm6793_vm3, %v14005_v55  ;;  %v6576_v57 = vor.u32 %v18928_v36, %v18921_v37  ;;  %v6579_v7 = vshll.u32 %v18907_v33, 16  ;;  %v6585_v0 = vrot.slane %v6583_v22, 4  ;;  %15250 = vmatprep.mubr.msk.bf16.mxu0 %vm6793_vm3, %v14045_v1  ;;  %v6589_v34 = vshll.u32 %v18959_v35, 16  ;;  %v6301_v36 = vld [vmem:[#allocation3 + $0xa8] sm:$0xf] }
 0x2dd   : > { %v6623_v32 = vrot.slane %v6621_v61, 5  ;;  %v6563_v4 = vrot.slane %v6562_v41, 4  ;;  %v6642_v51 = vshrl.u32 %v6299_v48, 16  ;;  %v6645_v63 = vshll.u32 %v6299_v48, 16  ;;  %v6303_v3 = vld [vmem:[#allocation3 + $0xb4] sm:$0xf] }
 0x2de   : > { %v6577_v62 = vrot.slane %v6576_v57, 4  ;;  %v6581_v11 = vrot.slane %v6579_v7, 5  ;;  %v6655_v47 = vshrl.u32 %v18974_v56, 16  ;;  %v14046_v37 = vcombine.low %v6299_v48, %v18974_v56 }
 0x2df   : > { %v6568_v27 = vsel %vm15995_vm13, %v6563_v4, %v6567_v20  ;;  %v6591_v22 = vrot.slane %v6589_v34, 5  ;;  %v6644_v54 = vrot.slane %v6642_v51, 4  ;;  %v6647_v39 = vrot.slane %v6645_v63, 5 }
 0x2e0   : > { %v14006_v38 = vcombine.low %v6558_v2, %v6568_v27  ;;  %v6582_v28 = vsel %vm15995_vm13, %v6577_v62, %v6581_v11  ;;  %v6586_v18 = vor.u32 %v6585_v0, %v6581_v11  ;;  %15251 = vmatmul.mubr.msk.bf16.gmra.mxu0 %vm6793_vm3, %v14046_v37  ;;  %v6600_v13 = vor.u32 %v18946_v23, %v18940_v50  ;;  %v19016_v37 = vld [vmem:[#allocation3 + $0xa4] sm:$0x1] }
 0x2e1   : > { %v6603_v29 = vshll.u32 %v18936_v60, 16  ;;  %v6609_v44 = vrot.slane %v6607_v30, 4  ;;  %v6613_v19 = vshll.u32 %v18984_v16, 16  ;;  %v6666_v58 = vshrl.u32 %v6301_v36, 16  ;;  %v19007_v41 = vld [vmem:[#allocation3 + $0xb8] sm:$0xf] }
 0x2e2   : > { %15203 = vmatmul.mubr.msk.bf16.gmra.mxu1 %vm6793_vm3, %v14006_v38  ;;  %v6587_v52 = vrot.slane %v6586_v18, 4  ;;  %v6601_v45 = vrot.slane %v6600_v13, 4  ;;  %v6669_v15 = vshll.u32 %v6301_v36, 16  ;;  %v6679_v49 = vshrl.u32 %v18990_v17, 16  ;;  %v15674_v38 = vld [vmem:[#allocation3 + $0xc] sm:$0xff]  }
 0x2e3   : > { %v6605_v55 = vrot.slane %v6603_v29, 5  ;;  %v6615_v20 = vrot.slane %v6613_v19, 5  ;;  %v6668_v61 = vrot.slane %v6666_v58, 4  ;;  %v14047_v50 = vcombine.low %v6301_v36, %v18990_v17 }
 0x2e4   : > { %v6592_v23 = vsel %vm15995_vm13, %v6587_v52, %v6591_v22  ;;  %v6671_v30 = vrot.slane %v6669_v15, 5  ;;  %v6624_v48 = vor.u32 %v6623_v32, %v6620_v9  ;;  %v6627_v2 = vshll.u32 %v18957_v5, 16 }
 0x2e5   : > { %v14007_v1 = vcombine.low %v6582_v28, %v6592_v23  ;;  %v6606_v57 = vsel %vm15995_vm13, %v6601_v45, %v6605_v55  ;;  %v6610_v7 = vor.u32 %v6609_v44, %v6605_v55  ;;  %15254 = vmatprep.mubr.msk.bf16.mxu0 %vm6793_vm3, %v14047_v50  ;;  %v6633_v0 = vrot.slane %v6631_v12, 4  ;;  %v19024_v44 = vld [vmem:[#allocation3 + $0xb0] sm:$0x1]  ;;  %v7316_v50 = vld [vmem:[#allocation3] sm:$0xe] }
 0x2e6   : > { %v6625_v4 = vrot.slane %v6624_v48, 4  ;;  %v6629_v34 = vrot.slane %v6627_v2, 5  ;;  %v6637_v51 = vshll.u32 %v18999_v25, 16  ;;  %v6690_v63 = vshrl.u32 %v6303_v3, 16 }
 0x2e7   : > { %15206 = vmatprep.mubr.msk.bf16.mxu1 %vm6793_vm3, %v14007_v1  ;;  %v6611_v9 = vrot.slane %v6610_v7, 4  ;;  %v6693_v32 = vshll.u32 %v6303_v3, 16  ;;  %v6703_v62 = vshrl.u32 %v19007_v41, 16  ;;  %v14048_v11 = vcombine.low %v6303_v3, %v19007_v41 }
 0x2e8   : > { %v6630_v36 = vsel %vm15995_vm13, %v6625_v4, %v6629_v34  ;;  %v6634_v27 = vor.u32 %v6633_v0, %v6629_v34  ;;  %v6639_v12 = vrot.slane %v6637_v51, 5  ;;  %v6692_v22 = vrot.slane %v6690_v63, 4  ;;  %v15676_v51 = vld [vmem:[#allocation3 + $0x18] sm:$0xff]  }
 0x2e9   : > { %v6616_v28 = vsel %vm15995_vm13, %v6611_v9, %v6615_v20  ;;  %v6695_v18 = vrot.slane %v6693_v32, 5  ;;  %15255 = vmatmul.mubr.msk.bf16.gmra.mxu0 %vm6793_vm3, %v14048_v11  ;;  %v6648_v13 = vor.u32 %v6647_v39, %v6644_v54  ;;  %v6651_v29 = vshll.u32 %v18974_v56, 16  ;;  %v15694_v32 = vld [vmem:[%s21817_s5 + $0xb0] sm:$0xff]  }
 0x2ea   : > { %v14008_v19 = vcombine.low %v6606_v57, %v6616_v28  ;;  %v6635_v58 = vrot.slane %v6634_v27, 4  ;;  %v6657_v52 = vrot.slane %v6655_v47, 4  ;;  %v6661_v45 = vshll.u32 %v19016_v37, 16  ;;  %15306 = vmatprep.mubr.msk.bf16.mxu0 %vm6793_vm3, %v15674_v38  ;;  %v19033_v47 = vld [vmem:[#allocation3 + $0xbc] sm:$0x1] }
 0x2eb   : > { %v6649_v15 = vrot.slane %v6648_v13, 4  ;;  %v6653_v3 = vrot.slane %v6651_v29, 5  ;;  %v6672_v55 = vor.u32 %v6671_v30, %v6668_v61  ;;  %v6675_v20 = vshll.u32 %v18990_v17, 16  ;;  %v7317_v38 = vld [vmem:[#allocation3 + $0xc] sm:$0xe] }
 0x2ec   : > { %15207 = vmatmul.mubr.msk.bf16.gmra.mxu1 %vm6793_vm3, %v14008_v19  ;;  %v6640_v54 = vsel %vm15995_vm13, %v6635_v58, %v6639_v12  ;;  %v6663_v39 = vrot.slane %v6661_v45, 5  ;;  %v6681_v23 = vrot.slane %v6679_v49, 4  ;;  %v6685_v48 = vshll.u32 %v19024_v44, 16  ;;  %v15743_v29 = vld [vmem:[#allocation3 + $0x8] sm:$0x1] }
 0x2ed   : > { %v14009_v2 = vcombine.low %v6630_v36, %v6640_v54  ;;  %v6654_v1 = vsel %vm15995_vm13, %v6649_v15, %v6653_v3  ;;  %v6658_v57 = vor.u32 %v6657_v52, %v6653_v3  ;;  %v6673_v61 = vrot.slane %v6672_v55, 4  ;;  %v7318_v58 = vld [vmem:[#allocation3 + $0x18] sm:$0xe] }
 0x2ee   : > { %v6677_v30 = vrot.slane %v6675_v20, 5  ;;  %v6687_v7 = vrot.slane %v6685_v48, 5  ;;  %v6696_v0 = vor.u32 %v6695_v18, %v6692_v22  ;;  %v6699_v4 = vshll.u32 %v19007_v41, 16  ;;  %v15677_v22 = vld [vmem:[#allocation3 + $0x24] sm:$0xff]   ;;  %v15697_v48 = vld [vmem:[%s21817_s5 + $0xa8] sm:$0xff]  }
 0x2ef   : > { %15210 = vmatprep.mubr.msk.bf16.mxu1 %vm6793_vm3, %v14009_v2  ;;  %v6659_v34 = vrot.slane %v6658_v57, 4  ;;  %v6705_v49 = vrot.slane %v6703_v62, 4  ;;  %v6709_v63 = vshll.u32 %v19033_v47, 16  ;;  %v14069_v9 = vrot.slane %v7316_v50, 9  ;;  %v15742_v18 = vld [vmem:[#allocation3 + $0x4] sm:$0xf] }
 0x2f0   : > { %v6678_v11 = vsel %vm15995_vm13, %v6673_v61, %v6677_v30  ;;  %v6682_v36 = vor.u32 %v6681_v23, %v6677_v30  ;;  %v6697_v27 = vrot.slane %v6696_v0, 4  ;;  %v6701_v12 = vrot.slane %v6699_v4, 5  ;;  %v7319_v30 = vld [vmem:[#allocation3 + $0x24] sm:$0xe] }
 0x2f1   : > { %v6664_v28 = vsel %vm15995_vm13, %v6659_v34, %v6663_v39  ;;  %15307 = vmatmul.mubr.msk.bf16.vlgmr.msra.gmra.mxu0 %vm6793_vm3, %v15676_v51  ;;  %v6711_v62 = vrot.slane %v6709_v63, 5  ;;  %v7366_v13 = vrot.slane %v15742_v18, 5  ;;  %v7369_v19 = vrot.slane %v15743_v29, 5  ;;  %v15744_v39 = vld [vmem:[#allocation3 + $0x10] sm:$0xf]  ;;  %v15698_v29 = vld [vmem:[%s21817_s5 + $0xa0] sm:$0xff]  }
 0x2f2   : > { %v14010_v52 = vcombine.low %v6654_v1, %v6664_v28  ;;  %v6683_v45 = vrot.slane %v6682_v36, 4  ;;  %v6702_v15 = vsel %vm15995_vm13, %v6697_v27, %v6701_v12  ;;  %v6706_v3 = vor.u32 %v6705_v49, %v6701_v12  ;;  %15310 = vmatprep.mubr.msk.bf16.mxu0 %vm6793_vm3, %v15677_v22  ;;  %15379 = vmatpush3.bf16.msra.mxu0 %v18764_v14  ;;  %v15745_v14 = vld [vmem:[#allocation3 + $0x14] sm:$0x1]  ;;  %v15747_v36 = vld [vmem:[#allocation3 + $0x20] sm:$0x1] }
 0x2f3   : > { %v19054_v20 = vsel %vm16408_vm11, %v14069_v9, %v7366_v13  ;;  %v7368_v50 = vrot.slane %v7366_v13, 4  ;;  %v14070_v54 = vrot.slane %v7317_v38, 9  ;;  %v7373_v23 = vrot.slane %v15744_v39, 5  ;;  %15380 = vmatprep.subr.bf16.mxu0 %v15694_v32  ;;  %v7320_v12 = vld [vmem:[#allocation3 + $0x30] sm:$0xe] }
 0x2f4   : > { %15211 = vmatmul.mubr.msk.bf16.gmra.mxu1 %vm6793_vm3, %v14010_v52  ;;  %v6688_v2 = vsel %vm15995_vm13, %v6683_v45, %v6687_v7  ;;  %v6707_v1 = vrot.slane %v6706_v3, 4  ;;  %v7376_v57 = vrot.slane %v15745_v14, 5  ;;  %v14071_v61 = vrot.slane %v7318_v58, 9  ;;  %v15746_v7 = vld [vmem:[#allocation3 + $0x1c] sm:$0xf]  ;;  %v15678_v22 = vld [vmem:[#allocation3 + $0x30] sm:$0xff]  }
 0x2f5   : > { %v14011_v0 = vcombine.low %v6678_v11, %v6688_v2  ;;  %v7370_v4 = vsel %vm16408_vm11, %v7368_v50, %v7369_v19  ;;  %v19066_v34 = vsel %vm16408_vm11, %v14070_v54, %v7373_v23  ;;  %v7375_v51 = vrot.slane %v7373_v23, 4  ;;  %v15748_v18 = vld [vmem:[#allocation3 + $0x28] sm:$0xf]  ;;  %v15680_v19 = vld [vmem:[#allocation3 + $0x3c] sm:$0xff]   ;;  %v15749_v50 = vld [vmem:[#allocation3 + $0x34] sm:$0xf] }
 0x2f6   : > { %v6712_v49 = vsel %vm15995_vm13, %v6707_v1, %v6711_v62  ;;  %v14085_v63 = vcombine.low %v19054_v20, %v7370_v4  ;;  %v7380_v9 = vrot.slane %v15746_v7, 5  ;;  %v7383_v27 = vrot.slane %v15747_v36, 5  ;;  %15381 = vmatpush3.bf16.msra.mxu0 %v15694_v32  ;;  %v7321_v62 = vld [vmem:[#allocation3 + $0x3c] sm:$0xe]  ;;  %v7322_v1 = vld [vmem:[#allocation3 + $0x48] sm:$0xe] }
 0x2f7   : > { %15214 = vmatprep.mubr.msk.bf16.mxu1 %vm6793_vm3, %v14011_v0  ;;  %v14012_v11 = vcombine.low %v6702_v15, %v6712_v49  ;;  %v19074_v38 = vsel %vm16408_vm11, %v7375_v51, %v7376_v57  ;;  %v14072_v28 = vrot.slane %v7319_v30, 9  ;;  %v7387_v13 = vrot.slane %v15748_v18, 5  ;;  %15382 = vmatprep.subr.bf16.mxu0 %v15697_v48  ;;  %v7323_v0 = vld [vmem:[#allocation3 + $0x54] sm:$0xe] }
 0x2f8   : > { %v14086_v32 = vcombine.low %v19066_v34, %v19074_v38  ;;  %v19083_v58 = vsel %vm16408_vm11, %v14071_v61, %v7380_v9  ;;  %v7382_v52 = vrot.slane %v7380_v9, 4  ;;  %v7390_v45 = vrot.slane %v18744_v10, 5 }
 0x2f9   : > { %15311 = vmatmul.mubr.msk.bf16.gmra.mxu0 %vm6793_vm3, %v15678_v22  ;;  %v19089_v15 = vsel %vm16408_vm11, %v14072_v28, %v7387_v13  ;;  %v7389_v3 = vrot.slane %v7387_v13, 4  ;;  %v14073_v20 = vrot.slane %v7320_v12, 9  ;;  %v7394_v54 = vrot.slane %v15749_v50, 5  ;;  %v7325_v22 = vld [vmem:[#allocation3 + $0x6c] sm:$0xe]  ;;  %v15684_v50 = vld [vmem:[%s21817_s5 + $0x90] sm:$0xff]  }
 0x2fa   : > { %15314 = vmatprep.mubr.msk.bf16.mxu0 %vm6793_vm3, %v15680_v19  ;;  %v19094_v39 = vsel %vm16408_vm11, %v7382_v52, %v7383_v27  ;;  %v7397_v23 = vrot.slane %v18793_v46, 5  ;;  %v14074_v2 = vrot.slane %v7321_v62, 9  ;;  %v7401_v10 = vrot.slane %v18711_v31, 5  ;;  %15383 = vmatpush3.bf16.msra.mxu0 %v15697_v48  ;;  %v19111_v31 = vld [vmem:[%s21817_s5 + $0xf8] sm:$0xff]   ;;  %v15681_v28 = vld [vmem:[#allocation3 + $0x48] sm:$0xff]   ;;  %v15682_v62 = vld [vmem:[#allocation3 + $0x54] sm:$0xff]  }
 0x2fb   : > { %v14087_v14 = vcombine.low %v19083_v58, %v19094_v39  ;;  %v19102_v57 = vsel %vm16408_vm11, %v7389_v3, %v7390_v45  ;;  %v19106_v61 = vsel %vm16408_vm11, %v14073_v20, %v7394_v54  ;;  %v7396_v30 = vrot.slane %v7394_v54, 4  ;;  %15384 = vmatprep.subr.bf16.mxu0 %v15698_v29  ;;  %v7324_v27 = vld [vmem:[#allocation3 + $0x60] sm:$0xe]  ;;  %v7326_v20 = vld [vmem:[#allocation3 + $0x78] sm:$0xe] }
 0x2fc   : > { %15215 = vmatmul.mubr.msk.bf16.gmra.mxu1 %vm6793_vm3, %v14012_v11  ;;  %v14088_v46 = vcombine.low %v19089_v15, %v19102_v57  ;;  %v19118_v48 = vsel %vm16408_vm11, %v14074_v2, %v7401_v10  ;;  %v7403_v4 = vrot.slane %v7401_v10, 4  ;;  %v7404_v51 = vrot.slane %v18835_v6, 5 }
 0x2fd   : > { %15266 = vmatprep.mubr.msk.bf16.mxu1 %vm6793_vm3, %v14085_v63  ;;  %v19124_v49 = vsel %vm16408_vm11, %v7396_v30, %v7397_v23  ;;  %v14075_v7 = vrot.slane %v7322_v1, 9  ;;  %v7408_v9 = vrot.slane %v18778_v59, 5  ;;  %v7411_v36 = vrot.slane %v18874_v43, 5 }
 0x2fe   : > { %v14089_v12 = vcombine.low %v19106_v61, %v19124_v49  ;;  %v19132_v11 = vsel %vm16408_vm11, %v7403_v4, %v7404_v51  ;;  %v14076_v6 = vrot.slane %v7323_v0, 9  ;;  %v7415_v63 = vrot.slane %v18821_v40, 5  ;;  %15385 = vmatpush3.bf16.msra.mxu0 %v15698_v29 }
 0x2ff   : > { %v14090_v18 = vcombine.low %v19118_v48, %v19132_v11  ;;  %v19139_v59 = vsel %vm16408_vm11, %v14075_v7, %v7408_v9  ;;  %v7410_v43 = vrot.slane %v7408_v9, 4  ;;  %v7418_v13 = vrot.slane %v18900_v21, 5  ;;  %15458 = vmatprep.subr.bf16.mxu0 %v19111_v31  ;;  %v7328_v7 = vld [vmem:[#allocation3 + $0x90] sm:$0xe]  ;;  %v15750_v9 = vld [vmem:[%s21817_s5 + $0x98] sm:$0xff]  }
 0x300   : > { %v19145_v19 = vsel %vm16408_vm11, %v14076_v6, %v7415_v63  ;;  %v7417_v40 = vrot.slane %v7415_v63, 4  ;;  %v14077_v29 = vrot.slane %v7324_v27, 9  ;;  %v7422_v58 = vrot.slane %v18863_v42, 5  ;;  %v8935_v63 = vld [vmem:[#allocation3 + $0xc] sm:$0xe] }
 0x301   : > { %15315 = vmatmul.mubr.msk.bf16.gmra.mxu0 %vm6793_vm3, %v15681_v28  ;;  %v19151_v52 = vsel %vm16408_vm11, %v7410_v43, %v7411_v36  ;;  %v7425_v45 = vrot.slane %v18917_v26, 5  ;;  %v14078_v21 = vrot.slane %v7325_v22, 9  ;;  %v7429_v3 = vrot.slane %v18882_v24, 5  ;;  %v7327_v24 = vld [vmem:[#allocation3 + $0x84] sm:$0xe] }
 0x302   : > { %15318 = vmatprep.mubr.msk.bf16.mxu0 %vm6793_vm3, %v15682_v62  ;;  %v14091_v42 = vcombine.low %v19139_v59, %v19151_v52  ;;  %v19163_v54 = vsel %vm16408_vm11, %v7417_v40, %v7418_v13  ;;  %v19167_v26 = vsel %vm16408_vm11, %v14077_v29, %v7422_v58  ;;  %v7424_v39 = vrot.slane %v7422_v58, 4  ;;  %v15683_v22 = vld [vmem:[#allocation3 + $0x60] sm:$0xff]   ;;  %v19212_v62 = vld [vmem:[#allocation3 + $0x10] sm:$0xf] }
 0x303   : > { %v14092_v23 = vcombine.low %v19145_v19, %v19163_v54  ;;  %v19173_v2 = vsel %vm16408_vm11, %v14078_v21, %v7429_v3  ;;  %v7431_v10 = vrot.slane %v7429_v3, 4  ;;  %v7432_v1 = vrot.slane %v18944_v53, 5  ;;  %v15685_v40 = vld [vmem:[#allocation3 + $0x6c] sm:$0xff]   ;;  %v19220_v21 = vld [vmem:[#allocation3 + $0x14] sm:$0x1] }
 0x304   : > { %15267 = vmatmul.mubr.msk.bf16.vlgmr.msra.gmra.mxu1 %vm6793_vm3, %v14086_v32  ;;  %v19182_v30 = vsel %vm16408_vm11, %v7424_v39, %v7425_v45  ;;  %v14079_v0 = vrot.slane %v7326_v20, 9  ;;  %v7436_v4 = vrot.slane %v18907_v33, 5  ;;  %v7439_v51 = vrot.slane %v18959_v35, 5  ;;  %v7329_v32 = vld [vmem:[#allocation3 + $0x9c] sm:$0xe]  ;;  %v15689_v35 = vld [vmem:[%s21817_s5 + $0x88] sm:$0xff]  }
 0x305   : > { %15339 = vmatpush3.bf16.msra.mxu1 %v15750_v9  ;;  %15270 = vmatprep.mubr.msk.bf16.mxu1 %vm6793_vm3, %v14087_v14  ;;  %v14093_v53 = vcombine.low %v19167_v26, %v19182_v30  ;;  %v19194_v34 = vsel %vm16408_vm11, %v7431_v10, %v7432_v1  ;;  %v14080_v38 = vrot.slane %v7327_v24, 9  ;;  %v7443_v33 = vrot.slane %v18936_v60, 5  ;;  %v7330_v39 = vld [vmem:[#allocation3 + $0xa8] sm:$0xe] }
 0x306   : > { %15340 = vmatprep.subr.bf16.mxu1 %v15684_v50  ;;  %v14094_v36 = vcombine.low %v19173_v2, %v19194_v34  ;;  %v19204_v14 = vsel %vm16408_vm11, %v14079_v0, %v7436_v4  ;;  %v7438_v27 = vrot.slane %v7436_v4, 4  ;;  %v7446_v6 = vrot.slane %v18984_v16, 5  ;;  %v8936_v0 = vld [vmem:[#allocation3 + $0x18] sm:$0xe]  ;;  %v8941_v34 = vld [vmem:[#allocation3 + $0x54] sm:$0xe] }
 0x307   : > { %v19209_v60 = vsel %vm16408_vm11, %v14080_v38, %v7443_v33  ;;  %v7445_v28 = vrot.slane %v7443_v33, 4  ;;  %v14081_v43 = vrot.slane %v7328_v7, 9  ;;  %v7450_v13 = vrot.slane %v18957_v5, 5  ;;  %v19250_v38 = vld [vmem:[#allocation3 + $0x1c] sm:$0xf] }
 0x308   : > { %v19216_v29 = vsel %vm16408_vm11, %v7438_v27, %v7439_v51  ;;  %v7453_v58 = vrot.slane %v18999_v25, 5  ;;  %v14082_v16 = vrot.slane %v7329_v32, 9  ;;  %v7457_v45 = vrot.slane %v18974_v56, 5 }
 0x309   : > { %15319 = vmatmul.mubr.msk.bf16.gmra.mxu0 %vm6793_vm3, %v15683_v22  ;;  %15341 = vmatpush3.bf16.msra.mxu1 %v15684_v50  ;;  %v14095_v5 = vcombine.low %v19204_v14, %v19216_v29  ;;  %v19227_v3 = vsel %vm16408_vm11, %v7445_v28, %v7446_v6  ;;  %v19231_v20 = vsel %vm16408_vm11, %v14081_v43, %v7450_v13  ;;  %v7452_v25 = vrot.slane %v7450_v13, 4  ;;  %v15696_v50 = vld [vmem:[%s21817_s5 + $0x80] sm:$0xff]   ;;  %v19263_v6 = vld [vmem:[#allocation3 + $0x20] sm:$0x1]  ;;  %v15686_v13 = vld [vmem:[#allocation3 + $0x78] sm:$0xff]  }
 0x30a   : > { %15322 = vmatprep.mubr.msk.bf16.mxu0 %vm6793_vm3, %v15685_v40  ;;  %15342 = vmatprep.subr.bf16.mxu1 %v15689_v35  ;;  %v14096_v56 = vcombine.low %v19209_v60, %v19227_v3  ;;  %v19241_v24 = vsel %vm16408_vm11, %v14082_v16, %v7457_v45  ;;  %v7459_v10 = vrot.slane %v7457_v45, 4  ;;  %v7460_v1 = vrot.slane %v19016_v37, 5  ;;  %v19286_v43 = vld [vmem:[%s21817_s5 + $0xd8] sm:$0xff]   ;;  %v19294_v45 = vld [vmem:[#allocation3 + $0x2c] sm:$0x1] }
 0x30b   : > { %v19246_v4 = vsel %vm16408_vm11, %v7452_v25, %v7453_v58  ;;  %v14193_v51 = vrot.slane %v8935_v63, 9  ;;  %v9001_v7 = vrot.slane %v19212_v62, 5  ;;  %v9004_v9 = vrot.slane %v19220_v21, 5  ;;  %v7331_v63 = vld [vmem:[#allocation3 + $0xb4] sm:$0xe]  ;;  %v15687_v25 = vld [vmem:[#allocation3 + $0x84] sm:$0xff]  }
 0x30c   : > { %15271 = vmatmul.mubr.msk.bf16.gmra.mxu1 %vm6793_vm3, %v14088_v46  ;;  %v14097_v37 = vcombine.low %v19231_v20, %v19246_v4  ;;  %v19260_v33 = vsel %vm16408_vm11, %v7459_v10, %v7460_v1  ;;  %v14083_v32 = vrot.slane %v7330_v39, 9  ;;  %v7464_v27 = vrot.slane %v18990_v17, 5  ;;  %v8937_v17 = vld [vmem:[#allocation3 + $0x24] sm:$0xe]  ;;  %v19435_v14 = vld [vmem:[#allocation3 + $0x58] sm:$0xf] }
 0x30d   : > { %15274 = vmatprep.mubr.msk.bf16.mxu1 %vm6793_vm3, %v14089_v12  ;;  %15343 = vmatpush3.bf16.msra.mxu1 %v15689_v35  ;;  %v19273_v57 = vsel %vm16408_vm11, %v14193_v51, %v9001_v7  ;;  %v9003_v46 = vrot.slane %v9001_v7, 4  ;;  %v7467_v22 = vrot.slane %v19024_v44, 5  ;;  %v14194_v49 = vrot.slane %v8936_v0, 9  ;;  %v19281_v35 = vld [vmem:[#allocation3 + $0x28] sm:$0xf]  ;;  %v15695_v29 = vld [vmem:[#allocation3 + $0xc0] sm:$0xff]  }
 0x30e   : > { %15344 = vmatprep.subr.bf16.mxu1 %v15696_v50  ;;  %v19278_v28 = vsel %vm16408_vm11, %v14083_v32, %v7464_v27  ;;  %v7466_v61 = vrot.slane %v7464_v27, 4  ;;  %v9008_v12 = vrot.slane %v19250_v38, 5  ;;  %v9011_v40 = vrot.slane %v19263_v6, 5  ;;  %v8182_v51 = vld [vmem:[#allocation3 + $0xc] sm:$0xf] }
 0x30f   : > { %v19290_v44 = vsel %vm16408_vm11, %v9003_v46, %v9004_v9  ;;  %v14084_v58 = vrot.slane %v7331_v63, 9  ;;  %v7471_v16 = vrot.slane %v19007_v41, 5  ;;  %v7474_v32 = vrot.slane %v19033_v47, 5 }
 0x310   : > { %v14209_v39 = vcombine.low %v19273_v57, %v19290_v44  ;;  %v19300_v10 = vsel %vm16408_vm11, %v7466_v61, %v7467_v22  ;;  %v19304_v1 = vsel %vm16408_vm11, %v14194_v49, %v9008_v12  ;;  %v9010_v0 = vrot.slane %v9008_v12, 4  ;;  %v19328_v12 = vld [vmem:[#allocation3 + $0x34] sm:$0xf] }
 0x311   : > { %15323 = vmatmul.mubr.msk.bf16.gmra.mxu0 %vm6793_vm3, %v15686_v13  ;;  %15345 = vmatpush3.bf16.msra.mxu1 %v15696_v50  ;;  %v19311_v7 = vsel %vm16408_vm11, %v14084_v58, %v7471_v16  ;;  %v7473_v9 = vrot.slane %v7471_v16, 4  ;;  %v14195_v63 = vrot.slane %v8937_v17, 9  ;;  %v9015_v46 = vrot.slane %v19281_v35, 5  ;;  %v8938_v13 = vld [vmem:[#allocation3 + $0x30] sm:$0xe] }
 0x312   : > { %15326 = vmatprep.mubr.msk.bf16.mxu0 %vm6793_vm3, %v15687_v25  ;;  %v19317_v27 = vsel %vm16408_vm11, %v9010_v0, %v9011_v40  ;;  %v9018_v50 = vrot.slane %v19294_v45, 5  ;;  %15418 = vmatprep.subr.bf16.mxu1 %v19286_v43  ;;  %v8231_v47 = vshrl.u32 %v8182_v51, 16  ;;  %v8234_v49 = vshll.u32 %v8182_v51, 16  ;;  %v8185_v25 = vld [vmem:[#allocation3 + $0x18] sm:$0xf]  ;;  %v15688_v17 = vld [vmem:[#allocation3 + $0x90] sm:$0xff]  }
 0x313   : > { %v14210_v22 = vcombine.low %v19304_v1, %v19317_v27  ;;  %v19326_v61 = vsel %vm16408_vm11, %v7473_v9, %v7474_v32  ;;  %v19338_v40 = vsel %vm16408_vm11, %v14195_v63, %v9015_v46  ;;  %v9017_v58 = vrot.slane %v9015_v46, 4  ;;  %v19347_v51 = vld [vmem:[#allocation3 + $0x38] sm:$0x1] }
 0x314   : > { %15275 = vmatmul.mubr.msk.bf16.gmra.mxu1 %vm6793_vm3, %v14090_v18  ;;  %v8240_v16 = vshll.u32 %v19212_v62, 16  ;;  %v8233_v0 = vrot.slane %v8231_v47, 4  ;;  %v8236_v48 = vrot.slane %v8234_v49, 5  ;;  %v8244_v11 = vshrl.u32 %v19212_v62, 16  ;;  %v15690_v62 = vld [vmem:[#allocation3 + $0x9c] sm:$0xff]  }
 0x315   : > { %15278 = vmatprep.mubr.msk.bf16.mxu1 %vm6793_vm3, %v14091_v42  ;;  %v8250_v18 = vshll.u32 %v19220_v21, 16  ;;  %v19351_v9 = vsel %vm16408_vm11, %v9017_v58, %v9018_v50  ;;  %v14196_v63 = vrot.slane %v8938_v13, 9  ;;  %v9022_v46 = vrot.slane %v19328_v12, 5 }
 0x316   : > { %v8242_v32 = vrot.slane %v8240_v16, 5  ;;  %v8237_v52 = vor.u32 %v8236_v48, %v8233_v0  ;;  %v8246_v42 = vrot.slane %v8244_v11, 4  ;;  %v9025_v50 = vrot.slane %v19347_v51, 5  ;;  %v8939_v16 = vld [vmem:[#allocation3 + $0x3c] sm:$0xe] }
 0x317   : > { %v8252_v47 = vrot.slane %v8250_v18, 5  ;;  %v19358_v21 = vsel %vm16408_vm11, %v14196_v63, %v9022_v46  ;;  %v9024_v49 = vrot.slane %v9022_v46, 4  ;;  %v8255_v58 = vshrl.u32 %v8185_v25, 16  ;;  %v19363_v0 = vld [vmem:[#allocation3 + $0x40] sm:$0xf] }
 0x318   : > { %v8238_v13 = vrot.slane %v8237_v52, 4  ;;  %v8247_v41 = vor.u32 %v8246_v42, %v8242_v32  ;;  %v8258_v15 = vshll.u32 %v8185_v25, 16  ;;  %v8264_v59 = vshll.u32 %v19250_v38, 16  ;;  %v19372_v46 = vld [vmem:[#allocation3 + $0x44] sm:$0x1] }
 0x319   : > { %15327 = vmatmul.mubr.msk.bf16.gmra.mxu0 %vm6793_vm3, %v15688_v17  ;;  %v19368_v48 = vsel %vm16408_vm11, %v9024_v49, %v9025_v50  ;;  %v8257_v11 = vrot.slane %v8255_v58, 4  ;;  %v8268_v18 = vshrl.u32 %v19250_v38, 16  ;;  %v8274_v63 = vshll.u32 %v19263_v6, 16 }
 0x31a   : > { %15330 = vmatprep.mubr.msk.bf16.mxu0 %vm6793_vm3, %v15690_v62  ;;  %v8243_v17 = vsel %vm15995_vm13, %v8238_v13, %v8242_v32  ;;  %v8248_v25 = vrot.slane %v8247_v41, 4  ;;  %v14212_v52 = vcombine.low %v19358_v21, %v19368_v48  ;;  %v8260_v42 = vrot.slane %v8258_v15, 5  ;;  %v8188_v62 = vld [vmem:[#allocation3 + $0x24] sm:$0xf]  ;;  %v8940_v13 = vld [vmem:[#allocation3 + $0x48] sm:$0xe] }
 0x31b   : > { %v8266_v49 = vrot.slane %v8264_v59, 5  ;;  %v8270_v38 = vrot.slane %v8268_v18, 4  ;;  %v8276_v50 = vrot.slane %v8274_v63, 5  ;;  %v14197_v6 = vrot.slane %v8939_v16, 9  ;;  %v15691_v16 = vld [vmem:[#allocation3 + $0xa8] sm:$0xff]  }
 0x31c   : > { %15279 = vmatmul.mubr.msk.bf16.gmra.mxu1 %vm6793_vm3, %v14092_v23  ;;  %v8253_v41 = vsel %vm15995_vm13, %v8248_v25, %v8252_v47  ;;  %v8261_v32 = vor.u32 %v8260_v42, %v8257_v11  ;;  %v9029_v15 = vrot.slane %v19363_v0, 5  ;;  %v9032_v58 = vrot.slane %v19372_v46, 5  ;;  %v19397_v47 = vld [vmem:[#allocation3 + $0x4c] sm:$0xf]  ;;  %v15693_v11 = vld [vmem:[#allocation3 + $0xb4] sm:$0xff]  }
 0x31d   : > { %15282 = vmatprep.mubr.msk.bf16.mxu1 %vm6793_vm3, %v14093_v53  ;;  %v19390_v19 = vcombine.low %v8243_v17, %v8253_v41  ;;  %v8271_v54 = vor.u32 %v8270_v38, %v8266_v49  ;;  %v8279_v23 = vshrl.u32 %v8188_v62, 16  ;;  %v8282_v59 = vshll.u32 %v8188_v62, 16 }
 0x31e   : > { %v8262_v18 = vrot.slane %v8261_v32, 4  ;;  %v19394_v26 = vsel %vm16408_vm11, %v14197_v6, %v9029_v15  ;;  %v9031_v30 = vrot.slane %v9029_v15, 4  ;;  %v8288_v53 = vshll.u32 %v19281_v35, 16  ;;  %v19408_v32 = vld [vmem:[#allocation3 + $0x50] sm:$0x1] }
 0x31f   : > { %v8272_v63 = vrot.slane %v8271_v54, 4  ;;  %v8281_v25 = vrot.slane %v8279_v23, 4  ;;  %v8284_v17 = vrot.slane %v8282_v59, 5  ;;  %v8292_v42 = vshrl.u32 %v19281_v35, 16  ;;  %v8191_v15 = vld [vmem:[#allocation3 + $0x30] sm:$0xf] }
 0x320   : > { %v8267_v62 = vsel %vm15995_vm13, %v8262_v18, %v8266_v49  ;;  %v19405_v38 = vsel %vm16408_vm11, %v9031_v30, %v9032_v58  ;;  %v8290_v6 = vrot.slane %v8288_v53, 5  ;;  %v8298_v41 = vshll.u32 %v19294_v45, 16 }
 0x321   : > { %15331 = vmatmul.mubr.msk.bf16.gmra.mxu0 %vm6793_vm3, %v15691_v16  ;;  %v8277_v35 = vsel %vm15995_vm13, %v8272_v63, %v8276_v50  ;;  %v14213_v54 = vcombine.low %v19394_v26, %v19405_v38  ;;  %v8285_v23 = vor.u32 %v8284_v17, %v8281_v25  ;;  %v8294_v49 = vrot.slane %v8292_v42, 4 }
 0x322   : > { %15334 = vmatprep.mubr.msk.bf16.mxu0 %vm6793_vm3, %v15693_v11  ;;  %v19415_v59 = vcombine.low %v8267_v62, %v8277_v35  ;;  %v8300_v58 = vrot.slane %v8298_v41, 5  ;;  %v14198_v16 = vrot.slane %v8940_v13, 9  ;;  %v9036_v18 = vrot.slane %v19397_v47, 5 }
 0x323   : > { %v8286_v45 = vrot.slane %v8285_v23, 4  ;;  %v8295_v30 = vor.u32 %v8294_v49, %v8290_v6  ;;  %v9039_v50 = vrot.slane %v19408_v32, 5  ;;  %v8303_v53 = vshrl.u32 %v8191_v15, 16  ;;  %v19442_v23 = vld [vmem:[#allocation3 + $0x5c] sm:$0x1] }
 0x324   : > { %15283 = vmatmul.mubr.msk.bf16.gmra.mxu1 %vm6793_vm3, %v14094_v36  ;;  %v19429_v13 = vsel %vm16408_vm11, %v14198_v16, %v9036_v18  ;;  %v9038_v11 = vrot.slane %v9036_v18, 4  ;;  %v8306_v63 = vshll.u32 %v8191_v15, 16  ;;  %v8312_v2 = vshll.u32 %v19328_v12, 16  ;;  %v8194_v36 = vld [vmem:[#allocation3 + $0x3c] sm:$0xf] }
 0x325   : > { %15286 = vmatprep.mubr.msk.bf16.mxu1 %vm6793_vm3, %v14095_v5  ;;  %v8291_v25 = vsel %vm15995_vm13, %v8286_v45, %v8290_v6  ;;  %v8296_v17 = vrot.slane %v8295_v30, 4  ;;  %v8305_v42 = vrot.slane %v8303_v53, 4  ;;  %v8316_v62 = vshrl.u32 %v19328_v12, 16 }
 0x326   : > { %v19439_v5 = vsel %vm16408_vm11, %v9038_v11, %v9039_v50  ;;  %v8308_v41 = vrot.slane %v8306_v63, 5  ;;  %v8314_v15 = vrot.slane %v8312_v2, 5  ;;  %v8322_v35 = vshll.u32 %v19347_v51, 16 }
 0x327   : > { %v8301_v6 = vsel %vm15995_vm13, %v8296_v17, %v8300_v58  ;;  %v14214_v49 = vcombine.low %v19429_v13, %v19439_v5  ;;  %v8318_v12 = vrot.slane %v8316_v62, 4  ;;  %v14199_v16 = vrot.slane %v8941_v34, 9  ;;  %v8942_v17 = vld [vmem:[#allocation3 + $0x60] sm:$0xe] }
 0x328   : > { %v19449_v18 = vcombine.low %v8291_v25, %v8301_v6  ;;  %v8309_v45 = vor.u32 %v8308_v41, %v8305_v42  ;;  %v8324_v30 = vrot.slane %v8322_v35, 5  ;;  %v9043_v50 = vrot.slane %v19435_v14, 5 }
 0x329   : > { %15335 = vmatmul.mubr.msk.bf16.gmra.mxu0 %vm6793_vm3, %v15695_v29  ;;  %v8319_v51 = vor.u32 %v8318_v12, %v8314_v15  ;;  %v9046_v58 = vrot.slane %v19442_v23, 5  ;;  %v8327_v53 = vshrl.u32 %v8194_v36, 16  ;;  %v8330_v11 = vshll.u32 %v8194_v36, 16  ;;  %v19467_v36 = vld [vmem:[#allocation3 + $0x64] sm:$0xf] }
 0x32a   : > { %15386 = vmatprep.mubr.msk.bf16.mxu0 %vm6793_vm3, %v14209_v39  ;;  %v8310_v63 = vrot.slane %v8309_v45, 4  ;;  %v19459_v2 = vsel %vm16408_vm11, %v14199_v16, %v9043_v50  ;;  %v9045_v34 = vrot.slane %v9043_v50, 4  ;;  %v8336_v25 = vshll.u32 %v19363_v0, 16  ;;  %v19480_v29 = vld [vmem:[#allocation3 + $0x68] sm:$0x1] }
 0x32b   : > { %v8320_v57 = vrot.slane %v8319_v51, 4  ;;  %v8329_v44 = vrot.slane %v8327_v53, 4  ;;  %v8332_v39 = vrot.slane %v8330_v11, 5  ;;  %v8340_v42 = vshrl.u32 %v19363_v0, 16  ;;  %v8197_v0 = vld [vmem:[#allocation3 + $0x48] sm:$0xf] }
 0x32c   : > { %15287 = vmatmul.mubr.msk.bf16.gmra.mxu1 %vm6793_vm3, %v14096_v56  ;;  %v8315_v62 = vsel %vm15995_vm13, %v8310_v63, %v8314_v15  ;;  %v19477_v60 = vsel %vm16408_vm11, %v9045_v34, %v9046_v58  ;;  %v8338_v3 = vrot.slane %v8336_v25, 5  ;;  %v8346_v56 = vshll.u32 %v19372_v46, 16  ;;  %v15703_v46 = vld [vmem:[%s21817_s5 + $0xf0] sm:$0xff]   ;;  %v8943_v63 = vld [vmem:[#allocation3 + $0x6c] sm:$0xe] }
 0x32d   : > { %15290 = vmatprep.mubr.msk.bf16.mxu1 %vm6793_vm3, %v14097_v37  ;;  %v8325_v41 = vsel %vm15995_vm13, %v8320_v57, %v8324_v30  ;;  %v14215_v20 = vcombine.low %v19459_v2, %v19477_v60  ;;  %v8333_v4 = vor.u32 %v8332_v39, %v8329_v44  ;;  %v8342_v37 = vrot.slane %v8340_v42, 4  ;;  %v8200_v34 = vld [vmem:[#allocation3 + $0x54] sm:$0xf]  ;;  %v19509_v57 = vld [vmem:[#allocation3 + $0x70] sm:$0xf] }
 0x32e   : > { %v19486_v35 = vcombine.low %v8315_v62, %v8325_v41  ;;  %v8348_v15 = vrot.slane %v8346_v56, 5  ;;  %v14200_v6 = vrot.slane %v8942_v17, 9  ;;  %v9050_v12 = vrot.slane %v19467_v36, 5  ;;  %v15705_v62 = vld [vmem:[%s21817_s5 + $0xe8] sm:$0xff]  }
 0x32f   : > { %v8334_v16 = vrot.slane %v8333_v4, 4  ;;  %v8343_v45 = vor.u32 %v8342_v37, %v8338_v3  ;;  %v9053_v50 = vrot.slane %v19480_v29, 5  ;;  %v8351_v30 = vshrl.u32 %v8197_v0, 16  ;;  %v19621_v2 = vld [vmem:[#allocation3 + $0x94] sm:$0xf] }
 0x330   : > { %v19499_v51 = vsel %vm16408_vm11, %v14200_v6, %v9050_v12  ;;  %v9052_v58 = vrot.slane %v9050_v12, 4  ;;  %v8354_v53 = vshll.u32 %v8197_v0, 16  ;;  %v8360_v11 = vshll.u32 %v19397_v47, 16 }
 0x331   : > { %15387 = vmatmul.mubr.msk.bf16.vlgmr.msra.gmra.mxu0 %vm6793_vm3, %v14210_v22  ;;  %v22055_v25 = vcombine.low %v19338_v40, %v19351_v9  ;;  %v8339_v1 = vsel %vm15995_vm13, %v8334_v16, %v8338_v3  ;;  %v8344_v27 = vrot.slane %v8343_v45, 4  ;;  %v8353_v22 = vrot.slane %v8351_v30, 4  ;;  %v19517_v9 = vld [vmem:[#allocation3 + $0x74] sm:$0x1]  ;;  %v15706_v30 = vld [vmem:[%s21817_s5 + $0xe0] sm:$0xff]  }
 0x332   : > { %v8364_v17 = vshrl.u32 %v19397_v47, 16  ;;  %15459 = vmatpush3.bf16.msra.mxu0 %v19111_v31  ;;  %v19514_v44 = vsel %vm16408_vm11, %v9052_v58, %v9053_v50  ;;  %v8356_v39 = vrot.slane %v8354_v53, 5  ;;  %v8362_v42 = vrot.slane %v8360_v11, 5  ;;  %v8944_v50 = vld [vmem:[#allocation3 + $0x78] sm:$0xe] }
 0x333   : > { %15390 = vmatprep.mubr.msk.bf16.mxu0 %vm6793_vm3, %v22055_v25  ;;  %v8370_v40 = vshll.u32 %v19408_v32, 16  ;;  %15460 = vmatprep.subr.bf16.mxu0 %v15703_v46  ;;  %v22056_v47 = vcombine.low %v19241_v24, %v19260_v33  ;;  %v8349_v31 = vsel %vm15995_vm13, %v8344_v27, %v8348_v15  ;;  %v14216_v3 = vcombine.low %v19499_v51, %v19514_v44 }
 0x334   : > { %v8366_v56 = vrot.slane %v8364_v17, 4  ;;  %v14201_v32 = vrot.slane %v8943_v63, 9  ;;  %v22057_v0 = vcombine.low %v19278_v28, %v19300_v10  ;;  %v19534_v41 = vcombine.low %v8339_v1, %v8349_v31 }
 0x335   : > { %15291 = vmatmul.mubr.msk.bf16.gmra.mxu1 %vm6793_vm3, %v22056_v47  ;;  %v8357_v4 = vor.u32 %v8356_v39, %v8353_v22  ;;  %v8372_v37 = vrot.slane %v8370_v40, 5  ;;  %v9057_v24 = vrot.slane %v19509_v57, 5  ;;  %v9060_v6 = vrot.slane %v19517_v9, 5  ;;  %v19560_v22 = vld [vmem:[#allocation3 + $0x80] sm:$0x1] }
 0x336   : > { %15294 = vmatprep.mubr.msk.bf16.mxu1 %vm6793_vm3, %v22057_v0  ;;  %v8367_v33 = vor.u32 %v8366_v56, %v8362_v42  ;;  %v8375_v15 = vshrl.u32 %v8200_v34, 16  ;;  %v8378_v12 = vshll.u32 %v8200_v34, 16  ;;  %15461 = vmatpush3.bf16.msra.mxu0 %v15703_v46  ;;  %v8384_v10 = vshll.u32 %v19435_v14, 16  ;;  %v19547_v46 = vld [vmem:[#allocation3 + $0x7c] sm:$0xf] }
 0x337   : > { %v8358_v16 = vrot.slane %v8357_v4, 4  ;;  %v19540_v45 = vsel %vm16408_vm11, %v14201_v32, %v9057_v24  ;;  %v9059_v28 = vrot.slane %v9057_v24, 4  ;;  %15462 = vmatprep.subr.bf16.mxu0 %v15705_v62  ;;  %v8388_v63 = vshrl.u32 %v19435_v14, 16  ;;  %v8203_v14 = vld [vmem:[#allocation3 + $0x60] sm:$0xf] }
 0x338   : > { %v8368_v58 = vrot.slane %v8367_v33, 4  ;;  %v8377_v53 = vrot.slane %v8375_v15, 4  ;;  %v8380_v11 = vrot.slane %v8378_v12, 5  ;;  %v8386_v1 = vrot.slane %v8384_v10, 5  ;;  %v8945_v4 = vld [vmem:[#allocation3 + $0x84] sm:$0xe] }
 0x339   : > { %15391 = vmatmul.mubr.msk.bf16.gmra.mxu0 %vm6793_vm3, %v14212_v52  ;;  %v8363_v34 = vsel %vm15995_vm13, %v8358_v16, %v8362_v42  ;;  %v19557_v25 = vsel %vm16408_vm11, %v9059_v28, %v9060_v6  ;;  %v8394_v27 = vshll.u32 %v19442_v23, 16  ;;  %v8390_v17 = vrot.slane %v8388_v63, 4  ;;  %v19588_v6 = vld [vmem:[#allocation3 + $0x88] sm:$0xf]  ;;  %v19595_v28 = vld [vmem:[#allocation3 + $0x8c] sm:$0x1] }
 0x33a   : > { %15394 = vmatprep.mubr.msk.bf16.mxu0 %vm6793_vm3, %v14213_v54  ;;  %v8373_v21 = vsel %vm15995_vm13, %v8368_v58, %v8372_v37  ;;  %v14217_v48 = vcombine.low %v19540_v45, %v19557_v25  ;;  %v8381_v52 = vor.u32 %v8380_v11, %v8377_v53  ;;  %15463 = vmatpush3.bf16.msra.mxu0 %v15705_v62  ;;  %v14202_v42 = vrot.slane %v8944_v50, 9  ;;  %v15700_v63 = vld [vmem:[%s21817_s5 + $0xd0] sm:$0xff]  }
 0x33b   : > { %v19570_v39 = vcombine.low %v8363_v34, %v8373_v21  ;;  %v8396_v23 = vrot.slane %v8394_v27, 5  ;;  %v9064_v40 = vrot.slane %v19547_v46, 5  ;;  %15464 = vmatprep.subr.bf16.mxu0 %v15706_v30  ;;  %v22058_v26 = vcombine.low %v19311_v7, %v19326_v61  ;;  %v8206_v7 = vld [vmem:[#allocation3 + $0x6c] sm:$0xf] }
 0x33c   : > { %v8382_v38 = vrot.slane %v8381_v52, 4  ;;  %v8391_v54 = vor.u32 %v8390_v17, %v8386_v1  ;;  %v9067_v47 = vrot.slane %v19560_v22, 5  ;;  %v8399_v31 = vshrl.u32 %v8203_v14, 16 }
 0x33d   : > { %15295 = vmatmul.mubr.msk.bf16.gmra.mxu1 %vm6793_vm3, %v22058_v26  ;;  %v19582_v62 = vsel %vm16408_vm11, %v14202_v42, %v9064_v40  ;;  %v9066_v56 = vrot.slane %v9064_v40, 4  ;;  %v8402_v32 = vshll.u32 %v8203_v14, 16  ;;  %v8408_v0 = vshll.u32 %v19467_v36, 16 }
 0x33e   : > { %15346 = vmatprep.mubr.msk.bf16.mxu1 %vm6793_vm3, %v19390_v19  ;;  %v8387_v61 = vsel %vm15995_vm13, %v8382_v38, %v8386_v1  ;;  %v8392_v37 = vrot.slane %v8391_v54, 4  ;;  %v8401_v24 = vrot.slane %v8399_v31, 4  ;;  %v8412_v33 = vshrl.u32 %v19467_v36, 16  ;;  %15465 = vmatpush3.bf16.msra.mxu0 %v15706_v30  ;;  %v19636_v38 = vld [vmem:[#allocation3 + $0x98] sm:$0x1]  ;;  %v15701_v31 = vld [vmem:[%s21817_s5 + $0xc8] sm:$0xff]  }
 0x33f   : > { %v19592_v19 = vsel %vm16408_vm11, %v9066_v56, %v9067_v47  ;;  %v8404_v15 = vrot.slane %v8402_v32, 5  ;;  %v8410_v12 = vrot.slane %v8408_v0, 5  ;;  %v8418_v16 = vshll.u32 %v19480_v29, 16  ;;  %v8209_v54 = vld [vmem:[#allocation3 + $0x78] sm:$0xf] }
 0x340   : > { %v8397_v10 = vsel %vm15995_vm13, %v8392_v37, %v8396_v23  ;;  %v14218_v50 = vcombine.low %v19582_v62, %v19592_v19  ;;  %v8414_v36 = vrot.slane %v8412_v33, 4  ;;  %v14203_v58 = vrot.slane %v8945_v4, 9  ;;  %v8946_v23 = vld [vmem:[#allocation3 + $0x90] sm:$0xe] }
 0x341   : > { %15395 = vmatmul.mubr.msk.bf16.gmra.mxu0 %vm6793_vm3, %v14214_v49  ;;  %v19605_v30 = vcombine.low %v8387_v61, %v8397_v10  ;;  %v8405_v53 = vor.u32 %v8404_v15, %v8401_v24  ;;  %v8420_v11 = vrot.slane %v8418_v16, 5  ;;  %v9071_v29 = vrot.slane %v19588_v6, 5  ;;  %v8947_v16 = vld [vmem:[#allocation3 + $0x9c] sm:$0xe]  ;;  %v8212_v10 = vld [vmem:[#allocation3 + $0x84] sm:$0xf] }
 0x342   : > { %15398 = vmatprep.mubr.msk.bf16.mxu0 %vm6793_vm3, %v14215_v20  ;;  %v8415_v34 = vor.u32 %v8414_v36, %v8410_v12  ;;  %v9074_v13 = vrot.slane %v19595_v28, 5  ;;  %v8423_v5 = vshrl.u32 %v8206_v7, 16  ;;  %v8426_v49 = vshll.u32 %v8206_v7, 16 }
 0x343   : > { %v8406_v1 = vrot.slane %v8405_v53, 4  ;;  %v19618_v27 = vsel %vm16408_vm11, %v14203_v58, %v9071_v29  ;;  %v9073_v14 = vrot.slane %v9071_v29, 4  ;;  %v8432_v21 = vshll.u32 %v19509_v57, 16  ;;  %v19665_v58 = vld [vmem:[#allocation3 + $0xa0] sm:$0xf]  ;;  %v15704_v53 = vld [vmem:[%s21817_s5 + $0xc0] sm:$0xff]  }
 0x344   : > { %v8416_v60 = vrot.slane %v8415_v34, 4  ;;  %v8425_v20 = vrot.slane %v8423_v5, 4  ;;  %v8428_v52 = vrot.slane %v8426_v49, 5  ;;  %v8436_v17 = vshrl.u32 %v19509_v57, 16  ;;  %v19675_v29 = vld [vmem:[#allocation3 + $0xa4] sm:$0x1]  ;;  %v19683_v5 = vpop.f32.mrf.mxu0 }
 0x345   : > { %15347 = vmatmul.mubr.msk.bf16.vlgmr.msra.gmra.mxu1 %vm6793_vm3, %v19415_v59  ;;  %v8411_v42 = vsel %vm15995_vm13, %v8406_v1, %v8410_v12  ;;  %v19633_v40 = vsel %vm16408_vm11, %v9073_v14, %v9074_v13  ;;  %v8434_v26 = vrot.slane %v8432_v21, 5  ;;  %v8442_v59 = vshll.u32 %v19517_v9, 16 }
 0x346   : > { %15419 = vmatpush3.bf16.msra.mxu1 %v19286_v43  ;;  %15350 = vmatprep.mubr.msk.bf16.mxu1 %vm6793_vm3, %v19449_v18  ;;  %v8421_v43 = vsel %vm15995_vm13, %v8416_v60, %v8420_v11  ;;  %v14219_v18 = vcombine.low %v19618_v27, %v19633_v40  ;;  %v8429_v57 = vor.u32 %v8428_v52, %v8425_v20  ;;  %v8438_v47 = vrot.slane %v8436_v17, 4  ;;  %v19694_v52 = vld [vmem:[%s21817_s5 + $0x118] sm:$0xff]  }
 0x347   : > { %15420 = vmatprep.subr.bf16.mxu1 %v15700_v63  ;;  %v19645_v56 = vcombine.low %v8411_v42, %v8421_v43  ;;  %v8444_v32 = vrot.slane %v8442_v59, 5  ;;  %v14204_v9 = vrot.slane %v8946_v23, 9  ;;  %v9078_v0 = vrot.slane %v19621_v2, 5 }
 0x348   : > { %v8430_v4 = vrot.slane %v8429_v57, 4  ;;  %v8439_v7 = vor.u32 %v8438_v47, %v8434_v26  ;;  %v9081_v61 = vrot.slane %v19636_v38, 5  ;;  %v8447_v37 = vshrl.u32 %v8209_v54, 16  ;;  %v19700_v47 = vld [vmem:[#allocation3 + $0xac] sm:$0xf] }
 0x349   : > { %15399 = vmatmul.mubr.msk.bf16.gmra.mxu0 %vm6793_vm3, %v14216_v3  ;;  %v19655_v24 = vsel %vm16408_vm11, %v14204_v9, %v9078_v0  ;;  %v9080_v33 = vrot.slane %v9078_v0, 4  ;;  %v8450_v15 = vshll.u32 %v8209_v54, 16  ;;  %v8456_v12 = vshll.u32 %v19547_v46, 16 }
 0x34a   : > { %15421 = vmatpush3.bf16.msra.mxu1 %v15700_v63  ;;  %15402 = vmatprep.mubr.msk.bf16.mxu0 %vm6793_vm3, %v14217_v48  ;;  %v8435_v51 = vsel %vm15995_vm13, %v8430_v4, %v8434_v26  ;;  %v8440_v44 = vrot.slane %v8439_v7, 4  ;;  %v8449_v3 = vrot.slane %v8447_v37, 4  ;;  %v8460_v36 = vshrl.u32 %v19547_v46, 16  ;;  %v8948_v26 = vld [vmem:[#allocation3 + $0xa8] sm:$0xe] }
 0x34b   : > { %15422 = vmatprep.subr.bf16.mxu1 %v15701_v31  ;;  %v19672_v11 = vsel %vm16408_vm11, %v9080_v33, %v9081_v61  ;;  %v8452_v45 = vrot.slane %v8450_v15, 5  ;;  %v8458_v25 = vrot.slane %v8456_v12, 5  ;;  %v8466_v48 = vshll.u32 %v19560_v22, 16  ;;  %v19713_v7 = vld [vmem:[#allocation3 + $0xb0] sm:$0x1] }
 0x34c   : > { %v8445_v46 = vsel %vm15995_vm13, %v8440_v44, %v8444_v32  ;;  %v14220_v63 = vcombine.low %v19655_v24, %v19672_v11  ;;  %v8462_v34 = vrot.slane %v8460_v36, 4  ;;  %v14205_v13 = vrot.slane %v8947_v16, 9  ;;  %v8949_v36 = vld [vmem:[#allocation3 + $0xb4] sm:$0xe] }
 0x34d   : > { %15351 = vmatmul.mubr.msk.bf16.gmra.mxu1 %vm6793_vm3, %v19486_v35  ;;  %v19687_v49 = vcombine.low %v8435_v51, %v8445_v46  ;;  %v8453_v22 = vor.u32 %v8452_v45, %v8449_v3  ;;  %v8468_v1 = vrot.slane %v8466_v48, 5  ;;  %v9085_v14 = vrot.slane %v19665_v58, 5  ;;  %v19740_v46 = vld [vmem:[#allocation3 + $0xb8] sm:$0xf] }
 0x34e   : > { %15354 = vmatprep.mubr.msk.bf16.mxu1 %vm6793_vm3, %v19534_v41  ;;  %15423 = vmatpush3.bf16.msra.mxu1 %v15701_v31  ;;  %v8463_v35 = vor.u32 %v8462_v34, %v8458_v25  ;;  %v9088_v21 = vrot.slane %v19675_v29, 5  ;;  %v8471_v60 = vshrl.u32 %v8212_v10, 16  ;;  %v8474_v20 = vshll.u32 %v8212_v10, 16  ;;  %v19702_v31 = vpop.f32.mrf.mxu0 }
 0x34f   : > { %15424 = vmatprep.subr.bf16.mxu1 %v15704_v53  ;;  %v8454_v17 = vrot.slane %v8453_v22, 4  ;;  %v9086_v41 = vsel %vm16408_vm11, %v14205_v13, %v9085_v14  ;;  %v9087_v23 = vrot.slane %v9085_v14, 4  ;;  %v8480_v42 = vshll.u32 %v19588_v6, 16 }
 0x350   : > { %v8464_v59 = vrot.slane %v8463_v35, 4  ;;  %v8473_v54 = vrot.slane %v8471_v60, 4  ;;  %v8476_v43 = vrot.slane %v8474_v20, 5  ;;  %v8484_v57 = vshrl.u32 %v19588_v6, 16  ;;  %v8215_v6 = vld [vmem:[#allocation3 + $0x90] sm:$0xf]  ;;  %v19728_v16 = vpop.f32.mrf.mxu0 }
 0x351   : > { %15403 = vmatmul.mubr.msk.bf16.gmra.mxu0 %vm6793_vm3, %v14218_v50  ;;  %v8459_v32 = vsel %vm15995_vm13, %v8454_v17, %v8458_v25  ;;  %v9089_v9 = vsel %vm16408_vm11, %v9087_v23, %v9088_v21  ;;  %v8482_v0 = vrot.slane %v8480_v42, 5  ;;  %v8490_v4 = vshll.u32 %v19595_v28, 16 }
 0x352   : > { %15425 = vmatpush3.bf16.msra.mxu1 %v15704_v53  ;;  %15406 = vmatprep.mubr.msk.bf16.mxu0 %vm6793_vm3, %v14219_v18  ;;  %v8469_v62 = vsel %vm15995_vm13, %v8464_v59, %v8468_v1  ;;  %v14221_v19 = vcombine.low %v9086_v41, %v9089_v9  ;;  %v8477_v50 = vor.u32 %v8476_v43, %v8473_v54  ;;  %v8486_v61 = vrot.slane %v8484_v57, 4  ;;  %v19745_v1 = vld [vmem:[#allocation3 + $0xbc] sm:$0x1]  ;;  %v19750_v20 = vpop.f32.mrf.mxu0 }
 0x353   : > { %15498 = vmatprep.subr.bf16.mxu1 %v19694_v52  ;;  %v19722_v37 = vcombine.low %v8459_v32, %v8469_v62  ;;  %v8492_v28 = vrot.slane %v8490_v4, 5  ;;  %v14206_v33 = vrot.slane %v8948_v26, 9  ;;  %v9092_v15 = vrot.slane %v19700_v47, 5  ;;  %v19767_v4 = vld [vmem:[#allocation3 + $0xc4] sm:$0xf] }
 0x354   : > { %v8478_v27 = vrot.slane %v8477_v50, 4  ;;  %v8487_v40 = vor.u32 %v8486_v61, %v8482_v0  ;;  %v9095_v18 = vrot.slane %v19713_v7, 5  ;;  %v8495_v12 = vshrl.u32 %v8215_v6, 16  ;;  %v19778_v61 = vld [vmem:[#allocation3 + $0xc8] sm:$0x1] }
 0x355   : > { %15355 = vmatmul.mubr.msk.bf16.gmra.mxu1 %vm6793_vm3, %v19570_v39  ;;  %v19734_v10 = vsel %vm16408_vm11, %v14206_v33, %v9092_v15  ;;  %v9094_v51 = vrot.slane %v9092_v15, 4  ;;  %v8498_v44 = vshll.u32 %v8215_v6, 16  ;;  %v8504_v3 = vshll.u32 %v19621_v2, 16  ;;  %v8218_v39 = vld [vmem:[#allocation3 + $0x9c] sm:$0xf]  ;;  %v19769_v6 = vpop.f32.mrf.mxu0 }
 0x356   : > { %15358 = vmatprep.mubr.msk.bf16.mxu1 %vm6793_vm3, %v19605_v30  ;;  %v8483_v53 = vsel %vm15995_vm13, %v8478_v27, %v8482_v0  ;;  %v8488_v45 = vrot.slane %v8487_v40, 4  ;;  %v8497_v25 = vrot.slane %v8495_v12, 4  ;;  %v8508_v48 = vshrl.u32 %v19621_v2, 16 }
 0x357   : > { %v9096_v30 = vsel %vm16408_vm11, %v9094_v51, %v9095_v18  ;;  %v8500_v34 = vrot.slane %v8498_v44, 5  ;;  %v8506_v13 = vrot.slane %v8504_v3, 5  ;;  %v8514_v22 = vshll.u32 %v19636_v38, 16  ;;  %v19786_v3 = vpop.f32.mrf.mxu0 }
 0x358   : > { %v8493_v14 = vsel %vm15995_vm13, %v8488_v45, %v8492_v28  ;;  %v14222_v35 = vcombine.low %v19734_v10, %v9096_v30  ;;  %v8510_v21 = vrot.slane %v8508_v48, 4  ;;  %v14207_v60 = vrot.slane %v8949_v36, 9  ;;  %v8221_v28 = vld [vmem:[#allocation3 + $0xa8] sm:$0xf] }
 0x359   : > { %15407 = vmatmul.mubr.msk.bf16.gmra.mxu0 %vm6793_vm3, %v14220_v63  ;;  %v19756_v2 = vcombine.low %v8483_v53, %v8493_v14  ;;  %v8501_v17 = vor.u32 %v8500_v34, %v8497_v25  ;;  %v8516_v38 = vrot.slane %v8514_v22, 5  ;;  %v9099_v41 = vrot.slane %v19740_v46, 5  ;;  %v8950_v63 = vld [vmem:[#allocation3 + $0xc0] sm:$0xe]  ;;  %v9818_v25 = vld [vmem:[#allocation3 + $0x18] sm:$0xf] }
 0x35a   : > { %15410 = vmatprep.mubr.msk.bf16.mxu0 %vm6793_vm3, %v14221_v19  ;;  %v8511_v23 = vor.u32 %v8510_v21, %v8506_v13  ;;  %v9102_v42 = vrot.slane %v19745_v1, 5  ;;  %v8519_v26 = vshrl.u32 %v8218_v39, 16  ;;  %v8522_v59 = vshll.u32 %v8218_v39, 16 }
 0x35b   : > { %v8502_v54 = vrot.slane %v8501_v17, 4  ;;  %v9100_v43 = vsel %vm16408_vm11, %v14207_v60, %v9099_v41  ;;  %v9101_v24 = vrot.slane %v9099_v41, 4  ;;  %v8528_v11 = vshll.u32 %v19665_v58, 16  ;;  %v19799_v60 = vld [vmem:[#allocation3 + $0x1c] sm:$0xf] }
 0x35c   : > { %v8512_v57 = vrot.slane %v8511_v23, 4  ;;  %v8521_v32 = vrot.slane %v8519_v26, 4  ;;  %v8524_v9 = vrot.slane %v8522_v59, 5  ;;  %v8532_v0 = vshrl.u32 %v19665_v58, 16  ;;  %v19805_v23 = vld [vmem:[#allocation3 + $0x20] sm:$0x1]  ;;  %v19807_v26 = vpop.f32.mrf.mxu0 }
 0x35d   : > { %15359 = vmatmul.mubr.msk.bf16.gmra.mxu1 %vm6793_vm3, %v19645_v56  ;;  %v8507_v62 = vsel %vm15995_vm13, %v8502_v54, %v8506_v13  ;;  %v9103_v19 = vsel %vm16408_vm11, %v9101_v24, %v9102_v42  ;;  %v8530_v50 = vrot.slane %v8528_v11, 5  ;;  %v8538_v56 = vshll.u32 %v19675_v29, 16  ;;  %v8224_v42 = vld [vmem:[#allocation3 + $0xb4] sm:$0xf] }
 0x35e   : > { %15362 = vmatprep.mubr.msk.bf16.mxu1 %vm6793_vm3, %v19687_v49  ;;  %v8517_v58 = vsel %vm15995_vm13, %v8512_v57, %v8516_v38  ;;  %v14223_v33 = vcombine.low %v9100_v43, %v9103_v19  ;;  %v8525_v15 = vor.u32 %v8524_v9, %v8521_v32  ;;  %v8534_v27 = vrot.slane %v8532_v0, 4 }
 0x35f   : > { %v19782_v40 = vcombine.low %v8507_v62, %v8517_v58  ;;  %v8540_v49 = vrot.slane %v8538_v56, 5  ;;  %v14208_v18 = vrot.slane %v8950_v63, 9  ;;  %v9106_v12 = vrot.slane %v19767_v4, 5 }
 0x360   : > { %v8526_v10 = vrot.slane %v8525_v15, 4  ;;  %v8535_v51 = vor.u32 %v8534_v27, %v8530_v50  ;;  %v9109_v44 = vrot.slane %v19778_v61, 5  ;;  %v8543_v29 = vshrl.u32 %v8221_v28, 16 }
 0x361   : > { %15411 = vmatmul.mubr.msk.bf16.gmra.mxu0 %vm6793_vm3, %v14222_v35  ;;  %v9107_v36 = vsel %vm16408_vm11, %v14208_v18, %v9106_v12  ;;  %v9108_v39 = vrot.slane %v9106_v12, 4  ;;  %v8546_v53 = vshll.u32 %v8221_v28, 16  ;;  %v8552_v45 = vshll.u32 %v19700_v47, 16  ;;  %v19816_v28 = vpop.f32.mrf.mxu0 }
 0x362   : > { %15414 = vmatprep.mubr.msk.bf16.mxu0 %vm6793_vm3, %v14223_v33  ;;  %v8531_v48 = vsel %vm15995_vm13, %v8526_v10, %v8530_v50  ;;  %v8536_v30 = vrot.slane %v8535_v51, 4  ;;  %v8545_v34 = vrot.slane %v8543_v29, 4  ;;  %v8556_v13 = vshrl.u32 %v19700_v47, 16 }
 0x363   : > { %v9110_v22 = vsel %vm16408_vm11, %v9108_v39, %v9109_v44  ;;  %v8548_v14 = vrot.slane %v8546_v53, 5  ;;  %v8554_v35 = vrot.slane %v8552_v45, 5  ;;  %v8562_v21 = vshll.u32 %v19713_v7, 16  ;;  %v19826_v53 = vld [vmem:[#allocation3 + $0x28] sm:$0xf] }
 0x364   : > { %v8541_v17 = vsel %vm15995_vm13, %v8536_v30, %v8540_v49  ;;  %v14224_v38 = vcombine.low %v9107_v36, %v9110_v22  ;;  %v8558_v41 = vrot.slane %v8556_v13, 4  ;;  %v9867_v47 = vshrl.u32 %v9818_v25, 16  ;;  %v9821_v49 = vld [vmem:[#allocation3 + $0x24] sm:$0xf]  ;;  %v19830_v30 = vld [vmem:[#allocation3 + $0x2c] sm:$0x1] }
 0x365   : > { %15363 = vmatmul.mubr.msk.bf16.gmra.mxu1 %vm6793_vm3, %v19722_v37  ;;  %v14169_v7 = vcombine.low %v8531_v48, %v8541_v17  ;;  %v8549_v59 = vor.u32 %v8548_v14, %v8545_v34  ;;  %v8564_v54 = vrot.slane %v8562_v21, 5  ;;  %v9870_v43 = vshll.u32 %v9818_v25, 16  ;;  %v19834_v22 = vpop.f32.mrf.mxu0  ;;  %v8227_v21 = vld [vmem:[#allocation3 + $0xc0] sm:$0xf] }
 0x366   : > { %15366 = vmatprep.mubr.msk.bf16.mxu1 %vm6793_vm3, %v19756_v2  ;;  %v8559_v24 = vor.u32 %v8558_v41, %v8554_v35  ;;  %v9869_v37 = vrot.slane %v9867_v47, 4  ;;  %v9876_v11 = vshll.u32 %v19799_v60, 16  ;;  %v9880_v63 = vshrl.u32 %v19799_v60, 16  ;;  %v19814_v2 = vpop.f32.mrf.mxu1 }
 0x367   : > { %v8550_v57 = vrot.slane %v8549_v59, 4  ;;  %v9872_v32 = vrot.slane %v9870_v43, 5  ;;  %v9886_v9 = vshll.u32 %v19805_v23, 16  ;;  %v8567_v0 = vshrl.u32 %v8224_v42, 16 }
 0x368   : > { %v8560_v62 = vrot.slane %v8559_v24, 4  ;;  %v9878_v19 = vrot.slane %v9876_v11, 5  ;;  %v9882_v50 = vrot.slane %v9880_v63, 4  ;;  %v8570_v56 = vshll.u32 %v8224_v42, 16  ;;  %v19832_v13 = vpop.f32.mrf.mxu1  ;;  %v19848_v63 = vpop.f32.mrf.mxu0 }
 0x369   : > { %15415 = vmatmul.mubr.msk.bf16.gmra.mxu0 %vm6793_vm3, %v14224_v38  ;;  %v8555_v58 = vsel %vm15995_vm13, %v8550_v57, %v8554_v35  ;;  %v9873_v33 = vor.u32 %v9872_v32, %v9869_v37  ;;  %v9888_v15 = vrot.slane %v9886_v9, 5  ;;  %v8569_v27 = vrot.slane %v8567_v0, 4 }
 0x36a   : > { %v8565_v18 = vsel %vm15995_vm13, %v8560_v62, %v8564_v54  ;;  %v9883_v12 = vor.u32 %v9882_v50, %v9878_v19  ;;  %v8572_v10 = vrot.slane %v8570_v56, 5  ;;  %v8576_v51 = vshll.u32 %v19740_v46, 16  ;;  %v19846_v11 = vpop.f32.mrf.mxu1 }
 0x36b   : > { %v14170_v44 = vcombine.low %v8555_v58, %v8565_v18  ;;  %v9874_v29 = vrot.slane %v9873_v33, 4  ;;  %v8580_v36 = vshrl.u32 %v19740_v46, 16  ;;  %v8586_v39 = vshll.u32 %v19745_v1, 16  ;;  %v9824_v58 = vld [vmem:[#allocation3 + $0x30] sm:$0xf] }
 0x36c   : > { %v9884_v45 = vrot.slane %v9883_v12, 4  ;;  %v8573_v25 = vor.u32 %v8572_v10, %v8569_v27  ;;  %v8578_v48 = vrot.slane %v8576_v51, 5  ;;  %v9891_v34 = vshrl.u32 %v9821_v49, 16  ;;  %v19855_v18 = vld [vmem:[#allocation3 + $0x34] sm:$0xf] }
 0x36d   : > { %15367 = vmatmul.mubr.msk.bf16.gmra.mxu1 %vm6793_vm3, %v19782_v40  ;;  %v9879_v46 = vsel %vm15995_vm13, %v9874_v29, %v9878_v19  ;;  %v8582_v1 = vrot.slane %v8580_v36, 4  ;;  %v8588_v14 = vrot.slane %v8586_v39, 5  ;;  %v9894_v35 = vshll.u32 %v9821_v49, 16  ;;  %v19859_v36 = vpop.f32.mrf.mxu1  ;;  %v19861_v39 = vpop.f32.mrf.mxu0 }
 0x36e   : > { %15370 = vmatprep.mubr.msk.bf16.mxu1 %vm6793_vm3, %v14169_v7  ;;  %v9889_v40 = vsel %vm15995_vm13, %v9884_v45, %v9888_v15  ;;  %v8574_v17 = vrot.slane %v8573_v25, 4  ;;  %v9893_v38 = vrot.slane %v9891_v34, 4  ;;  %v9900_v41 = vshll.u32 %v19826_v53, 16 }
 0x36f   : > { %v14281_v47 = vcombine.low %v9879_v46, %v9889_v40  ;;  %v8583_v42 = vor.u32 %v8582_v1, %v8578_v48  ;;  %v9896_v59 = vrot.slane %v9894_v35, 5  ;;  %v9904_v54 = vshrl.u32 %v19826_v53, 16 }
 0x370   : > { %v8579_v7 = vsel %vm15995_vm13, %v8574_v17, %v8578_v48  ;;  %v9902_v43 = vrot.slane %v9900_v41, 5  ;;  %v9910_v24 = vshll.u32 %v19830_v30, 16  ;;  %v8591_v37 = vshrl.u32 %v8227_v21, 16  ;;  %v19865_v48 = vld [vmem:[#allocation3 + $0x38] sm:$0x1] }
 0x371   : > { %15466 = vmatprep.mubr.msk.bf16.mxu0 %vm6793_vm3, %v14281_v47  ;;  %v8584_v57 = vrot.slane %v8583_v42, 4  ;;  %v9897_v32 = vor.u32 %v9896_v59, %v9893_v38  ;;  %v9906_v9 = vrot.slane %v9904_v54, 4  ;;  %v8594_v0 = vshll.u32 %v8227_v21, 16  ;;  %v19872_v38 = vld [vmem:[#allocation3 + $0x40] sm:$0xf] }
 0x372   : > { %v9912_v62 = vrot.slane %v9910_v24, 5  ;;  %v8593_v19 = vrot.slane %v8591_v37, 4  ;;  %v8600_v50 = vshll.u32 %v19767_v4, 16  ;;  %v8604_v56 = vshrl.u32 %v19767_v4, 16  ;;  %v19874_v54 = vpop.f32.mrf.mxu1 }
 0x373   : > { %v8589_v33 = vsel %vm15995_vm13, %v8584_v57, %v8588_v14  ;;  %v9898_v15 = vrot.slane %v9897_v32, 4  ;;  %v9907_v27 = vor.u32 %v9906_v9, %v9902_v43  ;;  %v8596_v49 = vrot.slane %v8594_v0, 5 }
 0x374   : > { %v14171_v12 = vcombine.low %v8579_v7, %v8589_v33  ;;  %v8602_v10 = vrot.slane %v8600_v50, 5  ;;  %v8606_v51 = vrot.slane %v8604_v56, 4  ;;  %v8610_v29 = vshll.u32 %v19778_v61, 16  ;;  %v9827_v61 = vld [vmem:[#allocation3 + $0x3c] sm:$0xf]  ;;  %v19876_v7 = vpop.f32.mrf.mxu0 }
 0x375   : > { %15371 = vmatmul.mubr.msk.bf16.gmra.mxu1 %vm6793_vm3, %v14170_v44  ;;  %v9903_v4 = vsel %vm15995_vm13, %v9898_v15, %v9902_v43  ;;  %v9908_v45 = vrot.slane %v9907_v27, 4  ;;  %v8597_v25 = vor.u32 %v8596_v49, %v8593_v19  ;;  %v9915_v34 = vshrl.u32 %v9824_v58, 16  ;;  %v9830_v19 = vld [vmem:[#allocation3 + $0x48] sm:$0xf]  ;;  %v19885_v33 = vld [vmem:[#allocation3 + $0x44] sm:$0x1] }
 0x376   : > { %15374 = vmatprep.mubr.msk.bf16.mxu1 %vm6793_vm3, %v14171_v12  ;;  %v8607_v44 = vor.u32 %v8606_v51, %v8602_v10  ;;  %v8612_v46 = vrot.slane %v8610_v29, 5  ;;  %v9918_v1 = vshll.u32 %v9824_v58, 16  ;;  %v9924_v14 = vshll.u32 %v19855_v18, 16  ;;  %v15707_v58 = vld [vmem:[#allocation3 + $0x18] sm:$0xff]   ;;  %v19888_v51 = vld [vmem:[#allocation3 + $0x4c] sm:$0xf]  ;;  %v19890_v29 = vpop.f32.mrf.mxu1 }
 0x377   : > { %v9913_v35 = vsel %vm15995_vm13, %v9908_v45, %v9912_v62  ;;  %v8598_v21 = vrot.slane %v8597_v25, 4  ;;  %v9917_v40 = vrot.slane %v9915_v34, 4  ;;  %v9928_v17 = vshrl.u32 %v19855_v18, 16 }
 0x378   : > { %v14282_v41 = vcombine.low %v9903_v4, %v9913_v35  ;;  %v8608_v47 = vrot.slane %v8607_v44, 4  ;;  %v9920_v42 = vrot.slane %v9918_v1, 5  ;;  %v9926_v59 = vrot.slane %v9924_v14, 5 }
 0x379   : > { %v8603_v43 = vsel %vm15995_vm13, %v8598_v21, %v8602_v10  ;;  %v9930_v24 = vrot.slane %v9928_v17, 4  ;;  %v9934_v37 = vshll.u32 %v19865_v48, 16  ;;  %v9939_v57 = vshrl.u32 %v9827_v61, 16 }
 0x37a   : > { %15467 = vmatmul.mubr.msk.bf16.vlgmr.msra.gmra.mxu0 %vm6793_vm3, %v14282_v41  ;;  %v8613_v32 = vsel %vm15995_vm13, %v8608_v47, %v8612_v46  ;;  %v9921_v9 = vor.u32 %v9920_v42, %v9917_v40  ;;  %v9942_v0 = vshll.u32 %v9827_v61, 16  ;;  %v9948_v62 = vshll.u32 %v19872_v38, 16  ;;  %v19892_v4 = vpop.f32.mrf.mxu0  ;;  %v19901_v61 = vld [vmem:[#allocation3 + $0x50] sm:$0x1] }
 0x37b   : > { %v14172_v50 = vcombine.low %v8603_v43, %v8613_v32  ;;  %v9931_v56 = vor.u32 %v9930_v24, %v9926_v59  ;;  %v9941_v15 = vrot.slane %v9939_v57, 4  ;;  %v9952_v10 = vshrl.u32 %v19872_v38, 16  ;;  %v9833_v43 = vld [vmem:[#allocation3 + $0x54] sm:$0xf]  ;;  %v19908_v24 = vpop.f32.mrf.mxu1 }
 0x37c   : > { %v9922_v27 = vrot.slane %v9921_v9, 4  ;;  %v9944_v49 = vrot.slane %v9942_v0, 5  ;;  %v9950_v12 = vrot.slane %v9948_v62, 5  ;;  %v9936_v25 = vrot.slane %v9934_v37, 5  ;;  %v19910_v37 = vpop.f32.mrf.mxu0  ;;  %v19918_v0 = vld [vmem:[#allocation3 + $0x58] sm:$0xf] }
 0x37d   : > { %15375 = vmatmul.mubr.msk.bf16.gmra.mxu1 %vm6793_vm3, %v14172_v50  ;;  %v9932_v45 = vrot.slane %v9931_v56, 4  ;;  %v19897_v34 = vadd.f32 %v19683_v5, %v19814_v2  ;;  %v9963_v44 = vshrl.u32 %v9830_v19, 16  ;;  %v9954_v1 = vrot.slane %v9952_v10, 4  ;;  %v15709_v50 = vld [vmem:[#allocation3 + $0x24] sm:$0xff]   ;;  %v19927_v10 = vld [vmem:[#allocation3 + $0x5c] sm:$0x1] }
 0x37e   : > { %15426 = vmatprep.mubr.msk.bf16.mxu1 %vm6793_vm3, %v15707_v58  ;;  %v9945_v46 = vor.u32 %v9944_v49, %v9941_v15  ;;  %v9958_v14 = vshll.u32 %v19885_v33, 16  ;;  %v9966_v35 = vshll.u32 %v9830_v19, 16  ;;  %v9927_v21 = vsel %vm15995_vm13, %v9922_v27, %v9926_v59 }
 0x37f   : > { %v9937_v40 = vsel %vm15995_vm13, %v9932_v45, %v9936_v25  ;;  %v9965_v17 = vrot.slane %v9963_v44, 4  ;;  %v9972_v5 = vshll.u32 %v19888_v51, 16  ;;  %v9955_v47 = vor.u32 %v9954_v1, %v9950_v12  ;;  %v15710_v44 = vld [vmem:[#allocation3 + $0x30] sm:$0xff]   ;;  %v19935_v1 = vpop.f32.mrf.mxu1 }
 0x380   : > { %v14283_v2 = vcombine.low %v9927_v21, %v9937_v40  ;;  %v9946_v41 = vrot.slane %v9945_v46, 4  ;;  %v9968_v42 = vrot.slane %v9966_v35, 5  ;;  %v9976_v32 = vshrl.u32 %v19888_v51, 16 }
 0x381   : > { %v9974_v57 = vrot.slane %v9972_v5, 5  ;;  %v9982_v59 = vshll.u32 %v19901_v61, 16  ;;  %v19916_v9 = vadd.f32 %v19702_v31, %v19832_v13  ;;  %v9956_v62 = vrot.slane %v9955_v47, 4  ;;  %v15713_v13 = vld [vmem:[%s21817_s5 + $0x110] sm:$0xff]  }
 0x382   : > { %15470 = vmatprep.mubr.msk.bf16.mxu0 %vm6793_vm3, %v14283_v2  ;;  %v9960_v19 = vrot.slane %v9958_v14, 5  ;;  %v9969_v56 = vor.u32 %v9968_v42, %v9965_v17  ;;  %v19923_v58 = vadd.f32 %v19728_v16, %v19846_v11  ;;  %v9951_v15 = vsel %vm15995_vm13, %v9946_v41, %v9950_v12  ;;  %v9836_v11 = vld [vmem:[#allocation3 + $0x60] sm:$0xf]  ;;  %v19937_v12 = vpop.f32.mrf.mxu0  ;;  %v19941_v17 = vld [vmem:[#allocation3 + $0x64] sm:$0xf] }
 0x383   : > { %v9978_v27 = vrot.slane %v9976_v32, 4  ;;  %v9984_v49 = vrot.slane %v9982_v59, 5  ;;  %v9987_v31 = vshrl.u32 %v9833_v43, 16  ;;  %v9990_v46 = vshll.u32 %v9833_v43, 16 }
 0x384   : > { %v9961_v45 = vsel %vm15995_vm13, %v9956_v62, %v9960_v19  ;;  %v9970_v25 = vrot.slane %v9969_v56, 4  ;;  %v9996_v16 = vshll.u32 %v19918_v0, 16  ;;  %v10000_v40 = vshrl.u32 %v19918_v0, 16  ;;  %v19956_v19 = vld [vmem:[#allocation3 + $0x68] sm:$0x1] }
 0x385   : > { %v14284_v14 = vcombine.low %v9951_v15, %v9961_v45  ;;  %15427 = vmatmul.mubr.msk.bf16.vlgmr.msra.gmra.mxu1 %vm6793_vm3, %v15709_v50  ;;  %v9979_v35 = vor.u32 %v9978_v27, %v9974_v57  ;;  %v9989_v21 = vrot.slane %v9987_v31, 4  ;;  %v9992_v2 = vrot.slane %v9990_v46, 5  ;;  %v19959_v27 = vpop.f32.mrf.mxu0  ;;  %v15711_v46 = vld [vmem:[#allocation3 + $0x3c] sm:$0xff]  }
 0x386   : > { %v9975_v5 = vsel %vm15995_vm13, %v9970_v25, %v9974_v57  ;;  %15499 = vmatpush3.bf16.msra.mxu1 %v19694_v52  ;;  %15430 = vmatprep.mubr.msk.bf16.mxu1 %vm6793_vm3, %v15710_v44  ;;  %v9998_v41 = vrot.slane %v9996_v16, 5  ;;  %v10006_v47 = vshll.u32 %v19927_v10, 16  ;;  %v10002_v43 = vrot.slane %v10000_v40, 4  ;;  %v15718_v52 = vld [vmem:[%s21817_s5 + $0x108] sm:$0xff]  }
 0x387   : > { %15471 = vmatmul.mubr.msk.bf16.gmra.mxu0 %vm6793_vm3, %v14284_v14  ;;  %v9980_v42 = vrot.slane %v9979_v35, 4  ;;  %v19951_v32 = vadd.f32 %v19769_v6, %v19874_v54  ;;  %v10011_v59 = vshrl.u32 %v9836_v11, 16  ;;  %15500 = vmatprep.subr.bf16.mxu1 %v15713_v13  ;;  %v9993_v57 = vor.u32 %v9992_v2, %v9989_v21  ;;  %v9839_v35 = vld [vmem:[#allocation3 + $0x6c] sm:$0xf] }
 0x388   : > { %v10008_v62 = vrot.slane %v10006_v47, 5  ;;  %v10014_v50 = vshll.u32 %v9836_v11, 16  ;;  %v10020_v56 = vshll.u32 %v19941_v17, 16  ;;  %v15196_v15 = vpop.f32.mrf.mxu1  ;;  %v10003_v54 = vor.u32 %v10002_v43, %v9998_v41  ;;  %v15712_v43 = vld [vmem:[#allocation3 + $0x48] sm:$0xff]  }
 0x389   : > { %22059 = vst [vmem:[#allocation13_spill] sm:$0xff] %v19951_v32  ;;  %v9985_v6 = vsel %vm15995_vm13, %v9980_v42, %v9984_v49  ;;  %v10013_v31 = vrot.slane %v10011_v59, 4  ;;  %v10024_v45 = vshrl.u32 %v19941_v17, 16  ;;  %v9994_v44 = vrot.slane %v9993_v57, 4  ;;  %v19969_v49 = vld [vmem:[#allocation3 + $0x70] sm:$0xf] }
 0x38a   : > { %v14285_v25 = vcombine.low %v9975_v5, %v9985_v6  ;;  %v10016_v16 = vrot.slane %v10014_v50, 5  ;;  %v10022_v14 = vrot.slane %v10020_v56, 5  ;;  %15501 = vmatpush3.bf16.msra.mxu1 %v15713_v13  ;;  %v10004_v11 = vrot.slane %v10003_v54, 4  ;;  %v6908_v47 = vpop.f32.mrf.mxu1  ;;  %v15723_v5 = vld [vmem:[%s21817_s5 + $0x100] sm:$0xff]   ;;  %v9845_v32 = vld [vmem:[#allocation3 + $0x84] sm:$0xf] }
 0x38b   : > { %v10026_v21 = vrot.slane %v10024_v45, 4  ;;  %v10030_v40 = vshll.u32 %v19956_v19, 16  ;;  %v19967_v2 = vadd.f32 %v19786_v3, %v19890_v29  ;;  %15502 = vmatprep.subr.bf16.mxu1 %v15718_v52  ;;  %v9999_v13 = vsel %vm15995_vm13, %v9994_v44, %v9998_v41  ;;  %v19981_v3 = vld [vmem:[#allocation3 + $0x74] sm:$0x1] }
 0x38c   : > { %15474 = vmatprep.mubr.msk.bf16.mxu0 %vm6793_vm3, %v14285_v25  ;;  %v10017_v42 = vor.u32 %v10016_v16, %v10013_v31  ;;  %v19979_v59 = vadd.f32 %v19807_v26, %v19908_v24  ;;  %v19983_v29 = vpop.f32.mrf.mxu0  ;;  %v10009_v57 = vsel %vm15995_vm13, %v10004_v11, %v10008_v62  ;;  %v10035_v6 = vshrl.u32 %v9839_v35, 16  ;;  %v9842_v24 = vld [vmem:[#allocation3 + $0x78] sm:$0xf]  ;;  %v19994_v16 = vld [vmem:[#allocation3 + $0x7c] sm:$0xf]  ;;  %v15197_v11 = vpop.f32.mrf.mxu1 }
 0x38d   : > { %22060 = vst [vmem:[#allocation12_spill] sm:$0xff] %v19967_v2  ;;  %15431 = vmatmul.mubr.msk.bf16.gmra.mxu1 %vm6793_vm3, %v15711_v46  ;;  %v10027_v50 = vor.u32 %v10026_v21, %v10022_v14  ;;  %v10032_v56 = vrot.slane %v10030_v40, 5  ;;  %v14286_v54 = vcombine.low %v9999_v13, %v10009_v57  ;;  %v10038_v31 = vshll.u32 %v9839_v35, 16 }
 0x38e   : > { %22061 = vst [vmem:[#allocation15_spill] sm:$0xff] %v19979_v59  ;;  %v10018_v41 = vrot.slane %v10017_v42, 4  ;;  %15434 = vmatprep.mubr.msk.bf16.mxu1 %vm6793_vm3, %v15712_v43  ;;  %v10044_v26 = vshll.u32 %v19969_v49, 16  ;;  %v19990_v45 = vpop.f32.mrf.mxu0  ;;  %15503 = vmatpush3.bf16.msra.mxu1 %v15718_v52  ;;  %v10037_v44 = vrot.slane %v10035_v6, 4  ;;  %v10048_v62 = vshrl.u32 %v19969_v49, 16 }
 0x38f   : > { %v10028_v25 = vrot.slane %v10027_v50, 4  ;;  %v10054_v46 = vshll.u32 %v19981_v3, 16  ;;  %15504 = vmatprep.subr.bf16.mxu1 %v15723_v5  ;;  %15475 = vmatmul.mubr.msk.bf16.gmra.mxu0 %vm6793_vm3, %v14286_v54  ;;  %v10040_v21 = vrot.slane %v10038_v31, 5  ;;  %v20000_v13 = vadd.f32 %v19834_v22, %v15196_v15  ;;  %v20002_v52 = vld [vmem:[#allocation3 + $0x80] sm:$0x1]  ;;  %v15714_v31 = vld [vmem:[#allocation3 + $0x54] sm:$0xff]  }
 0x390   : > { %v10023_v35 = vsel %vm15995_vm13, %v10018_v41, %v10022_v14  ;;  %v10046_v40 = vrot.slane %v10044_v26, 5  ;;  %v20004_v42 = vpop.f32.mrf.mxu0  ;;  %v10050_v57 = vrot.slane %v10048_v62, 4  ;;  %v10059_v6 = vshrl.u32 %v9842_v24, 16 }
 0x391   : > { %22062 = vst [vmem:[#allocation14_spill] sm:$0xff] %v20000_v13  ;;  %v10033_v43 = vsel %vm15995_vm13, %v10028_v25, %v10032_v56  ;;  %v10056_v50 = vrot.slane %v10054_v46, 5  ;;  %v10041_v54 = vor.u32 %v10040_v21, %v10037_v44  ;;  %v10062_v2 = vshll.u32 %v9842_v24, 16  ;;  %v6911_v13 = vpop.f32.mrf.mxu1  ;;  %v15715_v46 = vld [vmem:[#allocation3 + $0x60] sm:$0xff]   ;;  %v20015_v44 = vld [vmem:[#allocation3 + $0x88] sm:$0xf] }
 0x392   : > { %v14287_v59 = vcombine.low %v10023_v35, %v10033_v43  ;;  %v10068_v14 = vshll.u32 %v19994_v16, 16  ;;  %15505 = vmatpush3.bf16.msra.mxu1 %v15723_v5  ;;  %v10051_v41 = vor.u32 %v10050_v57, %v10046_v40  ;;  %v10061_v22 = vrot.slane %v10059_v6, 4  ;;  %22064 = vst [vmem:[#allocation19_spill] sm:$0xff] %v20015_v44  ;;  %v20017_v5 = vpop.f32.mrf.mxu0 }
 0x393   : > { %v10072_v15 = vshrl.u32 %v19994_v16, 16  ;;  %v10078_v26 = vshll.u32 %v20002_v52, 16  ;;  %v10042_v56 = vrot.slane %v10041_v54, 4  ;;  %v10064_v25 = vrot.slane %v10062_v2, 5 }
 0x394   : > { %15478 = vmatprep.mubr.msk.bf16.mxu0 %vm6793_vm3, %v14287_v59  ;;  %v10070_v62 = vrot.slane %v10068_v14, 5  ;;  %v20013_v24 = vadd.f32 %v19848_v63, %v6908_v47  ;;  %v10052_v35 = vrot.slane %v10051_v41, 4  ;;  %v20021_v57 = vadd.f32 %v19861_v39, %v15197_v11  ;;  %v20029_v47 = vld [vmem:[#allocation3 + $0x8c] sm:$0x1] }
 0x395   : > { %15435 = vmatmul.mubr.msk.bf16.gmra.mxu1 %vm6793_vm3, %v15714_v31  ;;  %v10074_v21 = vrot.slane %v10072_v15, 4  ;;  %v10080_v43 = vrot.slane %v10078_v26, 5  ;;  %v10047_v2 = vsel %vm15995_vm13, %v10042_v56, %v10046_v40  ;;  %v10065_v59 = vor.u32 %v10064_v25, %v10061_v22  ;;  %22067 = vst [vmem:[#allocation43_spill] sm:$0xff] %v20029_v47  ;;  %v9848_v31 = vld [vmem:[#allocation3 + $0x90] sm:$0xf] }
 0x396   : > { %22063 = vst [vmem:[#allocation23_spill] sm:$0xff] %v20013_v24  ;;  %22065 = vst [vmem:[#allocation30_spill] sm:$0xff] %v20021_v57  ;;  %15438 = vmatprep.mubr.msk.bf16.mxu1 %vm6793_vm3, %v15715_v46  ;;  %v20027_v63 = vadd.f32 %v19876_v7, %v6911_v13  ;;  %v10083_v6 = vshrl.u32 %v9845_v32, 16  ;;  %v10057_v54 = vsel %vm15995_vm13, %v10052_v35, %v10056_v50  ;;  %v10086_v41 = vshll.u32 %v9845_v32, 16 }
 0x397   : > { %v10075_v14 = vor.u32 %v10074_v21, %v10070_v62  ;;  %v10092_v39 = vshll.u32 %v20015_v44, 16  ;;  %v15200_v11 = vpop.f32.mrf.mxu1  ;;  %v14288_v15 = vcombine.low %v10047_v2, %v10057_v54  ;;  %v10066_v40 = vrot.slane %v10065_v59, 4  ;;  %v20046_v2 = vld [vmem:[#allocation3 + $0x98] sm:$0x1] }
 0x398   : > { %22066 = vst [vmem:[#allocation27_spill] sm:$0xff] %v20027_v63  ;;  %v10085_v22 = vrot.slane %v10083_v6, 4  ;;  %v10096_v26 = vshrl.u32 %v20015_v44, 16  ;;  %v20035_v56 = vpop.f32.mrf.mxu0  ;;  %v10088_v13 = vrot.slane %v10086_v41, 5  ;;  %v10102_v46 = vshll.u32 %v20029_v47, 16  ;;  %22070 = vst [vmem:[#allocation18_spill] sm:$0xff] %v20046_v2 }
 0x399   : > { %v10076_v7 = vrot.slane %v10075_v14, 4  ;;  %v10094_v25 = vrot.slane %v10092_v39, 5  ;;  %v20038_v63 = vld [vmem:[#allocation3 + $0x94] sm:$0xf]  ;;  %v6924_v50 = vpop.f32.mrf.mxu1  ;;  %15479 = vmatmul.mubr.msk.bf16.gmra.mxu0 %vm6793_vm3, %v14288_v15  ;;  %v10071_v32 = vsel %vm15995_vm13, %v10066_v40, %v10070_v62  ;;  %v20044_v21 = vadd.f32 %v19892_v4, %v15200_v11  ;;  %v15716_v39 = vld [vmem:[#allocation3 + $0x6c] sm:$0xff]   ;;  %v15717_v4 = vld [vmem:[#allocation3 + $0x78] sm:$0xff]  }
 0x39a   : > { %22068 = vst [vmem:[#allocation38_spill] sm:$0xff] %v20038_v63  ;;  %v10098_v35 = vrot.slane %v10096_v26, 4  ;;  %v10107_v59 = vshrl.u32 %v9848_v31, 16  ;;  %v20048_v6 = vpop.f32.mrf.mxu0  ;;  %v10089_v14 = vor.u32 %v10088_v13, %v10085_v22  ;;  %v10104_v41 = vrot.slane %v10102_v46, 5 }
 0x39b   : > { %22069 = vst [vmem:[#allocation45_spill] sm:$0xff] %v20044_v21  ;;  %v10081_v54 = vsel %vm15995_vm13, %v10076_v7, %v10080_v43  ;;  %v10110_v57 = vshll.u32 %v9848_v31, 16  ;;  %v15201_v15 = vpop.f32.mrf.mxu1  ;;  %v10116_v40 = vshll.u32 %v20038_v63, 16  ;;  %v10120_v44 = vshrl.u32 %v20038_v63, 16  ;;  %v9851_v7 = vld [vmem:[#allocation3 + $0x9c] sm:$0xf] }
 0x39c   : > { %v14289_v24 = vcombine.low %v10071_v32, %v10081_v54  ;;  %v10099_v47 = vor.u32 %v10098_v35, %v10094_v25  ;;  %v10109_v62 = vrot.slane %v10107_v59, 4  ;;  %v20053_v11 = vpop.f32.mrf.mxu0  ;;  %v10090_v26 = vrot.slane %v10089_v14, 4  ;;  %v20066_v35 = vld [vmem:[#allocation3 + $0xa0] sm:$0xf] }
 0x39d   : > { %15439 = vmatmul.mubr.msk.bf16.gmra.mxu1 %vm6793_vm3, %v15716_v39  ;;  %v10112_v21 = vrot.slane %v10110_v57, 5  ;;  %v10126_v43 = vshll.u32 %v20046_v2, 16  ;;  %v6927_v22 = vpop.f32.mrf.mxu1  ;;  %v10118_v13 = vrot.slane %v10116_v40, 5  ;;  %v20061_v46 = vadd.f32 %v19910_v37, %v6924_v50  ;;  %22073 = vst [vmem:[#allocation21_spill] sm:$0xff] %v20066_v35 }
 0x39e   : > { %15482 = vmatprep.mubr.msk.bf16.mxu0 %vm6793_vm3, %v14289_v24  ;;  %v10100_v31 = vrot.slane %v10099_v47, 4  ;;  %15442 = vmatprep.mubr.msk.bf16.mxu1 %vm6793_vm3, %v15717_v4  ;;  %v20064_v32 = vadd.f32 %v19937_v12, %v15201_v15  ;;  %v20068_v57 = vpop.f32.mrf.mxu0  ;;  %v10095_v59 = vsel %vm15995_vm13, %v10090_v26, %v10094_v25  ;;  %v10122_v14 = vrot.slane %v10120_v44, 4  ;;  %v20072_v47 = vld [vmem:[#allocation3 + $0xa4] sm:$0x1] }
 0x39f   : > { %22071 = vst [vmem:[#allocation34_spill] sm:$0xff] %v20061_v46  ;;  %v10113_v54 = vor.u32 %v10112_v21, %v10109_v62  ;;  %v10128_v24 = vrot.slane %v10126_v43, 5  ;;  %22074 = vst [vmem:[#allocation20_spill] sm:$0xff] %v20072_v47  ;;  %v20077_v37 = vadd.f32 %v19959_v27, %v6927_v22  ;;  %v10131_v12 = vshrl.u32 %v9851_v7, 16  ;;  %v9854_v21 = vld [vmem:[#allocation3 + $0xa8] sm:$0xf] }
 0x3a0   : > { %22072 = vst [vmem:[#allocation26_spill] sm:$0xff] %v20064_v32  ;;  %v10105_v39 = vsel %vm15995_vm13, %v10100_v31, %v10104_v41  ;;  %v10134_v50 = vshll.u32 %v9851_v7, 16  ;;  %v20079_v15 = vpop.f32.mrf.mxu0  ;;  %v10123_v32 = vor.u32 %v10122_v14, %v10118_v13  ;;  %v10140_v25 = vshll.u32 %v20066_v35, 16  ;;  %v20084_v31 = vld [vmem:[#allocation3 + $0xac] sm:$0xf]  ;;  %v15719_v14 = vld [vmem:[#allocation3 + $0x84] sm:$0xff]  }
 0x3a1   : > { %22075 = vst [vmem:[#allocation32_spill] sm:$0xff] %v20077_v37  ;;  %v14290_v40 = vcombine.low %v10095_v59, %v10105_v39  ;;  %v10114_v4 = vrot.slane %v10113_v54, 4  ;;  %v10133_v44 = vrot.slane %v10131_v12, 4  ;;  %v10144_v26 = vshrl.u32 %v20066_v35, 16  ;;  %v20094_v37 = vld [vmem:[#allocation3 + $0xb0] sm:$0x1] }
 0x3a2   : > { %v10136_v62 = vrot.slane %v10134_v50, 5  ;;  %v10150_v43 = vshll.u32 %v20072_v47, 16  ;;  %v15204_v41 = vpop.f32.mrf.mxu1  ;;  %v20086_v27 = vpop.f32.mrf.mxu0  ;;  %v10124_v7 = vrot.slane %v10123_v32, 4  ;;  %v10142_v59 = vrot.slane %v10140_v25, 5  ;;  %v15720_v47 = vld [vmem:[#allocation3 + $0x90] sm:$0xff]  }
 0x3a3   : > { %15483 = vmatmul.mubr.msk.bf16.gmra.mxu0 %vm6793_vm3, %v14290_v40  ;;  %v10119_v22 = vsel %vm15995_vm13, %v10114_v4, %v10118_v13  ;;  %v20092_v54 = vadd.f32 %v19983_v29, %v15204_v41  ;;  %v10146_v12 = vrot.slane %v10144_v26, 4  ;;  %v10155_v46 = vshrl.u32 %v9854_v21, 16 }
 0x3a4   : > { %v10137_v39 = vor.u32 %v10136_v62, %v10133_v44  ;;  %v10152_v50 = vrot.slane %v10150_v43, 5  ;;  %v6940_v35 = vpop.f32.mrf.mxu1  ;;  %v20096_v2 = vpop.f32.mrf.mxu0  ;;  %v10129_v40 = vsel %vm15995_vm13, %v10124_v7, %v10128_v24  ;;  %v10158_v13 = vshll.u32 %v9854_v21, 16  ;;  %v9857_v43 = vld [vmem:[#allocation3 + $0xb4] sm:$0xf]  ;;  %v20107_v21 = vld [vmem:[#allocation3 + $0xb8] sm:$0xf] }
 0x3a5   : > { %22076 = vst [vmem:[#allocation17_spill] sm:$0xff] %v20092_v54  ;;  %15443 = vmatmul.mubr.msk.bf16.gmra.mxu1 %vm6793_vm3, %v15719_v14  ;;  %v10164_v29 = vshll.u32 %v20084_v31, 16  ;;  %v10168_v32 = vshrl.u32 %v20084_v31, 16  ;;  %v14291_v4 = vcombine.low %v10119_v22, %v10129_v40  ;;  %v10147_v44 = vor.u32 %v10146_v12, %v10142_v59  ;;  %22077 = vst [vmem:[#allocation25_spill] sm:$0xff] %v20107_v21 }
 0x3a6   : > { %v10138_v25 = vrot.slane %v10137_v39, 4  ;;  %v10157_v62 = vrot.slane %v10155_v46, 4  ;;  %15446 = vmatprep.mubr.msk.bf16.mxu1 %vm6793_vm3, %v15720_v47  ;;  %v15205_v26 = vpop.f32.mrf.mxu1  ;;  %v20104_v41 = vpop.f32.mrf.mxu0  ;;  %v10160_v54 = vrot.slane %v10158_v13, 5  ;;  %v10174_v7 = vshll.u32 %v20094_v37, 16 }
 0x3a7   : > { %v10166_v63 = vrot.slane %v10164_v29, 5  ;;  %v10170_v24 = vrot.slane %v10168_v32, 4  ;;  %15486 = vmatprep.mubr.msk.bf16.mxu0 %vm6793_vm3, %v14291_v4  ;;  %v10148_v14 = vrot.slane %v10147_v44, 4  ;;  %v20113_v46 = vadd.f32 %v19990_v45, %v6940_v35  ;;  %v20121_v32 = vld [vmem:[#allocation3 + $0xbc] sm:$0x1] }
 0x3a8   : > { %v10143_v22 = vsel %vm15995_vm13, %v10138_v25, %v10142_v59  ;;  %v20116_v47 = vadd.f32 %v20004_v42, %v15205_v26  ;;  %v6943_v39 = vpop.f32.mrf.mxu1  ;;  %v10161_v12 = vor.u32 %v10160_v54, %v10157_v62  ;;  %v10176_v13 = vrot.slane %v10174_v7, 5  ;;  %22081 = vst [vmem:[#allocation16_spill] sm:$0xff] %v20121_v32  ;;  %v15721_v42 = vld [vmem:[#allocation3 + $0x9c] sm:$0xff]  }
 0x3a9   : > { %22078 = vst [vmem:[#allocation40_spill] sm:$0xff] %v20113_v46  ;;  %v10171_v40 = vor.u32 %v10170_v24, %v10166_v63  ;;  %v20119_v29 = vadd.f32 %v20017_v5, %v6943_v39  ;;  %v20123_v4 = vpop.f32.mrf.mxu0  ;;  %v10153_v59 = vsel %vm15995_vm13, %v10148_v14, %v10152_v50  ;;  %v10179_v25 = vshrl.u32 %v9857_v43, 16  ;;  %v9860_v24 = vld [vmem:[#allocation3 + $0xc0] sm:$0xf]  ;;  %v15722_v5 = vld [vmem:[#allocation3 + $0xa8] sm:$0xff]  }
 0x3aa   : > { %22079 = vst [vmem:[#allocation37_spill] sm:$0xff] %v20116_v47  ;;  %v10182_v45 = vshll.u32 %v9857_v43, 16  ;;  %v10188_v35 = vshll.u32 %v20107_v21, 16  ;;  %v14292_v44 = vcombine.low %v10143_v22, %v10153_v59  ;;  %v10162_v26 = vrot.slane %v10161_v12, 4  ;;  %v20132_v14 = vld [vmem:[#allocation3 + $0xc4] sm:$0xf] }
 0x3ab   : > { %22080 = vst [vmem:[#allocation29_spill] sm:$0xff] %v20119_v29  ;;  %v10172_v54 = vrot.slane %v10171_v40, 4  ;;  %v10192_v62 = vshrl.u32 %v20107_v21, 16  ;;  %v20129_v7 = vpop.f32.mrf.mxu0  ;;  %v10181_v39 = vrot.slane %v10179_v25, 4  ;;  %v10198_v46 = vshll.u32 %v20121_v32, 16  ;;  %22082 = vst [vmem:[#allocation31_spill] sm:$0xff] %v20132_v14 }
 0x3ac   : > { %v10184_v29 = vrot.slane %v10182_v45, 5  ;;  %v10190_v47 = vrot.slane %v10188_v35, 5  ;;  %v15208_v50 = vpop.f32.mrf.mxu1  ;;  %15487 = vmatmul.mubr.msk.bf16.gmra.mxu0 %vm6793_vm3, %v14292_v44  ;;  %v10167_v43 = vsel %vm15995_vm13, %v10162_v26, %v10166_v63  ;;  %v20143_v59 = vld [vmem:[#allocation3 + $0xc8] sm:$0x1]  ;;  %v10203_v44 = vshrl.u32 %v9860_v24, 16 }
 0x3ad   : > { %v10177_v22 = vsel %vm15995_vm13, %v10172_v54, %v10176_v13  ;;  %v10194_v12 = vrot.slane %v10192_v62, 4  ;;  %v20140_v40 = vadd.f32 %v20035_v56, %v15208_v50  ;;  %15447 = vmatmul.mubr.msk.bf16.gmra.mxu1 %vm6793_vm3, %v15721_v42  ;;  %22084 = vst [vmem:[#allocation46_spill] sm:$0xff] %v20143_v59  ;;  %v20145_v25 = vpop.f32.mrf.mxu0  ;;  %v10200_v32 = vrot.slane %v10198_v46, 5 }
 0x3ae   : > { %v14293_v45 = vcombine.low %v10167_v43, %v10177_v22  ;;  %v10185_v35 = vor.u32 %v10184_v29, %v10181_v39  ;;  %15450 = vmatprep.mubr.msk.bf16.mxu1 %vm6793_vm3, %v15722_v5  ;;  %v6956_v63 = vpop.f32.mrf.mxu1  ;;  %v10206_v21 = vshll.u32 %v9860_v24, 16  ;;  %v10212_v13 = vshll.u32 %v20132_v14, 16  ;;  %v10571_v5 = vld [vmem:[#allocation3 + $0x18] sm:$0xe] }
 0x3af   : > { %22083 = vst [vmem:[#allocation22_spill] sm:$0xff] %v20140_v40  ;;  %v10195_v26 = vor.u32 %v10194_v12, %v10190_v47  ;;  %v10216_v56 = vshrl.u32 %v20132_v14, 16  ;;  %v20150_v54 = vpop.f32.mrf.mxu0  ;;  %v10205_v62 = vrot.slane %v10203_v44, 4  ;;  %v10222_v50 = vshll.u32 %v20143_v59, 16  ;;  %v9863_v40 = vld [vmem:[#allocation3 + $0xcc] sm:$0xf] }
 0x3b0   : > { %15490 = vmatprep.mubr.msk.bf16.mxu0 %vm6793_vm3, %v14293_v45  ;;  %v10186_v42 = vrot.slane %v10185_v35, 4  ;;  %v20155_v46 = vadd.f32 %v20048_v6, %v6956_v63  ;;  %v15209_v29 = vpop.f32.mrf.mxu1  ;;  %v10208_v43 = vrot.slane %v10206_v21, 5  ;;  %v10214_v24 = vrot.slane %v10212_v13, 5 }
 0x3b1   : > { %v10196_v39 = vrot.slane %v10195_v26, 4  ;;  %v10218_v22 = vrot.slane %v10216_v56, 4  ;;  %v20157_v12 = vpop.f32.mrf.mxu0  ;;  %v20161_v14 = vadd.f32 %v19750_v20, %v19859_v36  ;;  %v10224_v35 = vrot.slane %v10222_v50, 5  ;;  %v15724_v56 = vld [vmem:[#allocation3 + $0xb4] sm:$0xff]   ;;  %v20175_v20 = vld [vmem:[#allocation3 + $0xd0] sm:$0xf] }
 0x3b2   : > { %22085 = vst [vmem:[#allocation48_spill] sm:$0xff] %v20155_v46  ;;  %v10191_v45 = vsel %vm15995_vm13, %v10186_v42, %v10190_v47  ;;  %v20166_v6 = vadd.f32 %v20053_v11, %v15209_v29  ;;  %v6959_v44 = vpop.f32.mrf.mxu1  ;;  %v10209_v63 = vor.u32 %v10208_v43, %v10205_v62  ;;  %v15725_v42 = vld [vmem:[#allocation3 + $0xc0] sm:$0xff]   ;;  %v14317_v50 = vrot.slane %v10571_v5, 9 }
 0x3b3   : > { %v10201_v21 = vsel %vm15995_vm13, %v10196_v39, %v10200_v32  ;;  %v10219_v26 = vor.u32 %v10218_v22, %v10214_v24  ;;  %v20171_v13 = vadd.f32 %v20068_v57, %v6959_v44  ;;  %v20173_v59 = vpop.f32.mrf.mxu0  ;;  %v10637_v11 = vrot.slane %v19799_v60, 5  ;;  %v20187_v60 = vld [vmem:[#allocation3 + $0xd4] sm:$0x1] }
 0x3b4   : > { %22086 = vst [vmem:[#allocation50_spill] sm:$0xff] %v20166_v6  ;;  %v14294_v36 = vcombine.low %v10191_v45, %v10201_v21  ;;  %v15212_v47 = vpop.f32.mrf.mxu1  ;;  %v10227_v29 = vshrl.u32 %v9863_v40, 16  ;;  %v10210_v6 = vrot.slane %v10209_v63, 4  ;;  %v10230_v57 = vshll.u32 %v9863_v40, 16 }
 0x3b5   : > { %v10220_v46 = vrot.slane %v10219_v26, 4  ;;  %v20179_v32 = vadd.f32 %v20079_v15, %v15212_v47  ;;  %15451 = vmatmul.mubr.msk.bf16.gmra.mxu1 %vm6793_vm3, %v15724_v56  ;;  %v20182_v62 = vpop.f32.mrf.mxu0  ;;  %v10639_v43 = vrot.slane %v10637_v11, 4  ;;  %v10640_v5 = vrot.slane %v19805_v23, 5 }
 0x3b6   : > { %15491 = vmatmul.mubr.msk.bf16.gmra.mxu0 %vm6793_vm3, %v14294_v36  ;;  %15454 = vmatprep.mubr.msk.bf16.mxu1 %vm6793_vm3, %v15725_v42  ;;  %v6972_v39 = vpop.f32.mrf.mxu1  ;;  %v10229_v22 = vrot.slane %v10227_v29, 4  ;;  %v10236_v45 = vshll.u32 %v20175_v20, 16  ;;  %v10215_v15 = vsel %vm15995_vm13, %v10210_v6, %v10214_v24  ;;  %v10232_v21 = vrot.slane %v10230_v57, 5  ;;  %v10572_v42 = vld [vmem:[#allocation3 + $0x24] sm:$0xe]  ;;  %v15726_v6 = vld [vmem:[#allocation3 + $0xcc] sm:$0xff]  }
 0x3b7   : > { %v10225_v40 = vsel %vm15995_vm13, %v10220_v46, %v10224_v35  ;;  %v20195_v44 = vadd.f32 %v20086_v27, %v6972_v39  ;;  %v20197_v63 = vpop.f32.mrf.mxu0  ;;  %v10641_v23 = vsel %vm16408_vm11, %v10639_v43, %v10640_v5  ;;  %v10240_v47 = vshrl.u32 %v20175_v20, 16 }
 0x3b8   : > { %v14295_v26 = vcombine.low %v10215_v15, %v10225_v40  ;;  %v15213_v56 = vpop.f32.mrf.mxu1  ;;  %v10238_v36 = vrot.slane %v10236_v45, 5  ;;  %v10638_v27 = vsel %vm16408_vm11, %v14317_v50, %v10637_v11  ;;  %v10233_v46 = vor.u32 %v10232_v21, %v10229_v22  ;;  %v10573_v45 = vld [vmem:[#allocation3 + $0x30] sm:$0xe] }
 0x3b9   : > { %v20203_v24 = vadd.f32 %v20096_v2, %v15213_v56  ;;  %v10246_v35 = vshll.u32 %v20187_v60, 16  ;;  %v20208_v29 = vpop.f32.mrf.mxu0  ;;  %v20212_v57 = vadd.f32 %v19816_v28, %v19935_v1  ;;  %v14333_v43 = vcombine.low %v10638_v27, %v10641_v23  ;;  %v10574_v23 = vld [vmem:[#allocation3 + $0x3c] sm:$0xe] }
 0x3ba   : > { %15494 = vmatprep.mubr.msk.bf16.mxu0 %vm6793_vm3, %v14295_v26  ;;  %v6975_v39 = vpop.f32.mrf.mxu1  ;;  %v10242_v5 = vrot.slane %v10240_v47, 4  ;;  %v10644_v2 = vrot.slane %v19826_v53, 5  ;;  %v10234_v50 = vrot.slane %v10233_v46, 4  ;;  %v14318_v11 = vrot.slane %v10572_v42, 9 }
 0x3bb   : > { %v20217_v15 = vadd.f32 %v20104_v41, %v6975_v39  ;;  %v10647_v22 = vrot.slane %v19830_v30, 5  ;;  %v20220_v40 = vpop.f32.mrf.mxu0  ;;  %v10248_v1 = vrot.slane %v10246_v35, 5  ;;  %v10651_v26 = vrot.slane %v19855_v18, 5 }
 0x3bc   : > { %v15216_v21 = vpop.f32.mrf.mxu1  ;;  %v10243_v28 = vor.u32 %v10242_v5, %v10238_v36  ;;  %v10646_v56 = vrot.slane %v10644_v2, 4  ;;  %v10239_v53 = vsel %vm15995_vm13, %v10234_v50, %v10238_v36  ;;  %v10645_v30 = vsel %vm16408_vm11, %v14318_v11, %v10644_v2 }
 0x3bd   : > { %22087 = vst [vmem:[#allocation52_spill] sm:$0xff] %v20217_v15  ;;  %v20224_v47 = vadd.f32 %v20123_v4, %v15216_v21  ;;  %15455 = vmatmul.mubr.msk.bf16.gmra.mxu1 %vm6793_vm3, %v15726_v6  ;;  %v14319_v41 = vrot.slane %v10573_v45, 9  ;;  %v20231_v42 = vpop.f32.mrf.mxu0  ;;  %v10653_v4 = vrot.slane %v10651_v26, 4  ;;  %v10654_v35 = vrot.slane %v19865_v48, 5  ;;  %v10575_v6 = vld [vmem:[#allocation3 + $0x48] sm:$0xe] }
 0x3be   : > { %15506 = vmatprep.mubr.msk.bf16.mxu1 %vm6793_vm3, %v14333_v43  ;;  %v6988_v27 = vpop.f32.mrf.mxu1  ;;  %v10244_v46 = vrot.slane %v10243_v28, 4  ;;  %v10648_v18 = vsel %vm16408_vm11, %v10646_v56, %v10647_v22  ;;  %v14320_v2 = vrot.slane %v10574_v23, 9  ;;  %v10658_v43 = vrot.slane %v19872_v38, 5  ;;  %v10576_v38 = vld [vmem:[#allocation3 + $0x54] sm:$0xe] }
 0x3bf   : > { %22088 = vst [vmem:[#allocation54_spill] sm:$0xff] %v20224_v47  ;;  %v20238_v39 = vadd.f32 %v20129_v7, %v6988_v27  ;;  %v10652_v36 = vsel %vm16408_vm11, %v14319_v41, %v10651_v26  ;;  %v20242_v5 = vpop.f32.mrf.mxu0  ;;  %v14334_v11 = vcombine.low %v10645_v30, %v10648_v18  ;;  %v10655_v48 = vsel %vm16408_vm11, %v10653_v4, %v10654_v35  ;;  %v10577_v27 = vld [vmem:[#allocation3 + $0x60] sm:$0xe] }
 0x3c0   : > { %v10249_v45 = vsel %vm15995_vm13, %v10244_v46, %v10248_v1  ;;  %v15217_v50 = vpop.f32.mrf.mxu1  ;;  %v10665_v22 = vrot.slane %v19888_v51, 5  ;;  %v10661_v56 = vrot.slane %v19885_v33, 5  ;;  %v14321_v26 = vrot.slane %v10575_v6, 9 }
 0x3c1   : > { %22089 = vst [vmem:[#allocation33_spill] sm:$0xff] %v20238_v39  ;;  %v14296_v7 = vcombine.low %v10239_v53, %v10249_v45  ;;  %v20251_v21 = vadd.f32 %v20145_v25, %v15217_v50  ;;  %v20253_v28 = vpop.f32.mrf.mxu0  ;;  %v14335_v8 = vcombine.low %v10652_v36, %v10655_v48  ;;  %v10660_v1 = vrot.slane %v10658_v43, 4  ;;  %v10578_v45 = vld [vmem:[#allocation3 + $0x6c] sm:$0xe] }
 0x3c2   : > { %v6991_v23 = vpop.f32.mrf.mxu1  ;;  %v10667_v41 = vrot.slane %v10665_v22, 4  ;;  %v10668_v30 = vrot.slane %v19901_v61, 5  ;;  %v10659_v25 = vsel %vm16408_vm11, %v14320_v2, %v10658_v43  ;;  %v10666_v33 = vsel %vm16408_vm11, %v14321_v26, %v10665_v22 }
 0x3c3   : > { %22090 = vst [vmem:[#allocation24_spill] sm:$0xff] %v20251_v21  ;;  %15495 = vmatmul.mubr.msk.bf16.gmra.mxu0 %vm6793_vm3, %v14296_v7  ;;  %v20259_v51 = vadd.f32 %v20150_v54, %v6991_v23  ;;  %v20263_v53 = vpop.f32.mrf.mxu0  ;;  %v10672_v46 = vrot.slane %v19918_v0, 5  ;;  %v10662_v61 = vsel %vm16408_vm11, %v10660_v1, %v10661_v56  ;;  %v14322_v35 = vrot.slane %v10576_v38, 9  ;;  %v10579_v56 = vld [vmem:[#allocation3 + $0x78] sm:$0xe] }
 0x3c4   : > { %v15268_v18 = vpop.f32.mrf.mxu1  ;;  %v10669_v4 = vsel %vm16408_vm11, %v10667_v41, %v10668_v30  ;;  %v10679_v54 = vrot.slane %v19941_v17, 5  ;;  %v14336_v36 = vcombine.low %v10659_v25, %v10662_v61  ;;  %v10675_v0 = vrot.slane %v19927_v10, 5 }
 0x3c5   : > { %22091 = vst [vmem:[#allocation35_spill] sm:$0xff] %v20259_v51  ;;  %v20274_v6 = vadd.f32 %v15268_v18, %v19897_v34  ;;  %15507 = vmatmul.mubr.msk.bf16.vlgmr.msra.gmra.mxu1 %vm6793_vm3, %v14334_v11  ;;  %v20277_v2 = vpop.f32.mrf.mxu0  ;;  %v14323_v43 = vrot.slane %v10577_v27, 9  ;;  %v14337_v48 = vcombine.low %v10666_v33, %v10669_v4  ;;  %v10674_v22 = vrot.slane %v10672_v46, 4  ;;  %v10580_v33 = vld [vmem:[#allocation3 + $0x84] sm:$0xe] }
 0x3c6   : > { %15510 = vmatprep.mubr.msk.bf16.mxu1 %vm6793_vm3, %v14335_v8  ;;  %v7638_v50 = vpop.f32.mrf.mxu1  ;;  %v10681_v7 = vrot.slane %v10679_v54, 4  ;;  %v10682_v17 = vrot.slane %v19956_v19, 5  ;;  %v20289_v26 = vsel %vm16408_vm11, %v14322_v35, %v10672_v46  ;;  %v10686_v38 = vrot.slane %v19969_v49, 5  ;;  %v10581_v35 = vld [vmem:[#allocation3 + $0x90] sm:$0xe] }
 0x3c7   : > { %v20283_v34 = vadd.f32 %v7638_v50, %v19916_v9  ;;  %v20285_v11 = vpop.f32.mrf.mxu0  ;;  %v20293_v10 = vsel %vm16408_vm11, %v14323_v43, %v10679_v54  ;;  %v20298_v19 = vsel %vm16408_vm11, %v10674_v22, %v10675_v0  ;;  %v14324_v8 = vrot.slane %v10578_v45, 9  ;;  %v22092_v45 = vld [vmem:[#allocation19_spill] sm:$0xff]  ;;  %v10583_v27 = vld [vmem:[#allocation3 + $0xa8] sm:$0xe] }
 0x3c8   : > { %v15269_v23 = vpop.f32.mrf.mxu1  ;;  %v20302_v9 = vsel %vm16408_vm11, %v10681_v7, %v10682_v17  ;;  %v10693_v1 = vrot.slane %v19994_v16, 5  ;;  %v14325_v25 = vrot.slane %v10579_v56, 9  ;;  %v10688_v18 = vrot.slane %v10686_v38, 4  ;;  %v22093_v7 = vld [vmem:[#allocation38_spill] sm:$0xff]  ;;  %v22094_v56 = vld [vmem:[#allocation13_spill] sm:$0xff] }
 0x3c9   : > { %v20306_v41 = vadd.f32 %v15269_v23, %v19923_v58  ;;  %v20308_v30 = vpop.f32.mrf.mxu0  ;;  %v10689_v61 = vrot.slane %v19981_v3, 5  ;;  %v10696_v16 = vrot.slane %v20002_v52, 5  ;;  %v20323_v0 = vsel %vm16408_vm11, %v14324_v8, %v10686_v38 }
 0x3ca   : > { %v7641_v46 = vpop.f32.mrf.mxu1  ;;  %v10695_v4 = vrot.slane %v10693_v1, 4  ;;  %v20327_v43 = vsel %vm16408_vm11, %v14325_v25, %v10693_v1  ;;  %v10700_v50 = vrot.slane %v22092_v45, 5  ;;  %v14326_v22 = vrot.slane %v10580_v33, 9  ;;  %v22096_v45 = vld [vmem:[#allocation18_spill] sm:$0xff] }
 0x3cb   : > { %v20317_v58 = vadd.f32 %v7641_v46, %v20161_v14  ;;  %v20319_v54 = vpop.f32.mrf.mxu0  ;;  %v20332_v52 = vsel %vm16408_vm11, %v10688_v18, %v10689_v61  ;;  %v10707_v17 = vrot.slane %v22093_v7, 5  ;;  %v14327_v25 = vrot.slane %v10581_v35, 9  ;;  %v10582_v46 = vld [vmem:[#allocation3 + $0x9c] sm:$0xe] }
 0x3cc   : > { %v15272_v3 = vpop.f32.mrf.mxu1  ;;  %v20336_v14 = vsel %vm16408_vm11, %v10695_v4, %v10696_v16  ;;  %v10702_v18 = vrot.slane %v10700_v50, 4  ;;  %v22095_v61 = vld [vmem:[#allocation43_spill] sm:$0xff]  ;;  %v20357_v8 = vsel %vm16408_vm11, %v14326_v22, %v10700_v50  ;;  %v10721_v50 = vrot.slane %v20084_v31, 5 }
 0x3cd   : > { %v20340_v38 = vadd.f32 %v15272_v3, %v22094_v56  ;;  %15511 = vmatmul.mubr.msk.bf16.gmra.mxu1 %vm6793_vm3, %v14336_v36  ;;  %v20343_v23 = vpop.f32.mrf.mxu0  ;;  %v10703_v4 = vrot.slane %v22095_v61, 5  ;;  %v10709_v16 = vrot.slane %v10707_v17, 4  ;;  %v10710_v3 = vrot.slane %v22096_v45, 5  ;;  %v22097_v36 = vld [vmem:[#allocation12_spill] sm:$0xff]  ;;  %v22099_v22 = vld [vmem:[#allocation15_spill] sm:$0xff] }
 0x3ce   : > { %15514 = vmatprep.mubr.msk.bf16.mxu1 %vm6793_vm3, %v14337_v48  ;;  %v7654_v33 = vpop.f32.mrf.mxu1  ;;  %v20361_v35 = vsel %vm16408_vm11, %v14327_v25, %v10707_v17  ;;  %v22098_v48 = vld [vmem:[#allocation21_spill] sm:$0xff]  ;;  %v14328_v45 = vrot.slane %v10582_v46, 9  ;;  %v14329_v39 = vrot.slane %v10583_v27, 9  ;;  %v10724_v46 = vrot.slane %v20094_v37, 5 }
 0x3cf   : > { %v7769_v7 = vadd.f32 %v7654_v33, %v22097_v36  ;;  %v20353_v56 = vpop.f32.mrf.mxu0  ;;  %v10714_v1 = vrot.slane %v22098_v48, 5  ;;  %v20366_v61 = vsel %vm16408_vm11, %v10702_v18, %v10703_v4  ;;  %v20370_v33 = vsel %vm16408_vm11, %v10709_v16, %v10710_v3  ;;  %v22100_v48 = vld [vmem:[#allocation20_spill] sm:$0xff] }
 0x3d0   : > { %v15273_v49 = vpop.f32.mrf.mxu1  ;;  %v14343_v25 = vcombine.low %v20361_v35, %v20370_v33  ;;  %v10717_v18 = vrot.slane %v22100_v48, 5  ;;  %v10723_v16 = vrot.slane %v10721_v50, 4  ;;  %v20396_v27 = vsel %vm16408_vm11, %v14329_v39, %v10721_v50  ;;  %v22120_v33 = vld [vmem:[#allocation29_spill] sm:$0xff] }
 0x3d1   : > { %v7772_v36 = vadd.f32 %v15273_v49, %v22099_v22  ;;  %v20374_v51 = vpop.f32.mrf.mxu0  ;;  %v10716_v21 = vrot.slane %v10714_v1, 4  ;;  %v10584_v49 = vld [vmem:[#allocation3 + $0xb4] sm:$0xe]  ;;  %v22101_v22 = vld [vmem:[#allocation25_spill] sm:$0xff]  ;;  %v20388_v17 = vsel %vm16408_vm11, %v14328_v45, %v10714_v1  ;;  %v22104_v45 = vcombine.low %v20293_v10, %v20302_v9 }
 0x3d2   : > { %v7657_v4 = vpop.f32.mrf.mxu1  ;;  %v10728_v47 = vrot.slane %v22101_v22, 5  ;;  %v20400_v37 = vsel %vm16408_vm11, %v10723_v16, %v10724_v46  ;;  %v22103_v22 = vcombine.low %v20289_v26, %v20298_v19  ;;  %v22105_v16 = vld [vmem:[#allocation16_spill] sm:$0xff]  ;;  %v22106_v19 = vld [vmem:[#allocation23_spill] sm:$0xff]  ;;  %v20431_v10 = vadd.f32 %v20157_v12, %v20274_v6 }
 0x3d3   : > { %v7770_v31 = vadd.f32 %v7657_v4, %v20212_v57  ;;  %v20383_v3 = vpop.f32.mrf.mxu0  ;;  %v20392_v48 = vsel %vm16408_vm11, %v10716_v21, %v10717_v18  ;;  %v22102_v57 = vld [vmem:[#allocation14_spill] sm:$0xff]  ;;  %v10731_v26 = vrot.slane %v22105_v16, 5  ;;  %v20435_v9 = vadd.f32 %v20173_v59, %v20283_v34  ;;  %v22108_v6 = vld [vmem:[#allocation27_spill] sm:$0xff] }
 0x3d4   : > { %v15276_v15 = vpop.f32.mrf.mxu1  ;;  %v10730_v18 = vrot.slane %v10728_v47, 4  ;;  %v20448_v12 = vadd.f32 %v20197_v63, %v20317_v58  ;;  %v20452_v59 = vadd.f32 %v20208_v29, %v20340_v38  ;;  %v22109_v38 = vld [vmem:[#allocation45_spill] sm:$0xff]  ;;  %vm13407_vm13 = vcmask 1045509  }
 0x3d5   : > { %v7775_v4 = vadd.f32 %v15276_v15, %v22102_v57  ;;  %15515 = vmatmul.mubr.msk.bf16.gmra.mxu1 %vm6793_vm3, %v22103_v22  ;;  %v20407_v1 = vpop.f32.mrf.mxu0  ;;  %v14330_v15 = vrot.slane %v10584_v49, 9  ;;  %v22107_v49 = vld [vmem:[#allocation30_spill] sm:$0xff]  ;;  %vm13413_vm15 = vcmask 1047559  }
 0x3d6   : > { %15518 = vmatprep.mubr.msk.bf16.mxu1 %vm6793_vm3, %v22104_v45  ;;  %v7670_v50 = vpop.f32.mrf.mxu1  ;;  %v20427_v39 = vsel %vm16408_vm11, %v10730_v18, %v10731_v26  ;;  %v20444_v18 = vadd.f32 %v20182_v62, %v20306_v41  ;;  %v20458_v26 = vadd.f32 %v20220_v40, %v7769_v7  ;;  %v20464_v62 = vadd.f32 %v20242_v5, %v7770_v31  ;;  %v22112_v7 = vld [vmem:[#allocation34_spill] sm:$0xff] }
 0x3d7   : > { %v7773_v46 = vadd.f32 %v7670_v50, %v22106_v19  ;;  %v20419_v57 = vpop.f32.mrf.mxu0  ;;  %v20423_v21 = vsel %vm16408_vm11, %v14330_v15, %v10728_v47  ;;  %v20461_v19 = vadd.f32 %v20231_v42, %v7772_v36  ;;  %v20467_v63 = vadd.f32 %v20253_v28, %v7775_v4 }
 0x3d8   : > { %v15277_v22 = vpop.f32.mrf.mxu1  ;;  %v14346_v47 = vcombine.low %v20423_v21, %v20427_v39  ;;  %v22110_v40 = vcombine.low %v20323_v0, %v20332_v52  ;;  %v22111_v28 = vcombine.low %v20327_v43, %v20336_v14  ;;  %v22113_v52 = vld [vmem:[#allocation26_spill] sm:$0xff]  ;;  %v22114_v43 = vld [vmem:[#allocation32_spill] sm:$0xff] }
 0x3d9   : > { %v7776_v45 = vadd.f32 %v15277_v22, %v22107_v49  ;;  %v20438_v50 = vpop.f32.mrf.mxu0  ;;  %v20470_v29 = vadd.f32 %v20263_v53, %v7773_v46 }
 0x3da   : > { %v7673_v15 = vpop.f32.mrf.mxu1 }
 0x3db   : > { %v7774_v34 = vadd.f32 %v7673_v15, %v22108_v6  ;;  %v20455_v16 = vpop.f32.mrf.mxu0  ;;  %v20473_v58 = vadd.f32 %v20277_v2, %v7776_v45 }
 0x3dc   : > { %v15280_v41 = vpop.f32.mrf.mxu1 }
 0x3dd   : > { %v7779_v22 = vadd.f32 %v15280_v41, %v22109_v38  ;;  %15519 = vmatmul.mubr.msk.bf16.gmra.mxu1 %vm6793_vm3, %v22110_v40  ;;  %v15329_v42 = vpop.f32.mrf.mxu0  ;;  %v20481_v5 = vadd.f32 %v20285_v11, %v7774_v34  ;;  %v22115_v34 = vld [vmem:[#allocation17_spill] sm:$0xff]  ;;  %v22116_v41 = vcombine.low %v20357_v8, %v20366_v61 }
 0x3de   : > { %15522 = vmatprep.mubr.msk.bf16.mxu1 %vm6793_vm3, %v22111_v28  ;;  %v7686_v53 = vpop.f32.mrf.mxu1  ;;  %v22118_v61 = vld [vmem:[#allocation37_spill] sm:$0xff] }
 0x3df   : > { %v7777_v2 = vadd.f32 %v7686_v53, %v22112_v7  ;;  %v20488_v36 = vpop.f32.mrf.mxu0  ;;  %v20491_v31 = vadd.f32 %v20308_v30, %v7779_v22  ;;  %v22117_v22 = vld [vmem:[#allocation40_spill] sm:$0xff] }
 0x3e0   : > { %v15281_v0 = vpop.f32.mrf.mxu1 }
 0x3e1   : > { %v7780_v4 = vadd.f32 %v15281_v0, %v22113_v52  ;;  %v20494_v46 = vpop.f32.mrf.mxu0  ;;  %v20497_v11 = vadd.f32 %v20319_v54, %v7777_v2 }
 0x3e2   : > { %v7689_v49 = vpop.f32.mrf.mxu1 }
 0x3e3   : > { %v7778_v14 = vadd.f32 %v7689_v49, %v22114_v43  ;;  %v20500_v45 = vpop.f32.mrf.mxu0  ;;  %v20503_v15 = vadd.f32 %v20343_v23, %v7780_v4  ;;  %v22121_v43 = vld [vmem:[#allocation22_spill] sm:$0xff] }
 0x3e4   : > { %v15284_v6 = vpop.f32.mrf.mxu1 }
 0x3e5   : > { %v7783_v30 = vadd.f32 %v15284_v6, %v22115_v34  ;;  %15523 = vmatmul.mubr.msk.bf16.gmra.mxu1 %vm6793_vm3, %v22116_v41  ;;  %v20510_v38 = vpop.f32.mrf.mxu0  ;;  %v20513_v54 = vadd.f32 %v20353_v56, %v7778_v14  ;;  %v22119_v56 = vld [vmem:[#allocation31_spill] sm:$0xff]  ;;  %v22122_v6 = vcombine.low %v20388_v17, %v20392_v48  ;;  %v22123_v41 = vcombine.low %v20396_v27, %v20400_v37  ;;  %v22125_v17 = vld [vmem:[#allocation46_spill] sm:$0xff] }
 0x3e6   : > { %15526 = vmatprep.mubr.msk.bf16.mxu1 %vm6793_vm3, %v14343_v25  ;;  %v7702_v23 = vpop.f32.mrf.mxu1  ;;  %v10735_v0 = vrot.slane %v22119_v56, 5  ;;  %v10738_v48 = vrot.slane %v22125_v17, 5 }
 0x3e7   : > { %v7781_v40 = vadd.f32 %v7702_v23, %v22117_v22  ;;  %v20520_v28 = vpop.f32.mrf.mxu0  ;;  %v20523_v53 = vadd.f32 %v20374_v51, %v7783_v30  ;;  %v10585_v23 = vld [vmem:[#allocation3 + $0xc0] sm:$0xe]  ;;  %v10742_v22 = vrot.slane %v20175_v20, 5 }
 0x3e8   : > { %v15285_v8 = vpop.f32.mrf.mxu1  ;;  %v10737_v34 = vrot.slane %v10735_v0, 4 }
 0x3e9   : > { %v7784_v7 = vadd.f32 %v15285_v8, %v22118_v61  ;;  %v20526_v2 = vpop.f32.mrf.mxu0  ;;  %v20530_v52 = vadd.f32 %v20383_v3, %v7781_v40  ;;  %v22124_v40 = vld [vmem:[#allocation48_spill] sm:$0xff] }
 0x3ea   : > { %v7705_v35 = vpop.f32.mrf.mxu1  ;;  %v10739_v27 = vsel %vm16408_vm11, %v10737_v34, %v10738_v48 }
 0x3eb   : > { %v7782_v25 = vadd.f32 %v7705_v35, %v22120_v33  ;;  %v20533_v4 = vpop.f32.mrf.mxu0  ;;  %v20536_v49 = vadd.f32 %v20407_v1, %v7784_v7  ;;  %v10586_v7 = vld [vmem:[#allocation3 + $0xcc] sm:$0xe]  ;;  %v22126_v35 = vld [vmem:[#allocation50_spill] sm:$0xff] }
 0x3ec   : > { %v15288_v51 = vpop.f32.mrf.mxu1 }
 0x3ed   : > { %v7787_v14 = vadd.f32 %v15288_v51, %v22121_v43  ;;  %15527 = vmatmul.mubr.msk.bf16.gmra.mxu1 %vm6793_vm3, %v22122_v6  ;;  %v20543_v30 = vpop.f32.mrf.mxu0  ;;  %v20546_v3 = vadd.f32 %v20419_v57, %v7782_v25  ;;  %v14331_v25 = vrot.slane %v10585_v23, 9  ;;  %v14332_v43 = vrot.slane %v10586_v7, 9 }
 0x3ee   : > { %15530 = vmatprep.mubr.msk.bf16.mxu1 %vm6793_vm3, %v22123_v41  ;;  %v7718_v1 = vpop.f32.mrf.mxu1  ;;  %v10744_v6 = vrot.slane %v10742_v22, 4  ;;  %v10745_v41 = vrot.slane %v20187_v60, 5 }
 0x3ef   : > { %v7785_v8 = vadd.f32 %v7718_v1, %v22124_v40  ;;  %v8138_v61 = vpop.f32.mrf.mxu0  ;;  %v20556_v56 = vadd.f32 %v20438_v50, %v7787_v14  ;;  %v10736_v14 = vsel %vm16408_vm11, %v14331_v25, %v10735_v0  ;;  %v22128_v25 = vld [vmem:[#allocation54_spill] sm:$0xff] }
 0x3f0   : > { %v15289_v57 = vpop.f32.mrf.mxu1  ;;  %v14347_v40 = vcombine.low %v10736_v14, %v10739_v27  ;;  %v10746_v0 = vsel %vm16408_vm11, %v10744_v6, %v10745_v41  ;;  %v22130_v14 = vld [vmem:[#allocation24_spill] sm:$0xff] }
 0x3f1   : > { %v7788_v33 = vadd.f32 %v15289_v57, %v22126_v35  ;;  %v20561_v37 = vpop.f32.mrf.mxu0  ;;  %v20564_v20 = vadd.f32 %v20455_v16, %v7785_v8 }
 0x3f2   : > { %v7721_v51 = vpop.f32.mrf.mxu1 }
 0x3f3   : > { %v7786_v50 = vadd.f32 %v7721_v51, %v20171_v13  ;;  %v20570_v1 = vpop.f32.mrf.mxu0  ;;  %v20572_v23 = vadd.f32 %v15329_v42, %v7788_v33  ;;  %v10743_v42 = vsel %vm16408_vm11, %v14332_v43, %v10742_v22  ;;  %v22127_v22 = vld [vmem:[#allocation52_spill] sm:$0xff]  ;;  %v22129_v43 = vld [vmem:[#allocation33_spill] sm:$0xff] }
 0x3f5   : > { %v15292_v34 = vpop.f32.mrf.mxu1  ;;  %15531 = vmatmul.mubr.msk.bf16.gmra.mxu1 %vm6793_vm3, %v14346_v47  ;;  %v20579_v16 = vpop.f32.mrf.mxu0  ;;  %v20582_v13 = vadd.f32 %v20488_v36, %v7786_v50  ;;  %v14348_v36 = vcombine.low %v10743_v42, %v10746_v0 }
 0x3f6   : > { %v7791_v17 = vadd.f32 %v15292_v34, %v20179_v32  ;;  %15534 = vmatprep.mubr.msk.bf16.mxu1 %vm6793_vm3, %v14347_v40 }
 0x3f7   : > { %v7734_v60 = vpop.f32.mrf.mxu1  ;;  %v20590_v8 = vpop.f32.mrf.mxu0 }
 0x3f8   : > { %v7789_v32 = vadd.f32 %v7734_v60, %v20195_v44  ;;  %v20593_v21 = vadd.f32 %v20494_v46, %v7791_v17  ;;  %v22131_v60 = vld [vmem:[#allocation35_spill] sm:$0xff] }
 0x3f9   : > { %v15293_v39 = vpop.f32.mrf.mxu1  ;;  %v15392_v48 = vpop.f32.mrf.mxu0 }
 0x3fa   : > { %v7792_v47 = vadd.f32 %v15293_v39, %v20203_v24  ;;  %v20597_v7 = vadd.f32 %v20500_v45, %v7789_v32 }
 0x3fb   : > { %v7737_v57 = vpop.f32.mrf.mxu1  ;;  %v9289_v55 = vpop.f32.mrf.mxu0 }
 0x3fc   : > { %v7790_v35 = vadd.f32 %v7737_v57, %v22127_v22  ;;  %v20601_v33 = vadd.f32 %v20510_v38, %v7792_v47 }
 0x3fd   : > { %v15296_v44 = vpop.f32.mrf.mxu1  ;;  %15535 = vmatmul.mubr.msk.bf16.gmra.mxu1 %vm6793_vm3, %v14348_v36  ;;  %v15393_v46 = vpop.f32.mrf.mxu0 }
 0x3fe   : > { %v7795_v27 = vadd.f32 %v15296_v44, %v22128_v25  ;;  %v20606_v24 = vadd.f32 %v20520_v28, %v7790_v35 }
 0x3ff   : > { %v7750_v51 = vpop.f32.mrf.mxu1  ;;  %v9292_v6 = vpop.f32.mrf.mxu0 }
 0x400   : > { %v7793_v45 = vadd.f32 %v7750_v51, %v22129_v43  ;;  %v20610_v41 = vadd.f32 %v20526_v2, %v7795_v27 }
 0x401   : > { %v15297_v50 = vpop.f32.mrf.mxu1  ;;  %v15396_v34 = vpop.f32.mrf.mxu0 }
 0x402   : > { %v7796_v38 = vadd.f32 %v15297_v50, %v22130_v14  ;;  %v20614_v40 = vadd.f32 %v20533_v4, %v7793_v45 }
 0x403   : > { %v7753_v17 = vpop.f32.mrf.mxu1  ;;  %v9305_v0 = vpop.f32.mrf.mxu0 }
 0x404   : > { %v7794_v42 = vadd.f32 %v7753_v17, %v22131_v60  ;;  %v20618_v28 = vadd.f32 %v20543_v30, %v7796_v38 }
 0x405   : > { %v15348_v32 = vpop.f32.mrf.mxu1  ;;  %v15397_v2 = vpop.f32.mrf.mxu0 }
 0x406   : > { %v20621_v39 = vadd.f32 %v15348_v32, %v20431_v10  ;;  %v20623_v47 = vadd.f32 %v8138_v61, %v7794_v42 }
 0x407   : > { %v8776_v36 = vpop.f32.mrf.mxu1  ;;  %v9308_v4 = vpop.f32.mrf.mxu0 }
 0x408   : > { %v20626_v57 = vadd.f32 %v8776_v36, %v20435_v9 }
 0x409   : > { %v15349_v22 = vpop.f32.mrf.mxu1  ;;  %v15400_v44 = vpop.f32.mrf.mxu0 }
 0x40a   : > { %v20629_v35 = vadd.f32 %v15349_v22, %v20444_v18 }
 0x40b   : > { %v8779_v25 = vpop.f32.mrf.mxu1  ;;  %v9321_v27 = vpop.f32.mrf.mxu0 }
 0x40c   : > { %v20632_v30 = vadd.f32 %v8779_v25, %v20448_v12 }
 0x40d   : > { %v15352_v10 = vpop.f32.mrf.mxu1  ;;  %v15401_v61 = vpop.f32.mrf.mxu0 }
 0x40e   : > { %v8909_v51 = vadd.f32 %v15352_v10, %v20452_v59 }
 0x40f   : > { %v8792_v43 = vpop.f32.mrf.mxu1  ;;  %v9324_v9 = vpop.f32.mrf.mxu0 }
 0x410   : > { %v8907_v45 = vadd.f32 %v8792_v43, %v20458_v26  ;;  %v20636_v50 = vadd.f32 %v15392_v48, %v8909_v51 }
 0x411   : > { %v15353_v14 = vpop.f32.mrf.mxu1  ;;  %v15404_v38 = vpop.f32.mrf.mxu0 }
 0x412   : > { %v8910_v18 = vadd.f32 %v15353_v14, %v20461_v19  ;;  %v20639_v17 = vadd.f32 %v9289_v55, %v8907_v45 }
 0x413   : > { %v8795_v60 = vpop.f32.mrf.mxu1  ;;  %v9337_v42 = vpop.f32.mrf.mxu0 }
 0x414   : > { %v8908_v12 = vadd.f32 %v8795_v60, %v20464_v62  ;;  %v20642_v32 = vadd.f32 %v15393_v46, %v8910_v18 }
 0x415   : > { %v15356_v59 = vpop.f32.mrf.mxu1  ;;  %v15405_v22 = vpop.f32.mrf.mxu0 }
 0x416   : > { %v8913_v36 = vadd.f32 %v15356_v59, %v20467_v63  ;;  %v20645_v26 = vadd.f32 %v9292_v6, %v8908_v12 }
 0x417   : > { %v8808_v48 = vpop.f32.mrf.mxu1  ;;  %v9340_v10 = vpop.f32.mrf.mxu0 }
 0x418   : > { %v8911_v25 = vadd.f32 %v8808_v48, %v20470_v29  ;;  %v20648_v19 = vadd.f32 %v15396_v34, %v8913_v36 }
 0x419   : > { %v15357_v55 = vpop.f32.mrf.mxu1  ;;  %v15408_v43 = vpop.f32.mrf.mxu0 }
 0x41a   : > { %v8914_v51 = vadd.f32 %v15357_v55, %v20473_v58  ;;  %v20651_v62 = vadd.f32 %v9305_v0, %v8911_v25 }
 0x41b   : > { %v8811_v46 = vpop.f32.mrf.mxu1  ;;  %v9353_v18 = vpop.f32.mrf.mxu0 }
 0x41c   : > { %v8912_v45 = vadd.f32 %v8811_v46, %v20481_v5  ;;  %v20654_v14 = vadd.f32 %v15397_v2, %v8914_v51 }
 0x41d   : > { %v15360_v63 = vpop.f32.mrf.mxu1  ;;  %v15409_v59 = vpop.f32.mrf.mxu0 }
 0x41e   : > { %v8917_v6 = vadd.f32 %v15360_v63, %v20491_v31  ;;  %v20657_v60 = vadd.f32 %v9308_v4, %v8912_v45 }
 0x41f   : > { %v8824_v29 = vpop.f32.mrf.mxu1  ;;  %v9356_v25 = vpop.f32.mrf.mxu0 }
 0x420   : > { %v8915_v34 = vadd.f32 %v8824_v29, %v20497_v11  ;;  %v20660_v12 = vadd.f32 %v15400_v44, %v8917_v6 }
 0x421   : > { %v15361_v58 = vpop.f32.mrf.mxu1  ;;  %v15412_v46 = vpop.f32.mrf.mxu0 }
 0x422   : > { %v8918_v0 = vadd.f32 %v15361_v58, %v20503_v15  ;;  %v20663_v36 = vadd.f32 %v9321_v27, %v8915_v34 }
 0x423   : > { %v8827_v5 = vpop.f32.mrf.mxu1  ;;  %v9369_v6 = vpop.f32.mrf.mxu0 }
 0x424   : > { %v8916_v2 = vadd.f32 %v8827_v5, %v20513_v54  ;;  %v20666_v48 = vadd.f32 %v15401_v61, %v8918_v0 }
 0x425   : > { %v15364_v31 = vpop.f32.mrf.mxu1  ;;  %v15413_v58 = vpop.f32.mrf.mxu0 }
 0x426   : > { %v8921_v4 = vadd.f32 %v15364_v31, %v20523_v53  ;;  %v20669_v55 = vadd.f32 %v9324_v9, %v8916_v2 }
 0x427   : > { %v8840_v11 = vpop.f32.mrf.mxu1  ;;  %v9372_v2 = vpop.f32.mrf.mxu0 }
 0x428   : > { %v8919_v44 = vadd.f32 %v8840_v11, %v20530_v52  ;;  %v20672_v51 = vadd.f32 %v15404_v38, %v8921_v4 }
 0x429   : > { %v15365_v15 = vpop.f32.mrf.mxu1 }
 0x42a   : > { %v8922_v27 = vadd.f32 %v15365_v15, %v20536_v49  ;;  %v20675_v45 = vadd.f32 %v9337_v42, %v8919_v44 }
 0x42b   : > { %v8843_v54 = vpop.f32.mrf.mxu1 }
 0x42c   : > { %v8920_v61 = vadd.f32 %v8843_v54, %v20546_v3  ;;  %v20678_v63 = vadd.f32 %v15405_v22, %v8922_v27 }
 0x42d   : > { %v15368_v53 = vpop.f32.mrf.mxu1 }
 0x42e   : > { %v8925_v9 = vadd.f32 %v15368_v53, %v20556_v56  ;;  %v20681_v29 = vadd.f32 %v9340_v10, %v8920_v61 }
 0x42f   : > { %v8856_v52 = vpop.f32.mrf.mxu1 }
 0x430   : > { %v8923_v38 = vadd.f32 %v8856_v52, %v20564_v20  ;;  %v20684_v34 = vadd.f32 %v15408_v43, %v8925_v9 }
 0x431   : > { %v15369_v49 = vpop.f32.mrf.mxu1 }
 0x432   : > { %v8926_v42 = vadd.f32 %v15369_v49, %v20572_v23  ;;  %v20687_v0 = vadd.f32 %v9353_v18, %v8923_v38  ;;  %v15416_v23 = vpop.f32.mrf.mxu0 }
 0x433   : > { %v8859_v3 = vpop.f32.mrf.mxu1 }
 0x434   : > { %v8924_v22 = vadd.f32 %v8859_v3, %v20582_v13  ;;  %v20690_v5 = vadd.f32 %v15409_v59, %v8926_v42  ;;  %v9385_v27 = vpop.f32.mrf.mxu0 }
 0x435   : > { %v15372_v56 = vpop.f32.mrf.mxu1 }
 0x436   : > { %v8929_v10 = vadd.f32 %v15372_v56, %v20593_v21  ;;  %v20693_v31 = vadd.f32 %v9356_v25, %v8924_v22  ;;  %v15417_v53 = vpop.f32.mrf.mxu0 }
 0x437   : > { %v8872_v20 = vpop.f32.mrf.mxu1 }
 0x438   : > { %v8927_v43 = vadd.f32 %v8872_v20, %v20597_v7  ;;  %v20696_v4 = vadd.f32 %v15412_v46, %v8929_v10  ;;  %v9388_v49 = vpop.f32.mrf.mxu0 }
 0x439   : > { %v15373_v11 = vpop.f32.mrf.mxu1 }
 0x43a   : > { %v8930_v18 = vadd.f32 %v15373_v11, %v20601_v33  ;;  %v20699_v44 = vadd.f32 %v9369_v6, %v8927_v43 }
 0x43b   : > { %v8875_v13 = vpop.f32.mrf.mxu1 }
 0x43c   : > { %v8928_v59 = vadd.f32 %v8875_v13, %v20606_v24  ;;  %v20702_v15 = vadd.f32 %v15413_v58, %v8930_v18 }
 0x43d   : > { %v15376_v21 = vpop.f32.mrf.mxu1 }
 0x43e   : > { %v20704_v25 = vadd.f32 %v9372_v2, %v8928_v59  ;;  %v8933_v54 = vadd.f32 %v15376_v21, %v20610_v41 }
 0x43f   : > { %v8888_v7 = vpop.f32.mrf.mxu1 }
 0x440   : > { %v8931_v46 = vadd.f32 %v8888_v7, %v20614_v40  ;;  %v20708_v61 = vadd.f32 %v15416_v23, %v8933_v54 }
 0x441   : > { %v15377_v33 = vpop.f32.mrf.mxu1 }
 0x442   : > { %v8934_v9 = vadd.f32 %v15377_v33, %v20618_v28  ;;  %v20711_v6 = vadd.f32 %v9385_v27, %v8931_v46  ;;  %v15468_v33 = vpop.f32.mrf.mxu0 }
 0x443   : > { %v8891_v24 = vpop.f32.mrf.mxu1 }
 0x444   : > { %v8932_v52 = vadd.f32 %v8891_v24, %v20623_v47  ;;  %v20714_v38 = vadd.f32 %v15417_v53, %v8934_v9 }
 0x445   : > { %v20716_v58 = vpop.f32.mrf.mxu1 }
 0x446   : > { %v20718_v41 = vadd.f32 %v9388_v49, %v8932_v52 }
 0x447   : > { %v20720_v42 = vpop.f32.mrf.mxu1 }
 0x449   : > { %v20722_v40 = vpop.f32.mrf.mxu1 }
 0x44b   : > { %v20724_v3 = vpop.f32.mrf.mxu1 }
 0x44d   : > { %v15432_v22 = vpop.f32.mrf.mxu1 }
 0x44e   : > { %v20727_v28 = vadd.f32 %v15432_v22, %v20636_v50 }
 0x44f   : > { %v9675_v56 = vpop.f32.mrf.mxu1 }
 0x450   : > { %v20730_v47 = vadd.f32 %v9675_v56, %v20639_v17 }
 0x451   : > { %v15433_v2 = vpop.f32.mrf.mxu1 }
 0x452   : > { %v20733_v10 = vadd.f32 %v15433_v2, %v20642_v32 }
 0x453   : > { %v9678_v20 = vpop.f32.mrf.mxu1 }
 0x454   : > { %v20736_v43 = vadd.f32 %v9678_v20, %v20645_v26 }
 0x455   : > { %v15436_v11 = vpop.f32.mrf.mxu1 }
 0x456   : > { %v20739_v23 = vadd.f32 %v15436_v11, %v20648_v19 }
 0x457   : > { %v9691_v18 = vpop.f32.mrf.mxu1 }
 0x458   : > { %v20742_v50 = vadd.f32 %v9691_v18, %v20651_v62 }
 0x459   : > { %v15437_v13 = vpop.f32.mrf.mxu1 }
 0x45a   : > { %v20745_v17 = vadd.f32 %v15437_v13, %v20654_v14 }
 0x45b   : > { %v9694_v59 = vpop.f32.mrf.mxu1 }
 0x45c   : > { %v20748_v32 = vadd.f32 %v9694_v59, %v20657_v60 }
 0x45d   : > { %v15440_v27 = vpop.f32.mrf.mxu1 }
 0x45e   : > { %v20751_v26 = vadd.f32 %v15440_v27, %v20660_v12 }
 0x45f   : > { %v9707_v21 = vpop.f32.mrf.mxu1 }
 0x460   : > { %v20754_v19 = vadd.f32 %v9707_v21, %v20663_v36 }
 0x461   : > { %v15441_v54 = vpop.f32.mrf.mxu1 }
 0x462   : > { %v20757_v62 = vadd.f32 %v15441_v54, %v20666_v48  ;;  %v10412_v48 = vpop.f32.mrf.mxu0 }
 0x463   : > { %v9710_v7 = vpop.f32.mrf.mxu1 }
 0x464   : > { %v20760_v14 = vadd.f32 %v9710_v7, %v20669_v55  ;;  %v15469_v22 = vpop.f32.mrf.mxu0  ;;  %v9402_v7 = vadd.f32 %v20561_v37, %v20621_v39  ;;  %v9403_v37 = vadd.f32 %v20579_v16, %v20629_v35  ;;  %v20824_v16 = vld [vmem:[%s21818_s6] ss:$0 sm:$0xff] }
 0x465   : > { %v15444_v46 = vpop.f32.mrf.mxu1 }
 0x466   : > { %v20763_v60 = vadd.f32 %v15444_v46, %v20672_v51  ;;  %v10415_v20 = vpop.f32.mrf.mxu0 }
 0x467   : > { %v9723_v53 = vpop.f32.mrf.mxu1 }
 0x468   : > { %v20766_v12 = vadd.f32 %v9723_v53, %v20675_v45  ;;  %v15472_v13 = vpop.f32.mrf.mxu0  ;;  %v11175_v53 = vlaneseq }
 0x469   : > { %v15445_v9 = vpop.f32.mrf.mxu1 }
 0x46a   : > { %v20769_v36 = vadd.f32 %v15445_v9, %v20678_v63  ;;  %v10428_v21 = vpop.f32.mrf.mxu0 }
 0x46b   : > { %v9726_v24 = vpop.f32.mrf.mxu1 }
 0x46c   : > { %v20772_v52 = vadd.f32 %v9726_v24, %v20681_v29  ;;  %v15473_v9 = vpop.f32.mrf.mxu0 }
 0x46d   : > { %v15448_v55 = vpop.f32.mrf.mxu1 }
 0x46e   : > { %v20775_v49 = vadd.f32 %v15448_v55, %v20684_v34 }
 0x46f   : > { %v9739_v51 = vpop.f32.mrf.mxu1 }
 0x470   : > { %v20778_v56 = vadd.f32 %v9739_v51, %v20687_v0 }
 0x471   : > { %v15449_v45 = vpop.f32.mrf.mxu1 }
 0x472   : > { %v20781_v2 = vadd.f32 %v15449_v45, %v20690_v5 }
 0x473   : > { %v9742_v63 = vpop.f32.mrf.mxu1 }
 0x474   : > { %v20784_v11 = vadd.f32 %v9742_v63, %v20693_v31  ;;  %v9789_v63 = vadd.f32 %v20722_v40, %v9403_v37 }
 0x475   : > { %v15452_v29 = vpop.f32.mrf.mxu1 }
 0x476   : > { %v20787_v18 = vadd.f32 %v15452_v29, %v20696_v4 }
 0x477   : > { %v9755_v34 = vpop.f32.mrf.mxu1 }
 0x478   : > { %v20790_v59 = vadd.f32 %v9755_v34, %v20699_v44  ;;  %v9788_v44 = vadd.f32 %v20716_v58, %v9402_v7  ;;  %v11176_v58 = vshrl.u32 %v11175_v53, 7  ;;  %v9401_v34 = vadd.f32 %v20590_v8, %v20632_v30 }
 0x479   : > { %v15453_v0 = vpop.f32.mrf.mxu1  ;;  %v10542_v7 = vadd.f32 %v15469_v22, %v9789_v63 }
 0x47a   : > { %v20793_v27 = vadd.f32 %v15453_v0, %v20702_v15  ;;  %v9400_v15 = vadd.f32 %v20570_v1, %v20626_v57  ;;  %v10431_v1 = vpop.f32.mrf.mxu0  ;;  %v9787_v0 = vadd.f32 %v20724_v3, %v9401_v34  ;;  %v20835_v3 = vadd.f32 %v10428_v21, %v20730_v47 }
 0x47b   : > { %v9758_v5 = vpop.f32.mrf.mxu1 }
 0x47c   : > { %v20796_v54 = vadd.f32 %v9758_v5, %v20704_v25  ;;  %v15823_v25 = vmov 1983009808   ;;  %v9786_v45 = vadd.f32 %v20720_v42, %v9400_v15  ;;  %v15476_v5 = vpop.f32.mrf.mxu0 }
 0x47d   : > { %v15456_v31 = vpop.f32.mrf.mxu1  ;;  %v11173_v55 = vunpack.c.l.s4 %v15823_v25  ;;  %v20838_v25 = vadd.f32 %v15473_v9, %v20733_v10 }
 0x47e   : > { %v20801_v4 = vadd.f32 %v15456_v31, %v20708_v61 }
 0x47f   : > { %v9771_v46 = vpop.f32.mrf.mxu1  ;;  %v11174_v29 = vunpack.c.0.s8 %v11173_v55  ;;  %v10444_v55 = vpop.f32.mrf.mxu0 }
 0x480   : > { %v20807_v24 = vadd.f32 %v9771_v46, %v20711_v6  ;;  %v10541_v6 = vadd.f32 %v15468_v33, %v9788_v44  ;;  %v10540_v44 = vadd.f32 %v10415_v20, %v9787_v0  ;;  %v20843_v20 = vadd.f32 %v10431_v1, %v20736_v43 }
 0x481   : > { %v15457_v51 = vpop.f32.mrf.mxu1  ;;  %v20828_v31 = vsub.s32 %v11174_v29, %v11176_v58  ;;  %v20849_v47 = vadd.f32 %v10444_v55, %v20742_v50 }
 0x482   : > { %v20813_v39 = vadd.f32 %v15457_v51, %v20714_v38  ;;  %v10539_v38 = vadd.f32 %v10412_v48, %v9786_v45  ;;  %v20832_v48 = vadd.f32 %v15472_v13, %v20727_v28  ;;  %v20846_v28 = vadd.f32 %v15476_v5, %v20739_v23 }
 0x483   : > { %v9774_v61 = vpop.f32.mrf.mxu1 }
 0x484   : > { %v20817_v57 = vadd.f32 %v9774_v61, %v20718_v41 }
 0x485   : > { %v15508_v42 = vpop.f32.mrf.mxu1 }
 0x486   : > { %22132 = vst [vmem:[#allocation28_spill] sm:$0xff] %v20817_v57  ;;  %v11038_v35 = vadd.f32 %v15508_v42, %v10541_v6 }
 0x487   : > { %v10909_v40 = vpop.f32.mrf.mxu1 }
 0x488   : > { %v11077_v41 = vadd.f32 %v20824_v16, %v11038_v35  ;;  %v11036_v33 = vadd.f32 %v10909_v40, %v10539_v38 }
 0x489   : > { %v15509_v46 = vpop.f32.mrf.mxu1 }
 0x48a   : > { %v11109_v8 = vmax.f32 %v11077_v41, 0.0  ;;  %v11075_v30 = vadd.f32 %v20824_v16, %v11036_v33  ;;  %v11039_v53 = vadd.f32 %v15509_v46, %v10542_v7 }
 0x48b   : > { %v10912_v15 = vpop.f32.mrf.mxu1 }
 0x48c   : > { %v11205_v51 = vcombine.high %v11109_v8, %v11109_v8  ;;  %v11212_v22 = vrot.slane %v11109_v8, %v20828_v31  ;;  %v11107_v45 = vmax.f32 %v11075_v30, 0.0  ;;  %v11078_v37 = vadd.f32 %v20824_v16, %v11039_v53 }
 0x48d   : > { %v11037_v61 = vadd.f32 %v10912_v15, %v10540_v44 }
 0x48e   : > { %v11219_v10 = vrot.slane %v11205_v51, %v20828_v31  ;;  %v11220_v13 = vcombine.high %v11212_v22, %v11212_v22  ;;  %v11900_v21 = vsel %vm11843_vm4, %v11212_v22, -inf  ;;  %v11171_v9 = vcombine.high %v11107_v45, %v11107_v45 }
 0x48f   : > { %v11901_v58 = vrot.slane %v11900_v21, 4  ;;  %v11178_v63 = vrot.slane %v11107_v45, %v20828_v31  ;;  %v20854_v6 = vmax.f32 %v11078_v37, 0.0  ;;  %v20857_v43 = vadd.f32 %v20824_v16, %v11037_v61 }
 0x490   : > { %v11221_v1 = vcombine.high %v11219_v10, %v11219_v10  ;;  %v11907_v23 = vsel %vm11843_vm4, %v11220_v13, -inf  ;;  %v11914_v50 = vsel %vm11843_vm4, %v11219_v10, -inf  ;;  %v11185_v29 = vrot.slane %v11171_v9, %v20828_v31 }
 0x491   : > { %v11902_v34 = vmax.f32 %v11900_v21, %v11901_v58  ;;  %v11908_v42 = vrot.slane %v11907_v23, 4  ;;  %v11915_v35 = vrot.slane %v11914_v50, 4  ;;  %v11186_v38 = vcombine.high %v11178_v63, %v11178_v63 }
 0x492   : > { %v11921_v0 = vsel %vm11843_vm4, %v11221_v1, -inf  ;;  %v11187_v40 = vcombine.high %v11185_v29, %v11185_v29  ;;  %v11844_v5 = vsel %vm11843_vm4, %v11178_v63, -inf  ;;  %v11858_v41 = vsel %vm11843_vm4, %v11185_v29, -inf }
 0x493   : > { %v11903_v33 = vrot.slane %v11902_v34, 2  ;;  %v11909_v7 = vmax.f32 %v11907_v23, %v11908_v42  ;;  %v11916_v46 = vmax.f32 %v11914_v50, %v11915_v35  ;;  %v11922_v8 = vrot.slane %v11921_v0, 4 }
 0x494   : > { %v11845_v30 = vrot.slane %v11844_v5, 4  ;;  %v11851_v53 = vsel %vm11843_vm4, %v11186_v38, -inf  ;;  %v11859_v44 = vrot.slane %v11858_v41, 4  ;;  %v11865_v15 = vsel %vm11843_vm4, %v11187_v40, -inf }
 0x495   : > { %v11904_v55 = vmax.f32 %v11902_v34, %v11903_v33  ;;  %v11910_v51 = vrot.slane %v11909_v7, 2  ;;  %v11917_v22 = vrot.slane %v11916_v46, 2  ;;  %v11923_v45 = vmax.f32 %v11921_v0, %v11922_v8 }
 0x496   : > { %v11846_v37 = vmax.f32 %v11844_v5, %v11845_v30  ;;  %v11852_v61 = vrot.slane %v11851_v53, 4  ;;  %v11860_v10 = vmax.f32 %v11858_v41, %v11859_v44  ;;  %v11866_v13 = vrot.slane %v11865_v15, 4 }
 0x497   : > { %v11905_v21 = vrot.slane %v11904_v55, 1  ;;  %v11911_v9 = vmax.f32 %v11909_v7, %v11910_v51  ;;  %v11918_v58 = vmax.f32 %v11916_v46, %v11917_v22  ;;  %v11924_v63 = vrot.slane %v11923_v45, 2 }
 0x498   : > { %v11847_v1 = vrot.slane %v11846_v37, 2  ;;  %v11853_v23 = vmax.f32 %v11851_v53, %v11852_v61  ;;  %v11861_v50 = vrot.slane %v11860_v10, 2  ;;  %v11867_v29 = vmax.f32 %v11865_v15, %v11866_v13 }
 0x499   : > { %v11906_v42 = vmax.f32 %v11904_v55, %v11905_v21  ;;  %v11912_v35 = vrot.slane %v11911_v9, 1  ;;  %v11919_v38 = vrot.slane %v11918_v58, 1  ;;  %v11925_v40 = vmax.f32 %v11923_v45, %v11924_v63 }
 0x49a   : > { %v11848_v34 = vmax.f32 %v11846_v37, %v11847_v1  ;;  %v11854_v33 = vrot.slane %v11853_v23, 2  ;;  %v11862_v57 = vmax.f32 %v11860_v10, %v11861_v50  ;;  %v11868_v0 = vrot.slane %v11867_v29, 2 }
 0x49b   : > { %v11913_v5 = vmax.f32 %v11911_v9, %v11912_v35  ;;  %v11920_v8 = vmax.f32 %v11918_v58, %v11919_v38  ;;  %v11926_v41 = vrot.slane %v11925_v40, 1  ;;  %v12741_v30 = vsel %vm6793_vm3, %v11906_v42, -inf }
 0x49c   : > { %v11849_v7 = vrot.slane %v11848_v34, 1  ;;  %v11855_v46 = vmax.f32 %v11853_v23, %v11854_v33  ;;  %v11863_v44 = vrot.slane %v11862_v57, 1  ;;  %v11869_v51 = vmax.f32 %v11867_v29, %v11868_v0 }
 0x49d   : > { %v11927_v53 = vmax.f32 %v11925_v40, %v11926_v41  ;;  %v12744_v15 = vsel %vm6793_vm3, %v11913_v5, -inf  ;;  %v12747_v55 = vsel %vm6793_vm3, %v11920_v8, -inf  ;;  %v11222_v22 = vcombine.high %v20854_v6, %v20854_v6  ;;  %v20891_v40 = vld [vmem:[%s21820_s8] ss:$0 sm:$0xff] }
 0x49e   : > { %v11850_v45 = vmax.f32 %v11848_v34, %v11849_v7  ;;  %v11856_v37 = vrot.slane %v11855_v46, 1  ;;  %v11864_v61 = vmax.f32 %v11862_v57, %v11863_v44  ;;  %v11870_v10 = vrot.slane %v11869_v51, 1  ;;  %v20884_v57 = vld [vmem:[%s21819_s7] ss:$0 sm:$0xff] }
 0x49f   : > { %v12750_v13 = vsel %vm6793_vm3, %v11927_v53, -inf  ;;  %v11229_v21 = vrot.slane %v20854_v6, %v20828_v31  ;;  %v11236_v9 = vrot.slane %v11222_v22, %v20828_v31  ;;  %v20877_v58 = vmax.f32 %v20857_v43, 0.0 }
 0x4a0   : > { %v11857_v63 = vmax.f32 %v11855_v46, %v11856_v37  ;;  %v11871_v1 = vmax.f32 %v11869_v51, %v11870_v10  ;;  %v12740_v23 = vsel %vm6793_vm3, %v11850_v45, -inf  ;;  %v12746_v50 = vsel %vm6793_vm3, %v11864_v61, -inf  ;;  %v15512_v10 = vpop.f32.mrf.mxu1 }
 0x4a1   : > { %v12742_v29 = vmax.f32 %v12740_v23, %v12741_v30  ;;  %v12748_v42 = vmax.f32 %v12746_v50, %v12747_v55  ;;  %v11237_v35 = vcombine.high %v11229_v21, %v11229_v21  ;;  %v11238_v6 = vcombine.high %v11236_v9, %v11236_v9 }
 0x4a2   : > { %v12743_v38 = vsel %vm6793_vm3, %v11857_v63, -inf  ;;  %v12749_v43 = vsel %vm6793_vm3, %v11871_v1, -inf  ;;  %v11928_v34 = vsel %vm11843_vm4, %v11229_v21, -inf  ;;  %v11942_v33 = vsel %vm11843_vm4, %v11236_v9, -inf }
 0x4a3   : > { %v12745_v0 = vmax.f32 %v12743_v38, %v12744_v15  ;;  %v12751_v5 = vmax.f32 %v12749_v43, %v12750_v13  ;;  %v12939_v8 = vmul.f32 %v20884_v57, %v12742_v29  ;;  %v12941_v41 = vmul.f32 %v20884_v57, %v12748_v42 }
 0x4a4   : > { %v11929_v30 = vrot.slane %v11928_v34, 4  ;;  %v11935_v7 = vsel %vm11843_vm4, %v11237_v35, -inf  ;;  %v11943_v46 = vrot.slane %v11942_v33, 4  ;;  %v11949_v44 = vsel %vm11843_vm4, %v11238_v6, -inf }
 0x4a5   : > { %v12940_v51 = vmul.f32 %v20884_v57, %v12745_v0  ;;  %v12942_v53 = vmul.f32 %v20884_v57, %v12751_v5  ;;  %v13010_v55 = vadd.f32 %v20891_v40, %v12939_v8  ;;  %v13012_v15 = vadd.f32 %v20891_v40, %v12941_v41  ;;  %v10925_v5 = vpop.f32.mrf.mxu1 }
 0x4a6   : > { %v11930_v22 = vmax.f32 %v11928_v34, %v11929_v30  ;;  %v11936_v45 = vrot.slane %v11935_v7, 4  ;;  %v11944_v37 = vmax.f32 %v11942_v33, %v11943_v46  ;;  %v11950_v61 = vrot.slane %v11949_v44, 4 }
 0x4a7   : > { %v13011_v13 = vadd.f32 %v20891_v40, %v12940_v51  ;;  %v13013_v21 = vadd.f32 %v20891_v40, %v12942_v53  ;;  %v14474_v9 = vpack.c.bf16 %v13010_v55, %v13010_v55  ;;  %v14476_v63 = vpack.c.bf16 %v13012_v15, %v13012_v15 }
 0x4a8   : > { %v11931_v1 = vrot.slane %v11930_v22, 2  ;;  %v11937_v23 = vmax.f32 %v11935_v7, %v11936_v45  ;;  %v11945_v50 = vrot.slane %v11944_v37, 2  ;;  %v11951_v29 = vmax.f32 %v11949_v44, %v11950_v61 }
 0x4a9   : > { %v14475_v42 = vpack.c.bf16 %v13011_v13, %v13011_v13  ;;  %v14477_v35 = vpack.c.bf16 %v13013_v21, %v13013_v21  ;;  %v13330_v6 = vunpack.c.l.b16 %v14474_v9  ;;  %v13332_v38 = vunpack.c.l.b16 %v14476_v63  ;;  %v15513_v9 = vpop.f32.mrf.mxu1 }
 0x4aa   : > { %v11932_v43 = vmax.f32 %v11930_v22, %v11931_v1  ;;  %v11938_v34 = vrot.slane %v11937_v23, 2  ;;  %v11946_v33 = vmax.f32 %v11944_v37, %v11945_v50  ;;  %v11952_v0 = vrot.slane %v11951_v29, 2 }
 0x4ab   : > { %v13331_v8 = vunpack.c.l.b16 %v14475_v42  ;;  %v13333_v41 = vunpack.c.l.b16 %v14477_v35  ;;  %v13397_v30 = vrot.slane %v13332_v38, 6  ;;  %v11188_v46 = vcombine.high %v20877_v58, %v20877_v58 }
 0x4ac   : > { %v11933_v51 = vrot.slane %v11932_v43, 1  ;;  %v11939_v7 = vmax.f32 %v11937_v23, %v11938_v34  ;;  %v11947_v53 = vrot.slane %v11946_v33, 1  ;;  %v11953_v44 = vmax.f32 %v11951_v29, %v11952_v0 }
 0x4ad   : > { %v13394_v55 = vrot.slane %v13331_v8, 7  ;;  %v13400_v15 = vrot.slane %v13333_v41, 5  ;;  %v11195_v45 = vrot.slane %v20877_v58, %v20828_v31  ;;  %v11202_v22 = vrot.slane %v11188_v46, %v20828_v31 }
 0x4ae   : > { %v11934_v37 = vmax.f32 %v11932_v43, %v11933_v51  ;;  %v11940_v61 = vrot.slane %v11939_v7, 1  ;;  %v11948_v13 = vmax.f32 %v11946_v33, %v11947_v53  ;;  %v11954_v21 = vrot.slane %v11953_v44, 1 }
 0x4af   : > { %v13396_v63 = vsel %vm13395_vm7, %v13394_v55, %v13330_v6  ;;  %v11203_v1 = vcombine.high %v11195_v45, %v11195_v45  ;;  %v11204_v50 = vcombine.high %v11202_v22, %v11202_v22  ;;  %v11872_v23 = vsel %vm11843_vm4, %v11195_v45, -inf }
 0x4b0   : > { %v13399_v29 = vsel %vm13398_vm8, %v13397_v30, %v13396_v63  ;;  %v11941_v42 = vmax.f32 %v11939_v7, %v11940_v61  ;;  %v11955_v35 = vmax.f32 %v11953_v44, %v11954_v21  ;;  %v20914_v38 = vsel %vm6793_vm3, %v11934_v37, -inf  ;;  %v10928_v30 = vpop.f32.mrf.mxu1 }
 0x4b1   : > { %v20917_v58 = vsel %vm6793_vm3, %v11948_v13, -inf  ;;  %v11873_v43 = vrot.slane %v11872_v23, 4  ;;  %v11879_v34 = vsel %vm11843_vm4, %v11203_v1, -inf  ;;  %v11886_v33 = vsel %vm11843_vm4, %v11202_v22, -inf }
 0x4b2   : > { %v20922_v6 = vsel %vm6793_vm3, %v11941_v42, -inf  ;;  %v20925_v0 = vsel %vm6793_vm3, %v11955_v35, -inf  ;;  %v11880_v8 = vrot.slane %v11879_v34, 4  ;;  %v11887_v41 = vrot.slane %v11886_v33, 4 }
 0x4b3   : > { %v11874_v46 = vmax.f32 %v11872_v23, %v11873_v43  ;;  %v11893_v51 = vsel %vm11843_vm4, %v11204_v50, -inf  ;;  %v20929_v7 = vsel %vm13401_vm10, %v13400_v15, %v13399_v29  ;;  %v11042_v53 = vadd.f32 %v15512_v10, %v20832_v48 }
 0x4b4   : > { %v11881_v44 = vmax.f32 %v11879_v34, %v11880_v8  ;;  %v11888_v55 = vmax.f32 %v11886_v33, %v11887_v41  ;;  %v11894_v45 = vrot.slane %v11893_v51, 4  ;;  %v11040_v22 = vadd.f32 %v10925_v5, %v20835_v3 }
 0x4b5   : > { %v11875_v37 = vrot.slane %v11874_v46, 2  ;;  %v11081_v61 = vadd.f32 %v20824_v16, %v11042_v53  ;;  %v11043_v13 = vadd.f32 %v15513_v9, %v20838_v25  ;;  %v11041_v21 = vadd.f32 %v10928_v30, %v20843_v20 }
 0x4b6   : > { %v11882_v63 = vrot.slane %v11881_v44, 2  ;;  %v11889_v1 = vrot.slane %v11888_v55, 2  ;;  %v11895_v50 = vmax.f32 %v11893_v51, %v11894_v45  ;;  %v11079_v15 = vadd.f32 %v20824_v16, %v11040_v22 }
 0x4b7   : > { %v11876_v23 = vmax.f32 %v11874_v46, %v11875_v37  ;;  %v11113_v29 = vmax.f32 %v11081_v61, 0.0  ;;  %v11082_v48 = vadd.f32 %v20824_v16, %v11043_v13  ;;  %v20939_v10 = vadd.f32 %v20824_v16, %v11041_v21 }
 0x4b8   : > { %v11883_v3 = vmax.f32 %v11881_v44, %v11882_v63  ;;  %v11890_v5 = vmax.f32 %v11888_v55, %v11889_v1  ;;  %v11896_v42 = vrot.slane %v11895_v50, 2  ;;  %v20941_v35 = vmax.f32 %v11079_v15, 0.0 }
 0x4b9   : > { %v11877_v25 = vrot.slane %v11876_v23, 1  ;;  %v11273_v9 = vcombine.high %v11113_v29, %v11113_v29  ;;  %v11280_v20 = vrot.slane %v11113_v29, %v20828_v31  ;;  %v20944_v43 = vmax.f32 %v11082_v48, 0.0 }
 0x4ba   : > { %v11884_v34 = vrot.slane %v11883_v3, 1  ;;  %v11891_v33 = vrot.slane %v11890_v5, 1  ;;  %v11897_v8 = vmax.f32 %v11895_v50, %v11896_v42  ;;  %v11239_v41 = vcombine.high %v20941_v35, %v20941_v35 }
 0x4bb   : > { %v11878_v30 = vmax.f32 %v11876_v23, %v11877_v25  ;;  %v11287_v46 = vrot.slane %v11273_v9, %v20828_v31  ;;  %v11288_v51 = vcombine.high %v11280_v20, %v11280_v20  ;;  %v12012_v53 = vsel %vm11843_vm4, %v11280_v20, -inf }
 0x4bc   : > { %v11885_v44 = vmax.f32 %v11883_v3, %v11884_v34  ;;  %v11892_v55 = vmax.f32 %v11890_v5, %v11891_v33  ;;  %v11898_v45 = vrot.slane %v11897_v8, 1  ;;  %v12013_v22 = vrot.slane %v12012_v53, 4 }
 0x4bd   : > { %v12752_v37 = vsel %vm6793_vm3, %v11878_v30, -inf  ;;  %v11289_v61 = vcombine.high %v11287_v46, %v11287_v46  ;;  %v12019_v13 = vsel %vm11843_vm4, %v11288_v51, -inf  ;;  %v12026_v21 = vsel %vm11843_vm4, %v11287_v46, -inf }
 0x4be   : > { %v11899_v63 = vmax.f32 %v11897_v8, %v11898_v45  ;;  %v12754_v1 = vmax.f32 %v12752_v37, %v20914_v38  ;;  %v12755_v50 = vsel %vm6793_vm3, %v11885_v44, -inf  ;;  %v12758_v15 = vsel %vm6793_vm3, %v11892_v55, -inf }
 0x4bf   : > { %v12757_v23 = vmax.f32 %v12755_v50, %v20922_v6  ;;  %v12760_v29 = vmax.f32 %v12758_v15, %v20917_v58  ;;  %v12014_v48 = vmax.f32 %v12012_v53, %v12013_v22  ;;  %v12020_v3 = vrot.slane %v12019_v13, 4 }
 0x4c0   : > { %v12761_v5 = vsel %vm6793_vm3, %v11899_v63, -inf  ;;  %v12943_v42 = vmul.f32 %v20884_v57, %v12754_v1  ;;  %v12027_v25 = vrot.slane %v12026_v21, 4  ;;  %v12033_v9 = vsel %vm11843_vm4, %v11289_v61, -inf }
 0x4c1   : > { %v12763_v38 = vmax.f32 %v12761_v5, %v20925_v0  ;;  %v12944_v20 = vmul.f32 %v20884_v57, %v12757_v23  ;;  %v12945_v34 = vmul.f32 %v20884_v57, %v12760_v29  ;;  %v12015_v6 = vrot.slane %v12014_v48, 2 }
 0x4c2   : > { %v13014_v58 = vadd.f32 %v20891_v40, %v12943_v42  ;;  %v12021_v33 = vmax.f32 %v12019_v13, %v12020_v3  ;;  %v12028_v8 = vmax.f32 %v12026_v21, %v12027_v25  ;;  %v12034_v30 = vrot.slane %v12033_v9, 4 }
 0x4c3   : > { %v12946_v46 = vmul.f32 %v20884_v57, %v12763_v38  ;;  %v13015_v51 = vadd.f32 %v20891_v40, %v12944_v20  ;;  %v13016_v53 = vadd.f32 %v20891_v40, %v12945_v34  ;;  %v12016_v0 = vmax.f32 %v12014_v48, %v12015_v6 }
 0x4c4   : > { %v14478_v44 = vpack.c.bf16 %v13014_v58, %v13014_v58  ;;  %v12022_v55 = vrot.slane %v12021_v33, 2  ;;  %v12029_v45 = vrot.slane %v12028_v8, 2  ;;  %v12035_v22 = vmax.f32 %v12033_v9, %v12034_v30 }
 0x4c5   : > { %v13017_v37 = vadd.f32 %v20891_v40, %v12946_v46  ;;  %v14479_v61 = vpack.c.bf16 %v13015_v51, %v13015_v51  ;;  %v14480_v63 = vpack.c.bf16 %v13016_v53, %v13016_v53  ;;  %v12017_v1 = vrot.slane %v12016_v0, 1 }
 0x4c6   : > { %v13334_v13 = vunpack.c.l.b16 %v14478_v44  ;;  %v12023_v21 = vmax.f32 %v12021_v33, %v12022_v55  ;;  %v12030_v50 = vmax.f32 %v12028_v8, %v12029_v45  ;;  %v12036_v15 = vrot.slane %v12035_v22, 2 }
 0x4c7   : > { %v14481_v23 = vpack.c.bf16 %v13017_v37, %v13017_v37  ;;  %v13335_v29 = vunpack.c.l.b16 %v14479_v61  ;;  %v13336_v3 = vunpack.c.l.b16 %v14480_v63  ;;  %v12018_v5 = vmax.f32 %v12016_v0, %v12017_v1 }
 0x4c8   : > { %v13403_v48 = vrot.slane %v13334_v13, 4  ;;  %v12024_v42 = vrot.slane %v12023_v21, 1  ;;  %v12031_v25 = vrot.slane %v12030_v50, 1  ;;  %v12037_v38 = vmax.f32 %v12035_v22, %v12036_v15 }
 0x4c9   : > { %v13337_v9 = vunpack.c.l.b16 %v14481_v23  ;;  %v13406_v20 = vrot.slane %v13335_v29, 3  ;;  %v13409_v34 = vrot.slane %v13336_v3, 2  ;;  %v20971_v6 = vsel %vm6793_vm3, %v12018_v5, -inf }
 0x4ca   : > { %v13405_v58 = vsel %vm13404_vm12, %v13403_v48, %v20929_v7  ;;  %v12025_v33 = vmax.f32 %v12023_v21, %v12024_v42  ;;  %v12032_v8 = vmax.f32 %v12030_v50, %v12031_v25  ;;  %v12038_v30 = vrot.slane %v12037_v38, 1  ;;  %v15516_v21 = vpop.f32.mrf.mxu1 }
 0x4cb   : > { %v13408_v46 = vsel %vm13407_vm13, %v13406_v20, %v13405_v58  ;;  %v13412_v51 = vrot.slane %v13337_v9, 1  ;;  %v11246_v53 = vrot.slane %v20941_v35, %v20828_v31  ;;  %v11253_v0 = vrot.slane %v11239_v41, %v20828_v31 }
 0x4cc   : > { %v13411_v44 = vsel %vm13410_vm14, %v13409_v34, %v13408_v46  ;;  %v12039_v55 = vmax.f32 %v12037_v38, %v12038_v30  ;;  %v20986_v45 = vsel %vm6793_vm3, %v12025_v33, -inf  ;;  %v20989_v7 = vsel %vm6793_vm3, %v12032_v8, -inf }
 0x4cd   : > { %v13414_v22 = vsel %vm13413_vm15, %v13412_v51, %v13411_v44  ;;  %v11254_v37 = vcombine.high %v11246_v53, %v11246_v53  ;;  %v11255_v61 = vcombine.high %v11253_v0, %v11253_v0  ;;  %v11956_v63 = vsel %vm11843_vm4, %v11246_v53, -inf }
 0x4ce   : > { %v13513_v1 = vpack.c.b16 %v13414_v22, %v13414_v22  ;;  %v20994_v13 = vsel %vm6793_vm3, %v12039_v55, -inf  ;;  %v11957_v35 = vrot.slane %v11956_v63, 4  ;;  %v11970_v41 = vsel %vm11843_vm4, %v11253_v0, -inf }
 0x4cf   : > { %v11963_v50 = vsel %vm11843_vm4, %v11254_v37, -inf  ;;  %v11971_v15 = vrot.slane %v11970_v41, 4  ;;  %v11977_v23 = vsel %vm11843_vm4, %v11255_v61, -inf  ;;  %v11290_v29 = vcombine.high %v20944_v43, %v20944_v43 }
 0x4d0   : > { %13529 = vst.msk [vmem:[%s21001_s17] sm:$0xf] %vm5634_vm6, %v13513_v1  ;;  %v11958_v3 = vmax.f32 %v11956_v63, %v11957_v35  ;;  %v11964_v5 = vrot.slane %v11963_v50, 4  ;;  %v11978_v48 = vrot.slane %v11977_v23, 4  ;;  %v11297_v42 = vrot.slane %v20944_v43, %v20828_v31 }
 0x4d1   : > { %v11972_v25 = vmax.f32 %v11970_v41, %v11971_v15  ;;  %v11304_v38 = vrot.slane %v11290_v29, %v20828_v31  ;;  %v21009_v9 = vmax.f32 %v20939_v10, 0.0  ;;  %v21012_v20 = vadd.f32 %v15516_v21, %v20846_v28 }
 0x4d2   : > { %v11959_v34 = vrot.slane %v11958_v3, 2  ;;  %v11965_v58 = vmax.f32 %v11963_v50, %v11964_v5  ;;  %v11979_v33 = vmax.f32 %v11977_v23, %v11978_v48  ;;  %v11305_v8 = vcombine.high %v11297_v42, %v11297_v42 }
 0x4d3   : > { %v11973_v30 = vrot.slane %v11972_v25, 2  ;;  %v11306_v46 = vcombine.high %v11304_v38, %v11304_v38  ;;  %v12040_v51 = vsel %vm11843_vm4, %v11297_v42, -inf  ;;  %v12054_v53 = vsel %vm11843_vm4, %v11304_v38, -inf }
 0x4d4   : > { %v11960_v43 = vmax.f32 %v11958_v3, %v11959_v34  ;;  %v11966_v0 = vrot.slane %v11965_v58, 2  ;;  %v11980_v44 = vrot.slane %v11979_v33, 2  ;;  %v12041_v55 = vrot.slane %v12040_v51, 4 }
 0x4d5   : > { %v11974_v22 = vmax.f32 %v11972_v25, %v11973_v30  ;;  %v12047_v10 = vsel %vm11843_vm4, %v11305_v8, -inf  ;;  %v12055_v37 = vrot.slane %v12054_v53, 4  ;;  %v12061_v28 = vsel %vm11843_vm4, %v11306_v46, -inf }
 0x4d6   : > { %v11961_v61 = vrot.slane %v11960_v43, 1  ;;  %v11967_v63 = vmax.f32 %v11965_v58, %v11966_v0  ;;  %v11981_v1 = vmax.f32 %v11979_v33, %v11980_v44  ;;  %v12042_v35 = vmax.f32 %v12040_v51, %v12041_v55 }
 0x4d7   : > { %v11975_v41 = vrot.slane %v11974_v22, 1  ;;  %v12048_v21 = vrot.slane %v12047_v10, 4  ;;  %v12056_v50 = vmax.f32 %v12054_v53, %v12055_v37  ;;  %v12062_v15 = vrot.slane %v12061_v28, 4 }
 0x4d8   : > { %v11962_v23 = vmax.f32 %v11960_v43, %v11961_v61  ;;  %v11968_v29 = vrot.slane %v11967_v63, 1  ;;  %v11982_v3 = vrot.slane %v11981_v1, 1  ;;  %v12043_v5 = vrot.slane %v12042_v35, 2 }
 0x4d9   : > { %v11976_v48 = vmax.f32 %v11974_v22, %v11975_v41  ;;  %v12049_v42 = vmax.f32 %v12047_v10, %v12048_v21  ;;  %v12057_v25 = vrot.slane %v12056_v50, 2  ;;  %v12063_v38 = vmax.f32 %v12061_v28, %v12062_v15 }
 0x4da   : > { %v11969_v34 = vmax.f32 %v11967_v63, %v11968_v29  ;;  %v11983_v8 = vmax.f32 %v11981_v1, %v11982_v3  ;;  %v12764_v30 = vsel %vm6793_vm3, %v11962_v23, -inf  ;;  %v12044_v46 = vmax.f32 %v12042_v35, %v12043_v5 }
 0x4db   : > { %v12766_v58 = vmax.f32 %v12764_v30, %v20971_v6  ;;  %v12770_v33 = vsel %vm6793_vm3, %v11976_v48, -inf  ;;  %v12050_v51 = vrot.slane %v12049_v42, 2  ;;  %v12058_v53 = vmax.f32 %v12056_v50, %v12057_v25 }
 0x4dc   : > { %v12767_v43 = vsel %vm6793_vm3, %v11969_v34, -inf  ;;  %v12772_v0 = vmax.f32 %v12770_v33, %v20989_v7  ;;  %v12773_v44 = vsel %vm6793_vm3, %v11983_v8, -inf  ;;  %v12045_v55 = vrot.slane %v12044_v46, 1  ;;  %v10941_v8 = vpop.f32.mrf.mxu1 }
 0x4dd   : > { %v12769_v22 = vmax.f32 %v12767_v43, %v20986_v45  ;;  %v12775_v10 = vmax.f32 %v12773_v44, %v20994_v13  ;;  %v12947_v37 = vmul.f32 %v20884_v57, %v12766_v58  ;;  %v12051_v28 = vmax.f32 %v12049_v42, %v12050_v51 }
 0x4de   : > { %v12949_v6 = vmul.f32 %v20884_v57, %v12772_v0  ;;  %v12046_v61 = vmax.f32 %v12044_v46, %v12045_v55  ;;  %v12059_v63 = vrot.slane %v12058_v53, 1  ;;  %v12064_v1 = vrot.slane %v12063_v38, 2 }
 0x4df   : > { %v12948_v35 = vmul.f32 %v20884_v57, %v12769_v22  ;;  %v12950_v41 = vmul.f32 %v20884_v57, %v12775_v10  ;;  %v13018_v7 = vadd.f32 %v20891_v40, %v12947_v37  ;;  %v12052_v21 = vrot.slane %v12051_v28, 1 }
 0x4e0   : > { %v13020_v50 = vadd.f32 %v20891_v40, %v12949_v6  ;;  %v12060_v45 = vmax.f32 %v12058_v53, %v12059_v63  ;;  %v12065_v15 = vmax.f32 %v12063_v38, %v12064_v1  ;;  %v21033_v13 = vsel %vm6793_vm3, %v12046_v61, -inf }
 0x4e1   : > { %v13019_v23 = vadd.f32 %v20891_v40, %v12948_v35  ;;  %v13021_v29 = vadd.f32 %v20891_v40, %v12950_v41  ;;  %v14482_v3 = vpack.c.bf16 %v13018_v7, %v13018_v7  ;;  %v12053_v5 = vmax.f32 %v12051_v28, %v12052_v21 }
 0x4e2   : > { %v14484_v48 = vpack.c.bf16 %v13020_v50, %v13020_v50  ;;  %v12066_v42 = vrot.slane %v12065_v15, 1  ;;  %v21038_v25 = vsel %vm6793_vm3, %v12060_v45, -inf  ;;  %v11256_v34 = vcombine.high %v21009_v9, %v21009_v9 }
 0x4e3   : > { %v14483_v30 = vpack.c.bf16 %v13019_v23, %v13019_v23  ;;  %v14485_v38 = vpack.c.bf16 %v13021_v29, %v13021_v29  ;;  %v13338_v46 = vunpack.c.l.b16 %v14482_v3  ;;  %v21043_v58 = vsel %vm6793_vm3, %v12053_v5, -inf }
 0x4e4   : > { %v13340_v33 = vunpack.c.l.b16 %v14484_v48  ;;  %v12067_v51 = vmax.f32 %v12065_v15, %v12066_v42  ;;  %v11263_v53 = vrot.slane %v21009_v9, %v20828_v31  ;;  %v11270_v43 = vrot.slane %v11256_v34, %v20828_v31 }
 0x4e5   : > { %v13339_v0 = vunpack.c.l.b16 %v14483_v30  ;;  %v13341_v44 = vunpack.c.l.b16 %v14485_v38  ;;  %v11085_v55 = vadd.f32 %v20824_v16, %v21012_v20  ;;  %v11044_v22 = vadd.f32 %v10941_v8, %v20849_v47  ;;  %v15477_v8 = vpop.f32.mrf.mxu0 }
 0x4e6   : > { %v13417_v10 = vrot.slane %v13340_v33, 6  ;;  %v21052_v37 = vsel %vm6793_vm3, %v12067_v51, -inf  ;;  %v11271_v28 = vcombine.high %v11263_v53, %v11263_v53  ;;  %v11272_v6 = vcombine.high %v11270_v43, %v11270_v43 }
 0x4e7   : > { %v13415_v61 = vrot.slane %v13339_v0, 7  ;;  %v13419_v63 = vrot.slane %v13341_v44, 5  ;;  %v11984_v1 = vsel %vm11843_vm4, %v11263_v53, -inf  ;;  %v11998_v9 = vsel %vm11843_vm4, %v11270_v43, -inf }
 0x4e8   : > { %v11985_v35 = vrot.slane %v11984_v1, 4  ;;  %v11991_v41 = vsel %vm11843_vm4, %v11271_v28, -inf  ;;  %v11999_v7 = vrot.slane %v11998_v9, 4  ;;  %v12005_v20 = vsel %vm11843_vm4, %v11272_v6, -inf }
 0x4e9   : > { %v13416_v47 = vsel %vm13395_vm7, %v13415_v61, %v13338_v46  ;;  %v11992_v21 = vrot.slane %v11991_v41, 4  ;;  %v12006_v50 = vrot.slane %v12005_v20, 4  ;;  %v11117_v45 = vmax.f32 %v11085_v55, 0.0 }
 0x4ea   : > { %v13418_v15 = vsel %vm13398_vm8, %v13417_v10, %v13416_v47  ;;  %v11986_v23 = vmax.f32 %v11984_v1, %v11985_v35  ;;  %v12000_v29 = vmax.f32 %v11998_v9, %v11999_v7  ;;  %v11083_v3 = vadd.f32 %v20824_v16, %v11044_v22 }
 0x4eb   : > { %v11993_v5 = vmax.f32 %v11991_v41, %v11992_v21  ;;  %v12007_v48 = vmax.f32 %v12005_v20, %v12006_v50  ;;  %v21062_v42 = vsel %vm13401_vm10, %v13419_v63, %v13418_v15  ;;  %v11341_v34 = vcombine.high %v11117_v45, %v11117_v45 }
 0x4ec   : > { %v11987_v30 = vrot.slane %v11986_v23, 2  ;;  %v12001_v38 = vrot.slane %v12000_v29, 2  ;;  %v11348_v46 = vrot.slane %v11117_v45, %v20828_v31  ;;  %v21065_v33 = vmax.f32 %v11083_v3, 0.0 }
 0x4ed   : > { %v11994_v51 = vrot.slane %v11993_v5, 2  ;;  %v12008_v53 = vrot.slane %v12007_v48, 2  ;;  %v11355_v43 = vrot.slane %v11341_v34, %v20828_v31  ;;  %v21069_v0 = vadd.f32 %v15477_v8, %v20745_v17 }
 0x4ee   : > { %v11988_v16 = vmax.f32 %v11986_v23, %v11987_v30  ;;  %v12002_v44 = vmax.f32 %v12000_v29, %v12001_v38  ;;  %v11356_v55 = vcombine.high %v11348_v46, %v11348_v46  ;;  %v12124_v22 = vsel %vm11843_vm4, %v11348_v46, -inf }
 0x4ef   : > { %v11995_v10 = vmax.f32 %v11993_v5, %v11994_v51  ;;  %v12009_v28 = vmax.f32 %v12007_v48, %v12008_v53  ;;  %v11357_v6 = vcombine.high %v11355_v43, %v11355_v43  ;;  %v12125_v61 = vrot.slane %v12124_v22, 4 }
 0x4f0   : > { %v11989_v63 = vrot.slane %v11988_v16, 1  ;;  %v12003_v1 = vrot.slane %v12002_v44, 1  ;;  %v12131_v9 = vsel %vm11843_vm4, %v11356_v55, -inf  ;;  %v12138_v35 = vsel %vm11843_vm4, %v11355_v43, -inf }
 0x4f1   : > { %v11996_v41 = vrot.slane %v11995_v10, 1  ;;  %v12010_v7 = vrot.slane %v12009_v28, 1  ;;  %v12126_v20 = vmax.f32 %v12124_v22, %v12125_v61  ;;  %v12132_v17 = vrot.slane %v12131_v9, 4 }
 0x4f2   : > { %v11990_v47 = vmax.f32 %v11988_v16, %v11989_v63  ;;  %v12004_v21 = vmax.f32 %v12002_v44, %v12003_v1  ;;  %v12139_v50 = vrot.slane %v12138_v35, 4  ;;  %v12145_v45 = vsel %vm11843_vm4, %v11357_v6, -inf }
 0x4f3   : > { %v11997_v15 = vmax.f32 %v11995_v10, %v11996_v41  ;;  %v12011_v23 = vmax.f32 %v12009_v28, %v12010_v7  ;;  %v12127_v29 = vrot.slane %v12126_v20, 2  ;;  %v12133_v3 = vmax.f32 %v12131_v9, %v12132_v17 }
 0x4f4   : > { %v12776_v5 = vsel %vm6793_vm3, %v11990_v47, -inf  ;;  %v12782_v48 = vsel %vm6793_vm3, %v12004_v21, -inf  ;;  %v12140_v34 = vmax.f32 %v12138_v35, %v12139_v50  ;;  %v12146_v8 = vrot.slane %v12145_v45, 4 }
 0x4f5   : > { %v12778_v30 = vmax.f32 %v12776_v5, %v21033_v13  ;;  %v12779_v38 = vsel %vm6793_vm3, %v11997_v15, -inf  ;;  %v12784_v46 = vmax.f32 %v12782_v48, %v21038_v25  ;;  %v12785_v51 = vsel %vm6793_vm3, %v12011_v23, -inf }
 0x4f6   : > { %v12781_v53 = vmax.f32 %v12779_v38, %v21043_v58  ;;  %v12787_v43 = vmax.f32 %v12785_v51, %v21052_v37  ;;  %v12128_v16 = vmax.f32 %v12126_v20, %v12127_v29  ;;  %v12134_v44 = vrot.slane %v12133_v3, 2  ;;  %v15517_v51 = vpop.f32.mrf.mxu1 }
 0x4f7   : > { %v12951_v55 = vmul.f32 %v20884_v57, %v12778_v30  ;;  %v12953_v22 = vmul.f32 %v20884_v57, %v12784_v46  ;;  %v12141_v10 = vrot.slane %v12140_v34, 2  ;;  %v12147_v28 = vmax.f32 %v12145_v45, %v12146_v8 }
 0x4f8   : > { %v12952_v13 = vmul.f32 %v20884_v57, %v12781_v53  ;;  %v12954_v6 = vmul.f32 %v20884_v57, %v12787_v43  ;;  %v12129_v61 = vrot.slane %v12128_v16, 1  ;;  %v12135_v25 = vmax.f32 %v12133_v3, %v12134_v44 }
 0x4f9   : > { %v13022_v63 = vadd.f32 %v20891_v40, %v12951_v55  ;;  %v13024_v58 = vadd.f32 %v20891_v40, %v12953_v22  ;;  %v12142_v1 = vmax.f32 %v12140_v34, %v12141_v10  ;;  %v12148_v37 = vrot.slane %v12147_v28, 2  ;;  %v10447_v34 = vpop.f32.mrf.mxu0 }
 0x4fa   : > { %v13023_v9 = vadd.f32 %v20891_v40, %v12952_v13  ;;  %v13025_v35 = vadd.f32 %v20891_v40, %v12954_v6  ;;  %v12130_v41 = vmax.f32 %v12128_v16, %v12129_v61  ;;  %v12136_v7 = vrot.slane %v12135_v25, 1 }
 0x4fb   : > { %v14486_v20 = vpack.c.bf16 %v13022_v63, %v13022_v63  ;;  %v14488_v17 = vpack.c.bf16 %v13024_v58, %v13024_v58  ;;  %v12143_v47 = vrot.slane %v12142_v1, 1  ;;  %v12149_v21 = vmax.f32 %v12147_v28, %v12148_v37  ;;  %v15480_v63 = vpop.f32.mrf.mxu0 }
 0x4fc   : > { %v14487_v50 = vpack.c.bf16 %v13023_v9, %v13023_v9  ;;  %v14489_v45 = vpack.c.bf16 %v13025_v35, %v13025_v35  ;;  %v12137_v15 = vmax.f32 %v12135_v25, %v12136_v7  ;;  %v21092_v23 = vsel %vm6793_vm3, %v12130_v41, -inf  ;;  %v21119_v7 = vld [vmem:[%s21818_s6] ss:$0 sm:$0xff] }
 0x4fd   : > { %v13342_v29 = vunpack.c.l.b16 %v14486_v20  ;;  %v13344_v3 = vunpack.c.l.b16 %v14488_v17  ;;  %v12144_v5 = vmax.f32 %v12142_v1, %v12143_v47  ;;  %v12150_v48 = vrot.slane %v12149_v21, 1 }
 0x4fe   : > { %v13343_v8 = vunpack.c.l.b16 %v14487_v50  ;;  %v13345_v30 = vunpack.c.l.b16 %v14489_v45  ;;  %v21095_v38 = vsel %vm6793_vm3, %v12137_v15, -inf  ;;  %v11307_v46 = vcombine.high %v21065_v33, %v21065_v33 }
 0x4ff   : > { %v13421_v53 = vrot.slane %v13342_v29, 4  ;;  %v13425_v43 = vrot.slane %v13344_v3, 2  ;;  %v12151_v16 = vmax.f32 %v12149_v21, %v12150_v48  ;;  %v21100_v44 = vsel %vm6793_vm3, %v12144_v5, -inf  ;;  %v10460_v29 = vpop.f32.mrf.mxu0 }
 0x500   : > { %v13423_v55 = vrot.slane %v13343_v8, 3  ;;  %v13427_v22 = vrot.slane %v13345_v30, 1  ;;  %v11314_v10 = vrot.slane %v21065_v33, %v20828_v31  ;;  %v11321_v28 = vrot.slane %v11307_v46, %v20828_v31  ;;  %v10944_v33 = vpop.f32.mrf.mxu1 }
 0x501   : > { %v13422_v13 = vsel %vm13404_vm12, %v13421_v53, %v21062_v42  ;;  %v21108_v6 = vsel %vm6793_vm3, %v12151_v16, -inf  ;;  %v11047_v61 = vadd.f32 %v15517_v51, %v21069_v0  ;;  %v10548_v25 = vadd.f32 %v10447_v34, %v20748_v32 }
 0x502   : > { %v13424_v58 = vsel %vm13407_vm13, %v13423_v55, %v13422_v13  ;;  %v11322_v1 = vcombine.high %v11314_v10, %v11314_v10  ;;  %v11323_v37 = vcombine.high %v11321_v28, %v11321_v28  ;;  %v12068_v9 = vsel %vm11843_vm4, %v11314_v10, -inf  ;;  %v15520_v8 = vpop.f32.mrf.mxu1 }
 0x503   : > { %v13426_v35 = vsel %vm13410_vm14, %v13425_v43, %v13424_v58  ;;  %v12069_v41 = vrot.slane %v12068_v9, 4  ;;  %v12082_v42 = vsel %vm11843_vm4, %v11321_v28, -inf  ;;  %v11086_v32 = vadd.f32 %v21119_v7, %v11047_v61 }
 0x504   : > { %v13428_v0 = vsel %vm13413_vm15, %v13427_v22, %v13426_v35  ;;  %v12075_v20 = vsel %vm11843_vm4, %v11322_v1, -inf  ;;  %v12083_v17 = vrot.slane %v12082_v42, 4  ;;  %v12089_v47 = vsel %vm11843_vm4, %v11323_v37, -inf }
 0x505   : > { %v13514_v21 = vpack.c.b16 %v13428_v0, %v13428_v0  ;;  %v12070_v50 = vmax.f32 %v12068_v9, %v12069_v41  ;;  %v12076_v45 = vrot.slane %v12075_v20, 4  ;;  %v12090_v15 = vrot.slane %v12089_v47, 4 }
 0x506   : > { %v12084_v3 = vmax.f32 %v12082_v42, %v12083_v17  ;;  %v11118_v5 = vmax.f32 %v11086_v32, 0.0  ;;  %v11045_v48 = vadd.f32 %v10944_v33, %v10548_v25  ;;  %v10553_v34 = vadd.f32 %v15480_v63, %v20751_v26 }
 0x507   : > { %13530 = vst.msk [vmem:[%s21001_s17 + $0x4] sm:$0xf] %vm5634_vm6, %v13514_v21  ;;  %v12071_v30 = vrot.slane %v12070_v50, 2  ;;  %v12077_v46 = vmax.f32 %v12075_v20, %v12076_v45  ;;  %v12091_v51 = vmax.f32 %v12089_v47, %v12090_v15  ;;  %v21129_v53 = vadd.f32 %v10460_v29, %v20754_v19 }
 0x508   : > { %v12085_v43 = vrot.slane %v12084_v3, 2  ;;  %v11358_v16 = vcombine.high %v11118_v5, %v11118_v5  ;;  %v11365_v55 = vrot.slane %v11118_v5, %v20828_v31  ;;  %v21133_v22 = vadd.f32 %v21119_v7, %v11045_v48 }
 0x509   : > { %v12072_v10 = vmax.f32 %v12070_v50, %v12071_v30  ;;  %v12078_v28 = vrot.slane %v12077_v46, 2  ;;  %v12092_v13 = vrot.slane %v12091_v51, 2  ;;  %v21135_v26 = vadd.f32 %v15520_v8, %v10553_v34 }
 0x50a   : > { %v12086_v61 = vmax.f32 %v12084_v3, %v12085_v43  ;;  %v11372_v25 = vrot.slane %v11358_v16, %v20828_v31  ;;  %v11373_v63 = vcombine.high %v11365_v55, %v11365_v55  ;;  %v12152_v58 = vsel %vm11843_vm4, %v11365_v55, -inf }
 0x50b   : > { %v12073_v19 = vrot.slane %v12072_v10, 1  ;;  %v12079_v1 = vmax.f32 %v12077_v46, %v12078_v28  ;;  %v12093_v37 = vmax.f32 %v12091_v51, %v12092_v13  ;;  %v12153_v9 = vrot.slane %v12152_v58, 4 }
 0x50c   : > { %v12087_v33 = vrot.slane %v12086_v61, 1  ;;  %v11374_v35 = vcombine.high %v11372_v25, %v11372_v25  ;;  %v12159_v41 = vsel %vm11843_vm4, %v11373_v63, -inf  ;;  %v12166_v42 = vsel %vm11843_vm4, %v11372_v25, -inf }
 0x50d   : > { %v12074_v32 = vmax.f32 %v12072_v10, %v12073_v19  ;;  %v12080_v0 = vrot.slane %v12079_v1, 1  ;;  %v12094_v20 = vrot.slane %v12093_v37, 1  ;;  %v12154_v17 = vmax.f32 %v12152_v58, %v12153_v9 }
 0x50e   : > { %v12088_v47 = vmax.f32 %v12086_v61, %v12087_v33  ;;  %v12160_v21 = vrot.slane %v12159_v41, 4  ;;  %v12167_v50 = vrot.slane %v12166_v42, 4  ;;  %v12173_v45 = vsel %vm11843_vm4, %v11374_v35, -inf }
 0x50f   : > { %v12081_v15 = vmax.f32 %v12079_v1, %v12080_v0  ;;  %v12095_v29 = vmax.f32 %v12093_v37, %v12094_v20  ;;  %v12788_v3 = vsel %vm6793_vm3, %v12074_v32, -inf  ;;  %v12155_v5 = vrot.slane %v12154_v17, 2 }
 0x510   : > { %v12790_v48 = vmax.f32 %v12788_v3, %v21092_v23  ;;  %v12794_v34 = vsel %vm6793_vm3, %v12088_v47, -inf  ;;  %v12161_v8 = vmax.f32 %v12159_v41, %v12160_v21  ;;  %v12168_v30 = vmax.f32 %v12166_v42, %v12167_v50 }
 0x511   : > { %v12791_v46 = vsel %vm6793_vm3, %v12081_v15, -inf  ;;  %v12796_v51 = vmax.f32 %v12794_v34, %v21100_v44  ;;  %v12797_v43 = vsel %vm6793_vm3, %v12095_v29, -inf  ;;  %v12156_v16 = vmax.f32 %v12154_v17, %v12155_v5 }
 0x512   : > { %v12793_v55 = vmax.f32 %v12791_v46, %v21095_v38  ;;  %v12799_v10 = vmax.f32 %v12797_v43, %v21108_v6  ;;  %v12955_v28 = vmul.f32 %v20884_v57, %v12790_v48  ;;  %v12162_v13 = vrot.slane %v12161_v8, 2 }
 0x513   : > { %v12957_v23 = vmul.f32 %v20884_v57, %v12796_v51  ;;  %v12157_v61 = vrot.slane %v12156_v16, 1  ;;  %v12169_v25 = vrot.slane %v12168_v30, 2  ;;  %v12174_v63 = vrot.slane %v12173_v45, 4 }
 0x514   : > { %v12956_v58 = vmul.f32 %v20884_v57, %v12793_v55  ;;  %v12958_v19 = vmul.f32 %v20884_v57, %v12799_v10  ;;  %v13026_v44 = vadd.f32 %v20891_v40, %v12955_v28  ;;  %v12163_v1 = vmax.f32 %v12161_v8, %v12162_v13  ;;  %v10957_v8 = vpop.f32.mrf.mxu1 }
 0x515   : > { %v13028_v37 = vadd.f32 %v20891_v40, %v12957_v23  ;;  %v12158_v38 = vmax.f32 %v12156_v16, %v12157_v61  ;;  %v12170_v9 = vmax.f32 %v12168_v30, %v12169_v25  ;;  %v12175_v6 = vmax.f32 %v12173_v45, %v12174_v63  ;;  %v15481_v16 = vpop.f32.mrf.mxu0 }
 0x516   : > { %v13027_v33 = vadd.f32 %v20891_v40, %v12956_v58  ;;  %v13029_v35 = vadd.f32 %v20891_v40, %v12958_v19  ;;  %v14490_v41 = vpack.c.bf16 %v13026_v44, %v13026_v44  ;;  %v12164_v42 = vrot.slane %v12163_v1, 1 }
 0x517   : > { %v14492_v32 = vpack.c.bf16 %v13028_v37, %v13028_v37  ;;  %v12171_v0 = vrot.slane %v12170_v9, 1  ;;  %v12176_v20 = vrot.slane %v12175_v6, 2  ;;  %v21159_v17 = vsel %vm6793_vm3, %v12158_v38, -inf }
 0x518   : > { %v14491_v57 = vpack.c.bf16 %v13027_v33, %v13027_v33  ;;  %v14493_v47 = vpack.c.bf16 %v13029_v35, %v13029_v35  ;;  %v13346_v21 = vunpack.c.l.b16 %v14490_v41  ;;  %v12165_v50 = vmax.f32 %v12163_v1, %v12164_v42 }
 0x519   : > { %v13348_v15 = vunpack.c.l.b16 %v14492_v32  ;;  %v12172_v29 = vmax.f32 %v12170_v9, %v12171_v0  ;;  %v12177_v3 = vmax.f32 %v12175_v6, %v12176_v20  ;;  %v11116_v45 = vmax.f32 %v21133_v22, 0.0 }
 0x51a   : > { %v13347_v5 = vunpack.c.l.b16 %v14491_v57  ;;  %v13349_v48 = vunpack.c.l.b16 %v14493_v47  ;;  %v21163_v40 = vsel %vm6793_vm3, %v12165_v50, -inf  ;;  %v11089_v34 = vadd.f32 %v21119_v7, %v21135_v26 }
 0x51b   : > { %v13431_v30 = vrot.slane %v13348_v15, 6  ;;  %v12178_v46 = vrot.slane %v12177_v3, 1  ;;  %v21168_v51 = vsel %vm6793_vm3, %v12172_v29, -inf  ;;  %v11324_v43 = vcombine.high %v11116_v45, %v11116_v45 }
 0x51c   : > { %v13429_v55 = vrot.slane %v13347_v5, 7  ;;  %v13433_v10 = vrot.slane %v13349_v48, 5  ;;  %v11331_v22 = vrot.slane %v11116_v45, %v20828_v31  ;;  %v11121_v28 = vmax.f32 %v11089_v34, 0.0 }
 0x51d   : > { %v12179_v13 = vmax.f32 %v12177_v3, %v12178_v46  ;;  %v11338_v23 = vrot.slane %v11324_v43, %v20828_v31  ;;  %v21173_v61 = vadd.f32 %v10957_v8, %v21129_v53  ;;  %v21176_v26 = vadd.f32 %v15481_v16, %v20757_v62 }
 0x51e   : > { %v13430_v25 = vsel %vm13395_vm7, %v13429_v55, %v13346_v21  ;;  %v11339_v63 = vcombine.high %v11331_v22, %v11331_v22  ;;  %v12096_v58 = vsel %vm11843_vm4, %v11331_v22, -inf  ;;  %v11409_v19 = vcombine.high %v11121_v28, %v11121_v28 }
 0x51f   : > { %v13432_v44 = vsel %vm13398_vm8, %v13431_v30, %v13430_v25  ;;  %v21182_v1 = vsel %vm6793_vm3, %v12179_v13, -inf  ;;  %v11340_v37 = vcombine.high %v11338_v23, %v11338_v23  ;;  %v12097_v38 = vrot.slane %v12096_v58, 4 }
 0x520   : > { %v12103_v9 = vsel %vm11843_vm4, %v11339_v63, -inf  ;;  %v12110_v53 = vsel %vm11843_vm4, %v11338_v23, -inf  ;;  %v21187_v62 = vsel %vm13401_vm10, %v13433_v10, %v13432_v44  ;;  %v11416_v6 = vrot.slane %v11121_v28, %v20828_v31 }
 0x521   : > { %v12098_v33 = vmax.f32 %v12096_v58, %v12097_v38  ;;  %v12104_v35 = vrot.slane %v12103_v9, 4  ;;  %v12111_v41 = vrot.slane %v12110_v53, 4  ;;  %v12117_v42 = vsel %vm11843_vm4, %v11340_v37, -inf }
 0x522   : > { %v12118_v32 = vrot.slane %v12117_v42, 4  ;;  %v11423_v0 = vrot.slane %v11409_v19, %v20828_v31  ;;  %v11424_v20 = vcombine.high %v11416_v6, %v11416_v6  ;;  %v12236_v57 = vsel %vm11843_vm4, %v11416_v6, -inf }
 0x523   : > { %v12099_v47 = vrot.slane %v12098_v33, 2  ;;  %v12105_v21 = vmax.f32 %v12103_v9, %v12104_v35  ;;  %v12112_v50 = vmax.f32 %v12110_v53, %v12111_v41  ;;  %v12237_v15 = vrot.slane %v12236_v57, 4 }
 0x524   : > { %v12119_v29 = vmax.f32 %v12117_v42, %v12118_v32  ;;  %v11425_v3 = vcombine.high %v11423_v0, %v11423_v0  ;;  %v12243_v45 = vsel %vm11843_vm4, %v11424_v20, -inf  ;;  %v12250_v5 = vsel %vm11843_vm4, %v11423_v0, -inf }
 0x525   : > { %v12100_v48 = vmax.f32 %v12098_v33, %v12099_v47  ;;  %v12106_v34 = vrot.slane %v12105_v21, 2  ;;  %v12113_v8 = vrot.slane %v12112_v50, 2  ;;  %v12238_v30 = vmax.f32 %v12236_v57, %v12237_v15 }
 0x526   : > { %v12120_v46 = vrot.slane %v12119_v29, 2  ;;  %v12244_v43 = vrot.slane %v12243_v45, 4  ;;  %v12251_v16 = vrot.slane %v12250_v5, 4  ;;  %v12257_v55 = vsel %vm11843_vm4, %v11425_v3, -inf }
 0x527   : > { %v12101_v10 = vrot.slane %v12100_v48, 1  ;;  %v12107_v22 = vmax.f32 %v12105_v21, %v12106_v34  ;;  %v12114_v28 = vmax.f32 %v12112_v50, %v12113_v8  ;;  %v12239_v13 = vrot.slane %v12238_v30, 2 }
 0x528   : > { %v12121_v23 = vmax.f32 %v12119_v29, %v12120_v46  ;;  %v12245_v25 = vmax.f32 %v12243_v45, %v12244_v43  ;;  %v12252_v63 = vmax.f32 %v12250_v5, %v12251_v16  ;;  %v12258_v58 = vrot.slane %v12257_v55, 4 }
 0x529   : > { %v12102_v19 = vmax.f32 %v12100_v48, %v12101_v10  ;;  %v12108_v44 = vrot.slane %v12107_v22, 1  ;;  %v12115_v37 = vrot.slane %v12114_v28, 1  ;;  %v12240_v38 = vmax.f32 %v12238_v30, %v12239_v13  ;;  %v21206_v48 = vld [vmem:[%s21819_s7] ss:$0 sm:$0xff]  ;;  %v15521_v10 = vpop.f32.mrf.mxu1 }
 0x52a   : > { %v12122_v9 = vrot.slane %v12121_v23, 1  ;;  %v12246_v53 = vrot.slane %v12245_v25, 2  ;;  %v12253_v6 = vrot.slane %v12252_v63, 2  ;;  %v12259_v33 = vmax.f32 %v12257_v55, %v12258_v58 }
 0x52b   : > { %v12109_v35 = vmax.f32 %v12107_v22, %v12108_v44  ;;  %v12116_v41 = vmax.f32 %v12114_v28, %v12115_v37  ;;  %v12800_v42 = vsel %vm6793_vm3, %v12102_v19, -inf  ;;  %v12241_v32 = vrot.slane %v12240_v38, 1 }
 0x52c   : > { %v12123_v0 = vmax.f32 %v12121_v23, %v12122_v9  ;;  %v12802_v20 = vmax.f32 %v12800_v42, %v21159_v17  ;;  %v12247_v57 = vmax.f32 %v12245_v25, %v12246_v53  ;;  %v12254_v47 = vmax.f32 %v12252_v63, %v12253_v6  ;;  %v10463_v9 = vpop.f32.mrf.mxu0 }
 0x52d   : > { %v12803_v21 = vsel %vm6793_vm3, %v12109_v35, -inf  ;;  %v12806_v50 = vsel %vm6793_vm3, %v12116_v41, -inf  ;;  %v12242_v15 = vmax.f32 %v12240_v38, %v12241_v32  ;;  %v12260_v29 = vrot.slane %v12259_v33, 2  ;;  %v10960_v41 = vpop.f32.mrf.mxu1 }
 0x52e   : > { %v12805_v3 = vmax.f32 %v12803_v21, %v21163_v40  ;;  %v12808_v45 = vmax.f32 %v12806_v50, %v21168_v51  ;;  %v12809_v5 = vsel %vm6793_vm3, %v12123_v0, -inf  ;;  %v12959_v17 = vmul.f32 %v21206_v48, %v12802_v20  ;;  %v21215_v51 = vld [vmem:[%s21820_s8] ss:$0 sm:$0xff] }
 0x52f   : > { %v12811_v34 = vmax.f32 %v12809_v5, %v21182_v1  ;;  %v12248_v8 = vrot.slane %v12247_v57, 1  ;;  %v12255_v30 = vrot.slane %v12254_v47, 1  ;;  %v12261_v46 = vmax.f32 %v12259_v33, %v12260_v29 }
 0x530   : > { %v12960_v43 = vmul.f32 %v21206_v48, %v12805_v3  ;;  %v12961_v40 = vmul.f32 %v21206_v48, %v12808_v45  ;;  %v13030_v16 = vadd.f32 %v21215_v51, %v12959_v17  ;;  %v21219_v55 = vsel %vm6793_vm3, %v12242_v15, -inf }
 0x531   : > { %v12962_v1 = vmul.f32 %v21206_v48, %v12811_v34  ;;  %v12249_v22 = vmax.f32 %v12247_v57, %v12248_v8  ;;  %v12256_v28 = vmax.f32 %v12254_v47, %v12255_v30  ;;  %v12262_v13 = vrot.slane %v12261_v46, 1 }
 0x532   : > { %v13031_v23 = vadd.f32 %v21215_v51, %v12960_v43  ;;  %v13032_v25 = vadd.f32 %v21215_v51, %v12961_v40  ;;  %v14494_v63 = vpack.c.bf16 %v13030_v16, %v13030_v16  ;;  %v11087_v58 = vadd.f32 %v21119_v7, %v21173_v61 }
 0x533   : > { %v13033_v19 = vadd.f32 %v21215_v51, %v12962_v1  ;;  %v12263_v44 = vmax.f32 %v12261_v46, %v12262_v13  ;;  %v21228_v37 = vsel %vm6793_vm3, %v12249_v22, -inf  ;;  %v21231_v38 = vsel %vm6793_vm3, %v12256_v28, -inf }
 0x534   : > { %v14495_v53 = vpack.c.bf16 %v13031_v23, %v13031_v23  ;;  %v14496_v6 = vpack.c.bf16 %v13032_v25, %v13032_v25  ;;  %v13350_v33 = vunpack.c.l.b16 %v14494_v63  ;;  %v11119_v35 = vmax.f32 %v11087_v58, 0.0 }
 0x535   : > { %v14497_v42 = vpack.c.bf16 %v13033_v19, %v13033_v19  ;;  %v21234_v32 = vsel %vm6793_vm3, %v12263_v44, -inf  ;;  %v11051_v61 = vadd.f32 %v15521_v10, %v21176_v26  ;;  %v10552_v0 = vadd.f32 %v10463_v9, %v20760_v14 }
 0x536   : > { %v13351_v20 = vunpack.c.l.b16 %v14495_v53  ;;  %v13352_v57 = vunpack.c.l.b16 %v14496_v6  ;;  %v13435_v47 = vrot.slane %v13350_v33, 4  ;;  %v11375_v21 = vcombine.high %v11119_v35, %v11119_v35 }
 0x537   : > { %v13353_v50 = vunpack.c.l.b16 %v14497_v42  ;;  %v11382_v15 = vrot.slane %v11119_v35, %v20828_v31  ;;  %v11090_v29 = vadd.f32 %v21119_v7, %v11051_v61  ;;  %v11049_v3 = vadd.f32 %v10960_v41, %v10552_v0 }
 0x538   : > { %v13436_v45 = vsel %vm13404_vm12, %v13435_v47, %v21187_v62  ;;  %v13437_v5 = vrot.slane %v13351_v20, 3  ;;  %v13439_v17 = vrot.slane %v13352_v57, 2  ;;  %v11389_v34 = vrot.slane %v11375_v21, %v20828_v31 }
 0x539   : > { %v13441_v26 = vrot.slane %v13353_v50, 1  ;;  %v11390_v8 = vcombine.high %v11382_v15, %v11382_v15  ;;  %v12180_v14 = vsel %vm11843_vm4, %v11382_v15, -inf  ;;  %v11122_v30 = vmax.f32 %v11090_v29, 0.0 }
 0x53a   : > { %v13438_v46 = vsel %vm13407_vm13, %v13437_v5, %v13436_v45  ;;  %v11391_v43 = vcombine.high %v11389_v34, %v11389_v34  ;;  %v12181_v40 = vrot.slane %v12180_v14, 4  ;;  %v12194_v16 = vsel %vm11843_vm4, %v11389_v34, -inf }
 0x53b   : > { %v13440_v10 = vsel %vm13410_vm14, %v13439_v17, %v13438_v46  ;;  %v12187_v62 = vsel %vm11843_vm4, %v11390_v8, -inf  ;;  %v12195_v1 = vrot.slane %v12194_v16, 4  ;;  %v11426_v22 = vcombine.high %v11122_v30, %v11122_v30 }
 0x53c   : > { %v13442_v28 = vsel %vm13413_vm15, %v13441_v26, %v13440_v10  ;;  %v12182_v13 = vmax.f32 %v12180_v14, %v12181_v40  ;;  %v12188_v23 = vrot.slane %v12187_v62, 4  ;;  %v12201_v25 = vsel %vm11843_vm4, %v11391_v43, -inf }
 0x53d   : > { %v13515_v63 = vpack.c.b16 %v13442_v28, %v13442_v28  ;;  %v12196_v58 = vmax.f32 %v12194_v16, %v12195_v1  ;;  %v12202_v19 = vrot.slane %v12201_v25, 4  ;;  %v11433_v44 = vrot.slane %v11122_v30, %v20828_v31 }
 0x53e   : > { %v12183_v9 = vrot.slane %v12182_v13, 2  ;;  %v12189_v53 = vmax.f32 %v12187_v62, %v12188_v23  ;;  %v11440_v6 = vrot.slane %v11426_v22, %v20828_v31  ;;  %v21253_v33 = vadd.f32 %v21119_v7, %v11049_v3 }
 0x53f   : > { %13531 = vst.msk [vmem:[%s21001_s17 + $0x8] sm:$0xf] %vm5634_vm6, %v13515_v63  ;;  %v12197_v35 = vrot.slane %v12196_v58, 2  ;;  %v12203_v41 = vmax.f32 %v12201_v25, %v12202_v19  ;;  %v11441_v42 = vcombine.high %v11433_v44, %v11433_v44  ;;  %v12264_v61 = vsel %vm11843_vm4, %v11433_v44, -inf }
 0x540   : > { %v12184_v0 = vmax.f32 %v12182_v13, %v12183_v9  ;;  %v12190_v20 = vrot.slane %v12189_v53, 2  ;;  %v11442_v57 = vcombine.high %v11440_v6, %v11440_v6  ;;  %v12265_v47 = vrot.slane %v12264_v61, 4 }
 0x541   : > { %v12198_v21 = vmax.f32 %v12196_v58, %v12197_v35  ;;  %v12204_v50 = vrot.slane %v12203_v41, 2  ;;  %v12271_v15 = vsel %vm11843_vm4, %v11441_v42, -inf  ;;  %v12278_v29 = vsel %vm11843_vm4, %v11440_v6, -inf }
 0x542   : > { %v12185_v45 = vrot.slane %v12184_v0, 1  ;;  %v12191_v3 = vmax.f32 %v12189_v53, %v12190_v20  ;;  %v12266_v5 = vmax.f32 %v12264_v61, %v12265_v47  ;;  %v12272_v17 = vrot.slane %v12271_v15, 4 }
 0x543   : > { %v12199_v34 = vrot.slane %v12198_v21, 1  ;;  %v12205_v26 = vmax.f32 %v12203_v41, %v12204_v50  ;;  %v12279_v8 = vrot.slane %v12278_v29, 4  ;;  %v12285_v14 = vsel %vm11843_vm4, %v11442_v57, -inf }
 0x544   : > { %v12186_v30 = vmax.f32 %v12184_v0, %v12185_v45  ;;  %v12192_v46 = vrot.slane %v12191_v3, 1  ;;  %v12267_v43 = vrot.slane %v12266_v5, 2  ;;  %v12273_v40 = vmax.f32 %v12271_v15, %v12272_v17  ;;  %v15484_v15 = vpop.f32.mrf.mxu0 }
 0x545   : > { %v12200_v16 = vmax.f32 %v12198_v21, %v12199_v34  ;;  %v12206_v10 = vrot.slane %v12205_v26, 1  ;;  %v12280_v62 = vmax.f32 %v12278_v29, %v12279_v8  ;;  %v12286_v1 = vrot.slane %v12285_v14, 4 }
 0x546   : > { %v12193_v22 = vmax.f32 %v12191_v3, %v12192_v46  ;;  %v12812_v28 = vsel %vm6793_vm3, %v12186_v30, -inf  ;;  %v12268_v13 = vmax.f32 %v12266_v5, %v12267_v43  ;;  %v12274_v23 = vrot.slane %v12273_v40, 2 }
 0x547   : > { %v12207_v25 = vmax.f32 %v12205_v26, %v12206_v10  ;;  %v12814_v63 = vmax.f32 %v12812_v28, %v21219_v55  ;;  %v12818_v58 = vsel %vm6793_vm3, %v12200_v16, -inf  ;;  %v12281_v19 = vrot.slane %v12280_v62, 2  ;;  %v15524_v10 = vpop.f32.mrf.mxu1 }
 0x548   : > { %v12815_v44 = vsel %vm6793_vm3, %v12193_v22, -inf  ;;  %v12820_v9 = vmax.f32 %v12818_v58, %v21231_v38  ;;  %v12269_v53 = vrot.slane %v12268_v13, 1  ;;  %v12275_v6 = vmax.f32 %v12273_v40, %v12274_v23 }
 0x549   : > { %v12817_v35 = vmax.f32 %v12815_v44, %v21228_v37  ;;  %v12821_v41 = vsel %vm6793_vm3, %v12207_v25, -inf  ;;  %v12963_v42 = vmul.f32 %v21206_v48, %v12814_v63  ;;  %v12282_v61 = vmax.f32 %v12280_v62, %v12281_v19  ;;  %v10476_v62 = vpop.f32.mrf.mxu0 }
 0x54a   : > { %v12823_v0 = vmax.f32 %v12821_v41, %v21234_v32  ;;  %v12965_v55 = vmul.f32 %v21206_v48, %v12820_v9  ;;  %v12270_v20 = vmax.f32 %v12268_v13, %v12269_v53  ;;  %v12276_v57 = vrot.slane %v12275_v6, 1 }
 0x54b   : > { %v12964_v47 = vmul.f32 %v21206_v48, %v12817_v35  ;;  %v13034_v21 = vadd.f32 %v21215_v51, %v12963_v42  ;;  %v12283_v38 = vrot.slane %v12282_v61, 1  ;;  %v12287_v50 = vmax.f32 %v12285_v14, %v12286_v1  ;;  %v10973_v42 = vpop.f32.mrf.mxu1 }
 0x54c   : > { %v12966_v37 = vmul.f32 %v21206_v48, %v12823_v0  ;;  %v13036_v29 = vadd.f32 %v21215_v51, %v12965_v55  ;;  %v12277_v45 = vmax.f32 %v12275_v6, %v12276_v57  ;;  %v21276_v3 = vsel %vm6793_vm3, %v12270_v20, -inf }
 0x54d   : > { %v13035_v32 = vadd.f32 %v21215_v51, %v12964_v47  ;;  %v14498_v5 = vpack.c.bf16 %v13034_v21, %v13034_v21  ;;  %v12284_v17 = vmax.f32 %v12282_v61, %v12283_v38  ;;  %v12288_v34 = vrot.slane %v12287_v50, 2  ;;  %v15485_v61 = vpop.f32.mrf.mxu0 }
 0x54e   : > { %v13037_v26 = vadd.f32 %v21215_v51, %v12966_v37  ;;  %v14500_v8 = vpack.c.bf16 %v13036_v29, %v13036_v29  ;;  %v21281_v30 = vsel %vm6793_vm3, %v12277_v45, -inf  ;;  %v11120_v14 = vmax.f32 %v21253_v33, 0.0 }
 0x54f   : > { %v14499_v46 = vpack.c.bf16 %v13035_v32, %v13035_v32  ;;  %v13354_v43 = vunpack.c.l.b16 %v14498_v5  ;;  %v12289_v40 = vmax.f32 %v12287_v50, %v12288_v34  ;;  %v21285_v16 = vsel %vm6793_vm3, %v12284_v17, -inf  ;;  %v15525_v17 = vpop.f32.mrf.mxu1  ;;  %v10479_v34 = vpop.f32.mrf.mxu0 }
 0x550   : > { %v14501_v1 = vpack.c.bf16 %v13037_v26, %v13037_v26  ;;  %v13356_v22 = vunpack.c.l.b16 %v14500_v8  ;;  %v11392_v28 = vcombine.high %v11120_v14, %v11120_v14  ;;  %v11399_v13 = vrot.slane %v11120_v14, %v20828_v31 }
 0x551   : > { %v13355_v23 = vunpack.c.l.b16 %v14499_v46  ;;  %v12290_v25 = vrot.slane %v12289_v40, 1  ;;  %v10557_v63 = vadd.f32 %v15484_v15, %v20763_v60  ;;  %v10555_v58 = vadd.f32 %v10476_v62, %v20766_v12 }
 0x552   : > { %v13357_v33 = vunpack.c.l.b16 %v14501_v1  ;;  %v13445_v19 = vrot.slane %v13356_v22, 6  ;;  %v11406_v44 = vrot.slane %v11392_v28, %v20828_v31  ;;  %v11407_v9 = vcombine.high %v11399_v13, %v11399_v13 }
 0x553   : > { %v13443_v53 = vrot.slane %v13355_v23, 7  ;;  %v12291_v6 = vmax.f32 %v12289_v40, %v12290_v25  ;;  %v12208_v35 = vsel %vm11843_vm4, %v11399_v13, -inf  ;;  %v11054_v41 = vadd.f32 %v15524_v10, %v10557_v63 }
 0x554   : > { %v13447_v0 = vrot.slane %v13357_v33, 5  ;;  %v11408_v55 = vcombine.high %v11406_v44, %v11406_v44  ;;  %v12209_v20 = vrot.slane %v12208_v35, 4  ;;  %v12215_v57 = vsel %vm11843_vm4, %v11407_v9, -inf }
 0x555   : > { %v13444_v60 = vsel %vm13395_vm7, %v13443_v53, %v13354_v43  ;;  %v21295_v12 = vsel %vm6793_vm3, %v12291_v6, -inf  ;;  %v12216_v47 = vrot.slane %v12215_v57, 4  ;;  %v12222_v21 = vsel %vm11843_vm4, %v11406_v44, -inf }
 0x556   : > { %v13446_v38 = vsel %vm13398_vm8, %v13445_v19, %v13444_v60  ;;  %v12210_v50 = vmax.f32 %v12208_v35, %v12209_v20  ;;  %v12223_v15 = vrot.slane %v12222_v21, 4  ;;  %v12229_v37 = vsel %vm11843_vm4, %v11408_v55, -inf }
 0x557   : > { %v12217_v29 = vmax.f32 %v12215_v57, %v12216_v47  ;;  %v12230_v45 = vrot.slane %v12229_v37, 4  ;;  %v21301_v32 = vsel %vm13401_vm10, %v13447_v0, %v13446_v38  ;;  %v11093_v5 = vadd.f32 %v21119_v7, %v11054_v41 }
 0x558   : > { %v12211_v26 = vrot.slane %v12210_v50, 2  ;;  %v12224_v8 = vmax.f32 %v12222_v21, %v12223_v15  ;;  %v11052_v14 = vadd.f32 %v10973_v42, %v10555_v58  ;;  %v10558_v46 = vadd.f32 %v15485_v61, %v20769_v36 }
 0x559   : > { %v12218_v43 = vrot.slane %v12217_v29, 2  ;;  %v12231_v40 = vmax.f32 %v12229_v37, %v12230_v45  ;;  %v11125_v10 = vmax.f32 %v11093_v5, 0.0  ;;  %v21306_v62 = vadd.f32 %v10479_v34, %v20772_v52 }
 0x55a   : > { %v12212_v1 = vmax.f32 %v12210_v50, %v12211_v26  ;;  %v12225_v22 = vrot.slane %v12224_v8, 2  ;;  %v11091_v28 = vadd.f32 %v21119_v7, %v11052_v14  ;;  %v11055_v13 = vadd.f32 %v15525_v17, %v10558_v46 }
 0x55b   : > { %v12219_v23 = vmax.f32 %v12217_v29, %v12218_v43  ;;  %v12232_v25 = vrot.slane %v12231_v40, 2  ;;  %v11477_v63 = vcombine.high %v11125_v10, %v11125_v10  ;;  %v11484_v33 = vrot.slane %v11125_v10, %v20828_v31 }
 0x55c   : > { %v12213_v19 = vrot.slane %v12212_v1, 1  ;;  %v12226_v58 = vmax.f32 %v12224_v8, %v12225_v22  ;;  %v21310_v44 = vmax.f32 %v11091_v28, 0.0  ;;  %v21313_v36 = vadd.f32 %v21119_v7, %v11055_v13 }
 0x55d   : > { %v12220_v9 = vrot.slane %v12219_v23, 1  ;;  %v12233_v52 = vmax.f32 %v12231_v40, %v12232_v25  ;;  %v11491_v53 = vrot.slane %v11477_v63, %v20828_v31  ;;  %v11492_v6 = vcombine.high %v11484_v33, %v11484_v33 }
 0x55e   : > { %v12214_v35 = vmax.f32 %v12212_v1, %v12213_v19  ;;  %v12227_v41 = vrot.slane %v12226_v58, 1  ;;  %v12348_v42 = vsel %vm11843_vm4, %v11484_v33, -inf  ;;  %v11443_v61 = vcombine.high %v21310_v44, %v21310_v44 }
 0x55f   : > { %v12221_v0 = vmax.f32 %v12219_v23, %v12220_v9  ;;  %v12234_v55 = vrot.slane %v12233_v52, 1  ;;  %v11493_v20 = vcombine.high %v11491_v53, %v11491_v53  ;;  %v12349_v57 = vrot.slane %v12348_v42, 4 }
 0x560   : > { %v12228_v60 = vmax.f32 %v12226_v58, %v12227_v41  ;;  %v12824_v7 = vsel %vm6793_vm3, %v12214_v35, -inf  ;;  %v12355_v47 = vsel %vm11843_vm4, %v11492_v6, -inf  ;;  %v12362_v21 = vsel %vm11843_vm4, %v11491_v53, -inf }
 0x561   : > { %v12235_v38 = vmax.f32 %v12233_v52, %v12234_v55  ;;  %v12826_v50 = vmax.f32 %v12824_v7, %v21276_v3  ;;  %v12827_v15 = vsel %vm6793_vm3, %v12221_v0, -inf  ;;  %v12350_v37 = vmax.f32 %v12348_v42, %v12349_v57 }
 0x562   : > { %v12829_v29 = vmax.f32 %v12827_v15, %v21281_v30  ;;  %v12830_v45 = vsel %vm6793_vm3, %v12228_v60, -inf  ;;  %v12356_v5 = vrot.slane %v12355_v47, 4  ;;  %v12363_v17 = vrot.slane %v12362_v21, 4 }
 0x563   : > { %v12832_v34 = vmax.f32 %v12830_v45, %v21285_v16  ;;  %v12833_v26 = vsel %vm6793_vm3, %v12235_v38, -inf  ;;  %v12967_v8 = vmul.f32 %v21206_v48, %v12826_v50  ;;  %v12351_v14 = vrot.slane %v12350_v37, 2 }
 0x564   : > { %v12835_v46 = vmax.f32 %v12833_v26, %v21295_v12  ;;  %v12968_v3 = vmul.f32 %v21206_v48, %v12829_v29  ;;  %v12357_v43 = vmax.f32 %v12355_v47, %v12356_v5  ;;  %v12364_v40 = vmax.f32 %v12362_v21, %v12363_v17  ;;  %v10976_v17 = vpop.f32.mrf.mxu1 }
 0x565   : > { %v12969_v10 = vmul.f32 %v21206_v48, %v12832_v34  ;;  %v13038_v30 = vadd.f32 %v21215_v51, %v12967_v8  ;;  %v12352_v1 = vmax.f32 %v12350_v37, %v12351_v14  ;;  %v12369_v22 = vsel %vm11843_vm4, %v11493_v20, -inf }
 0x566   : > { %v12970_v16 = vmul.f32 %v21206_v48, %v12835_v46  ;;  %v13039_v28 = vadd.f32 %v21215_v51, %v12968_v3  ;;  %v12358_v13 = vrot.slane %v12357_v43, 2  ;;  %v12365_v23 = vrot.slane %v12364_v40, 2 }
 0x567   : > { %v13040_v25 = vadd.f32 %v21215_v51, %v12969_v10  ;;  %v14502_v12 = vpack.c.bf16 %v13038_v30, %v13038_v30  ;;  %v12353_v63 = vrot.slane %v12352_v1, 1  ;;  %v12370_v33 = vrot.slane %v12369_v22, 4 }
 0x568   : > { %v13041_v19 = vadd.f32 %v21215_v51, %v12970_v16  ;;  %v14503_v58 = vpack.c.bf16 %v13039_v28, %v13039_v28  ;;  %v12359_v9 = vmax.f32 %v12357_v43, %v12358_v13  ;;  %v12366_v52 = vmax.f32 %v12364_v40, %v12365_v23 }
 0x569   : > { %v14504_v53 = vpack.c.bf16 %v13040_v25, %v13040_v25  ;;  %v13358_v6 = vunpack.c.l.b16 %v14502_v12  ;;  %v12354_v35 = vmax.f32 %v12352_v1, %v12353_v63  ;;  %v12371_v41 = vmax.f32 %v12369_v22, %v12370_v33 }
 0x56a   : > { %v14505_v42 = vpack.c.bf16 %v13041_v19, %v13041_v19  ;;  %v13359_v0 = vunpack.c.l.b16 %v14503_v58  ;;  %v12360_v55 = vrot.slane %v12359_v9, 1  ;;  %v12367_v20 = vrot.slane %v12366_v52, 1 }
 0x56b   : > { %v13360_v57 = vunpack.c.l.b16 %v14504_v53  ;;  %v13449_v60 = vrot.slane %v13358_v6, 4  ;;  %v12372_v7 = vrot.slane %v12371_v41, 2  ;;  %v21339_v47 = vsel %vm6793_vm3, %v12354_v35, -inf }
 0x56c   : > { %v13361_v21 = vunpack.c.l.b16 %v14505_v42  ;;  %v13451_v38 = vrot.slane %v13359_v0, 3  ;;  %v12361_v50 = vmax.f32 %v12359_v9, %v12360_v55  ;;  %v12368_v15 = vmax.f32 %v12366_v52, %v12367_v20 }
 0x56d   : > { %v13450_v37 = vsel %vm13404_vm12, %v13449_v60, %v21301_v32  ;;  %v13453_v29 = vrot.slane %v13360_v57, 2  ;;  %v12373_v45 = vmax.f32 %v12371_v41, %v12372_v7  ;;  %v11450_v5 = vrot.slane %v21310_v44, %v20828_v31 }
 0x56e   : > { %v13452_v34 = vsel %vm13407_vm13, %v13451_v38, %v13450_v37  ;;  %v13455_v26 = vrot.slane %v13361_v21, 1  ;;  %v21347_v8 = vsel %vm6793_vm3, %v12361_v50, -inf  ;;  %v21350_v14 = vsel %vm6793_vm3, %v12368_v15, -inf }
 0x56f   : > { %v13454_v46 = vsel %vm13410_vm14, %v13453_v29, %v13452_v34  ;;  %v12374_v3 = vrot.slane %v12373_v45, 1  ;;  %v11457_v32 = vrot.slane %v11443_v61, %v20828_v31  ;;  %v11458_v43 = vcombine.high %v11450_v5, %v11450_v5 }
 0x570   : > { %v13456_v40 = vsel %vm13413_vm15, %v13455_v26, %v13454_v46  ;;  %v12292_v10 = vsel %vm11843_vm4, %v11450_v5, -inf  ;;  %v11126_v30 = vmax.f32 %v21313_v36, 0.0  ;;  %v21361_v1 = vadd.f32 %v10976_v17, %v21306_v62 }
 0x571   : > { %v13516_v22 = vpack.c.b16 %v13456_v40, %v13456_v40  ;;  %v12375_v16 = vmax.f32 %v12373_v45, %v12374_v3  ;;  %v11459_v28 = vcombine.high %v11457_v32, %v11457_v32  ;;  %v12293_v13 = vrot.slane %v12292_v10, 4 }
 0x572   : > { %v12299_v23 = vsel %vm11843_vm4, %v11458_v43, -inf  ;;  %v12306_v25 = vsel %vm11843_vm4, %v11457_v32, -inf  ;;  %v11494_v44 = vcombine.high %v11126_v30, %v11126_v30  ;;  %v11501_v61 = vrot.slane %v11126_v30, %v20828_v31 }
 0x573   : > { %13532 = vst.msk [vmem:[%s21001_s17 + $0xc] sm:$0xf] %vm5634_vm6, %v13516_v22  ;;  %v21369_v12 = vsel %vm6793_vm3, %v12375_v16, -inf  ;;  %v12294_v36 = vmax.f32 %v12292_v10, %v12293_v13  ;;  %v12300_v63 = vrot.slane %v12299_v23, 4  ;;  %v12307_v62 = vrot.slane %v12306_v25, 4 }
 0x574   : > { %v12313_v33 = vsel %vm11843_vm4, %v11459_v28, -inf  ;;  %v11508_v19 = vrot.slane %v11494_v44, %v20828_v31  ;;  %v11509_v58 = vcombine.high %v11501_v61, %v11501_v61  ;;  %v12376_v9 = vsel %vm11843_vm4, %v11501_v61, -inf }
 0x575   : > { %v12295_v52 = vrot.slane %v12294_v36, 2  ;;  %v12301_v53 = vmax.f32 %v12299_v23, %v12300_v63  ;;  %v12308_v6 = vmax.f32 %v12306_v25, %v12307_v62  ;;  %v12314_v35 = vrot.slane %v12313_v33, 4  ;;  %v15488_v62 = vpop.f32.mrf.mxu0 }
 0x576   : > { %v11510_v41 = vcombine.high %v11508_v19, %v11508_v19  ;;  %v12377_v42 = vrot.slane %v12376_v9, 4  ;;  %v12383_v0 = vsel %vm11843_vm4, %v11509_v58, -inf  ;;  %v12390_v55 = vsel %vm11843_vm4, %v11508_v19, -inf }
 0x577   : > { %v12296_v20 = vmax.f32 %v12294_v36, %v12295_v52  ;;  %v12302_v57 = vrot.slane %v12301_v53, 2  ;;  %v12309_v60 = vrot.slane %v12308_v6, 2  ;;  %v12315_v7 = vmax.f32 %v12313_v33, %v12314_v35  ;;  %v15528_v52 = vpop.f32.mrf.mxu1 }
 0x578   : > { %v12378_v21 = vmax.f32 %v12376_v9, %v12377_v42  ;;  %v12384_v38 = vrot.slane %v12383_v0, 4  ;;  %v12391_v50 = vrot.slane %v12390_v55, 4  ;;  %v12397_v15 = vsel %vm11843_vm4, %v11510_v41, -inf }
 0x579   : > { %v12297_v37 = vrot.slane %v12296_v20, 1  ;;  %v12303_v29 = vmax.f32 %v12301_v53, %v12302_v57  ;;  %v12310_v45 = vmax.f32 %v12308_v6, %v12309_v60  ;;  %v12316_v5 = vrot.slane %v12315_v7, 2 }
 0x57a   : > { %v12379_v17 = vrot.slane %v12378_v21, 2  ;;  %v12385_v34 = vmax.f32 %v12383_v0, %v12384_v38  ;;  %v12392_v26 = vmax.f32 %v12390_v55, %v12391_v50  ;;  %v12398_v46 = vrot.slane %v12397_v15, 4  ;;  %v10989_v50 = vpop.f32.mrf.mxu1 }
 0x57b   : > { %v12298_v3 = vmax.f32 %v12296_v20, %v12297_v37  ;;  %v12304_v32 = vrot.slane %v12303_v29, 1  ;;  %v12311_v43 = vrot.slane %v12310_v45, 1  ;;  %v12317_v40 = vmax.f32 %v12315_v7, %v12316_v5 }
 0x57c   : > { %v12380_v10 = vmax.f32 %v12378_v21, %v12379_v17  ;;  %v12386_v30 = vrot.slane %v12385_v34, 2  ;;  %v12393_v22 = vrot.slane %v12392_v26, 2  ;;  %v12399_v16 = vmax.f32 %v12397_v15, %v12398_v46  ;;  %v10492_v21 = vpop.f32.mrf.mxu0 }
 0x57d   : > { %v12305_v28 = vmax.f32 %v12303_v29, %v12304_v32  ;;  %v12312_v13 = vmax.f32 %v12310_v45, %v12311_v43  ;;  %v12318_v23 = vrot.slane %v12317_v40, 1  ;;  %v12836_v25 = vsel %vm6793_vm3, %v12298_v3, -inf }
 0x57e   : > { %v12838_v44 = vmax.f32 %v12836_v25, %v21339_v47  ;;  %v12381_v61 = vrot.slane %v12380_v10, 1  ;;  %v12387_v36 = vmax.f32 %v12385_v34, %v12386_v30  ;;  %v12394_v63 = vmax.f32 %v12392_v26, %v12393_v22  ;;  %v21401_v34 = vld [vmem:[%s21818_s6] ss:$0 sm:$0xff] }
 0x57f   : > { %v12319_v33 = vmax.f32 %v12317_v40, %v12318_v23  ;;  %v12839_v19 = vsel %vm6793_vm3, %v12305_v28, -inf  ;;  %v12842_v58 = vsel %vm6793_vm3, %v12312_v13, -inf  ;;  %v12400_v9 = vrot.slane %v12399_v16, 2  ;;  %v15489_v40 = vpop.f32.mrf.mxu0  ;;  %v15529_v28 = vpop.f32.mrf.mxu1 }
 0x580   : > { %v12841_v53 = vmax.f32 %v12839_v19, %v21347_v8  ;;  %v12844_v6 = vmax.f32 %v12842_v58, %v21350_v14  ;;  %v12971_v35 = vmul.f32 %v21206_v48, %v12838_v44  ;;  %v12382_v41 = vmax.f32 %v12380_v10, %v12381_v61 }
 0x581   : > { %v12845_v47 = vsel %vm6793_vm3, %v12319_v33, -inf  ;;  %v12388_v42 = vrot.slane %v12387_v36, 1  ;;  %v12395_v0 = vrot.slane %v12394_v63, 1  ;;  %v12401_v55 = vmax.f32 %v12399_v16, %v12400_v9 }
 0x582   : > { %v12847_v20 = vmax.f32 %v12845_v47, %v21369_v12  ;;  %v12972_v57 = vmul.f32 %v21206_v48, %v12841_v53  ;;  %v12973_v60 = vmul.f32 %v21206_v48, %v12844_v6  ;;  %v13042_v7 = vadd.f32 %v21215_v51, %v12971_v35 }
 0x583   : > { %v12389_v8 = vmax.f32 %v12387_v36, %v12388_v42  ;;  %v12396_v38 = vmax.f32 %v12394_v63, %v12395_v0  ;;  %v12402_v14 = vrot.slane %v12401_v55, 1  ;;  %v21393_v12 = vsel %vm6793_vm3, %v12382_v41, -inf }
 0x584   : > { %v12974_v15 = vmul.f32 %v21206_v48, %v12847_v20  ;;  %v13043_v37 = vadd.f32 %v21215_v51, %v12972_v57  ;;  %v13044_v29 = vadd.f32 %v21215_v51, %v12973_v60  ;;  %v14506_v45 = vpack.c.bf16 %v13042_v7, %v13042_v7 }
 0x585   : > { %v12403_v5 = vmax.f32 %v12401_v55, %v12402_v14  ;;  %v21396_v17 = vsel %vm6793_vm3, %v12389_v8, -inf  ;;  %v11092_v26 = vadd.f32 %v21401_v34, %v21361_v1  ;;  %v21407_v43 = vsel %vm6793_vm3, %v12396_v38, -inf }
 0x586   : > { %v13045_v46 = vadd.f32 %v21215_v51, %v12974_v15  ;;  %v14507_v3 = vpack.c.bf16 %v13043_v37, %v13043_v37  ;;  %v14508_v32 = vpack.c.bf16 %v13044_v29, %v13044_v29  ;;  %v13362_v10 = vunpack.c.l.b16 %v14506_v45 }
 0x587   : > { %v11124_v30 = vmax.f32 %v11092_v26, 0.0  ;;  %v10561_v22 = vadd.f32 %v15488_v62, %v20775_v49  ;;  %v10559_v16 = vadd.f32 %v10492_v21, %v20778_v56  ;;  %v10562_v1 = vadd.f32 %v15489_v40, %v20781_v2 }
 0x588   : > { %v14509_v13 = vpack.c.bf16 %v13045_v46, %v13045_v46  ;;  %v13363_v23 = vunpack.c.l.b16 %v14507_v3  ;;  %v13364_v25 = vunpack.c.l.b16 %v14508_v32  ;;  %v21425_v7 = vsel %vm6793_vm3, %v12403_v5, -inf }
 0x589   : > { %v11460_v44 = vcombine.high %v11124_v30, %v11124_v30  ;;  %v11467_v61 = vrot.slane %v11124_v30, %v20828_v31  ;;  %v11058_v36 = vadd.f32 %v15528_v52, %v10561_v22  ;;  %v11056_v63 = vadd.f32 %v10989_v50, %v10559_v16 }
 0x58a   : > { %v13365_v33 = vunpack.c.l.b16 %v14509_v13  ;;  %v13457_v19 = vrot.slane %v13363_v23, 7  ;;  %v13459_v58 = vrot.slane %v13364_v25, 6  ;;  %v11059_v9 = vadd.f32 %v15529_v28, %v10562_v1 }
 0x58b   : > { %v11474_v53 = vrot.slane %v11460_v44, %v20828_v31  ;;  %v11475_v49 = vcombine.high %v11467_v61, %v11467_v61  ;;  %v12320_v56 = vsel %vm11843_vm4, %v11467_v61, -inf  ;;  %v11097_v62 = vadd.f32 %v21401_v34, %v11058_v36 }
 0x58c   : > { %v13458_v6 = vsel %vm13395_vm7, %v13457_v19, %v13362_v10  ;;  %v13461_v35 = vrot.slane %v13365_v33, 5  ;;  %v12321_v2 = vrot.slane %v12320_v56, 4  ;;  %v11095_v41 = vadd.f32 %v21401_v34, %v11056_v63 }
 0x58d   : > { %v13460_v52 = vsel %vm13398_vm8, %v13459_v58, %v13458_v6  ;;  %v11476_v47 = vcombine.high %v11474_v53, %v11474_v53  ;;  %v12327_v42 = vsel %vm11843_vm4, %v11475_v49, -inf  ;;  %v12334_v0 = vsel %vm11843_vm4, %v11474_v53, -inf }
 0x58e   : > { %v12322_v55 = vmax.f32 %v12320_v56, %v12321_v2  ;;  %v12328_v20 = vrot.slane %v12327_v42, 4  ;;  %v12335_v57 = vrot.slane %v12334_v0, 4  ;;  %v21422_v60 = vsel %vm13401_vm10, %v13461_v35, %v13460_v52 }
 0x58f   : > { %v12341_v21 = vsel %vm11843_vm4, %v11476_v47, -inf  ;;  %v11129_v8 = vmax.f32 %v11097_v62, 0.0  ;;  %v21428_v38 = vmax.f32 %v11095_v41, 0.0  ;;  %v21434_v46 = vadd.f32 %v21401_v34, %v11059_v9 }
 0x590   : > { %v12323_v14 = vrot.slane %v12322_v55, 2  ;;  %v12329_v50 = vmax.f32 %v12327_v42, %v12328_v20  ;;  %v12336_v15 = vmax.f32 %v12334_v0, %v12335_v57  ;;  %v12342_v37 = vrot.slane %v12341_v21, 4 }
 0x591   : > { %v11545_v29 = vcombine.high %v11129_v8, %v11129_v8  ;;  %v11552_v45 = vrot.slane %v11129_v8, %v20828_v31  ;;  %v11511_v26 = vcombine.high %v21428_v38, %v21428_v38  ;;  %v21440_v16 = vrot.slane %v21428_v38, %v20828_v31 }
 0x592   : > { %v12324_v5 = vmax.f32 %v12322_v55, %v12323_v14  ;;  %v12330_v3 = vrot.slane %v12329_v50, 2  ;;  %v12337_v32 = vrot.slane %v12336_v15, 2  ;;  %v12343_v40 = vmax.f32 %v12341_v21, %v12342_v37 }
 0x593   : > { %v11559_v10 = vrot.slane %v11545_v29, %v20828_v31  ;;  %v11560_v30 = vcombine.high %v11552_v45, %v11552_v45  ;;  %v12460_v22 = vsel %vm11843_vm4, %v11552_v45, -inf }
 0x594   : > { %v12325_v28 = vrot.slane %v12324_v5, 1  ;;  %v12331_v13 = vmax.f32 %v12329_v50, %v12330_v3  ;;  %v12338_v23 = vmax.f32 %v12336_v15, %v12337_v32  ;;  %v12344_v25 = vrot.slane %v12343_v40, 2 }
 0x595   : > { %v11561_v1 = vcombine.high %v11559_v10, %v11559_v10  ;;  %v12461_v44 = vrot.slane %v12460_v22, 4  ;;  %v12467_v61 = vsel %vm11843_vm4, %v11560_v30, -inf  ;;  %v12474_v36 = vsel %vm11843_vm4, %v11559_v10, -inf }
 0x596   : > { %v12326_v63 = vmax.f32 %v12324_v5, %v12325_v28  ;;  %v12332_v33 = vrot.slane %v12331_v13, 1  ;;  %v12339_v19 = vrot.slane %v12338_v23, 1  ;;  %v12345_v58 = vmax.f32 %v12343_v40, %v12344_v25 }
 0x597   : > { %v12462_v9 = vmax.f32 %v12460_v22, %v12461_v44  ;;  %v12468_v53 = vrot.slane %v12467_v61, 4  ;;  %v12475_v49 = vrot.slane %v12474_v36, 4  ;;  %v12481_v56 = vsel %vm11843_vm4, %v11561_v1, -inf }
 0x598   : > { %v12333_v62 = vmax.f32 %v12331_v13, %v12332_v33  ;;  %v12340_v6 = vmax.f32 %v12338_v23, %v12339_v19  ;;  %v12346_v35 = vrot.slane %v12345_v58, 1  ;;  %v12848_v2 = vsel %vm6793_vm3, %v12326_v63, -inf }
 0x599   : > { %v12850_v41 = vmax.f32 %v12848_v2, %v21393_v12  ;;  %v12463_v52 = vrot.slane %v12462_v9, 2  ;;  %v12469_v47 = vmax.f32 %v12467_v61, %v12468_v53  ;;  %v12476_v42 = vmax.f32 %v12474_v36, %v12475_v49 }
 0x59a   : > { %v12347_v0 = vmax.f32 %v12345_v58, %v12346_v35  ;;  %v12851_v55 = vsel %vm6793_vm3, %v12333_v62, -inf  ;;  %v12854_v20 = vsel %vm6793_vm3, %v12340_v6, -inf  ;;  %v12482_v57 = vrot.slane %v12481_v56, 4 }
 0x59b   : > { %v12853_v21 = vmax.f32 %v12851_v55, %v21396_v17  ;;  %v12856_v8 = vmax.f32 %v12854_v20, %v21407_v43  ;;  %v12975_v14 = vmul.f32 %v21206_v48, %v12850_v41  ;;  %v12464_v50 = vmax.f32 %v12462_v9, %v12463_v52 }
 0x59c   : > { %v12857_v15 = vsel %vm6793_vm3, %v12347_v0, -inf  ;;  %v12470_v37 = vrot.slane %v12469_v47, 2  ;;  %v12477_v12 = vrot.slane %v12476_v42, 2  ;;  %v12483_v29 = vmax.f32 %v12481_v56, %v12482_v57 }
 0x59d   : > { %v12859_v45 = vmax.f32 %v12857_v15, %v21425_v7  ;;  %v12976_v5 = vmul.f32 %v21206_v48, %v12853_v21  ;;  %v12977_v3 = vmul.f32 %v21206_v48, %v12856_v8  ;;  %v13046_v32 = vadd.f32 %v21215_v51, %v12975_v14 }
 0x59e   : > { %v12465_v40 = vrot.slane %v12464_v50, 1  ;;  %v12471_v17 = vmax.f32 %v12469_v47, %v12470_v37  ;;  %v12478_v10 = vmax.f32 %v12476_v42, %v12477_v12  ;;  %v12484_v43 = vrot.slane %v12483_v29, 2 }
 0x59f   : > { %v12978_v30 = vmul.f32 %v21206_v48, %v12859_v45  ;;  %v13047_v22 = vadd.f32 %v21215_v51, %v12976_v5  ;;  %v13048_v28 = vadd.f32 %v21215_v51, %v12977_v3  ;;  %v14510_v13 = vpack.c.bf16 %v13046_v32, %v13046_v32 }
 0x5a0   : > { %v12466_v23 = vmax.f32 %v12464_v50, %v12465_v40  ;;  %v12472_v25 = vrot.slane %v12471_v17, 1  ;;  %v12479_v7 = vrot.slane %v12478_v10, 1  ;;  %v12485_v1 = vmax.f32 %v12483_v29, %v12484_v43 }
 0x5a1   : > { %v13049_v44 = vadd.f32 %v21215_v51, %v12978_v30  ;;  %v14511_v61 = vpack.c.bf16 %v13047_v22, %v13047_v22  ;;  %v14512_v36 = vpack.c.bf16 %v13048_v28, %v13048_v28  ;;  %v13366_v63 = vunpack.c.l.b16 %v14510_v13 }
 0x5a2   : > { %v12473_v33 = vmax.f32 %v12471_v17, %v12472_v25  ;;  %v12480_v19 = vmax.f32 %v12478_v10, %v12479_v7  ;;  %v12486_v58 = vrot.slane %v12485_v1, 1  ;;  %v11525_v48 = vrot.slane %v11511_v26, %v20828_v31 }
 0x5a3   : > { %v14513_v9 = vpack.c.bf16 %v13049_v44, %v13049_v44  ;;  %v13367_v53 = vunpack.c.l.b16 %v14511_v61  ;;  %v13368_v49 = vunpack.c.l.b16 %v14512_v36  ;;  %v13463_v56 = vrot.slane %v13366_v63, 4 }
 0x5a4   : > { %v12487_v62 = vmax.f32 %v12485_v1, %v12486_v58  ;;  %v21466_v6 = vsel %vm6793_vm3, %v12466_v23, -inf  ;;  %v21469_v51 = vsel %vm6793_vm3, %v12473_v33, -inf  ;;  %v11526_v35 = vcombine.high %v21440_v16, %v21440_v16 }
 0x5a5   : > { %v13369_v2 = vunpack.c.l.b16 %v14513_v9  ;;  %v13464_v41 = vsel %vm13404_vm12, %v13463_v56, %v21422_v60  ;;  %v13465_v38 = vrot.slane %v13367_v53, 3  ;;  %v13467_v26 = vrot.slane %v13368_v49, 2 }
 0x5a6   : > { %v21476_v52 = vsel %vm6793_vm3, %v12480_v19, -inf  ;;  %v11527_v47 = vcombine.high %v11525_v48, %v11525_v48  ;;  %v12404_v42 = vsel %vm11843_vm4, %v21440_v16, -inf  ;;  %v12411_v0 = vsel %vm11843_vm4, %v11526_v35, -inf }
 0x5a7   : > { %v13466_v55 = vsel %vm13407_vm13, %v13465_v38, %v13464_v41  ;;  %v13469_v20 = vrot.slane %v13369_v2, 1  ;;  %v12405_v57 = vrot.slane %v12404_v42, 4  ;;  %v12412_v21 = vrot.slane %v12411_v0, 4 }
 0x5a8   : > { %v13468_v8 = vsel %vm13410_vm14, %v13467_v26, %v13466_v55  ;;  %v12418_v60 = vsel %vm11843_vm4, %v11525_v48, -inf  ;;  %v12425_v14 = vsel %vm11843_vm4, %v11527_v47, -inf  ;;  %v11130_v50 = vmax.f32 %v21434_v46, 0.0  ;;  %v10495_v47 = vpop.f32.mrf.mxu0 }
 0x5a9   : > { %v13470_v15 = vsel %vm13413_vm15, %v13469_v20, %v13468_v8  ;;  %v12406_v37 = vmax.f32 %v12404_v42, %v12405_v57  ;;  %v12413_v16 = vmax.f32 %v12411_v0, %v12412_v21  ;;  %v12419_v12 = vrot.slane %v12418_v60, 4  ;;  %v10992_v57 = vpop.f32.mrf.mxu1 }
 0x5aa   : > { %v13517_v29 = vpack.c.b16 %v13470_v15, %v13470_v15  ;;  %v12426_v45 = vrot.slane %v12425_v14, 4  ;;  %v11562_v5 = vcombine.high %v11130_v50, %v11130_v50  ;;  %v11569_v3 = vrot.slane %v11130_v50, %v20828_v31 }
 0x5ab   : > { %v21489_v32 = vsel %vm6793_vm3, %v12487_v62, -inf  ;;  %v12407_v40 = vrot.slane %v12406_v37, 2  ;;  %v12414_v17 = vrot.slane %v12413_v16, 2  ;;  %v12420_v10 = vmax.f32 %v12418_v60, %v12419_v12 }
 0x5ac   : > { %13533 = vst.msk [vmem:[%s21001_s17 + $0x10] sm:$0xf] %vm5634_vm6, %v13517_v29  ;;  %v12427_v43 = vmax.f32 %v12425_v14, %v12426_v45  ;;  %v11576_v46 = vrot.slane %v11562_v5, %v20828_v31  ;;  %v11577_v30 = vcombine.high %v11569_v3, %v11569_v3  ;;  %v12488_v22 = vsel %vm11843_vm4, %v11569_v3, -inf  ;;  %v21508_v45 = vld [vmem:[%s21819_s7] ss:$0 sm:$0xff] }
 0x5ad   : > { %v12408_v28 = vmax.f32 %v12406_v37, %v12407_v40  ;;  %v12415_v13 = vmax.f32 %v12413_v16, %v12414_v17  ;;  %v12421_v23 = vrot.slane %v12420_v10, 2  ;;  %v12489_v25 = vrot.slane %v12488_v22, 4 }
 0x5ae   : > { %v12428_v7 = vrot.slane %v12427_v43, 2  ;;  %v11578_v1 = vcombine.high %v11576_v46, %v11576_v46  ;;  %v12495_v44 = vsel %vm11843_vm4, %v11577_v30, -inf  ;;  %v12502_v61 = vsel %vm11843_vm4, %v11576_v46, -inf  ;;  %v21517_v46 = vld [vmem:[%s21820_s8] ss:$0 sm:$0xff] }
 0x5af   : > { %v12409_v36 = vrot.slane %v12408_v28, 1  ;;  %v12416_v63 = vrot.slane %v12415_v13, 1  ;;  %v12422_v33 = vmax.f32 %v12420_v10, %v12421_v23  ;;  %v12490_v19 = vmax.f32 %v12488_v22, %v12489_v25 }
 0x5b0   : > { %v12429_v58 = vmax.f32 %v12427_v43, %v12428_v7  ;;  %v12496_v48 = vrot.slane %v12495_v44, 4  ;;  %v12503_v9 = vrot.slane %v12502_v61, 4  ;;  %v12509_v53 = vsel %vm11843_vm4, %v11578_v1, -inf  ;;  %v15532_v43 = vpop.f32.mrf.mxu1 }
 0x5b1   : > { %v12410_v49 = vmax.f32 %v12408_v28, %v12409_v36  ;;  %v12417_v56 = vmax.f32 %v12415_v13, %v12416_v63  ;;  %v12423_v62 = vrot.slane %v12422_v33, 1  ;;  %v12491_v35 = vrot.slane %v12490_v19, 2 }
 0x5b2   : > { %v12430_v2 = vrot.slane %v12429_v58, 1  ;;  %v12497_v41 = vmax.f32 %v12495_v44, %v12496_v48  ;;  %v12504_v38 = vmax.f32 %v12502_v61, %v12503_v9  ;;  %v12510_v26 = vrot.slane %v12509_v53, 4  ;;  %v11005_v48 = vpop.f32.mrf.mxu1 }
 0x5b3   : > { %v12424_v42 = vmax.f32 %v12422_v33, %v12423_v62  ;;  %v12860_v0 = vsel %vm6793_vm3, %v12410_v49, -inf  ;;  %v12863_v55 = vsel %vm6793_vm3, %v12417_v56, -inf  ;;  %v12492_v20 = vmax.f32 %v12490_v19, %v12491_v35 }
 0x5b4   : > { %v12431_v21 = vmax.f32 %v12429_v58, %v12430_v2  ;;  %v12862_v8 = vmax.f32 %v12860_v0, %v21466_v6  ;;  %v12865_v60 = vmax.f32 %v12863_v55, %v21469_v51  ;;  %v12498_v14 = vrot.slane %v12497_v41, 2  ;;  %v15492_v51 = vpop.f32.mrf.mxu0 }
 0x5b5   : > { %v12866_v50 = vsel %vm6793_vm3, %v12424_v42, -inf  ;;  %v12493_v15 = vrot.slane %v12492_v20, 1  ;;  %v12505_v37 = vrot.slane %v12504_v38, 2  ;;  %v12511_v16 = vmax.f32 %v12509_v53, %v12510_v26 }
 0x5b6   : > { %v12868_v12 = vmax.f32 %v12866_v50, %v21476_v52  ;;  %v12869_v29 = vsel %vm6793_vm3, %v12431_v21, -inf  ;;  %v12979_v5 = vmul.f32 %v21508_v45, %v12862_v8  ;;  %v12980_v6 = vmul.f32 %v21508_v45, %v12865_v60  ;;  %v10508_v36 = vpop.f32.mrf.mxu0  ;;  %v15533_v21 = vpop.f32.mrf.mxu1 }
 0x5b7   : > { %v12871_v3 = vmax.f32 %v12869_v29, %v21489_v32  ;;  %v12494_v40 = vmax.f32 %v12492_v20, %v12493_v15  ;;  %v12499_v17 = vmax.f32 %v12497_v41, %v12498_v14  ;;  %v12506_v10 = vmax.f32 %v12504_v38, %v12505_v37 }
 0x5b8   : > { %v12981_v52 = vmul.f32 %v21508_v45, %v12868_v12  ;;  %v13050_v30 = vadd.f32 %v21517_v46, %v12979_v5  ;;  %v13051_v22 = vadd.f32 %v21517_v46, %v12980_v6  ;;  %v12512_v28 = vrot.slane %v12511_v16, 2  ;;  %v15493_v42 = vpop.f32.mrf.mxu0 }
 0x5b9   : > { %v12982_v13 = vmul.f32 %v21508_v45, %v12871_v3  ;;  %v12500_v23 = vrot.slane %v12499_v17, 1  ;;  %v12507_v32 = vrot.slane %v12506_v10, 1  ;;  %v10560_v25 = vadd.f32 %v10495_v47, %v20784_v11 }
 0x5ba   : > { %v13052_v7 = vadd.f32 %v21517_v46, %v12981_v52  ;;  %v14514_v1 = vpack.c.bf16 %v13050_v30, %v13050_v30  ;;  %v14515_v44 = vpack.c.bf16 %v13051_v22, %v13051_v22  ;;  %v12513_v61 = vmax.f32 %v12511_v16, %v12512_v28  ;;  %v10511_v6 = vpop.f32.mrf.mxu0  ;;  %v11008_v30 = vpop.f32.mrf.mxu1 }
 0x5bb   : > { %v13053_v63 = vadd.f32 %v21517_v46, %v12982_v13  ;;  %v12501_v33 = vmax.f32 %v12499_v17, %v12500_v23  ;;  %v12508_v19 = vmax.f32 %v12506_v10, %v12507_v32  ;;  %v11057_v58 = vadd.f32 %v10992_v57, %v10560_v25 }
 0x5bc   : > { %v14516_v9 = vpack.c.bf16 %v13052_v7, %v13052_v7  ;;  %v13371_v53 = vunpack.c.l.b16 %v14515_v44  ;;  %v12514_v49 = vrot.slane %v12513_v61, 1  ;;  %v21526_v56 = vsel %vm6793_vm3, %v12494_v40, -inf }
 0x5bd   : > { %v14517_v62 = vpack.c.bf16 %v13053_v63, %v13053_v63  ;;  %v13370_v11 = vunpack.c.l.b16 %v14514_v1  ;;  %v21529_v35 = vsel %vm6793_vm3, %v12501_v33, -inf  ;;  %v11096_v2 = vadd.f32 %v21401_v34, %v11057_v58 }
 0x5be   : > { %v13372_v41 = vunpack.c.l.b16 %v14516_v9  ;;  %v13471_v38 = vrot.slane %v13371_v53, 7  ;;  %v12515_v26 = vmax.f32 %v12513_v61, %v12514_v49  ;;  %v10565_v47 = vadd.f32 %v15492_v51, %v20787_v18 }
 0x5bf   : > { %v13373_v0 = vunpack.c.l.b16 %v14517_v62  ;;  %v21534_v55 = vsel %vm6793_vm3, %v12508_v19, -inf  ;;  %v11128_v20 = vmax.f32 %v11096_v2, 0.0  ;;  %v10563_v57 = vadd.f32 %v10508_v36, %v20790_v59 }
 0x5c0   : > { %v13472_v8 = vsel %vm13395_vm7, %v13471_v38, %v13370_v11  ;;  %v13473_v60 = vrot.slane %v13372_v41, 6  ;;  %v11062_v14 = vadd.f32 %v15532_v43, %v10565_v47  ;;  %v10566_v50 = vadd.f32 %v15493_v42, %v20793_v27 }
 0x5c1   : > { %v13475_v15 = vrot.slane %v13373_v0, 5  ;;  %v11528_v37 = vcombine.high %v11128_v20, %v11128_v20  ;;  %v11535_v16 = vrot.slane %v11128_v20, %v20828_v31  ;;  %v11060_v18 = vadd.f32 %v11005_v48, %v10563_v57 }
 0x5c2   : > { %v13474_v12 = vsel %vm13398_vm8, %v13473_v60, %v13472_v8  ;;  %v21542_v29 = vsel %vm6793_vm3, %v12515_v26, -inf  ;;  %v11101_v5 = vadd.f32 %v21401_v34, %v11062_v14  ;;  %v11063_v59 = vadd.f32 %v15533_v21, %v10566_v50 }
 0x5c3   : > { %v11542_v51 = vrot.slane %v11528_v37, %v20828_v31  ;;  %v11543_v3 = vcombine.high %v11535_v16, %v11535_v16  ;;  %v12432_v40 = vsel %vm11843_vm4, %v11535_v16, -inf  ;;  %v21548_v27 = vsel %vm13401_vm10, %v13475_v15, %v13474_v12 }
 0x5c4   : > { %v12433_v17 = vrot.slane %v12432_v40, 4  ;;  %v11133_v10 = vmax.f32 %v11101_v5, 0.0  ;;  %v11099_v43 = vadd.f32 %v21401_v34, %v11060_v18  ;;  %v10564_v52 = vadd.f32 %v10511_v6, %v20796_v54 }
 0x5c5   : > { %v11544_v22 = vcombine.high %v11542_v51, %v11542_v51  ;;  %v12439_v28 = vsel %vm11843_vm4, %v11543_v3, -inf  ;;  %v12446_v13 = vsel %vm11843_vm4, %v11542_v51, -inf  ;;  %v11102_v23 = vadd.f32 %v21401_v34, %v11063_v59 }
 0x5c6   : > { %v12434_v32 = vmax.f32 %v12432_v40, %v12433_v17  ;;  %v12440_v25 = vrot.slane %v12439_v28, 4  ;;  %v12447_v7 = vrot.slane %v12446_v13, 4  ;;  %v11613_v1 = vcombine.high %v11133_v10, %v11133_v10 }
 0x5c7   : > { %v12453_v44 = vsel %vm11843_vm4, %v11544_v22, -inf  ;;  %v11620_v61 = vrot.slane %v11133_v10, %v20828_v31  ;;  %v21557_v36 = vmax.f32 %v11099_v43, 0.0  ;;  %v21559_v63 = vadd.f32 %v11008_v30, %v10564_v52 }
 0x5c8   : > { %v12435_v54 = vrot.slane %v12434_v32, 2  ;;  %v12441_v33 = vmax.f32 %v12439_v28, %v12440_v25  ;;  %v12448_v19 = vmax.f32 %v12446_v13, %v12447_v7  ;;  %v12454_v58 = vrot.slane %v12453_v44, 4 }
 0x5c9   : > { %v11627_v48 = vrot.slane %v11613_v1, %v20828_v31  ;;  %v11628_v9 = vcombine.high %v11620_v61, %v11620_v61  ;;  %v12572_v53 = vsel %vm11843_vm4, %v11620_v61, -inf  ;;  %v21563_v49 = vmax.f32 %v11102_v23, 0.0 }
 0x5ca   : > { %v12436_v62 = vmax.f32 %v12434_v32, %v12435_v54  ;;  %v12442_v11 = vrot.slane %v12441_v33, 2  ;;  %v12449_v2 = vrot.slane %v12448_v19, 2  ;;  %v12455_v41 = vmax.f32 %v12453_v44, %v12454_v58 }
 0x5cb   : > { %v11629_v38 = vcombine.high %v11627_v48, %v11627_v48  ;;  %v12573_v26 = vrot.slane %v12572_v53, 4  ;;  %v12579_v47 = vsel %vm11843_vm4, %v11628_v9, -inf  ;;  %v12586_v42 = vsel %vm11843_vm4, %v11627_v48, -inf }
 0x5cc   : > { %v12437_v0 = vrot.slane %v12436_v62, 1  ;;  %v12443_v20 = vmax.f32 %v12441_v33, %v12442_v11  ;;  %v12450_v57 = vmax.f32 %v12448_v19, %v12449_v2  ;;  %v12456_v21 = vrot.slane %v12455_v41, 2 }
 0x5cd   : > { %v12574_v8 = vmax.f32 %v12572_v53, %v12573_v26  ;;  %v12580_v60 = vrot.slane %v12579_v47, 4  ;;  %v12587_v14 = vrot.slane %v12586_v42, 4  ;;  %v12593_v50 = vsel %vm11843_vm4, %v11629_v38, -inf }
 0x5ce   : > { %v12438_v15 = vmax.f32 %v12436_v62, %v12437_v0  ;;  %v12444_v37 = vrot.slane %v12443_v20, 1  ;;  %v12451_v16 = vrot.slane %v12450_v57, 1  ;;  %v12457_v18 = vmax.f32 %v12455_v41, %v12456_v21 }
 0x5cf   : > { %v12575_v12 = vrot.slane %v12574_v8, 2  ;;  %v12581_v5 = vmax.f32 %v12579_v47, %v12580_v60  ;;  %v12588_v59 = vmax.f32 %v12586_v42, %v12587_v14  ;;  %v12594_v6 = vrot.slane %v12593_v50, 4 }
 0x5d0   : > { %v12445_v51 = vmax.f32 %v12443_v20, %v12444_v37  ;;  %v12452_v3 = vmax.f32 %v12450_v57, %v12451_v16  ;;  %v12458_v40 = vrot.slane %v12457_v18, 1  ;;  %v12872_v17 = vsel %vm6793_vm3, %v12438_v15, -inf }
 0x5d1   : > { %v12874_v10 = vmax.f32 %v12872_v17, %v21526_v56  ;;  %v12576_v43 = vmax.f32 %v12574_v8, %v12575_v12  ;;  %v12582_v52 = vrot.slane %v12581_v5, 2  ;;  %v12589_v30 = vrot.slane %v12588_v59, 2 }
 0x5d2   : > { %v12459_v22 = vmax.f32 %v12457_v18, %v12458_v40  ;;  %v12875_v28 = vsel %vm6793_vm3, %v12445_v51, -inf  ;;  %v12878_v13 = vsel %vm6793_vm3, %v12452_v3, -inf  ;;  %v12595_v23 = vmax.f32 %v12593_v50, %v12594_v6 }
 0x5d3   : > { %v12877_v32 = vmax.f32 %v12875_v28, %v21529_v35  ;;  %v12880_v25 = vmax.f32 %v12878_v13, %v21534_v55  ;;  %v12983_v7 = vmul.f32 %v21508_v45, %v12874_v10  ;;  %v12577_v1 = vrot.slane %v12576_v43, 1 }
 0x5d4   : > { %v12881_v44 = vsel %vm6793_vm3, %v12459_v22, -inf  ;;  %v12583_v61 = vmax.f32 %v12581_v5, %v12582_v52  ;;  %v12590_v56 = vmax.f32 %v12588_v59, %v12589_v30  ;;  %v12596_v54 = vrot.slane %v12595_v23, 2 }
 0x5d5   : > { %v12883_v33 = vmax.f32 %v12881_v44, %v21542_v29  ;;  %v12984_v19 = vmul.f32 %v21508_v45, %v12877_v32  ;;  %v12985_v58 = vmul.f32 %v21508_v45, %v12880_v25  ;;  %v13054_v48 = vadd.f32 %v21517_v46, %v12983_v7 }
 0x5d6   : > { %v12578_v9 = vmax.f32 %v12576_v43, %v12577_v1  ;;  %v12584_v35 = vrot.slane %v12583_v61, 1  ;;  %v12591_v53 = vrot.slane %v12590_v56, 1  ;;  %v12597_v55 = vmax.f32 %v12595_v23, %v12596_v54 }
 0x5d7   : > { %v12986_v62 = vmul.f32 %v21508_v45, %v12883_v33  ;;  %v13055_v11 = vadd.f32 %v21517_v46, %v12984_v19  ;;  %v13056_v2 = vadd.f32 %v21517_v46, %v12985_v58  ;;  %v14518_v41 = vpack.c.bf16 %v13054_v48, %v13054_v48 }
 0x5d8   : > { %v12585_v38 = vmax.f32 %v12583_v61, %v12584_v35  ;;  %v12592_v26 = vmax.f32 %v12590_v56, %v12591_v53  ;;  %v12598_v29 = vrot.slane %v12597_v55, 1  ;;  %v11579_v47 = vcombine.high %v21557_v36, %v21557_v36 }
 0x5d9   : > { %v13057_v42 = vadd.f32 %v21517_v46, %v12986_v62  ;;  %v14519_v0 = vpack.c.bf16 %v13055_v11, %v13055_v11  ;;  %v14520_v20 = vpack.c.bf16 %v13056_v2, %v13056_v2  ;;  %v13374_v57 = vunpack.c.l.b16 %v14518_v41 }
 0x5da   : > { %v12599_v21 = vmax.f32 %v12597_v55, %v12598_v29  ;;  %v21587_v8 = vsel %vm6793_vm3, %v12578_v9, -inf  ;;  %v21590_v60 = vsel %vm6793_vm3, %v12585_v38, -inf  ;;  %v11586_v14 = vrot.slane %v21557_v36, %v20828_v31 }
 0x5db   : > { %v14521_v50 = vpack.c.bf16 %v13057_v42, %v13057_v42  ;;  %v13375_v15 = vunpack.c.l.b16 %v14519_v0  ;;  %v13376_v37 = vunpack.c.l.b16 %v14520_v20  ;;  %v13477_v16 = vrot.slane %v13374_v57, 4 }
 0x5dc   : > { %v21595_v18 = vsel %vm6793_vm3, %v12592_v26, -inf  ;;  %v11593_v12 = vrot.slane %v11579_v47, %v20828_v31  ;;  %v11594_v5 = vcombine.high %v11586_v14, %v11586_v14  ;;  %v12516_v59 = vsel %vm11843_vm4, %v11586_v14, -inf }
 0x5dd   : > { %v13377_v6 = vunpack.c.l.b16 %v14521_v50  ;;  %v13478_v51 = vsel %vm13404_vm12, %v13477_v16, %v21548_v27  ;;  %v13479_v3 = vrot.slane %v13375_v15, 3  ;;  %v13481_v40 = vrot.slane %v13376_v37, 2 }
 0x5de   : > { %v11595_v17 = vcombine.high %v11593_v12, %v11593_v12  ;;  %v12517_v36 = vrot.slane %v12516_v59, 4  ;;  %v12523_v10 = vsel %vm11843_vm4, %v11594_v5, -inf  ;;  %v12530_v43 = vsel %vm11843_vm4, %v11593_v12, -inf }
 0x5df   : > { %v13480_v52 = vsel %vm13407_vm13, %v13479_v3, %v13478_v51  ;;  %v13483_v30 = vrot.slane %v13377_v6, 1  ;;  %v12524_v22 = vrot.slane %v12523_v10, 4  ;;  %v12531_v28 = vrot.slane %v12530_v43, 4 }
 0x5e0   : > { %v13482_v13 = vsel %vm13410_vm14, %v13481_v40, %v13480_v52  ;;  %v12518_v23 = vmax.f32 %v12516_v59, %v12517_v36  ;;  %v12537_v32 = vsel %vm11843_vm4, %v11595_v17, -inf  ;;  %v11630_v27 = vcombine.high %v21563_v49, %v21563_v49  ;;  %v15496_v59 = vpop.f32.mrf.mxu0 }
 0x5e1   : > { %v13484_v25 = vsel %vm13413_vm15, %v13483_v30, %v13482_v13  ;;  %v12525_v7 = vmax.f32 %v12523_v10, %v12524_v22  ;;  %v12532_v1 = vmax.f32 %v12530_v43, %v12531_v28  ;;  %v12538_v44 = vrot.slane %v12537_v32, 4 }
 0x5e2   : > { %v13518_v61 = vpack.c.b16 %v13484_v25, %v13484_v25  ;;  %v12519_v56 = vrot.slane %v12518_v23, 2  ;;  %v11637_v54 = vrot.slane %v21563_v49, %v20828_v31  ;;  %v11644_v33 = vrot.slane %v11630_v27, %v20828_v31  ;;  %v10524_v25 = vpop.f32.mrf.mxu0 }
 0x5e3   : > { %v12894_v19 = vsel %vm6793_vm3, %v12599_v21, -inf  ;;  %v12526_v58 = vrot.slane %v12525_v7, 2  ;;  %v12533_v48 = vrot.slane %v12532_v1, 2  ;;  %v12539_v9 = vmax.f32 %v12537_v32, %v12538_v44 }
 0x5e4   : > { %13534 = vst.msk [vmem:[%s21001_s17 + $0x14] sm:$0xf] %vm5634_vm6, %v13518_v61  ;;  %v12520_v35 = vmax.f32 %v12518_v23, %v12519_v56  ;;  %v11645_v53 = vcombine.high %v11637_v54, %v11637_v54  ;;  %v11646_v55 = vcombine.high %v11644_v33, %v11644_v33  ;;  %v12600_v62 = vsel %vm11843_vm4, %v11637_v54, -inf }
 0x5e5   : > { %v12527_v11 = vmax.f32 %v12525_v7, %v12526_v58  ;;  %v12534_v2 = vmax.f32 %v12532_v1, %v12533_v48  ;;  %v12540_v41 = vrot.slane %v12539_v9, 2  ;;  %v12601_v38 = vrot.slane %v12600_v62, 4 }
 0x5e6   : > { %v12521_v26 = vrot.slane %v12520_v35, 1  ;;  %v12607_v49 = vsel %vm11843_vm4, %v11645_v53, -inf  ;;  %v12614_v29 = vsel %vm11843_vm4, %v11644_v33, -inf  ;;  %v12621_v47 = vsel %vm11843_vm4, %v11646_v55, -inf  ;;  %v15497_v55 = vpop.f32.mrf.mxu0 }
 0x5e7   : > { %v12528_v42 = vrot.slane %v12527_v11, 1  ;;  %v12535_v0 = vrot.slane %v12534_v2, 1  ;;  %v12541_v20 = vmax.f32 %v12539_v9, %v12540_v41  ;;  %v12602_v57 = vmax.f32 %v12600_v62, %v12601_v38  ;;  %v15536_v41 = vpop.f32.mrf.mxu1 }
 0x5e8   : > { %v12522_v21 = vmax.f32 %v12520_v35, %v12521_v26  ;;  %v12608_v14 = vrot.slane %v12607_v49, 4  ;;  %v12615_v50 = vrot.slane %v12614_v29, 4  ;;  %v12622_v15 = vrot.slane %v12621_v47, 4 }
 0x5e9   : > { %v12529_v37 = vmax.f32 %v12527_v11, %v12528_v42  ;;  %v12536_v16 = vmax.f32 %v12534_v2, %v12535_v0  ;;  %v12542_v12 = vrot.slane %v12541_v20, 1  ;;  %v12603_v5 = vrot.slane %v12602_v57, 2 }
 0x5ea   : > { %v12884_v6 = vsel %vm6793_vm3, %v12522_v21, -inf  ;;  %v12609_v51 = vmax.f32 %v12607_v49, %v12608_v14  ;;  %v12616_v3 = vmax.f32 %v12614_v29, %v12615_v50  ;;  %v12623_v40 = vmax.f32 %v12621_v47, %v12622_v15 }
 0x5eb   : > { %v12543_v17 = vmax.f32 %v12541_v20, %v12542_v12  ;;  %v12886_v36 = vmax.f32 %v12884_v6, %v21587_v8  ;;  %v12887_v10 = vsel %vm6793_vm3, %v12529_v37, -inf  ;;  %v12890_v43 = vsel %vm6793_vm3, %v12536_v16, -inf }
 0x5ec   : > { %v12889_v52 = vmax.f32 %v12887_v10, %v21590_v60  ;;  %v12892_v30 = vmax.f32 %v12890_v43, %v21595_v18  ;;  %v12604_v22 = vmax.f32 %v12602_v57, %v12603_v5  ;;  %v12610_v28 = vrot.slane %v12609_v51, 2 }
 0x5ed   : > { %v12893_v13 = vsel %vm6793_vm3, %v12543_v17, -inf  ;;  %v12987_v23 = vmul.f32 %v21508_v45, %v12886_v36  ;;  %v12617_v32 = vrot.slane %v12616_v3, 2  ;;  %v12624_v27 = vrot.slane %v12623_v40, 2 }
 0x5ee   : > { %v12895_v7 = vmax.f32 %v12893_v13, %v12894_v19  ;;  %v12988_v8 = vmul.f32 %v21508_v45, %v12889_v52  ;;  %v12989_v1 = vmul.f32 %v21508_v45, %v12892_v30  ;;  %v12605_v44 = vrot.slane %v12604_v22, 1 }
 0x5ef   : > { %v13058_v61 = vadd.f32 %v21517_v46, %v12987_v23  ;;  %v12611_v60 = vmax.f32 %v12609_v51, %v12610_v28  ;;  %v12618_v56 = vmax.f32 %v12616_v3, %v12617_v32  ;;  %v12625_v18 = vmax.f32 %v12623_v40, %v12624_v27  ;;  %v11021_v23 = vpop.f32.mrf.mxu1 }
 0x5f0   : > { %v12990_v54 = vmul.f32 %v21508_v45, %v12895_v7  ;;  %v13059_v33 = vadd.f32 %v21517_v46, %v12988_v8  ;;  %v13060_v58 = vadd.f32 %v21517_v46, %v12989_v1  ;;  %v11100_v48 = vadd.f32 %v21401_v34, %v21559_v63 }
 0x5f1   : > { %v14522_v19 = vpack.c.bf16 %v13058_v61, %v13058_v61  ;;  %v12606_v9 = vmax.f32 %v12604_v22, %v12605_v44  ;;  %v12612_v35 = vrot.slane %v12611_v60, 1  ;;  %v10569_v53 = vadd.f32 %v15496_v59, %v20801_v4 }
 0x5f2   : > { %v13061_v62 = vadd.f32 %v21517_v46, %v12990_v54  ;;  %v14523_v11 = vpack.c.bf16 %v13059_v33, %v13059_v33  ;;  %v14524_v2 = vpack.c.bf16 %v13060_v58, %v13060_v58  ;;  %v10567_v38 = vadd.f32 %v10524_v25, %v20807_v24 }
 0x5f3   : > { %v12613_v26 = vmax.f32 %v12611_v60, %v12612_v35  ;;  %v12619_v49 = vrot.slane %v12618_v56, 1  ;;  %v12626_v29 = vrot.slane %v12625_v18, 1  ;;  %v11132_v63 = vmax.f32 %v11100_v48, 0.0 }
 0x5f4   : > { %v14525_v47 = vpack.c.bf16 %v13061_v62, %v13061_v62  ;;  %v13379_v42 = vunpack.c.l.b16 %v14523_v11  ;;  %v13380_v0 = vunpack.c.l.b16 %v14524_v2  ;;  %v21639_v20 = vadd.f32 %v15497_v55, %v20813_v39 }
 0x5f5   : > { %v13378_v57 = vunpack.c.l.b16 %v14522_v19  ;;  %v21642_v4 = vsel %vm6793_vm3, %v12606_v9, -inf  ;;  %v11066_v21 = vadd.f32 %v15536_v41, %v10569_v53  ;;  %v11596_v37 = vcombine.high %v11132_v63, %v11132_v63 }
 0x5f6   : > { %v13381_v14 = vunpack.c.l.b16 %v14525_v47  ;;  %v13485_v50 = vrot.slane %v13379_v42, 7  ;;  %v13487_v15 = vrot.slane %v13380_v0, 6  ;;  %v12620_v24 = vmax.f32 %v12618_v56, %v12619_v49 }
 0x5f7   : > { %v21644_v16 = vmax.f32 %v12625_v18, %v12626_v29  ;;  %v11603_v12 = vrot.slane %v11132_v63, %v20828_v31  ;;  %v11105_v5 = vadd.f32 %v21401_v34, %v11066_v21  ;;  %v21650_v6 = vsel %vm6793_vm3, %v12613_v26, -inf }
 0x5f8   : > { %v13486_v59 = vsel %vm13395_vm7, %v13485_v50, %v13378_v57  ;;  %v13489_v39 = vrot.slane %v13381_v14, 5  ;;  %v11610_v51 = vrot.slane %v11596_v37, %v20828_v31  ;;  %v12903_v32 = vsel %vm6793_vm3, %v12620_v24, -inf }
 0x5f9   : > { %v13488_v3 = vsel %vm13398_vm8, %v13487_v15, %v13486_v59  ;;  %v11611_v40 = vcombine.high %v11603_v12, %v11603_v12  ;;  %v12544_v17 = vsel %vm11843_vm4, %v11603_v12, -inf  ;;  %v11137_v36 = vmax.f32 %v11105_v5, 0.0  ;;  %v21671_v12 = vld [vmem:[%s21818_s6] ss:$0 sm:$0xff] }
 0x5fa   : > { %v11612_v10 = vcombine.high %v11610_v51, %v11610_v51  ;;  %v12545_v43 = vrot.slane %v12544_v17, 4  ;;  %v12558_v52 = vsel %vm11843_vm4, %v11610_v51, -inf  ;;  %v21657_v34 = vsel %vm13401_vm10, %v13489_v39, %v13488_v3 }
 0x5fb   : > { %v12551_v30 = vsel %vm11843_vm4, %v11611_v40, -inf  ;;  %v12559_v22 = vrot.slane %v12558_v52, 4  ;;  %v11681_v28 = vcombine.high %v11137_v36, %v11137_v36  ;;  %v11688_v13 = vrot.slane %v11137_v36, %v20828_v31  ;;  %v15537_v40 = vpop.f32.mrf.mxu1 }
 0x5fc   : > { %v12546_v27 = vmax.f32 %v12544_v17, %v12545_v43  ;;  %v12552_v25 = vrot.slane %v12551_v30, 4  ;;  %v12565_v7 = vsel %vm11843_vm4, %v11612_v10, -inf  ;;  %v11064_v54 = vadd.f32 %v11021_v23, %v10567_v38 }
 0x5fd   : > { %v12560_v8 = vmax.f32 %v12558_v52, %v12559_v22  ;;  %v12566_v1 = vrot.slane %v12565_v7, 4  ;;  %v11695_v44 = vrot.slane %v11681_v28, %v20828_v31  ;;  %v11696_v61 = vcombine.high %v11688_v13, %v11688_v13  ;;  %v10527_v52 = vpop.f32.mrf.mxu0 }
 0x5fe   : > { %v12547_v60 = vrot.slane %v12546_v27, 2  ;;  %v12553_v56 = vmax.f32 %v12551_v30, %v12552_v25  ;;  %v12684_v18 = vsel %vm11843_vm4, %v11688_v13, -inf  ;;  %v11103_v5 = vadd.f32 %v21671_v12, %v11064_v54 }
 0x5ff   : > { %v12561_v33 = vrot.slane %v12560_v8, 2  ;;  %v12567_v58 = vmax.f32 %v12565_v7, %v12566_v1  ;;  %v11697_v48 = vcombine.high %v11695_v44, %v11695_v44  ;;  %v12685_v19 = vrot.slane %v12684_v18, 4 }
 0x600   : > { %v12548_v9 = vmax.f32 %v12546_v27, %v12547_v60  ;;  %v12554_v35 = vrot.slane %v12553_v56, 2  ;;  %v12691_v53 = vsel %vm11843_vm4, %v11696_v61, -inf  ;;  %v12698_v55 = vsel %vm11843_vm4, %v11695_v44, -inf  ;;  %v11024_v61 = vpop.f32.mrf.mxu1  ;;  %v22133_v60 = vld [vmem:[#allocation28_spill] sm:$0xff] }
 0x601   : > { %v12562_v62 = vmax.f32 %v12560_v8, %v12561_v33  ;;  %v12568_v11 = vrot.slane %v12567_v58, 2  ;;  %v12686_v2 = vmax.f32 %v12684_v18, %v12685_v19  ;;  %v12692_v41 = vrot.slane %v12691_v53, 4 }
 0x602   : > { %v12549_v26 = vrot.slane %v12548_v9, 1  ;;  %v12555_v49 = vmax.f32 %v12553_v56, %v12554_v35  ;;  %v12699_v29 = vrot.slane %v12698_v55, 4  ;;  %v12705_v47 = vsel %vm11843_vm4, %v11697_v48, -inf }
 0x603   : > { %v12563_v38 = vrot.slane %v12562_v62, 1  ;;  %v12569_v42 = vmax.f32 %v12567_v58, %v12568_v11  ;;  %v12687_v0 = vrot.slane %v12686_v2, 2  ;;  %v12693_v63 = vmax.f32 %v12691_v53, %v12692_v41 }
 0x604   : > { %v12550_v57 = vmax.f32 %v12548_v9, %v12549_v26  ;;  %v12556_v21 = vrot.slane %v12555_v49, 1  ;;  %v12700_v14 = vmax.f32 %v12698_v55, %v12699_v29  ;;  %v12706_v50 = vrot.slane %v12705_v47, 4 }
 0x605   : > { %v12564_v15 = vmax.f32 %v12562_v62, %v12563_v38  ;;  %v12570_v37 = vrot.slane %v12569_v42, 1  ;;  %v12694_v24 = vrot.slane %v12693_v63, 2  ;;  %v12688_v51 = vmax.f32 %v12686_v2, %v12687_v0 }
 0x606   : > { %v12557_v59 = vmax.f32 %v12555_v49, %v12556_v21  ;;  %v12896_v39 = vsel %vm6793_vm3, %v12550_v57, -inf  ;;  %v12701_v3 = vrot.slane %v12700_v14, 2  ;;  %v12707_v43 = vmax.f32 %v12705_v47, %v12706_v50 }
 0x607   : > { %v12571_v17 = vmax.f32 %v12569_v42, %v12570_v37  ;;  %v12898_v36 = vmax.f32 %v12896_v39, %v21642_v4  ;;  %v12902_v10 = vsel %vm6793_vm3, %v12564_v15, -inf  ;;  %v12906_v30 = vsel %vm6793_vm3, %v21644_v16, -inf }
 0x608   : > { %v12899_v22 = vsel %vm6793_vm3, %v12557_v59, -inf  ;;  %v12904_v28 = vmax.f32 %v12902_v10, %v12903_v32  ;;  %v12695_v13 = vmax.f32 %v12693_v63, %v12694_v24  ;;  %v11135_v7 = vmax.f32 %v11103_v5, 0.0 }
 0x609   : > { %v12901_v23 = vmax.f32 %v12899_v22, %v21650_v6  ;;  %v12905_v27 = vsel %vm6793_vm3, %v12571_v17, -inf  ;;  %v12991_v25 = vmul.f32 %v21508_v45, %v12898_v36  ;;  %v12689_v1 = vrot.slane %v12688_v51, 1 }
 0x60a   : > { %v12907_v8 = vmax.f32 %v12905_v27, %v12906_v30  ;;  %v12993_v4 = vmul.f32 %v21508_v45, %v12904_v28  ;;  %v12702_v44 = vmax.f32 %v12700_v14, %v12701_v3  ;;  %v10568_v56 = vadd.f32 %v10527_v52, %v22133_v60 }
 0x60b   : > { %v12992_v16 = vmul.f32 %v21508_v45, %v12901_v23  ;;  %v13062_v32 = vadd.f32 %v21517_v46, %v12991_v25  ;;  %v12708_v18 = vrot.slane %v12707_v43, 2  ;;  %v12696_v33 = vrot.slane %v12695_v13, 1 }
 0x60c   : > { %v12994_v6 = vmul.f32 %v21508_v45, %v12907_v8  ;;  %v13064_v54 = vadd.f32 %v21517_v46, %v12993_v4  ;;  %v11067_v58 = vadd.f32 %v15537_v40, %v21639_v20  ;;  %v11647_v9 = vcombine.high %v11135_v7, %v11135_v7 }
 0x60d   : > { %v13063_v48 = vadd.f32 %v21517_v46, %v12992_v16  ;;  %v14526_v19 = vpack.c.bf16 %v13062_v32, %v13062_v32  ;;  %v21691_v35 = vadd.f32 %v11024_v61, %v10568_v56  ;;  %v12690_v62 = vmax.f32 %v12688_v51, %v12689_v1 }
 0x60e   : > { %v13065_v53 = vadd.f32 %v21517_v46, %v12994_v6  ;;  %v14528_v55 = vpack.c.bf16 %v13064_v54, %v13064_v54  ;;  %v12703_v11 = vrot.slane %v12702_v44, 1  ;;  %v12709_v26 = vmax.f32 %v12707_v43, %v12708_v18 }
 0x60f   : > { %v14527_v2 = vpack.c.bf16 %v13063_v48, %v13063_v48  ;;  %v13382_v41 = vunpack.c.l.b16 %v14526_v19  ;;  %v11654_v49 = vrot.slane %v11135_v7, %v20828_v31  ;;  %v12697_v38 = vmax.f32 %v12695_v13, %v12696_v33 }
 0x610   : > { %v14529_v29 = vpack.c.bf16 %v13065_v53, %v13065_v53  ;;  %v13384_v47 = vunpack.c.l.b16 %v14528_v55  ;;  %v11661_v20 = vrot.slane %v11647_v9, %v20828_v31  ;;  %v11106_v57 = vadd.f32 %v21671_v12, %v11067_v58 }
 0x611   : > { %v13383_v42 = vunpack.c.l.b16 %v14527_v2  ;;  %v13491_v0 = vrot.slane %v13382_v41, 4  ;;  %v11662_v63 = vcombine.high %v11654_v49, %v11654_v49  ;;  %v12628_v15 = vsel %vm11843_vm4, %v11654_v49, -inf }
 0x612   : > { %v13385_v21 = vunpack.c.l.b16 %v14529_v29  ;;  %v13495_v14 = vrot.slane %v13384_v47, 2  ;;  %v11663_v50 = vcombine.high %v11661_v20, %v11661_v20  ;;  %v12710_v5 = vrot.slane %v12709_v26, 1 }
 0x613   : > { %v13492_v37 = vsel %vm13404_vm12, %v13491_v0, %v21657_v34  ;;  %v13493_v24 = vrot.slane %v13383_v42, 3  ;;  %v12629_v59 = vrot.slane %v12628_v15, 4  ;;  %v12635_v51 = vsel %vm11843_vm4, %v11662_v63, -inf }
 0x614   : > { %v13497_v39 = vrot.slane %v13385_v21, 1  ;;  %v12642_v3 = vsel %vm11843_vm4, %v11661_v20, -inf  ;;  %v12649_v40 = vsel %vm11843_vm4, %v11663_v50, -inf  ;;  %v12636_v10 = vrot.slane %v12635_v51, 4 }
 0x615   : > { %v13494_v17 = vsel %vm13407_vm13, %v13493_v24, %v13492_v37  ;;  %v12630_v36 = vmax.f32 %v12628_v15, %v12629_v59  ;;  %v12643_v43 = vrot.slane %v12642_v3, 4  ;;  %v12704_v30 = vmax.f32 %v12702_v44, %v12703_v11 }
 0x616   : > { %v13496_v52 = vsel %vm13410_vm14, %v13495_v14, %v13494_v17  ;;  %v12650_v34 = vrot.slane %v12649_v40, 4  ;;  %v11138_v22 = vmax.f32 %v11106_v57, 0.0  ;;  %v12637_v23 = vmax.f32 %v12635_v51, %v12636_v10 }
 0x617   : > { %v13498_v28 = vsel %vm13413_vm15, %v13497_v39, %v13496_v52  ;;  %v12631_v13 = vrot.slane %v12630_v36, 2  ;;  %v12644_v27 = vmax.f32 %v12642_v3, %v12643_v43  ;;  %v12711_v1 = vmax.f32 %v12709_v26, %v12710_v5 }
 0x618   : > { %v13519_v25 = vpack.c.b16 %v13498_v28, %v13498_v28  ;;  %v12651_v7 = vmax.f32 %v12649_v40, %v12650_v34  ;;  %v11698_v8 = vcombine.high %v11138_v22, %v11138_v22  ;;  %v11705_v4 = vrot.slane %v11138_v22, %v20828_v31 }
 0x619   : > { %v12632_v61 = vmax.f32 %v12630_v36, %v12631_v13  ;;  %v12638_v60 = vrot.slane %v12637_v23, 2  ;;  %v12645_v56 = vrot.slane %v12644_v27, 2  ;;  %v12909_v6 = vsel %vm6793_vm3, %v12690_v62, -inf }
 0x61a   : > { %13535 = vst.msk [vmem:[%s21001_s17 + $0x18] sm:$0xf] %vm5634_vm6, %v13519_v25  ;;  %v12652_v16 = vrot.slane %v12651_v7, 2  ;;  %v11712_v44 = vrot.slane %v11698_v8, %v20828_v31  ;;  %v11713_v32 = vcombine.high %v11705_v4, %v11705_v4  ;;  %v12712_v18 = vsel %vm11843_vm4, %v11705_v4, -inf }
 0x61b   : > { %v12633_v54 = vrot.slane %v12632_v61, 1  ;;  %v12639_v33 = vmax.f32 %v12637_v23, %v12638_v60  ;;  %v12646_v58 = vmax.f32 %v12644_v27, %v12645_v56  ;;  %v12912_v48 = vsel %vm6793_vm3, %v12697_v38, -inf }
 0x61c   : > { %v12653_v19 = vmax.f32 %v12651_v7, %v12652_v16  ;;  %v11714_v9 = vcombine.high %v11712_v44, %v11712_v44  ;;  %v12719_v53 = vsel %vm11843_vm4, %v11713_v32, -inf  ;;  %v12713_v41 = vrot.slane %v12712_v18, 4 }
 0x61d   : > { %v12634_v55 = vmax.f32 %v12632_v61, %v12633_v54  ;;  %v12640_v11 = vrot.slane %v12639_v33, 1  ;;  %v12647_v2 = vrot.slane %v12646_v58, 1  ;;  %v12915_v26 = vsel %vm6793_vm3, %v12704_v30, -inf }
 0x61e   : > { %v12918_v49 = vsel %vm6793_vm3, %v12711_v1, -inf  ;;  %v12654_v29 = vrot.slane %v12653_v19, 1  ;;  %v12726_v62 = vsel %vm11843_vm4, %v11712_v44, -inf  ;;  %v12720_v38 = vrot.slane %v12719_v53, 4 }
 0x61f   : > { %v12641_v47 = vmax.f32 %v12639_v33, %v12640_v11  ;;  %v12648_v20 = vmax.f32 %v12646_v58, %v12647_v2  ;;  %v12908_v42 = vsel %vm6793_vm3, %v12634_v55, -inf  ;;  %v12733_v57 = vsel %vm11843_vm4, %v11714_v9, -inf }
 0x620   : > { %v12655_v0 = vmax.f32 %v12653_v19, %v12654_v29  ;;  %v12910_v63 = vmax.f32 %v12908_v42, %v12909_v6  ;;  %v11104_v21 = vadd.f32 %v21671_v12, %v21691_v35  ;;  %v12714_v15 = vmax.f32 %v12712_v18, %v12713_v41 }
 0x621   : > { %v12911_v14 = vsel %vm6793_vm3, %v12641_v47, -inf  ;;  %v12914_v50 = vsel %vm6793_vm3, %v12648_v20, -inf  ;;  %v12727_v37 = vrot.slane %v12726_v62, 4  ;;  %v12721_v3 = vmax.f32 %v12719_v53, %v12720_v38 }
 0x622   : > { %v12913_v24 = vmax.f32 %v12911_v14, %v12912_v48  ;;  %v12916_v5 = vmax.f32 %v12914_v50, %v12915_v26  ;;  %v12917_v59 = vsel %vm6793_vm3, %v12655_v0, -inf  ;;  %v12995_v39 = vmul.f32 %v21508_v45, %v12910_v63 }
 0x623   : > { %v12919_v51 = vmax.f32 %v12917_v59, %v12918_v49  ;;  %v12734_v40 = vrot.slane %v12733_v57, 4  ;;  %v12715_v10 = vrot.slane %v12714_v15, 2  ;;  %v11136_v43 = vmax.f32 %v11104_v21, 0.0 }
 0x624   : > { %v12996_v17 = vmul.f32 %v21508_v45, %v12913_v24  ;;  %v12997_v36 = vmul.f32 %v21508_v45, %v12916_v5  ;;  %v13066_v12 = vadd.f32 %v21517_v46, %v12995_v39  ;;  %v12728_v34 = vmax.f32 %v12726_v62, %v12727_v37 }
 0x625   : > { %v12998_v35 = vmul.f32 %v21508_v45, %v12919_v51  ;;  %v12722_v28 = vrot.slane %v12721_v3, 2  ;;  %v12735_v13 = vmax.f32 %v12733_v57, %v12734_v40  ;;  %v12716_v8 = vmax.f32 %v12714_v15, %v12715_v10 }
 0x626   : > { %v13067_v52 = vadd.f32 %v21517_v46, %v12996_v17  ;;  %v13068_v30 = vadd.f32 %v21517_v46, %v12997_v36  ;;  %v14530_v23 = vpack.c.bf16 %v13066_v12, %v13066_v12  ;;  %v11664_v4 = vcombine.high %v11136_v43, %v11136_v43 }
 0x627   : > { %v13069_v22 = vadd.f32 %v21517_v46, %v12998_v35  ;;  %v12729_v45 = vrot.slane %v12728_v34, 2  ;;  %v11671_v60 = vrot.slane %v11136_v43, %v20828_v31  ;;  %v12723_v16 = vmax.f32 %v12721_v3, %v12722_v28 }
 0x628   : > { %v14531_v27 = vpack.c.bf16 %v13067_v52, %v13067_v52  ;;  %v14532_v25 = vpack.c.bf16 %v13068_v30, %v13068_v30  ;;  %v12736_v44 = vrot.slane %v12735_v13, 2  ;;  %v11678_v32 = vrot.slane %v11664_v4, %v20828_v31 }
 0x629   : > { %v14533_v7 = vpack.c.bf16 %v13069_v22, %v13069_v22  ;;  %v13386_v18 = vunpack.c.l.b16 %v14530_v23  ;;  %v11679_v54 = vcombine.high %v11671_v60, %v11671_v60  ;;  %v12656_v48 = vsel %vm11843_vm4, %v11671_v60, -inf  ;;  %v15758_v60 = vld [vmem:[%s21819_s7] ss:$0 sm:$0xff] }
 0x62a   : > { %v13387_v1 = vunpack.c.l.b16 %v14531_v27  ;;  %v13388_v61 = vunpack.c.l.b16 %v14532_v25  ;;  %v11680_v58 = vcombine.high %v11678_v32, %v11678_v32  ;;  %v12670_v19 = vsel %vm11843_vm4, %v11678_v32, -inf }
 0x62b   : > { %v13389_v56 = vunpack.c.l.b16 %v14533_v7  ;;  %v12730_v53 = vmax.f32 %v12728_v34, %v12729_v45  ;;  %v12657_v55 = vrot.slane %v12656_v48, 4  ;;  %v12663_v11 = vsel %vm11843_vm4, %v11679_v54, -inf }
 0x62c   : > { %v13499_v46 = vrot.slane %v13387_v1, 7  ;;  %v13501_v6 = vrot.slane %v13388_v61, 6  ;;  %v12664_v41 = vrot.slane %v12663_v11, 4  ;;  %v12671_v31 = vrot.slane %v12670_v19, 4 }
 0x62d   : > { %v13503_v33 = vrot.slane %v13389_v56, 5  ;;  %v12677_v26 = vsel %vm11843_vm4, %v11680_v58, -inf  ;;  %v12737_v49 = vmax.f32 %v12735_v13, %v12736_v44  ;;  %v12658_v29 = vmax.f32 %v12656_v48, %v12657_v55 }
 0x62e   : > { %v13500_v9 = vsel %vm13395_vm7, %v13499_v46, %v13386_v18  ;;  %v12678_v62 = vrot.slane %v12677_v26, 4  ;;  %v12665_v20 = vmax.f32 %v12663_v11, %v12664_v41  ;;  %v12672_v42 = vmax.f32 %v12670_v19, %v12671_v31  ;;  %v15759_v18 = vld [vmem:[%s21820_s8] ss:$0 sm:$0xff] }
 0x62f   : > { %v13502_v2 = vsel %vm13398_vm8, %v13501_v6, %v13500_v9  ;;  %v12717_v38 = vrot.slane %v12716_v8, 1  ;;  %v12724_v0 = vrot.slane %v12723_v16, 1  ;;  %v12659_v63 = vrot.slane %v12658_v29, 2 }
 0x630   : > { %v13504_v47 = vsel %vm13401_vm10, %v13503_v33, %v13502_v2  ;;  %v12679_v57 = vmax.f32 %v12677_v26, %v12678_v62  ;;  %v12731_v21 = vrot.slane %v12730_v53, 1  ;;  %v12666_v14 = vrot.slane %v12665_v20, 2 }
 0x631   : > { %v12673_v50 = vrot.slane %v12672_v42, 2  ;;  %v12738_v15 = vrot.slane %v12737_v49, 1  ;;  %v12660_v37 = vmax.f32 %v12658_v29, %v12659_v63  ;;  %v12718_v39 = vmax.f32 %v12716_v8, %v12717_v38 }
 0x632   : > { %v12680_v24 = vrot.slane %v12679_v57, 2  ;;  %v12667_v5 = vmax.f32 %v12665_v20, %v12666_v14  ;;  %v12725_v51 = vmax.f32 %v12723_v16, %v12724_v0  ;;  %v12732_v17 = vmax.f32 %v12730_v53, %v12731_v21 }
 0x633   : > { %v12674_v59 = vmax.f32 %v12672_v42, %v12673_v50  ;;  %v12661_v3 = vrot.slane %v12660_v37, 1  ;;  %v12739_v35 = vmax.f32 %v12737_v49, %v12738_v15  ;;  %v12921_v34 = vsel %vm6793_vm3, %v12718_v39, -inf }
 0x634   : > { %v12681_v40 = vmax.f32 %v12679_v57, %v12680_v24  ;;  %v12668_v36 = vrot.slane %v12667_v5, 1  ;;  %v12924_v22 = vsel %vm6793_vm3, %v12725_v51, -inf  ;;  %v12927_v23 = vsel %vm6793_vm3, %v12732_v17, -inf }
 0x635   : > { %v12675_v12 = vrot.slane %v12674_v59, 1  ;;  %v12662_v10 = vmax.f32 %v12660_v37, %v12661_v3  ;;  %v12930_v8 = vsel %vm6793_vm3, %v12739_v35, -inf }
 0x636   : > { %v12682_v43 = vrot.slane %v12681_v40, 1  ;;  %v12669_v52 = vmax.f32 %v12667_v5, %v12668_v36 }
 0x637   : > { %v12676_v30 = vmax.f32 %v12674_v59, %v12675_v12  ;;  %v12920_v13 = vsel %vm6793_vm3, %v12662_v10, -inf }
 0x638   : > { %v12683_v28 = vmax.f32 %v12681_v40, %v12682_v43  ;;  %v12922_v27 = vmax.f32 %v12920_v13, %v12921_v34  ;;  %v12923_v25 = vsel %vm6793_vm3, %v12669_v52, -inf }
 0x639   : > { %v12926_v7 = vsel %vm6793_vm3, %v12676_v30, -inf  ;;  %v12925_v4 = vmax.f32 %v12923_v25, %v12924_v22 }
 0x63a   : > { %v12928_v1 = vmax.f32 %v12926_v7, %v12927_v23  ;;  %v12929_v61 = vsel %vm6793_vm3, %v12683_v28, -inf  ;;  %v12999_v56 = vmul.f32 %v15758_v60, %v12922_v27 }
 0x63b   : > { %v12931_v45 = vmax.f32 %v12929_v61, %v12930_v8  ;;  %v13000_v16 = vmul.f32 %v15758_v60, %v12925_v4 }
 0x63c   : > { %v13001_v44 = vmul.f32 %v15758_v60, %v12928_v1  ;;  %v13070_v46 = vadd.f32 %v15759_v18, %v12999_v56 }
 0x63d   : > { %v13002_v32 = vmul.f32 %v15758_v60, %v12931_v45  ;;  %v13071_v6 = vadd.f32 %v15759_v18, %v13000_v16 }
 0x63e   : > { %v13072_v54 = vadd.f32 %v15759_v18, %v13001_v44  ;;  %v14534_v58 = vpack.c.bf16 %v13070_v46, %v13070_v46 }
 0x63f   : > { %v13073_v33 = vadd.f32 %v15759_v18, %v13002_v32  ;;  %v14535_v48 = vpack.c.bf16 %v13071_v6, %v13071_v6 }
 0x640   : > { %v14536_v19 = vpack.c.bf16 %v13072_v54, %v13072_v54  ;;  %v13390_v53 = vunpack.c.l.b16 %v14534_v58 }
 0x641   : > { %v14537_v9 = vpack.c.bf16 %v13073_v33, %v13073_v33  ;;  %v13391_v55 = vunpack.c.l.b16 %v14535_v48 }
 0x642   : > { %v13392_v11 = vunpack.c.l.b16 %v14536_v19  ;;  %v13505_v41 = vrot.slane %v13390_v53, 4 }
 0x643   : > { %v13393_v2 = vunpack.c.l.b16 %v14537_v9  ;;  %v13507_v31 = vrot.slane %v13391_v55, 3 }
 0x644   : > { %v13509_v26 = vrot.slane %v13392_v11, 2  ;;  %v13506_v49 = vsel %vm13404_vm12, %v13505_v41, %v13504_v47 }
 0x645   : > { %v13511_v29 = vrot.slane %v13393_v2, 1  ;;  %v13508_v62 = vsel %vm13407_vm13, %v13507_v31, %v13506_v49 }
 0x646   : > { %v13510_v20 = vsel %vm13410_vm14, %v13509_v26, %v13508_v62 }
 0x647   : > { %v13512_v42 = vsel %vm13413_vm15, %v13511_v29, %v13510_v20 }
 0x648   : > { %v13520_v47 = vpack.c.b16 %v13512_v42, %v13512_v42 }
 0x64a   : > { %13536 = vst.msk [vmem:[%s21001_s17 + $0x1c] sm:$0xf] %vm5634_vm6, %v13520_v47 }
 0x64b   : > { %15773 = shalt.err (!%p15770_p3)
}
 0x64c   : > { %s15774_s14 = scalar_lea.hbm %s21764_s23, 512  ;;  %s15778_s29 = scalar_lea.hbm %s21821_s9, 1024 }
 0x64d   : > { %p15775_p4 = scmp.ne.s32.totalorder %s21764_s23, %s15774_s14  ;;  %p15779_p9 = scmp.lt.s32.totalorder %s21764_s23, %s21821_s9 }
 0x64e   : > { %p15780_p10 = scmp.lt.s32.totalorder %s15778_s29, %s15774_s14 }
 0x64f   : > { %p15776_p7 = pnand %p15775_p4, %p15915_p5 }
 0x650   : > { %p15781_p11 = por %p15780_p10, %p15779_p9 }
 0x651   : > { %p15777_p8 = pneg %p15776_p7 }
 0x653   : > { %p15782_p12 = pnand %p15781_p11, %p15777_p8 }
 0x655   : > { %15785 = shalt.err (!%p15782_p12)
}
 0x656   : > { %s15825_s24 = smov 64   ;;  %s15826_s25 = smov 4  }
 0x657   : > { %15547 = dma.vmem_to_hbm [thread:$0]  (%p15915_p5), %s21766_s16, 512, %s21764_s23, %s21772_s13, %s15825_s24, %s15825_s24, %s15826_s25  }
 0x658 PF: > { %p15553_p13 = scmp.ge.s32.totalorder %s15820_s12, 2  ;;  %s13566_s26 = sand.u32 1, %s15808_s30  }
 0x659   : > { %s13567_s27 = scalar_lea.sflag [#allocation5], %s13566_s26 }
 0x65a   : > { %p15550_p0 = pnand %p15553_p13, %p15919_p6 }
 0x65c   : > { %p15551_p1 = pneg %p15550_p0 }
 0x65e   : > { %15803 = dma.done.wait (%p15551_p1), %s13567_s27, 512  }
 0x65f   : > { %15805 = vsyncadd (%p15551_p1), %s13567_s27, 4294966784  ;;  %p19_p2 = scmp.ge.s32.totalorder %s15902_s15, 4   ;;  %s22134_s30 = smov %s15812_s10 }
 0x660   : > { %s22135_s10 = smov %s15816_s11  ;;  %s22136_s11 = smov %s15913_s18 }
 0x661   : > { %s22137_s12 = smov %s15902_s15  ;;  %21 = sbr.rel (!%p19_p2) target bundleno = 3 (0x3), region = 97 }
 0x666   :  { %13572 = vsyncpa [#allocation5], 1 }
 0x667   :  { %13574 = vsyncpa [#allocation5 + $0x1], 1 }

</bundles_post_ra>
